<compile_context>
chip_gen: v6e
topology: v6e:2x2x1
jax: 0.10.0
libtpu: 0.0.40
codegen_flags: <defaults>
</compile_context>

<pallas_src>
import functools

import jax
import jax.numpy as jnp
from jax import lax
from jax.experimental import pallas as pl
from jax.experimental.pallas import tpu as pltpu

_PAD_DIST = 1e30  # squared-norm sentinel for padded pixels: never selected


def _nla_kernel(x_ref, wd_ref, wsd_ref, b_ref, o_ref, *, k):
    """One (batch, query-tile) grid step.

    x_ref  : (1, F+1, N)    all pixels, channel-first, last row = ||x_j||^2
    wd_ref : (C_out, F+1)   diff_fc weight / k, extra zero column
    wsd_ref: (C_out, F+1)   (w_self - diff_fc) weight, extra zero column
    b_ref  : (C_out, 1)     folded bias = b_diff + b_self + bias
    o_ref  : (1, C_out, TQ) lane-dense output tile
    """
    f_aug, n = x_ref.shape[1], x_ref.shape[2]
    tq = o_ref.shape[2]

    xT = x_ref[0].astype(jnp.float32)                                # (F+1, N)

    # Query tile = lane-aligned slice of the resident full block (no extra DMA).
    qstart = pl.multiple_of(pl.program_id(1) * tq, tq)
    xq = x_ref[0, :, pl.ds(qstart, tq)].astype(jnp.float32)          # (F+1, TQ)

    # dist0 = ||x_j||^2 - 2 x_q.x_j via a single MXU contraction:
    # q_side rows 0..F-1 = -2*x_q, last row = 1 (multiplies the sq row of xT).
    # (The per-row constant ||x_q||^2 is dropped; it cannot change a row argmin.)
    row = lax.broadcasted_iota(jnp.int32, (f_aug, tq), 0)
    q_side = jnp.where(row == f_aug - 1, 1.0, -2.0 * xq)              # (F+1, TQ)
    dist0 = lax.dot_general(q_side, xT, (((0,), (0,)), ((), ())),
                            preferred_element_type=jnp.float32)       # (TQ, N)

    # (1, N) lane iota; compares broadcast it along sublanes (no (TQ,N) iota).
    col = lax.broadcasted_iota(jnp.int32, (1, n), 1)

    def select_one(_, carry):
        dist, mask = carry
        rowmin = jnp.min(dist, axis=-1, keepdims=True)                # (TQ, 1)
        cand = jnp.where(dist == rowmin, col, n)                      # tie -> lowest idx
        sel = jnp.min(cand, axis=-1, keepdims=True)                   # (TQ, 1)
        is_sel = col == sel                                           # reused compare
        mask = mask + is_sel.astype(jnp.float32)
        dist = jnp.where(is_sel, jnp.inf, dist)
        return dist, mask
    # NOTE: jnp.argmin would drop one XLU reduce per iteration; kept as the
    # min/where/min form (known-good Mosaic lowering) per review fallback advice.

    _, mask = lax.fori_loop(0, k, select_one,
                            (dist0, jnp.zeros((tq, n), jnp.float32)),
                            unroll=True)

    # Sum of the k selected neighbors, channel-first, on the MXU.
    neigh = lax.dot_general(xT, mask, (((1,), (1,)), ((), ())),
                            preferred_element_type=jnp.float32)       # (F+1, TQ)

    out = (jnp.dot(wd_ref[...], neigh, preferred_element_type=jnp.float32)
           + jnp.dot(wsd_ref[...], xq, preferred_element_type=jnp.float32)
           + b_ref[...])                                              # (C_out, TQ)
    o_ref[0] = out.astype(o_ref.dtype)


def _pick_tile_and_vmem(n_pad, f_aug, c_out):
    """Pick the query-tile width and a shape-derived VMEM limit per generation."""
    try:
        kind = jax.devices()[0].device_kind.lower()
    except Exception:  # pragma: no cover - defensive
        kind = ""
    vmem_cap = 64 * (1 << 20) if "v7" in kind else 128 * (1 << 20)

    def footprint(tq):
        inter = 6 * tq * n_pad * 4          # dist/mask/cand + select temps, f32
        x_blk = 2 * f_aug * n_pad * 4       # double-buffered full-pixel block
        o_blk = 2 * c_out * tq * 4
        return inter + x_blk + o_blk + (1 << 20)

    # v5e: keep the native 128x128 MXU tile; elsewhere prefer 256 when it fits.
    candidates = (128,) if "v5" in kind else (256, 128)
    tq = 128
    for cand in candidates:
        if n_pad % cand == 0 and footprint(cand) <= int(0.55 * vmem_cap):
            tq = cand
            break
    # TODO(synk): for very large N on v7x (64 MiB VMEM) the (TQ, N) selection
    # intermediates need a streamed per-row top-k over N chunks (and a
    # single-buffered full-x block); not implemented here.

    vmem_limit = int(min(max(footprint(tq) * 5 // 4, 32 * (1 << 20)),
                         min(int(0.8 * vmem_cap), 100 * (1 << 20))))
    return tq, vmem_limit


def non_local_aggregation(x_nchw, params, k):
    """x_nchw: (B, C_in, H, W) float32 -> (B, C_out, H, W) float32."""
    wd, bd, ws, bs, bias = params
    b, c_in, h, w = x_nchw.shape
    n = h * w
    c_out = wd.shape[0]
    f_aug = c_in + 1
    n_pad = ((n + 127) // 128) * 128

    # Channel-first pixels straight from NCHW (reshape only, no HBM transpose),
    # augmented with a precomputed ||x_j||^2 row; pad N up to a lane multiple.
    x = x_nchw.reshape(b, c_in, n).astype(jnp.float32)
    sq = jnp.sum(x * x, axis=1, keepdims=True)                        # (B, 1, N)
    if n_pad != n:
        pad = n_pad - n
        x = jnp.pad(x, ((0, 0), (0, 0), (0, pad)))
        sq = jnp.pad(sq, ((0, 0), (0, 0), (0, pad)), constant_values=_PAD_DIST)
    x_aug = jnp.concatenate([x, sq], axis=1)                          # (B, F+1, Npad)

    # Fold the affine algebra on the host (zero column nulls the sq row):
    #   out = (W_d/k)(sum_k neigh) + (W_s - W_d) x_q + (b_d + b_s + bias)
    zero_col = jnp.zeros((c_out, 1), jnp.float32)
    wd_aug = jnp.concatenate([wd.astype(jnp.float32) / float(k), zero_col], axis=1)
    wsd_aug = jnp.concatenate([(ws - wd).astype(jnp.float32), zero_col], axis=1)
    b_total = (bd + bs + bias).astype(jnp.float32).reshape(c_out, 1)

    tq, vmem_limit = _pick_tile_and_vmem(n_pad, f_aug, c_out)
    grid = (b, n_pad // tq)

    out = pl.pallas_call(
        functools.partial(_nla_kernel, k=k),
        out_shape=jax.ShapeDtypeStruct((b, c_out, n_pad), jnp.float32),
        grid=grid,
        in_specs=[
            pl.BlockSpec((1, f_aug, n_pad), lambda bi, qi: (bi, 0, 0)),  # all pixels + sq
            pl.BlockSpec((c_out, f_aug), lambda bi, qi: (0, 0)),         # W_d / k
            pl.BlockSpec((c_out, f_aug), lambda bi, qi: (0, 0)),         # W_s - W_d
            pl.BlockSpec((c_out, 1), lambda bi, qi: (0, 0)),             # folded bias
        ],
        out_specs=pl.BlockSpec((1, c_out, tq), lambda bi, qi: (bi, 0, qi)),
        compiler_params=pltpu.CompilerParams(
            dimension_semantics=("parallel", "parallel"),
            vmem_limit_bytes=vmem_limit),
    )(x_aug, wd_aug, wsd_aug, b_total)

    # Drop padded query columns; channel-first -> NCHW is a pure reshape.
    return out[:, :, :n].reshape(b, c_out, h, w)


def _reference_forward(x_nchw, params, k):
    """Plain-JAX reference mirroring the PyTorch forward (explicit gather)."""
    wd, bd, ws, bs, bias = params
    b, c_in, h, w = x_nchw.shape
    hi = jax.lax.Precision.HIGHEST
    x = jnp.transpose(x_nchw, (0, 2, 3, 1)).reshape(b, h * w, c_in)
    sq = jnp.sum(x * x, axis=-1, keepdims=True)
    dist = (sq - 2.0 * jnp.einsum("bnf,bmf->bnm", x, x, precision=hi)
            + jnp.swapaxes(sq, 1, 2))
    _, idx = jax.lax.top_k(-dist, k)                       # k smallest distances
    neigh = jax.vmap(lambda xi, ii: xi[ii])(x, idx)        # (B, N, k, F)
    diff = neigh - x[:, :, None, :]
    agg_w = jnp.einsum("bnkf,of->bnko", diff, wd, precision=hi) + bd   # diff_fc
    agg_self = jnp.einsum("bnf,of->bno", x, ws, precision=hi) + bs     # w_self
    x_new = jnp.mean(agg_w, axis=-2) + agg_self + bias
    return jnp.transpose(x_new.reshape(b, h, w, -1), (0, 3, 1, 2))


if __name__ == "__main__":
    B, C_IN, H, W = 2, 4, 16, 16
    C_OUT, K = 8, 4

    key = jax.random.PRNGKey(0)
    kx, kwd, kbd, kws, kbs, kb = jax.random.split(key, 6)

    x = jax.random.normal(kx, (B, C_IN, H, W), dtype=jnp.float32)
    # deterministic params (nn.Linear(input_channels, out_channels) x2 + bias)
    wd = jax.random.normal(kwd, (C_OUT, C_IN), dtype=jnp.float32) * 0.1
    bd = jax.random.normal(kbd, (C_OUT,), dtype=jnp.float32) * 0.1
    ws = jax.random.normal(kws, (C_OUT, C_IN), dtype=jnp.float32) * 0.1
    bs = jax.random.normal(kbs, (C_OUT,), dtype=jnp.float32) * 0.1
    bias = jax.random.normal(kb, (C_OUT,), dtype=jnp.float32)
    params = (wd, bd, ws, bs, bias)

    out = jax.block_until_ready(non_local_aggregation(x, params, K))
    ref = jax.block_until_ready(_reference_forward(x, params, K))

    assert out.shape == (B, C_OUT, H, W)
    assert jnp.max(jnp.abs(out - ref)) < 2e-4, "mismatch vs JAX reference"

    print("KERNEL_OK")
</pallas_src>

<mosaic_0001>
module attributes {stable_mosaic.version = 11 : i64} {
  func.func @_nla_kernel(%arg0: i32, %arg1: i32, %arg2: memref<1x5x256xf32, #tpu.memory_space<vmem>>, %arg3: memref<8x5xf32, #tpu.memory_space<vmem>>, %arg4: memref<8x5xf32, #tpu.memory_space<vmem>>, %arg5: memref<8x1xf32, #tpu.memory_space<vmem>>, %arg6: memref<1x8x256xf32, #tpu.memory_space<vmem>>) attributes {dimension_semantics = [#tpu.dimension_semantics<parallel>, #tpu.dimension_semantics<parallel>], iteration_bounds = array<i64: 2, 1>, scalar_prefetch = 0 : i64, scratch_operands = 0 : i64, tpu.core_type = #tpu.core_type<tc>, window_params = [{transform_indices = @transform_0, window_bounds = array<i64: 1, 5, 256>}, {pipeline_mode = #tpu.pipeline_mode<synchronous>, transform_indices = @transform_1, window_bounds = array<i64: 8, 5>}, {pipeline_mode = #tpu.pipeline_mode<synchronous>, transform_indices = @transform_2, window_bounds = array<i64: 8, 5>}, {pipeline_mode = #tpu.pipeline_mode<synchronous>, transform_indices = @transform_3, window_bounds = array<i64: 8, 1>}, {transform_indices = @transform_4, window_bounds = array<i64: 1, 8, 256>}]} {
    %c0 = arith.constant 0 : index
    %c0_0 = arith.constant 0 : index
    %c0_1 = arith.constant 0 : index
    %0 = vector.load %arg2[%c0, %c0_0, %c0_1] : memref<1x5x256xf32, #tpu.memory_space<vmem>>, vector<1x5x256xf32>
    %1 = vector.shape_cast %0 : vector<1x5x256xf32> to vector<5x256xf32>
    %c256_i32 = arith.constant 256 : i32
    %2 = arith.muli %arg1, %c256_i32 : i32
    %3 = tpu.assume_multiple %2, 256 : i32
    %c0_2 = arith.constant 0 : index
    %c0_3 = arith.constant 0 : index
    %4 = arith.index_cast %3 : i32 to index
    %5 = vector.load %arg2[%c0_2, %c0_3, %4] : memref<1x5x256xf32, #tpu.memory_space<vmem>>, vector<1x5x256xf32>
    %6 = vector.shape_cast %5 : vector<1x5x256xf32> to vector<5x256xf32>
    %7 = tpu.iota {dimensions = array<i32: 0>} : vector<5x256xi32>
    %c4_i32 = arith.constant 4 : i32
    %8 = vector.broadcast %c4_i32 : i32 to vector<5x256xi32>
    %9 = arith.cmpi eq, %7, %8 : vector<5x256xi32>
    %cst = arith.constant -2.000000e+00 : f32
    %10 = vector.broadcast %cst : f32 to vector<5x256xf32>
    %11 = arith.mulf %10, %6 : vector<5x256xf32>
    %cst_4 = arith.constant 1.000000e+00 : f32
    %12 = vector.broadcast %cst_4 : f32 to vector<5x256xf32>
    %13 = arith.select %9, %12, %11 : vector<5x256xi1>, vector<5x256xf32>
    %cst_5 = arith.constant dense<0.000000e+00> : vector<256x256xf32>
    %14 = tpu.matmul %13, %1, %cst_5 {dimension_numbers = #tpu.dot_dimension_numbers<[0], [0], [1], [1], [0, 1, 1, 1], [], []>} : vector<5x256xf32>, vector<5x256xf32>, vector<256x256xf32> -> vector<256x256xf32>
    %15 = tpu.iota {dimensions = array<i32: 1>} : vector<1x256xi32>
    %cst_6 = arith.constant 0.000000e+00 : f32
    %16 = vector.broadcast %cst_6 : f32 to vector<256x256xf32>
    %c0_i32 = arith.constant 0 : i32
    %cst_7 = arith.constant dense<0x7F800000> : vector<256xf32>
    %17 = vector.multi_reduction <minimumf>, %14, %cst_7 [1] : vector<256x256xf32> to vector<256xf32>
    %18 = vector.shape_cast %17 : vector<256xf32> to vector<256x1xf32>
    %19 = vector.broadcast %18 : vector<256x1xf32> to vector<256x256xf32>
    %20 = arith.cmpf oeq, %14, %19 : vector<256x256xf32>
    %c256_i32_8 = arith.constant 256 : i32
    %21 = vector.shape_cast %15 : vector<1x256xi32> to vector<1x256xi32>
    %22 = vector.broadcast %21 : vector<1x256xi32> to vector<256x256xi32>
    %23 = vector.broadcast %c256_i32_8 : i32 to vector<256x256xi32>
    %24 = arith.select %20, %22, %23 : vector<256x256xi1>, vector<256x256xi32>
    %cst_9 = arith.constant dense<2147483647> : vector<256xi32>
    %25 = vector.multi_reduction <minsi>, %24, %cst_9 [1] : vector<256x256xi32> to vector<256xi32>
    %26 = vector.shape_cast %25 : vector<256xi32> to vector<256x1xi32>
    %27 = vector.broadcast %15 : vector<1x256xi32> to vector<256x256xi32>
    %28 = vector.broadcast %26 : vector<256x1xi32> to vector<256x256xi32>
    %29 = arith.cmpi eq, %27, %28 : vector<256x256xi32>
    %30 = arith.extui %29 : vector<256x256xi1> to vector<256x256xi32>
    %31 = arith.sitofp %30 : vector<256x256xi32> to vector<256x256xf32>
    %32 = arith.addf %16, %31 : vector<256x256xf32>
    %cst_10 = arith.constant 0x7F800000 : f32
    %33 = vector.broadcast %cst_10 : f32 to vector<256x256xf32>
    %34 = arith.select %29, %33, %14 : vector<256x256xi1>, vector<256x256xf32>
    %c1_i32 = arith.constant 1 : i32
    %cst_11 = arith.constant dense<0x7F800000> : vector<256xf32>
    %35 = vector.multi_reduction <minimumf>, %34, %cst_11 [1] : vector<256x256xf32> to vector<256xf32>
    %36 = vector.shape_cast %35 : vector<256xf32> to vector<256x1xf32>
    %37 = vector.broadcast %36 : vector<256x1xf32> to vector<256x256xf32>
    %38 = arith.cmpf oeq, %34, %37 : vector<256x256xf32>
    %c256_i32_12 = arith.constant 256 : i32
    %39 = vector.shape_cast %15 : vector<1x256xi32> to vector<1x256xi32>
    %40 = vector.broadcast %39 : vector<1x256xi32> to vector<256x256xi32>
    %41 = vector.broadcast %c256_i32_12 : i32 to vector<256x256xi32>
    %42 = arith.select %38, %40, %41 : vector<256x256xi1>, vector<256x256xi32>
    %cst_13 = arith.constant dense<2147483647> : vector<256xi32>
    %43 = vector.multi_reduction <minsi>, %42, %cst_13 [1] : vector<256x256xi32> to vector<256xi32>
    %44 = vector.shape_cast %43 : vector<256xi32> to vector<256x1xi32>
    %45 = vector.broadcast %15 : vector<1x256xi32> to vector<256x256xi32>
    %46 = vector.broadcast %44 : vector<256x1xi32> to vector<256x256xi32>
    %47 = arith.cmpi eq, %45, %46 : vector<256x256xi32>
    %48 = arith.extui %47 : vector<256x256xi1> to vector<256x256xi32>
    %49 = arith.sitofp %48 : vector<256x256xi32> to vector<256x256xf32>
    %50 = arith.addf %32, %49 : vector<256x256xf32>
    %cst_14 = arith.constant 0x7F800000 : f32
    %51 = vector.broadcast %cst_14 : f32 to vector<256x256xf32>
    %52 = arith.select %47, %51, %34 : vector<256x256xi1>, vector<256x256xf32>
    %c2_i32 = arith.constant 2 : i32
    %cst_15 = arith.constant dense<0x7F800000> : vector<256xf32>
    %53 = vector.multi_reduction <minimumf>, %52, %cst_15 [1] : vector<256x256xf32> to vector<256xf32>
    %54 = vector.shape_cast %53 : vector<256xf32> to vector<256x1xf32>
    %55 = vector.broadcast %54 : vector<256x1xf32> to vector<256x256xf32>
    %56 = arith.cmpf oeq, %52, %55 : vector<256x256xf32>
    %c256_i32_16 = arith.constant 256 : i32
    %57 = vector.shape_cast %15 : vector<1x256xi32> to vector<1x256xi32>
    %58 = vector.broadcast %57 : vector<1x256xi32> to vector<256x256xi32>
    %59 = vector.broadcast %c256_i32_16 : i32 to vector<256x256xi32>
    %60 = arith.select %56, %58, %59 : vector<256x256xi1>, vector<256x256xi32>
    %cst_17 = arith.constant dense<2147483647> : vector<256xi32>
    %61 = vector.multi_reduction <minsi>, %60, %cst_17 [1] : vector<256x256xi32> to vector<256xi32>
    %62 = vector.shape_cast %61 : vector<256xi32> to vector<256x1xi32>
    %63 = vector.broadcast %15 : vector<1x256xi32> to vector<256x256xi32>
    %64 = vector.broadcast %62 : vector<256x1xi32> to vector<256x256xi32>
    %65 = arith.cmpi eq, %63, %64 : vector<256x256xi32>
    %66 = arith.extui %65 : vector<256x256xi1> to vector<256x256xi32>
    %67 = arith.sitofp %66 : vector<256x256xi32> to vector<256x256xf32>
    %68 = arith.addf %50, %67 : vector<256x256xf32>
    %cst_18 = arith.constant 0x7F800000 : f32
    %69 = vector.broadcast %cst_18 : f32 to vector<256x256xf32>
    %70 = arith.select %65, %69, %52 : vector<256x256xi1>, vector<256x256xf32>
    %c3_i32 = arith.constant 3 : i32
    %cst_19 = arith.constant dense<0x7F800000> : vector<256xf32>
    %71 = vector.multi_reduction <minimumf>, %70, %cst_19 [1] : vector<256x256xf32> to vector<256xf32>
    %72 = vector.shape_cast %71 : vector<256xf32> to vector<256x1xf32>
    %73 = vector.broadcast %72 : vector<256x1xf32> to vector<256x256xf32>
    %74 = arith.cmpf oeq, %70, %73 : vector<256x256xf32>
    %c256_i32_20 = arith.constant 256 : i32
    %75 = vector.shape_cast %15 : vector<1x256xi32> to vector<1x256xi32>
    %76 = vector.broadcast %75 : vector<1x256xi32> to vector<256x256xi32>
    %77 = vector.broadcast %c256_i32_20 : i32 to vector<256x256xi32>
    %78 = arith.select %74, %76, %77 : vector<256x256xi1>, vector<256x256xi32>
    %cst_21 = arith.constant dense<2147483647> : vector<256xi32>
    %79 = vector.multi_reduction <minsi>, %78, %cst_21 [1] : vector<256x256xi32> to vector<256xi32>
    %80 = vector.shape_cast %79 : vector<256xi32> to vector<256x1xi32>
    %81 = vector.broadcast %15 : vector<1x256xi32> to vector<256x256xi32>
    %82 = vector.broadcast %80 : vector<256x1xi32> to vector<256x256xi32>
    %83 = arith.cmpi eq, %81, %82 : vector<256x256xi32>
    %84 = arith.extui %83 : vector<256x256xi1> to vector<256x256xi32>
    %85 = arith.sitofp %84 : vector<256x256xi32> to vector<256x256xf32>
    %86 = arith.addf %68, %85 : vector<256x256xf32>
    %cst_22 = arith.constant 0x7F800000 : f32
    %87 = vector.broadcast %cst_22 : f32 to vector<256x256xf32>
    %88 = arith.select %83, %87, %70 : vector<256x256xi1>, vector<256x256xf32>
    %cst_23 = arith.constant dense<0.000000e+00> : vector<5x256xf32>
    %89 = tpu.matmul %1, %86, %cst_23 {dimension_numbers = #tpu.dot_dimension_numbers<[1], [1], [0], [0], [0, 0, 1, 0], [], []>} : vector<5x256xf32>, vector<256x256xf32>, vector<5x256xf32> -> vector<5x256xf32>
    %c0_24 = arith.constant 0 : index
    %c0_25 = arith.constant 0 : index
    %90 = vector.load %arg3[%c0_24, %c0_25] : memref<8x5xf32, #tpu.memory_space<vmem>>, vector<8x5xf32>
    %cst_26 = arith.constant dense<0.000000e+00> : vector<8x256xf32>
    %91 = tpu.matmul %90, %89, %cst_26 {dimension_numbers = #tpu.dot_dimension_numbers<[1], [0], [0], [1], [0, 0, 1, 1], [], []>} : vector<8x5xf32>, vector<5x256xf32>, vector<8x256xf32> -> vector<8x256xf32>
    %c0_27 = arith.constant 0 : index
    %c0_28 = arith.constant 0 : index
    %92 = vector.load %arg4[%c0_27, %c0_28] : memref<8x5xf32, #tpu.memory_space<vmem>>, vector<8x5xf32>
    %cst_29 = arith.constant dense<0.000000e+00> : vector<8x256xf32>
    %93 = tpu.matmul %92, %6, %cst_29 {dimension_numbers = #tpu.dot_dimension_numbers<[1], [0], [0], [1], [0, 0, 1, 1], [], []>} : vector<8x5xf32>, vector<5x256xf32>, vector<8x256xf32> -> vector<8x256xf32>
    %94 = arith.addf %91, %93 : vector<8x256xf32>
    %c0_30 = arith.constant 0 : index
    %c0_31 = arith.constant 0 : index
    %95 = vector.load %arg5[%c0_30, %c0_31] : memref<8x1xf32, #tpu.memory_space<vmem>>, vector<8x1xf32>
    %96 = vector.broadcast %95 : vector<8x1xf32> to vector<8x256xf32>
    %97 = arith.addf %94, %96 : vector<8x256xf32>
    %c0_32 = arith.constant 0 : index
    %c0_33 = arith.constant 0 : index
    %c0_34 = arith.constant 0 : index
    %98 = vector.load %arg6[%c0_32, %c0_33, %c0_34] : memref<1x8x256xf32, #tpu.memory_space<vmem>>, vector<1x8x256xf32>
    %99 = vector.shape_cast %98 : vector<1x8x256xf32> to vector<8x256xf32>
    %100 = vector.shape_cast %97 : vector<8x256xf32> to vector<1x8x256xf32>
    tpu.vector_store %arg6[%c0_32, %c0_33, %c0_34], %100 {strides = array<i32>} : memref<1x8x256xf32, #tpu.memory_space<vmem>>, vector<1x8x256xf32>,
    return
  }
  func.func @transform_0(%arg0: i32, %arg1: i32) -> (i32, i32, i32) {
    %c0_i32 = arith.constant 0 : i32
    %c0_i32_0 = arith.constant 0 : i32
    %c0_i32_1 = arith.constant 0 : i32
    return %arg0, %c0_i32, %c0_i32_0 : i32, i32, i32
  }
  func.func @transform_1(%arg0: i32, %arg1: i32) -> (i32, i32) {
    %c0_i32 = arith.constant 0 : i32
    %c0_i32_0 = arith.constant 0 : i32
    %c0_i32_1 = arith.constant 0 : i32
    return %c0_i32, %c0_i32_0 : i32, i32
  }
  func.func @transform_2(%arg0: i32, %arg1: i32) -> (i32, i32) {
    %c0_i32 = arith.constant 0 : i32
    %c0_i32_0 = arith.constant 0 : i32
    %c0_i32_1 = arith.constant 0 : i32
    return %c0_i32, %c0_i32_0 : i32, i32
  }
  func.func @transform_3(%arg0: i32, %arg1: i32) -> (i32, i32) {
    %c0_i32 = arith.constant 0 : i32
    %c0_i32_0 = arith.constant 0 : i32
    %c0_i32_1 = arith.constant 0 : i32
    return %c0_i32, %c0_i32_0 : i32, i32
  }
  func.func @transform_4(%arg0: i32, %arg1: i32) -> (i32, i32, i32) {
    %c0_i32 = arith.constant 0 : i32
    %c0_i32_0 = arith.constant 0 : i32
    return %arg0, %c0_i32, %arg1 : i32, i32, i32
  }
}

</mosaic_0001>

<bundles_post_ra>
// kernel: tpu_custom_call.1
= control target key start
LH: loop header
LB: loop body
LE: loop exit
PB: predicated region body
PF: predicated region fallthrough
CT: control target
= control target key end

     0   :  { %9 = vsyncpa [#allocation3], 0  ;;  %s10363_s0 = inlined_call_operand.vmem [shape: f32[2,5,256], index: 0, kind: input, shape index: {}]   ;;  %s10364_s1 = inlined_call_operand.vmem [shape: f32[8,5], index: 1, kind: input, shape index: {}]   ;;  %s10365_s2 = inlined_call_operand.vmem [shape: f32[8,5], index: 2, kind: input, shape index: {}]   ;;  %s10366_s3 = inlined_call_operand.vmem [shape: f32[8,1], index: 3, kind: input, shape index: {}]   ;;  %s10367_s4 = inlined_call_operand.hbm [shape: f32[2,8,256], index: 4, kind: output, shape index: {}]  }
   0x1   :  { %11 = vsyncpa [#allocation3 + $0x1], 0  ;;  %s5623_s15 = smov 0   ;;  %s5625_s16 = smov 0  }
   0x2   :  { %s5627_s17 = smov 0   ;;  %s5629_s18 = smov 0  }
   0x3   :  { %s5631_s19 = smov 0   ;;  %s5633_s20 = smov 0  }
   0x4 LB: > { %s5147_s21 = sadd.s32 4294967295, %s5593_s20   ;;  %s5148_s22 = sadd.s32 4294967294, %s5593_s20   ;;  %s5593_s20 = sphi %s5633_s20, %s17_s20   ;;  %s5589_s19 = sphi %s5631_s19, %s11725_s19   ;;  %s5585_s18 = sphi %s5629_s18, %s11724_s18   ;;  %s5581_s17 = sphi %s5627_s17, %s11723_s17   ;;  %s5577_s16 = sphi %s5625_s16, %s11722_s16   ;;  %s5573_s15 = sphi %s5623_s15, %s11721_s15  }
   0x5   : > { %s29_s23 = sadd.s32 1, %s5589_s19  ;;  %s127_s24 = sadd.s32 1, %s5581_s17 }
   0x6   : > { %p31_p0 = scmp.ge.s32.totalorder %s29_s23, 2  ;;  %p137_p1 = scmp.ne.s32.totalorder %s5581_s17, %s5577_s16 }
   0x7   : > { %p138_p2 = scmp.eq.s32.totalorder %s5147_s21, 1  ;;  %p143_p3 = scmp.ne.s32.totalorder %s5577_s16, %s5573_s15 }
   0x8   : > { %s11727_s23 = smov (%p31_p0, %s29_s23), 0  ;;  %p144_p5 = scmp.eq.s32.totalorder %s5148_s22, 1 }
   0x9   : > { %p5663_p4 = por %p138_p2, %p137_p1  ;;  %s122_s26 = ssub.s32 %s5589_s19, %s11727_s23 }
   0xa   : > { %p5151_p6 = scmp.ge.s32.totalorder %s5593_s20, 1  ;;  %p125_p7 = scmp.eq.s32.totalorder %s122_s26, 0 }
   0xb   : > { %p5670_p8 = por %p144_p5, %p143_p3  ;;  %p179_p9 = scmp.lt.s32.totalorder %s5593_s20, 3 }
   0xc   : > { %s5676_s28 = scalar_select %p125_p7, %s5581_s17, %s127_s24  }
   0xd   : > { %p180_p10 = pnand %p5151_p6, %p179_p9 }
   0xf   : > { %183 = sbr.rel (%p180_p10) target bundleno = 2758 (0xac6), region = 36 }
  0x14   : > { %p205_p11 = scmp.lt.s32.totalorder %s5585_s18, 1  ;;  %v10370_v0 = vlaneseq  ;;  %v10368_v1 = vmov 0.0   ;;  %vm10468_vm0 = vcmask 1044480   ;;  %vm10472_vm2 = vcmask 39936   ;;  %s202_s14 = sand.u32 1, %s5577_s16  }
  0x15   : > { %459 = vmatprep.mubr.f32.mxu0 %v10368_v1  ;;  %s5152_s21 = sshll.u32 %s202_s14, 4  ;;  %s5457_s22 = sshll.u32 %s5585_s18, 8 }
  0x16   : > { %s206_s29 = scalar_select %p205_p11, %s5585_s18, 1  ;;  %v221_v2 = vshrl.u32 %v10370_v0, 7 }
  0x17   : > { %s204_s24 = scalar_lea.vmem [#allocation2], %s5152_s21  ;;  %s5073_s5 = scalar_lea.hbm %s10367_s4, %s5457_s22 }
  0x18   : > { %s5456_s30 = sshll.u32 %s206_s29, 4  ;;  %vm222_vm1 = vcmp.eq.s32.totalorder %v221_v2, 4  ;;  %s5075_s26 = sshll.u32 %s204_s24, 4  ;;  %s5076_s26 = int_to_ptr.vmem [resolvable:$true] %s5075_s26 }
  0x19   : > { %s5685_s7 = scalar_lea.vmem %s10363_s0, %s5456_s30  ;;  %s5059_s6 = scalar_lea.sflag [#allocation3], %s202_s14 }
  0x1a   : > { %v218_v3 = vld [vmem:[%s5685_s7] sm:$0x1f]  ;;  %v212_v4 = vld [vmem:[%s5685_s7 + $0x8] sm:$0x1f]  ;;  %s5597_s8 = smov [#allocation2]  }
  0x1b   : > { %v223_v5 = vmul.f32 -2.0, %v218_v3  ;;  %5155 = vmatprep.subr.msk.mxu0 %vm10468_vm0, %v212_v4  ;;  %v211_v6 = vld [vmem:[%s5685_s7] sm:$0x1f]  ;;  %4879 = vmatprep.mubr.f32.mxu1 %v212_v4  ;;  %v219_v7 = vld [vmem:[%s5685_s7 + $0x8] sm:$0x1f]  ;;  %s5521_s18 = sshll.u32 %s5597_s8, 4  ;;  %s5522_s18 = int_to_ptr.vmem [resolvable:$false] %s5521_s18 }
  0x1c   : > { %5156 = vmatpush1.msk.msra.mxu0 %vm10468_vm0, %v211_v6  ;;  %v224_v9 = vmul.f32 -2.0, %v219_v7  ;;  %s5523_s9 = scalar_lea.vmem %s5522_s18, 512  ;;  %p5524_p1 = scmp.lt.s32.totalorder %s5076_s26, %s5522_s18 }
  0x1d   : > { %v225_v8 = vsel %vm222_vm1, 1.0, %v223_v5  ;;  %5445 = vmatprep.subr.msk.mxu0 %vm10468_vm0, %v219_v7 }
  0x1e   : > { %227 = vxpose.xlu0.b32.start.end [1/1] (short) %v225_v8, 128  ;;  %v226_v10 = vsel %vm222_vm1, 1.0, %v224_v9 }
  0x5b   : > { %259 = vxpose.xlu0.b32.start.end [1/1] (short) %v226_v10, 128 }
  0x9a   : > { %v243_v11 = vpop.trf.xlu0 }
  0x9b   : > { %5157 = vmatmul.mubr.msk.f32.vlgmr.msra.gmra.mxu0 %vm10472_vm2, %v243_v11 }
  0x9c   : > { %465 = vmatprep.mubr.f32.mxu0 %v10368_v1  ;;  %5446 = vmatpush1.msk.msra.mxu0 %vm10468_vm0, %v218_v3 }
  0x9e   : > { %v244_v12 = vpop.trf.xlu0 }
  0x9f   : > { %5158 = vmatmul.mubr.msk.f32.gmra.mxu0 %vm10472_vm2, %v244_v12 }
  0xa0   : > { %471 = vmatprep.mubr.f32.mxu0 %v10368_v1 }
  0xa2   : > { %v245_v13 = vpop.trf.xlu0 }
  0xa3   : > { %5159 = vmatmul.mubr.msk.f32.gmra.mxu0 %vm10472_vm2, %v245_v13 }
  0xa4   : > { %477 = vmatprep.mubr.f32.mxu0 %v10368_v1 }
  0xa6   : > { %v246_v14 = vpop.trf.xlu0 }
  0xa7   : > { %5160 = vmatmul.mubr.msk.f32.gmra.mxu0 %vm10472_vm2, %v246_v14 }
  0xa8   : > { %483 = vmatprep.mubr.f32.mxu0 %v10368_v1 }
  0xaa   : > { %v247_v15 = vpop.trf.xlu0 }
  0xab   : > { %5161 = vmatmul.mubr.msk.f32.gmra.mxu0 %vm10472_vm2, %v247_v15 }
  0xac   : > { %489 = vmatprep.mubr.f32.mxu0 %v10368_v1 }
  0xae   : > { %v248_v16 = vpop.trf.xlu0 }
  0xaf   : > { %5162 = vmatmul.mubr.msk.f32.gmra.mxu0 %vm10472_vm2, %v248_v16 }
  0xb0   : > { %495 = vmatprep.mubr.f32.mxu0 %v10368_v1 }
  0xb2   : > { %v249_v17 = vpop.trf.xlu0 }
  0xb3   : > { %5163 = vmatmul.mubr.msk.f32.gmra.mxu0 %vm10472_vm2, %v249_v17 }
  0xb4   : > { %501 = vmatprep.mubr.f32.mxu0 %v10368_v1 }
  0xb6   : > { %v250_v18 = vpop.trf.xlu0 }
  0xb7   : > { %5164 = vmatmul.mubr.msk.f32.gmra.mxu0 %vm10472_vm2, %v250_v18 }
  0xb8   : > { %507 = vmatprep.mubr.f32.mxu0 %v10368_v1 }
  0xba   : > { %v251_v19 = vpop.trf.xlu0 }
  0xbb   : > { %5165 = vmatmul.mubr.msk.f32.gmra.mxu0 %vm10472_vm2, %v251_v19 }
  0xbc   : > { %513 = vmatprep.mubr.f32.mxu0 %v10368_v1 }
  0xbe   : > { %v252_v20 = vpop.trf.xlu0 }
  0xbf   : > { %5166 = vmatmul.mubr.msk.f32.gmra.mxu0 %vm10472_vm2, %v252_v20 }
  0xc0   : > { %519 = vmatprep.mubr.f32.mxu0 %v10368_v1 }
  0xc2   : > { %v253_v21 = vpop.trf.xlu0 }
  0xc3   : > { %5167 = vmatmul.mubr.msk.f32.gmra.mxu0 %vm10472_vm2, %v253_v21 }
  0xc4   : > { %525 = vmatprep.mubr.f32.mxu0 %v10368_v1 }
  0xc6   : > { %v254_v22 = vpop.trf.xlu0 }
  0xc7   : > { %5168 = vmatmul.mubr.msk.f32.gmra.mxu0 %vm10472_vm2, %v254_v22 }
  0xc8   : > { %531 = vmatprep.mubr.f32.mxu0 %v10368_v1 }
  0xca   : > { %v255_v23 = vpop.trf.xlu0 }
  0xcb   : > { %5169 = vmatmul.mubr.msk.f32.gmra.mxu0 %vm10472_vm2, %v255_v23 }
  0xcc   : > { %537 = vmatprep.mubr.f32.mxu0 %v10368_v1 }
  0xce   : > { %v256_v24 = vpop.trf.xlu0 }
  0xcf   : > { %5170 = vmatmul.mubr.msk.f32.gmra.mxu0 %vm10472_vm2, %v256_v24 }
  0xd0   : > { %543 = vmatprep.mubr.f32.mxu0 %v10368_v1 }
  0xd2   : > { %v257_v25 = vpop.trf.xlu0 }
  0xd3   : > { %5171 = vmatmul.mubr.msk.f32.gmra.mxu0 %vm10472_vm2, %v257_v25 }
  0xd4   : > { %549 = vmatprep.mubr.f32.mxu0 %v10368_v1 }
  0xd6   : > { %v258_v26 = vpop.trf.xlu0 }
  0xd7   : > { %5172 = vmatmul.mubr.msk.f32.gmra.mxu0 %vm10472_vm2, %v258_v26 }
  0xd8   : > { %555 = vmatprep.mubr.f32.mxu0 %v10368_v1 }
  0xda   : > { %v275_v27 = vpop.trf.xlu0 }
  0xdb   : > { %5173 = vmatmul.mubr.msk.f32.gmra.mxu0 %vm10472_vm2, %v275_v27 }
  0xdc   : > { %561 = vmatprep.mubr.f32.mxu0 %v10368_v1 }
  0xde   : > { %v276_v28 = vpop.trf.xlu0 }
  0xdf   : > { %5174 = vmatmul.mubr.msk.f32.gmra.mxu0 %vm10472_vm2, %v276_v28 }
  0xe0   : > { %567 = vmatprep.mubr.f32.mxu0 %v10368_v1 }
  0xe2   : > { %v277_v29 = vpop.trf.xlu0 }
  0xe3   : > { %5175 = vmatmul.mubr.msk.f32.gmra.mxu0 %vm10472_vm2, %v277_v29 }
  0xe4   : > { %573 = vmatprep.mubr.f32.mxu0 %v10368_v1 }
  0xe6   : > { %v278_v30 = vpop.trf.xlu0 }
  0xe7   : > { %5176 = vmatmul.mubr.msk.f32.gmra.mxu0 %vm10472_vm2, %v278_v30 }
  0xe8   : > { %579 = vmatprep.mubr.f32.mxu0 %v10368_v1 }
  0xea   : > { %v279_v31 = vpop.trf.xlu0 }
  0xeb   : > { %5177 = vmatmul.mubr.msk.f32.gmra.mxu0 %vm10472_vm2, %v279_v31 }
  0xec   : > { %585 = vmatprep.mubr.f32.mxu0 %v10368_v1 }
  0xee   : > { %v280_v32 = vpop.trf.xlu0 }
  0xef   : > { %5178 = vmatmul.mubr.msk.f32.gmra.mxu0 %vm10472_vm2, %v280_v32 }
  0xf0   : > { %591 = vmatprep.mubr.f32.mxu0 %v10368_v1 }
  0xf2   : > { %v281_v33 = vpop.trf.xlu0 }
  0xf3   : > { %5179 = vmatmul.mubr.msk.f32.gmra.mxu0 %vm10472_vm2, %v281_v33 }
  0xf4   : > { %597 = vmatprep.mubr.f32.mxu0 %v10368_v1 }
  0xf6   : > { %v282_v34 = vpop.trf.xlu0 }
  0xf7   : > { %5180 = vmatmul.mubr.msk.f32.gmra.mxu0 %vm10472_vm2, %v282_v34 }
  0xf8   : > { %603 = vmatprep.mubr.f32.mxu0 %v10368_v1 }
  0xfa   : > { %v283_v35 = vpop.trf.xlu0 }
  0xfb   : > { %5181 = vmatmul.mubr.msk.f32.gmra.mxu0 %vm10472_vm2, %v283_v35 }
  0xfc   : > { %609 = vmatprep.mubr.f32.mxu0 %v10368_v1 }
  0xfe   : > { %v284_v36 = vpop.trf.xlu0 }
  0xff   : > { %5182 = vmatmul.mubr.msk.f32.gmra.mxu0 %vm10472_vm2, %v284_v36 }
 0x100   : > { %615 = vmatprep.mubr.f32.mxu0 %v10368_v1 }
 0x102   : > { %v285_v37 = vpop.trf.xlu0 }
 0x103   : > { %5183 = vmatmul.mubr.msk.f32.gmra.mxu0 %vm10472_vm2, %v285_v37 }
 0x104   : > { %621 = vmatprep.mubr.f32.mxu0 %v10368_v1 }
 0x106   : > { %v286_v38 = vpop.trf.xlu0 }
 0x107   : > { %5184 = vmatmul.mubr.msk.f32.gmra.mxu0 %vm10472_vm2, %v286_v38 }
 0x108   : > { %627 = vmatprep.mubr.f32.mxu0 %v10368_v1 }
 0x10a   : > { %v287_v39 = vpop.trf.xlu0 }
 0x10b   : > { %5185 = vmatmul.mubr.msk.f32.gmra.mxu0 %vm10472_vm2, %v287_v39 }
 0x10c   : > { %633 = vmatprep.mubr.f32.mxu0 %v10368_v1 }
 0x10e   : > { %v288_v40 = vpop.trf.xlu0 }
 0x10f   : > { %5186 = vmatmul.mubr.msk.f32.gmra.mxu0 %vm10472_vm2, %v288_v40 }
 0x110   : > { %639 = vmatprep.mubr.f32.mxu0 %v10368_v1 }
 0x112   : > { %v289_v41 = vpop.trf.xlu0 }
 0x113   : > { %5187 = vmatmul.mubr.msk.f32.gmra.mxu0 %vm10472_vm2, %v289_v41 }
 0x114   : > { %645 = vmatprep.mubr.f32.mxu0 %v10368_v1 }
 0x116   : > { %v290_v42 = vpop.trf.xlu0 }
 0x117   : > { %5188 = vmatmul.mubr.msk.f32.gmra.mxu0 %vm10472_vm2, %v290_v42 }
 0x118   : > { %4961 = vmatprep.mubr.f32.mxu0 %v10368_v1 }
 0x15b   : > { %v5759_v43 = vpop.f32.mrf.mxu0 }
 0x15c   : > { %10792 = vst [vmem:[#allocation5_spill] sm:$0xff] %v5759_v43 }
 0x15d   : > { %v5761_v44 = vpop.f32.mrf.mxu0 }
 0x15e   : > { %10793 = vst [vmem:[#allocation6_spill] sm:$0xff] %v5761_v44  ;;  %v655_v36 = vmin.f32 %v5759_v43, %v5761_v44 }
 0x15f   : > { %v5763_v45 = vpop.f32.mrf.mxu0 }
 0x160   : > { %10794 = vst [vmem:[#allocation7_spill] sm:$0xff] %v5763_v45 }
 0x161   : > { %v5765_v46 = vpop.f32.mrf.mxu0 }
 0x162   : > { %10795 = vst [vmem:[#allocation8_spill] sm:$0xff] %v5765_v46  ;;  %v658_v33 = vmin.f32 %v5763_v45, %v5765_v46 }
 0x163   : > { %v5767_v47 = vpop.f32.mrf.mxu0 }
 0x164   : > { %10796 = vst [vmem:[#allocation9_spill] sm:$0xff] %v5767_v47 }
 0x165   : > { %v5769_v48 = vpop.f32.mrf.mxu0 }
 0x166   : > { %10797 = vst [vmem:[#allocation10_spill] sm:$0xff] %v5769_v48  ;;  %v661_v30 = vmin.f32 %v5767_v47, %v5769_v48 }
 0x167   : > { %v5771_v49 = vpop.f32.mrf.mxu0 }
 0x168   : > { %10798 = vst [vmem:[#allocation11_spill] sm:$0xff] %v5771_v49 }
 0x169   : > { %v5773_v50 = vpop.f32.mrf.mxu0 }
 0x16a   : > { %10799 = vst [vmem:[#allocation12_spill] sm:$0xff] %v5773_v50  ;;  %v664_v27 = vmin.f32 %v5771_v49, %v5773_v50 }
 0x16b   : > { %v5775_v51 = vpop.f32.mrf.mxu0 }
 0x16c   : > { %10800 = vst [vmem:[#allocation13_spill] sm:$0xff] %v5775_v51 }
 0x16d   : > { %v5777_v52 = vpop.f32.mrf.mxu0 }
 0x16e   : > { %10801 = vst [vmem:[#allocation14_spill] sm:$0xff] %v5777_v52  ;;  %v667_v53 = vmin.f32 %v5775_v51, %v5777_v52 }
 0x16f   : > { %v5781_v54 = vpop.f32.mrf.mxu0 }
 0x170   : > { %10802 = vst [vmem:[#allocation15_spill] sm:$0xff] %v5781_v54  ;;  %668 = vmin.xlane.f32.xlu1 %v667_v53 }
 0x171   : > { %v5783_v55 = vpop.f32.mrf.mxu0 }
 0x172   : > { %10803 = vst [vmem:[#allocation16_spill] sm:$0xff] %v5783_v55  ;;  %v670_v56 = vmin.f32 %v5781_v54, %v5783_v55 }
 0x173   : > { %v5787_v57 = vpop.f32.mrf.mxu0 }
 0x174   : > { %10804 = vst [vmem:[#allocation17_spill] sm:$0xff] %v5787_v57  ;;  %671 = vmin.xlane.f32.xlu1 %v670_v56 }
 0x175   : > { %v5789_v58 = vpop.f32.mrf.mxu0 }
 0x176   : > { %10805 = vst [vmem:[#allocation18_spill] sm:$0xff] %v5789_v58  ;;  %v673_v59 = vmin.f32 %v5787_v57, %v5789_v58 }
 0x177   : > { %v5793_v60 = vpop.f32.mrf.mxu0 }
 0x178   : > { %10806 = vst [vmem:[#allocation19_spill] sm:$0xff] %v5793_v60  ;;  %674 = vmin.xlane.f32.xlu1 %v673_v59 }
 0x179   : > { %v5795_v61 = vpop.f32.mrf.mxu0 }
 0x17a   : > { %10807 = vst [vmem:[#allocation20_spill] sm:$0xff] %v5795_v61  ;;  %v676_v62 = vmin.f32 %v5793_v60, %v5795_v61 }
 0x17b   : > { %v5799_v63 = vpop.f32.mrf.mxu0 }
 0x17c   : > { %10808 = vst [vmem:[#allocation21_spill] sm:$0xff] %v5799_v63  ;;  %677 = vmin.xlane.f32.xlu1 %v676_v62 }
 0x17d   : > { %v5801_v2 = vpop.f32.mrf.mxu0 }
 0x17e   : > { %10809 = vst [vmem:[#allocation22_spill] sm:$0xff] %v5801_v2  ;;  %v679_v3 = vmin.f32 %v5799_v63, %v5801_v2 }
 0x17f   : > { %v5805_v4 = vpop.f32.mrf.mxu0 }
 0x180   : > { %10810 = vst [vmem:[#allocation23_spill] sm:$0xff] %v5805_v4  ;;  %680 = vmin.xlane.f32.xlu1 %v679_v3 }
 0x181   : > { %v5807_v5 = vpop.f32.mrf.mxu0 }
 0x182   : > { %10811 = vst [vmem:[#allocation24_spill] sm:$0xff] %v5807_v5  ;;  %v682_v6 = vmin.f32 %v5805_v4, %v5807_v5 }
 0x183   : > { %v5811_v7 = vpop.f32.mrf.mxu0 }
 0x184   : > { %10812 = vst [vmem:[#allocation25_spill] sm:$0xff] %v5811_v7  ;;  %683 = vmin.xlane.f32.xlu1 %v682_v6 }
 0x185   : > { %v5813_v8 = vpop.f32.mrf.mxu0 }
 0x186   : > { %10813 = vst [vmem:[#allocation26_spill] sm:$0xff] %v5813_v8  ;;  %v685_v9 = vmin.f32 %v5811_v7, %v5813_v8 }
 0x187   : > { %v5817_v10 = vpop.f32.mrf.mxu0 }
 0x188   : > { %10814 = vst [vmem:[#allocation27_spill] sm:$0xff] %v5817_v10  ;;  %686 = vmin.xlane.f32.xlu1 %v685_v9 }
 0x189   : > { %v5819_v11 = vpop.f32.mrf.mxu0 }
 0x18a   : > { %10815 = vst [vmem:[#allocation28_spill] sm:$0xff] %v5819_v11  ;;  %v688_v12 = vmin.f32 %v5817_v10, %v5819_v11 }
 0x18b   : > { %v5823_v13 = vpop.f32.mrf.mxu0 }
 0x18c   : > { %10816 = vst [vmem:[#allocation29_spill] sm:$0xff] %v5823_v13  ;;  %689 = vmin.xlane.f32.xlu1 %v688_v12 }
 0x18d   : > { %v5825_v14 = vpop.f32.mrf.mxu0 }
 0x18e   : > { %10817 = vst [vmem:[#allocation30_spill] sm:$0xff] %v5825_v14  ;;  %v691_v15 = vmin.f32 %v5823_v13, %v5825_v14 }
 0x18f   : > { %v5829_v16 = vpop.f32.mrf.mxu0 }
 0x190   : > { %10818 = vst [vmem:[#allocation31_spill] sm:$0xff] %v5829_v16  ;;  %692 = vmin.xlane.f32.xlu1 %v691_v15 }
 0x191   : > { %v5831_v17 = vpop.f32.mrf.mxu0 }
 0x192   : > { %10819 = vst [vmem:[#allocation32_spill] sm:$0xff] %v5831_v17  ;;  %v694_v18 = vmin.f32 %v5829_v16, %v5831_v17 }
 0x193   : > { %v5835_v19 = vpop.f32.mrf.mxu0 }
 0x194   : > { %10820 = vst [vmem:[#allocation33_spill] sm:$0xff] %v5835_v19  ;;  %695 = vmin.xlane.f32.xlu1 %v694_v18 }
 0x195   : > { %v5837_v20 = vpop.f32.mrf.mxu0 }
 0x196   : > { %10821 = vst [vmem:[#allocation34_spill] sm:$0xff] %v5837_v20  ;;  %v697_v21 = vmin.f32 %v5835_v19, %v5837_v20 }
 0x197   : > { %v5841_v22 = vpop.f32.mrf.mxu0 }
 0x198   : > { %10822 = vst [vmem:[#allocation35_spill] sm:$0xff] %v5841_v22  ;;  %698 = vmin.xlane.f32.xlu1 %v697_v21 }
 0x199   : > { %v5843_v23 = vpop.f32.mrf.mxu0 }
 0x19a   : > { %10823 = vst [vmem:[#allocation36_spill] sm:$0xff] %v5843_v23  ;;  %v700_v24 = vmin.f32 %v5841_v22, %v5843_v23 }
 0x19b   : > { %v5847_v25 = vpop.f32.mrf.mxu0 }
 0x19c   : > { %10824 = vst [vmem:[#allocation37_spill] sm:$0xff] %v5847_v25  ;;  %701 = vmin.xlane.f32.xlu1 %v700_v24 }
 0x19d   : > { %v5849_v26 = vpop.f32.mrf.mxu0 }
 0x19e   : > { %10825 = vst [vmem:[#allocation38_spill] sm:$0xff] %v5849_v26 }
 0x19f   : > { %v5853_v28 = vpop.f32.mrf.mxu0 }
 0x1a0   : > { %10826 = vst [vmem:[#allocation39_spill] sm:$0xff] %v5853_v28  ;;  %665 = vmin.xlane.f32.xlu1 %v664_v27 }
 0x1a1   : > { %v5855_v29 = vpop.f32.mrf.mxu0 }
 0x1a2   : > { %10827 = vst [vmem:[#allocation40_spill] sm:$0xff] %v5855_v29 }
 0x1a3   : > { %v5859_v31 = vpop.f32.mrf.mxu0 }
 0x1a4   : > { %10828 = vst [vmem:[#allocation41_spill] sm:$0xff] %v5859_v31  ;;  %662 = vmin.xlane.f32.xlu1 %v661_v30 }
 0x1a5   : > { %v5861_v32 = vpop.f32.mrf.mxu0 }
 0x1a6   : > { %10829 = vst [vmem:[#allocation42_spill] sm:$0xff] %v5861_v32 }
 0x1a7   : > { %v5865_v34 = vpop.f32.mrf.mxu0 }
 0x1a8   : > { %659 = vmin.xlane.f32.xlu1 %v658_v33 }
 0x1a9   : > { %v5867_v35 = vpop.f32.mrf.mxu0 }
 0x1ab   : > { %v5871_v37 = vpop.f32.mrf.mxu0 }
 0x1ac   : > { %656 = vmin.xlane.f32.xlu1 %v655_v36 }
 0x1ad   : > { %v5873_v38 = vpop.f32.mrf.mxu0 }
 0x1af   : > { %v5875_v39 = vpop.f32.mrf.mxu0 }
 0x1b1   : > { %v5877_v40 = vpop.f32.mrf.mxu0 }
 0x1b3   : > { %v5879_v41 = vpop.f32.mrf.mxu0 }
 0x1b4   : > { %10830 = vst [vmem:[#allocation43_spill] sm:$0xff] %v5879_v41 }
 0x1b5   : > { %v5881_v42 = vpop.f32.mrf.mxu0 }
 0x1b6   : > { %10831 = vst [vmem:[#allocation44_spill] sm:$0xff] %v5881_v42 }
 0x1b7   : > { %v5883_v53 = vpop.f32.mrf.mxu0 }
 0x1b8   : > { %10832 = vst [vmem:[#allocation45_spill] sm:$0xff] %v5883_v53 }
 0x1b9   : > { %v5885_v56 = vpop.f32.mrf.mxu0 }
 0x1ba   : > { %10833 = vst [vmem:[#allocation46_spill] sm:$0xff] %v5885_v56 }
 0x1bb   : > { %v5887_v59 = vpop.f32.mrf.mxu0 }
 0x1bc   : > { %10834 = vst [vmem:[#allocation47_spill] sm:$0xff] %v5887_v59 }
 0x1bd   : > { %v5889_v62 = vpop.f32.mrf.mxu0 }
 0x1be   : > { %10835 = vst [vmem:[#allocation48_spill] sm:$0xff] %v5889_v62 }
 0x1bf   : > { %v5891_v3 = vpop.f32.mrf.mxu0 }
 0x1c0   : > { %10836 = vst [vmem:[#allocation49_spill] sm:$0xff] %v5891_v3 }
 0x1c1   : > { %v5893_v6 = vpop.f32.mrf.mxu0 }
 0x1c2   : > { %10837 = vst [vmem:[#allocation50_spill] sm:$0xff] %v5893_v6 }
 0x1c3   : > { %v5895_v9 = vpop.f32.mrf.mxu0 }
 0x1c4   : > { %10838 = vst [vmem:[#allocation51_spill] sm:$0xff] %v5895_v9 }
 0x1c5   : > { %v5897_v12 = vpop.f32.mrf.mxu0 }
 0x1c6   : > { %10839 = vst [vmem:[#allocation52_spill] sm:$0xff] %v5897_v12 }
 0x1c7   : > { %v5899_v15 = vpop.f32.mrf.mxu0 }
 0x1c8   : > { %10840 = vst [vmem:[#allocation53_spill] sm:$0xff] %v5899_v15 }
 0x1c9   : > { %v5901_v18 = vpop.f32.mrf.mxu0 }
 0x1ca   : > { %10841 = vst [vmem:[#allocation54_spill] sm:$0xff] %v5901_v18  ;;  %v736_v26 = vmin.f32 %v5899_v15, %v5901_v18 }
 0x1cb   : > { %v5903_v21 = vpop.f32.mrf.mxu0 }
 0x1cc   : > { %10842 = vst [vmem:[#allocation55_spill] sm:$0xff] %v5903_v21 }
 0x1cd   : > { %v5905_v24 = vpop.f32.mrf.mxu0 }
 0x1ce   : > { %10843 = vst [vmem:[#allocation56_spill] sm:$0xff] %v5905_v24  ;;  %v739_v1 = vmin.f32 %v5903_v21, %v5905_v24  ;;  %v727_v24 = vmin.f32 %v5887_v59, %v5889_v62 }
 0x1cf   : > { %v5907_v27 = vpop.f32.mrf.mxu0 }
 0x1d0   : > { %10844 = vst [vmem:[#allocation57_spill] sm:$0xff] %v5907_v27 }
 0x1d1   : > { %v5909_v30 = vpop.f32.mrf.mxu0 }
 0x1d2   : > { %10845 = vst [vmem:[#allocation58_spill] sm:$0xff] %v5909_v30  ;;  %v742_v33 = vmin.f32 %v5907_v27, %v5909_v30  ;;  %v733_v30 = vmin.f32 %v5895_v9, %v5897_v12 }
 0x1d3   : > { %v5913_v36 = vpop.f32.mrf.mxu0 }
 0x1d4   : > { %10846 = vst [vmem:[#allocation59_spill] sm:$0xff] %v5913_v36  ;;  %743 = vmin.xlane.f32.xlu1 %v742_v33  ;;  %v730_v33 = vmin.f32 %v5891_v3, %v5893_v6 }
 0x1d5   : > { %v5917_v0 = vpop.f32.mrf.mxu0 }
 0x1d6   : > { %10847 = vst [vmem:[#allocation60_spill] sm:$0xff] %v5917_v0  ;;  %v745_v25 = vmin.f32 %v5913_v36, %v5917_v0 }
 0x1d7   : > { %v5929_v21 = vpop.f32.mrf.mxu0 }
 0x1d8   : > { %740 = vmin.xlane.f32.xlu1 %v739_v1  ;;  %746 = vmin.xlane.f32.xlu0 %v745_v25  ;;  %10848 = vst [vmem:[#allocation61_spill] sm:$0xff] %v5929_v21  ;;  %v724_v1 = vmin.f32 %v5883_v53, %v5885_v56 }
 0x1d9   : > { %v5933_v25 = vpop.f32.mrf.mxu0 }
 0x1da   : > { %10849 = vst [vmem:[#allocation62_spill] sm:$0xff] %v5933_v25 }
 0x1dc   : > { %737 = vmin.xlane.f32.xlu1 %v736_v26  ;;  %v721_v26 = vmin.f32 %v5879_v41, %v5881_v42 }
 0x1e0   : > { %734 = vmin.xlane.f32.xlu1 %v733_v30  ;;  %v748_v30 = vmin.f32 %v5929_v21, %v5933_v25 }
 0x1e4   : > { %731 = vmin.xlane.f32.xlu1 %v730_v33 }
 0x1e8   : > { %728 = vmin.xlane.f32.xlu1 %v727_v24 }
 0x1ec   : > { %725 = vmin.xlane.f32.xlu1 %v724_v1  ;;  %v10850_v1 = vlaneseq }
 0x1ee   : > { %v5950_v53 = vand.u32 127, %v10850_v1 }
 0x1f0   : > { %722 = vmin.xlane.f32.xlu1 %v721_v26  ;;  %v5953_v26 = vadd.s32 128, %v5950_v53 }
 0x1f4   : > { %749 = vmin.xlane.f32.xlu1 %v748_v30 }
 0x1f9   : > { %v5939_v33 = vpop.xlane.xlu1 %668 }
 0x1fd   : > { %v5941_v62 = vpop.xlane.xlu1 %671 }
 0x201   : > { %v5943_v24 = vpop.xlane.xlu1 %674 }
 0x205   : > { %v5945_v59 = vpop.xlane.xlu1 %677 }
 0x209   : > { %v5947_v56 = vpop.xlane.xlu1 %680 }
 0x20d   : > { %v684_v6 = vpop.xlane.xlu1 %683 }
 0x20e   : > { %vm769_vm14 = vcmp.eq.f32.partialorder %v5805_v4, %v684_v6  ;;  %vm770_vm15 = vcmp.eq.f32.partialorder %v5807_v5, %v684_v6 }
 0x20f   : > { %v834_v4 = vsel %vm770_vm15, %v5953_v26, 256 }
 0x211   : > { %v687_v42 = vpop.xlane.xlu1 %686 }
 0x212   : > { %vm771_vm3 = vcmp.eq.f32.partialorder %v5811_v7, %v687_v42  ;;  %vm772_vm4 = vcmp.eq.f32.partialorder %v5813_v8, %v687_v42 }
 0x213   : > { %v835_v30 = vsel %vm771_vm3, %v5950_v53, 256  ;;  %v836_v25 = vsel %vm772_vm4, %v5953_v26, 256 }
 0x214   : > { %vm1039_vm5 = vcmp.lt.s32.totalorder %v835_v30, %v836_v25 }
 0x215   : > { %v690_v21 = vpop.xlane.xlu1 %689  ;;  %v5959_v41 = vsel %vm1039_vm5, %v835_v30, %v836_v25 }
 0x216   : > { %vm773_vm6 = vcmp.eq.f32.partialorder %v5817_v10, %v690_v21  ;;  %vm774_vm7 = vcmp.eq.f32.partialorder %v5819_v11, %v690_v21  ;;  %v1042_v1 = vshra.s32 %v5959_v41, 16 }
 0x217   : > { %v837_v3 = vsel %vm773_vm6, %v5950_v53, 256  ;;  %v838_v7 = vsel %vm774_vm7, %v5953_v26, 256 }
 0x218   : > { %v5966_v12 = vcvt.s32.f32 %v1042_v1  ;;  %vm1055_vm8 = vcmp.lt.s32.totalorder %v837_v3, %v838_v7 }
 0x219   : > { %v693_v42 = vpop.xlane.xlu1 %692  ;;  %v5968_v8 = vsel %vm1055_vm8, %v837_v3, %v838_v7 }
 0x21a   : > { %vm775_vm9 = vcmp.eq.f32.partialorder %v5823_v13, %v693_v42  ;;  %vm776_vm10 = vcmp.eq.f32.partialorder %v5825_v14, %v693_v42  ;;  %1045 = vmin.xlane.f32.xlu1 %v5966_v12  ;;  %v1058_v21 = vshra.s32 %v5968_v8, 16  ;;  %v833_v14 = vsel %vm769_vm14, %v5950_v53, 256 }
 0x21b   : > { %v839_v25 = vsel %vm775_vm9, %v5950_v53, 256  ;;  %v840_v30 = vsel %vm776_vm10, %v5953_v26, 256  ;;  %vm1023_vm8 = vcmp.lt.s32.totalorder %v833_v14, %v834_v4  ;;  %vm767_vm9 = vcmp.eq.f32.partialorder %v5799_v63, %v5947_v56 }
 0x21c   : > { %v5976_v11 = vcvt.s32.f32 %v1058_v21  ;;  %vm1071_vm11 = vcmp.lt.s32.totalorder %v839_v25, %v840_v30  ;;  %vm768_vm10 = vcmp.eq.f32.partialorder %v5801_v2, %v5947_v56  ;;  %v831_v63 = vsel %vm767_vm9, %v5950_v53, 256 }
 0x21d   : > { %v696_v1 = vpop.xlane.xlu1 %695  ;;  %v5978_v10 = vsel %vm1071_vm11, %v839_v25, %v840_v30  ;;  %v832_v56 = vsel %vm768_vm10, %v5953_v26, 256  ;;  %vm764_vm9 = vcmp.eq.f32.partialorder %v5789_v58, %v5943_v24 }
 0x21e   : > { %vm777_vm12 = vcmp.eq.f32.partialorder %v5829_v16, %v696_v1  ;;  %vm778_vm13 = vcmp.eq.f32.partialorder %v5831_v17, %v696_v1  ;;  %1061 = vmin.xlane.f32.xlu1 %v5976_v11  ;;  %v1074_v7 = vshra.s32 %v5978_v10, 16  ;;  %vm1007_vm15 = vcmp.lt.s32.totalorder %v831_v63, %v832_v56 }
 0x21f   : > { %v841_v3 = vsel %vm777_vm12, %v5950_v53, 256  ;;  %v842_v42 = vsel %vm778_vm13, %v5953_v26, 256 }
 0x220   : > { %v5988_v21 = vcvt.s32.f32 %v1074_v7  ;;  %vm1087_vm1 = vcmp.lt.s32.totalorder %v841_v3, %v842_v42 }
 0x221   : > { %v699_v25 = vpop.xlane.xlu1 %698  ;;  %v5990_v30 = vsel %vm1087_vm1, %v841_v3, %v842_v42  ;;  %vm765_vm1 = vcmp.eq.f32.partialorder %v5793_v60, %v5945_v59 }
 0x222   : > { %vm779_vm3 = vcmp.eq.f32.partialorder %v5835_v19, %v699_v25  ;;  %vm780_vm4 = vcmp.eq.f32.partialorder %v5837_v20, %v699_v25  ;;  %1077 = vmin.xlane.f32.xlu1 %v5988_v21  ;;  %v1090_v1 = vshra.s32 %v5990_v30, 16  ;;  %v6045_v20 = vsel %vm1007_vm15, %v831_v63, %v832_v56 }
 0x223   : > { %v843_v6 = vsel %vm779_vm3, %v5950_v53, 256  ;;  %v844_v7 = vsel %vm780_vm4, %v5953_v26, 256  ;;  %vm766_vm3 = vcmp.eq.f32.partialorder %v5795_v61, %v5945_v59  ;;  %v718_v63 = vmin.f32 %v5875_v39, %v5877_v40 }
 0x224   : > { %v6000_v5 = vcvt.s32.f32 %v1090_v1  ;;  %vm1103_vm5 = vcmp.lt.s32.totalorder %v843_v6, %v844_v7  ;;  %v1010_v56 = vshra.s32 %v6045_v20, 16  ;;  %vm760_vm15 = vcmp.eq.f32.partialorder %v5777_v52, %v5939_v33 }
 0x225   : > { %v702_v3 = vpop.xlane.xlu1 %701  ;;  %v6002_v42 = vsel %vm1103_vm5, %v843_v6, %v844_v7 }
 0x226   : > { %vm781_vm6 = vcmp.eq.f32.partialorder %v5841_v22, %v702_v3  ;;  %vm782_vm7 = vcmp.eq.f32.partialorder %v5843_v23, %v702_v3  ;;  %1093 = vmin.xlane.f32.xlu1 %v6000_v5  ;;  %v1106_v25 = vshra.s32 %v6002_v42, 16  ;;  %v6018_v3 = vsel %vm1023_vm8, %v833_v14, %v834_v4  ;;  %v10854_v23 = vld [vmem:[#allocation55_spill] sm:$0xff] }
 0x227   : > { %v845_v13 = vsel %vm781_vm6, %v5950_v53, 256  ;;  %v846_v17 = vsel %vm782_vm7, %v5953_v26, 256  ;;  %v1026_v4 = vshra.s32 %v6018_v3, 16  ;;  %vm763_vm8 = vcmp.eq.f32.partialorder %v5787_v57, %v5943_v24 }
 0x228   : > { %v6014_v1 = vcvt.s32.f32 %v1106_v25  ;;  %vm1119_vm11 = vcmp.lt.s32.totalorder %v845_v13, %v846_v17 }
 0x229   : > { %v666_v6 = vpop.xlane.xlu1 %665  ;;  %v6016_v7 = vsel %vm1119_vm11, %v845_v13, %v846_v17  ;;  %vm761_vm11 = vcmp.eq.f32.partialorder %v5781_v54, %v5941_v62 }
 0x22a   : > { %vm757_vm12 = vcmp.eq.f32.partialorder %v5771_v49, %v666_v6  ;;  %vm758_vm13 = vcmp.eq.f32.partialorder %v5773_v50, %v666_v6  ;;  %1109 = vmin.xlane.f32.xlu1 %v6014_v1  ;;  %v1122_v16 = vshra.s32 %v6016_v7, 16  ;;  %v6043_v50 = vcvt.s32.f32 %v1026_v4 }
 0x22b   : > { %v821_v25 = vsel %vm757_vm12, %v5950_v53, 256  ;;  %v822_v2 = vsel %vm758_vm13, %v5953_v26, 256  ;;  %vm762_vm12 = vcmp.eq.f32.partialorder %v5783_v55, %v5941_v62 }
 0x22c   : > { %v6028_v13 = vcvt.s32.f32 %v1122_v16  ;;  %vm927_vm14 = vcmp.lt.s32.totalorder %v821_v25, %v822_v2 }
 0x22d   : > { %v6031_v14 = vpop.xlane.xlu1 %662  ;;  %v6033_v17 = vsel %vm927_vm14, %v821_v25, %v822_v2  ;;  %v829_v2 = vsel %vm765_vm1, %v5950_v53, 256  ;;  %v830_v25 = vsel %vm766_vm3, %v5953_v26, 256  ;;  %vm759_vm14 = vcmp.eq.f32.partialorder %v5775_v51, %v5939_v33 }
 0x22e   : > { %1125 = vmin.xlane.f32.xlu1 %v6028_v13  ;;  %v930_v6 = vshra.s32 %v6033_v17, 16  ;;  %vm991_vm7 = vcmp.lt.s32.totalorder %v829_v2, %v830_v25  ;;  %vm755_vm3 = vcmp.eq.f32.partialorder %v5767_v47, %v6031_v14 }
 0x22f   : > { %v6069_v61 = vsel %vm991_vm7, %v829_v2, %v830_v25  ;;  %v825_v25 = vsel %vm761_vm11, %v5950_v53, 256 }
 0x230   : > { %v6041_v16 = vcvt.s32.f32 %v930_v6  ;;  %v994_v57 = vshra.s32 %v6069_v61, 16 }
 0x231   : > { %v660_v49 = vpop.xlane.xlu1 %659 }
 0x232   : > { %vm753_vm4 = vcmp.eq.f32.partialorder %v5763_v45, %v660_v49  ;;  %vm754_vm5 = vcmp.eq.f32.partialorder %v5765_v46, %v660_v49  ;;  %933 = vmin.xlane.f32.xlu0 %v6041_v16  ;;  %1029 = vmin.xlane.f32.xlu1 %v6043_v50  ;;  %v6067_v45 = vcvt.s32.f32 %v1010_v56  ;;  %v6082_v24 = vcvt.s32.f32 %v994_v57 }
 0x233   : > { %v817_v59 = vsel %vm753_vm4, %v5950_v53, 256  ;;  %v818_v4 = vsel %vm754_vm5, %v5953_v26, 256  ;;  %v826_v56 = vsel %vm762_vm12, %v5953_v26, 256  ;;  %vm756_vm4 = vcmp.eq.f32.partialorder %v5769_v48, %v6031_v14 }
 0x234   : > { %vm895_vm6 = vcmp.lt.s32.totalorder %v817_v59, %v818_v4  ;;  %vm959_vm13 = vcmp.lt.s32.totalorder %v825_v25, %v826_v56  ;;  %v820_v52 = vsel %vm756_vm4, %v5953_v26, 256 }
 0x235   : > { %v6058_v6 = vsel %vm895_vm6, %v817_v59, %v818_v4  ;;  %v827_v59 = vsel %vm763_vm8, %v5950_v53, 256  ;;  %v828_v4 = vsel %vm764_vm9, %v5953_v26, 256  ;;  %v6098_v62 = vsel %vm959_vm13, %v825_v25, %v826_v56  ;;  %v657_v25 = vpop.xlane.xlu1 %656 }
 0x236   : > { %719 = vmin.xlane.f32.xlu1 %v718_v63  ;;  %v898_v49 = vshra.s32 %v6058_v6, 16  ;;  %v715_v63 = vmin.f32 %v5871_v37, %v5873_v38  ;;  %vm975_vm10 = vcmp.lt.s32.totalorder %v827_v59, %v828_v4  ;;  %v962_v55 = vshra.s32 %v6098_v62, 16 }
 0x237   : > { %v6084_v2 = vsel %vm975_vm10, %v827_v59, %v828_v4  ;;  %v823_v59 = vsel %vm759_vm14, %v5950_v53, 256  ;;  %v824_v4 = vsel %vm760_vm15, %v5953_v26, 256  ;;  %vm751_vm5 = vcmp.eq.f32.partialorder %v5759_v43, %v657_v25  ;;  %v10851_v43 = vld [vmem:[#allocation38_spill] sm:$0xff] }
 0x238   : > { %v6065_v46 = vcvt.s32.f32 %v898_v49  ;;  %v712_v49 = vmin.f32 %v5865_v34, %v5867_v35  ;;  %vm943_vm1 = vcmp.lt.s32.totalorder %v823_v59, %v824_v4  ;;  %v6110_v33 = vcvt.s32.f32 %v962_v55 }
 0x239   : > { %v6112_v56 = vsel %vm943_vm1, %v823_v59, %v824_v4  ;;  %vm752_vm6 = vcmp.eq.f32.partialorder %v5761_v44, %v657_v25  ;;  %v815_v55 = vsel %vm751_vm5, %v5950_v53, 256  ;;  %v10852_v25 = vld [vmem:[#allocation37_spill] sm:$0xff] }
 0x23a   : > { %901 = vmin.xlane.f32.xlu0 %v6065_v46  ;;  %1013 = vmin.xlane.f32.xlu1 %v6067_v45  ;;  %v946_v14 = vshra.s32 %v6112_v56, 16  ;;  %v816_v59 = vsel %vm752_vm6, %v5953_v26, 256  ;;  %v703_v44 = vmin.f32 %v10852_v25, %v10851_v43 }
 0x23b   : > { %vm879_vm8 = vcmp.lt.s32.totalorder %v815_v55, %v816_v59 }
 0x23c   : > { %v6124_v4 = vcvt.s32.f32 %v946_v14  ;;  %v6132_v54 = vsel %vm879_vm8, %v815_v55, %v816_v59  ;;  %v10855_v55 = vld [vmem:[#allocation56_spill] sm:$0xff] }
 0x23d   : > { %v882_v58 = vshra.s32 %v6132_v54, 16 }
 0x23e   : > { %716 = vmin.xlane.f32.xlu1 %v715_v63  ;;  %v978_v63 = vshra.s32 %v6084_v2, 16 }
 0x240   : > { %v6096_v57 = vcvt.s32.f32 %v978_v63  ;;  %v819_v63 = vsel %vm755_vm3, %v5950_v53, 256 }
 0x241   : > { %vm911_vm7 = vcmp.lt.s32.totalorder %v819_v63, %v820_v52 }
 0x242   : > { %997 = vmin.xlane.f32.xlu1 %v6082_v24  ;;  %v6126_v48 = vsel %vm911_vm7, %v819_v63, %v820_v52 }
 0x243   : > { %v914_v47 = vshra.s32 %v6126_v48, 16 }
 0x245   : > { %v6138_v63 = vcvt.s32.f32 %v914_v47 }
 0x246   : > { %713 = vmin.xlane.f32.xlu1 %v712_v49  ;;  %v709_v49 = vmin.f32 %v5859_v31, %v5861_v32 }
 0x24a   : > { %981 = vmin.xlane.f32.xlu1 %v6096_v57 }
 0x24e   : > { %710 = vmin.xlane.f32.xlu1 %v709_v49  ;;  %v706_v49 = vmin.f32 %v5853_v28, %v5855_v29 }
 0x252   : > { %965 = vmin.xlane.f32.xlu1 %v6110_v33 }
 0x256   : > { %707 = vmin.xlane.f32.xlu1 %v706_v49  ;;  %v10853_v49 = vld [vmem:[#allocation58_spill] sm:$0xff] }
 0x25a   : > { %949 = vmin.xlane.f32.xlu1 %v6124_v4 }
 0x25d   : > { %v744_v51 = vpop.xlane.xlu1 %743 }
 0x25e   : > { %vm809_vm9 = vcmp.eq.f32.partialorder %v5907_v27, %v744_v51  ;;  %vm810_vm10 = vcmp.eq.f32.partialorder %v10853_v49, %v744_v51  ;;  %704 = vmin.xlane.f32.xlu1 %v703_v44  ;;  %v6150_v49 = vcvt.s32.f32 %v882_v58 }
 0x25f   : > { %v873_v14 = vsel %vm809_vm9, %v5950_v53, 256  ;;  %v874_v52 = vsel %vm810_vm10, %v5953_v26, 256 }
 0x260   : > { %vm1343_vm11 = vcmp.lt.s32.totalorder %v873_v14, %v874_v52 }
 0x261   : > { %v741_v60 = vpop.xlane.xlu1 %740  ;;  %v747_v19 = vpop.xlane.xlu0 %746 }
 0x262   : > { %vm807_vm12 = vcmp.eq.f32.partialorder %v10854_v23, %v741_v60  ;;  %vm808_vm13 = vcmp.eq.f32.partialorder %v10855_v55, %v741_v60  ;;  %vm811_vm14 = vcmp.eq.f32.partialorder %v5913_v36, %v747_v19  ;;  %vm812_vm15 = vcmp.eq.f32.partialorder %v5917_v0, %v747_v19  ;;  %917 = vmin.xlane.f32.xlu1 %v6138_v63 }
 0x263   : > { %v871_v44 = vsel %vm807_vm12, %v5950_v53, 256  ;;  %v872_v47 = vsel %vm808_vm13, %v5953_v26, 256  ;;  %v875_v51 = vsel %vm811_vm14, %v5950_v53, 256  ;;  %v876_v59 = vsel %vm812_vm15, %v5953_v26, 256 }
 0x264   : > { %vm1359_vm1 = vcmp.lt.s32.totalorder %v875_v51, %v876_v59  ;;  %v6154_v60 = vsel %vm1343_vm11, %v873_v14, %v874_v52  ;;  %vm1327_vm5 = vcmp.lt.s32.totalorder %v871_v44, %v872_v47  ;;  %v10858_v52 = vld [vmem:[#allocation52_spill] sm:$0xff] }
 0x265   : > { %v738_v27 = vpop.xlane.xlu1 %737  ;;  %v6152_v23 = vsel %vm1359_vm1, %v875_v51, %v876_v59  ;;  %10856 = vst [vmem:[#allocation63_spill] sm:$0xff] %v6154_v60  ;;  %v1346_v51 = vshra.s32 %v6154_v60, 16  ;;  %v6165_v14 = vsel %vm1327_vm5, %v871_v44, %v872_v47  ;;  %v10861_v44 = vld [vmem:[#allocation49_spill] sm:$0xff]  ;;  %v10862_v47 = vld [vmem:[#allocation50_spill] sm:$0xff] }
 0x266   : > { %vm805_vm3 = vcmp.eq.f32.partialorder %v5899_v15, %v738_v27  ;;  %vm806_vm4 = vcmp.eq.f32.partialorder %v5901_v18, %v738_v27  ;;  %885 = vmin.xlane.f32.xlu1 %v6150_v49  ;;  %v1362_v19 = vshra.s32 %v6152_v23, 16  ;;  %10857 = vst [vmem:[#allocation64_spill] sm:$0xff] %v6165_v14 }
 0x267   : > { %v869_v55 = vsel %vm805_vm3, %v5950_v53, 256  ;;  %v870_v58 = vsel %vm806_vm4, %v5953_v26, 256  ;;  %v6172_v15 = vcvt.s32.f32 %v1346_v51 }
 0x268   : > { %v6162_v0 = vcvt.s32.f32 %v1362_v19  ;;  %vm1311_vm8 = vcmp.lt.s32.totalorder %v869_v55, %v870_v58  ;;  %v1330_v19 = vshra.s32 %v6165_v14, 16 }
 0x269   : > { %v735_v59 = vpop.xlane.xlu1 %734  ;;  %10859 = vst [vmem:[#allocation65_spill] sm:$0xff] %v6172_v15  ;;  %v6175_v22 = vsel %vm1311_vm8, %v869_v55, %v870_v58  ;;  %v10865_v55 = vld [vmem:[#allocation47_spill] sm:$0xff]  ;;  %v10866_v58 = vld [vmem:[#allocation48_spill] sm:$0xff] }
 0x26a   : > { %vm803_vm6 = vcmp.eq.f32.partialorder %v5895_v9, %v735_v59  ;;  %vm804_vm7 = vcmp.eq.f32.partialorder %v10858_v52, %v735_v59  ;;  %1365 = vmin.xlane.f32.xlu1 %v6162_v0  ;;  %10860 = vst [vmem:[#allocation66_spill] sm:$0xff] %v6175_v22  ;;  %v6182_v9 = vcvt.s32.f32 %v1330_v19  ;;  %v1314_v51 = vshra.s32 %v6175_v22, 16 }
 0x26b   : > { %v867_v27 = vsel %vm803_vm6, %v5950_v53, 256  ;;  %v868_v18 = vsel %vm804_vm7, %v5953_v26, 256 }
 0x26c   : > { %vm1295_vm9 = vcmp.lt.s32.totalorder %v867_v27, %v868_v18  ;;  %10863 = vst [vmem:[#allocation67_spill] sm:$0xff] %v6182_v9 }
 0x26d   : > { %v732_v36 = vpop.xlane.xlu1 %731  ;;  %v6185_v14 = vsel %vm1295_vm9, %v867_v27, %v868_v18  ;;  %v10869_v18 = vld [vmem:[#allocation45_spill] sm:$0xff]  ;;  %v10870_v27 = vld [vmem:[#allocation46_spill] sm:$0xff] }
 0x26e   : > { %vm801_vm10 = vcmp.eq.f32.partialorder %v10861_v44, %v732_v36  ;;  %vm802_vm11 = vcmp.eq.f32.partialorder %v10862_v47, %v732_v36  ;;  %1349 = vmin.xlane.f32.xlu1 %v6172_v15  ;;  %10864 = vst [vmem:[#allocation68_spill] sm:$0xff] %v6185_v14  ;;  %v6192_v44 = vcvt.s32.f32 %v1314_v51  ;;  %v1298_v19 = vshra.s32 %v6185_v14, 16 }
 0x26f   : > { %v865_v59 = vsel %vm801_vm10, %v5950_v53, 256  ;;  %v866_v52 = vsel %vm802_vm11, %v5953_v26, 256 }
 0x270   : > { %vm1279_vm12 = vcmp.lt.s32.totalorder %v865_v59, %v866_v52  ;;  %10867 = vst [vmem:[#allocation69_spill] sm:$0xff] %v6192_v44 }
 0x271   : > { %v729_v60 = vpop.xlane.xlu1 %728  ;;  %v6195_v22 = vsel %vm1279_vm12, %v865_v59, %v866_v52  ;;  %v10872_v52 = vld [vmem:[#allocation43_spill] sm:$0xff]  ;;  %v10873_v59 = vld [vmem:[#allocation44_spill] sm:$0xff] }
 0x272   : > { %vm799_vm13 = vcmp.eq.f32.partialorder %v10865_v55, %v729_v60  ;;  %vm800_vm14 = vcmp.eq.f32.partialorder %v10866_v58, %v729_v60  ;;  %1333 = vmin.xlane.f32.xlu1 %v6182_v9  ;;  %10868 = vst [vmem:[#allocation70_spill] sm:$0xff] %v6195_v22  ;;  %v6202_v55 = vcvt.s32.f32 %v1298_v19  ;;  %v1282_v51 = vshra.s32 %v6195_v22, 16 }
 0x273   : > { %v863_v36 = vsel %vm799_vm13, %v5950_v53, 256  ;;  %v864_v47 = vsel %vm800_vm14, %v5953_v26, 256 }
 0x274   : > { %vm1263_vm15 = vcmp.lt.s32.totalorder %v863_v36, %v864_v47 }
 0x275   : > { %v726_v15 = vpop.xlane.xlu1 %725  ;;  %v6205_v14 = vsel %vm1263_vm15, %v863_v36, %v864_v47  ;;  %v10875_v47 = vld [vmem:[#allocation61_spill] sm:$0xff]  ;;  %v10876_v36 = vld [vmem:[#allocation62_spill] sm:$0xff] }
 0x276   : > { %vm797_vm1 = vcmp.eq.f32.partialorder %v10869_v18, %v726_v15  ;;  %vm798_vm3 = vcmp.eq.f32.partialorder %v10870_v27, %v726_v15  ;;  %1317 = vmin.xlane.f32.xlu1 %v6192_v44  ;;  %10871 = vst [vmem:[#allocation71_spill] sm:$0xff] %v6205_v14  ;;  %v6212_v18 = vcvt.s32.f32 %v1282_v51  ;;  %v1266_v19 = vshra.s32 %v6205_v14, 16 }
 0x277   : > { %v861_v60 = vsel %vm797_vm1, %v5950_v53, 256  ;;  %v862_v58 = vsel %vm798_vm3, %v5953_v26, 256 }
 0x278   : > { %vm1247_vm4 = vcmp.lt.s32.totalorder %v861_v60, %v862_v58 }
 0x279   : > { %v723_v9 = vpop.xlane.xlu1 %722  ;;  %v6215_v22 = vsel %vm1247_vm4, %v861_v60, %v862_v58 }
 0x27a   : > { %vm795_vm5 = vcmp.eq.f32.partialorder %v10872_v52, %v723_v9  ;;  %vm796_vm6 = vcmp.eq.f32.partialorder %v10873_v59, %v723_v9  ;;  %1301 = vmin.xlane.f32.xlu1 %v6202_v55  ;;  %10874 = vst [vmem:[#allocation72_spill] sm:$0xff] %v6215_v22  ;;  %v6222_v52 = vcvt.s32.f32 %v1266_v19  ;;  %v1250_v51 = vshra.s32 %v6215_v22, 16 }
 0x27b   : > { %v859_v15 = vsel %vm795_vm5, %v5950_v53, 256  ;;  %v860_v27 = vsel %vm796_vm6, %v5953_v26, 256  ;;  %v1089_v22 = vand.u32 65535, %v5990_v30 }
 0x27c   : > { %vm1231_vm7 = vcmp.lt.s32.totalorder %v859_v15, %v860_v27  ;;  %10877 = vst [vmem:[#allocation73_spill] sm:$0xff] %v6222_v52 }
 0x27d   : > { %v750_v44 = vpop.xlane.xlu1 %749  ;;  %v6227_v58 = vsel %vm1231_vm7, %v859_v15, %v860_v27 }
 0x27e   : > { %vm813_vm8 = vcmp.eq.f32.partialorder %v10875_v47, %v750_v44  ;;  %vm814_vm9 = vcmp.eq.f32.partialorder %v10876_v36, %v750_v44  ;;  %1285 = vmin.xlane.f32.xlu1 %v6212_v18  ;;  %10879 = vst [vmem:[#allocation75_spill] sm:$0xff] %v6227_v58  ;;  %v6231_v44 = vcvt.s32.f32 %v1250_v51  ;;  %v1234_v47 = vshra.s32 %v6227_v58, 16 }
 0x27f   : > { %v877_v9 = vsel %vm813_vm8, %v5950_v53, 256  ;;  %v878_v59 = vsel %vm814_vm9, %v5953_v26, 256 }
 0x280   : > { %vm1375_vm10 = vcmp.lt.s32.totalorder %v877_v9, %v878_v59  ;;  %10880 = vst [vmem:[#allocation76_spill] sm:$0xff] %v6231_v44  ;;  %v6238_v19 = vcvt.s32.f32 %v1234_v47  ;;  %v1105_v47 = vand.u32 65535, %v6002_v42  ;;  %v1091_v42 = vcvt.s32.f32 %v1089_v22 }
 0x281   : > { %v6225_v14 = vsel %vm1375_vm10, %v877_v9, %v878_v59 }
 0x282   : > { %10878 = vst [vmem:[#allocation74_spill] sm:$0xff] %v6225_v14  ;;  %1269 = vmin.xlane.f32.xlu1 %v6222_v52  ;;  %v1378_v60 = vshra.s32 %v6225_v14, 16  ;;  %10882 = vst [vmem:[#allocation78_spill] sm:$0xff] %v6238_v19  ;;  %v1107_v52 = vcvt.s32.f32 %v1105_v47 }
 0x284   : > { %v6233_v36 = vcvt.s32.f32 %v1378_v60  ;;  %v1121_v60 = vand.u32 65535, %v6016_v7 }
 0x286   : > { %10881 = vst [vmem:[#allocation77_spill] sm:$0xff] %v6233_v36  ;;  %1253 = vmin.xlane.f32.xlu1 %v6231_v44  ;;  %1381 = vmin.xlane.f32.xlu0 %v6233_v36  ;;  %v1123_v44 = vcvt.s32.f32 %v1121_v60  ;;  %v1073_v60 = vand.u32 65535, %v5978_v10  ;;  %v1057_v10 = vand.u32 65535, %v5968_v8 }
 0x28a   : > { %1237 = vmin.xlane.f32.xlu1 %v6238_v19 }
 0x2a3   : > { %v6241_v27 = vpop.xlane.xlu1 %1045 }
 0x2a4   : > { %vm1047_vm8 = vcmp.eq.f32.partialorder %v5966_v12, %v6241_v27  ;;  %v1009_v12 = vand.u32 65535, %v6045_v20 }
 0x2a7   : > { %v6243_v59 = vpop.xlane.xlu1 %1061 }
 0x2a8   : > { %vm1063_vm4 = vcmp.eq.f32.partialorder %v5976_v11, %v6243_v59 }
 0x2ab   : > { %v6245_v15 = vpop.xlane.xlu1 %1077 }
 0x2ac   : > { %vm1079_vm3 = vcmp.eq.f32.partialorder %v5988_v21, %v6245_v15  ;;  %v1041_v21 = vand.u32 65535, %v5959_v41 }
 0x2af   : > { %v6247_v9 = vpop.xlane.xlu1 %1093 }
 0x2b0   : > { %vm1095_vm13 = vcmp.eq.f32.partialorder %v6000_v5, %v6247_v9  ;;  %v1075_v5 = vcvt.s32.f32 %v1073_v60 }
 0x2b3   : > { %v6249_v51 = vpop.xlane.xlu1 %1109 }
 0x2b4   : > { %vm1111_vm12 = vcmp.eq.f32.partialorder %v6014_v1, %v6249_v51 }
 0x2b5   : > { %v1112_v14 = vsel %vm1111_vm12, %v1107_v52, inf  ;;  %v1080_v52 = vsel %vm1079_vm3, %v1075_v5, inf }
 0x2b7   : > { %v6252_v58 = vpop.xlane.xlu1 %1125 }
 0x2b8   : > { %vm1127_vm11 = vcmp.eq.f32.partialorder %v6028_v13, %v6252_v58 }
 0x2b9   : > { %v1128_v19 = vsel %vm1127_vm11, %v1123_v44, inf  ;;  %v1096_v44 = vsel %vm1095_vm13, %v1091_v42, inf }
 0x2ba   : > { %1129 = vmin.xlane.f32.xlu0 %v1128_v19 }
 0x2bb   : > { %v6259_v36 = vpop.xlane.xlu1 %1029 }
 0x2bc   : > { %vm1031_vm9 = vcmp.eq.f32.partialorder %v6043_v50, %v6259_v36 }
 0x2be   : > { %1113 = vmin.xlane.f32.xlu0 %v1112_v14 }
 0x2bf   : > { %v720_v7 = vpop.xlane.xlu1 %719 }
 0x2c0   : > { %vm793_vm14 = vcmp.eq.f32.partialorder %v5875_v39, %v720_v7  ;;  %vm794_vm15 = vcmp.eq.f32.partialorder %v5877_v40, %v720_v7  ;;  %v1059_v7 = vcvt.s32.f32 %v1057_v10 }
 0x2c1   : > { %v857_v1 = vsel %vm793_vm14, %v5950_v53, 256  ;;  %v858_v13 = vsel %vm794_vm15, %v5953_v26, 256 }
 0x2c2   : > { %vm1215_vm1 = vcmp.lt.s32.totalorder %v857_v1, %v858_v13  ;;  %1097 = vmin.xlane.f32.xlu0 %v1096_v44  ;;  %v1064_v60 = vsel %vm1063_vm4, %v1059_v7, inf }
 0x2c3   : > { %v6271_v30 = vpop.xlane.xlu1 %1013  ;;  %v6273_v22 = vsel %vm1215_vm1, %v857_v1, %v858_v13  ;;  %v1043_v1 = vcvt.s32.f32 %v1041_v21  ;;  %v1025_v13 = vand.u32 65535, %v6018_v3  ;;  %v1011_v21 = vcvt.s32.f32 %v1009_v12 }
 0x2c4   : > { %v1218_v14 = vshra.s32 %v6273_v22, 16  ;;  %vm1015_vm13 = vcmp.eq.f32.partialorder %v6067_v45, %v6271_v30  ;;  %v977_v45 = vand.u32 65535, %v6084_v2  ;;  %v961_v12 = vand.u32 65535, %v6098_v62 }
 0x2c5   : > { %v1048_v5 = vsel %vm1047_vm8, %v1043_v1, inf }
 0x2c6   : > { %1081 = vmin.xlane.f32.xlu0 %v1080_v52  ;;  %v6277_v19 = vcvt.s32.f32 %v1218_v14  ;;  %v1027_v52 = vcvt.s32.f32 %v1025_v13 }
 0x2c7   : > { %v717_v47 = vpop.xlane.xlu1 %716 }
 0x2c8   : > { %vm791_vm5 = vcmp.eq.f32.partialorder %v5871_v37, %v717_v47  ;;  %vm792_vm6 = vcmp.eq.f32.partialorder %v5873_v38, %v717_v47  ;;  %1221 = vmin.xlane.f32.xlu1 %v6277_v19  ;;  %v1032_v7 = vsel %vm1031_vm9, %v1027_v52, inf  ;;  %v979_v52 = vcvt.s32.f32 %v977_v45 }
 0x2c9   : > { %v855_v8 = vsel %vm791_vm5, %v5950_v53, 256  ;;  %v856_v42 = vsel %vm792_vm6, %v5953_v26, 256 }
 0x2ca   : > { %vm1199_vm7 = vcmp.lt.s32.totalorder %v855_v8, %v856_v42  ;;  %1065 = vmin.xlane.f32.xlu0 %v1064_v60  ;;  %v1016_v60 = vsel %vm1015_vm13, %v1011_v21, inf }
 0x2cb   : > { %v6289_v11 = vpop.xlane.xlu1 %997  ;;  %v6291_v41 = vsel %vm1199_vm7, %v855_v8, %v856_v42  ;;  %v993_v8 = vand.u32 65535, %v6069_v61 }
 0x2cc   : > { %v1202_v44 = vshra.s32 %v6291_v41, 16  ;;  %vm999_vm14 = vcmp.eq.f32.partialorder %v6082_v24, %v6289_v11 }
 0x2ce   : > { %1049 = vmin.xlane.f32.xlu0 %v1048_v5  ;;  %v6295_v10 = vcvt.s32.f32 %v1202_v44  ;;  %v995_v44 = vcvt.s32.f32 %v993_v8  ;;  %v963_v8 = vcvt.s32.f32 %v961_v12 }
 0x2cf   : > { %v714_v14 = vpop.xlane.xlu1 %713 }
 0x2d0   : > { %vm789_vm10 = vcmp.eq.f32.partialorder %v5865_v34, %v714_v14  ;;  %vm790_vm11 = vcmp.eq.f32.partialorder %v5867_v35, %v714_v14  ;;  %1205 = vmin.xlane.f32.xlu1 %v6295_v10  ;;  %v1000_v14 = vsel %vm999_vm14, %v995_v44, inf }
 0x2d1   : > { %v853_v3 = vsel %vm789_vm10, %v5950_v53, 256  ;;  %v854_v47 = vsel %vm790_vm11, %v5953_v26, 256 }
 0x2d2   : > { %vm1183_vm12 = vcmp.lt.s32.totalorder %v853_v3, %v854_v47  ;;  %1033 = vmin.xlane.f32.xlu0 %v1032_v7 }
 0x2d3   : > { %v6307_v50 = vpop.xlane.xlu1 %981  ;;  %v6309_v20 = vsel %vm1183_vm12, %v853_v3, %v854_v47 }
 0x2d4   : > { %v1186_v42 = vshra.s32 %v6309_v20, 16  ;;  %vm983_vm4 = vcmp.eq.f32.partialorder %v6096_v57, %v6307_v50  ;;  %v945_v57 = vand.u32 65535, %v6112_v56  ;;  %v929_v56 = vand.u32 65535, %v6033_v17 }
 0x2d5   : > { %v984_v47 = vsel %vm983_vm4, %v979_v52, inf  ;;  %v913_v52 = vand.u32 65535, %v6126_v48 }
 0x2d6   : > { %1017 = vmin.xlane.f32.xlu0 %v1016_v60  ;;  %v6313_v1 = vcvt.s32.f32 %v1186_v42  ;;  %v947_v44 = vcvt.s32.f32 %v945_v57 }
 0x2d7   : > { %v711_v13 = vpop.xlane.xlu1 %710 }
 0x2d8   : > { %vm787_vm15 = vcmp.eq.f32.partialorder %v5859_v31, %v711_v13  ;;  %vm788_vm1 = vcmp.eq.f32.partialorder %v5861_v32, %v711_v13  ;;  %1189 = vmin.xlane.f32.xlu1 %v6313_v1  ;;  %v6341_v13 = vpop.xlane.xlu0 %933 }
 0x2d9   : > { %v851_v61 = vsel %vm787_vm15, %v5950_v53, 256  ;;  %v852_v5 = vsel %vm788_vm1, %v5953_v26, 256  ;;  %vm935_vm10 = vcmp.eq.f32.partialorder %v6041_v16, %v6341_v13 }
 0x2da   : > { %vm1167_vm3 = vcmp.lt.s32.totalorder %v851_v61, %v852_v5  ;;  %1001 = vmin.xlane.f32.xlu0 %v1000_v14 }
 0x2db   : > { %v6325_v24 = vpop.xlane.xlu1 %965  ;;  %v6327_v2 = vsel %vm1167_vm3, %v851_v61, %v852_v5 }
 0x2dc   : > { %v1170_v3 = vshra.s32 %v6327_v2, 16  ;;  %vm967_vm5 = vcmp.eq.f32.partialorder %v6110_v33, %v6325_v24  ;;  %v6362_v16 = vpop.xlane.xlu0 %901 }
 0x2dd   : > { %v968_v60 = vsel %vm967_vm5, %v963_v8, inf  ;;  %v915_v8 = vcvt.s32.f32 %v913_v52  ;;  %vm903_vm15 = vcmp.eq.f32.partialorder %v6065_v46, %v6362_v16 }
 0x2de   : > { %985 = vmin.xlane.f32.xlu0 %v984_v47  ;;  %v6331_v7 = vcvt.s32.f32 %v1170_v3  ;;  %v931_v3 = vcvt.s32.f32 %v929_v56 }
 0x2df   : > { %v708_v21 = vpop.xlane.xlu1 %707 }
 0x2e0   : > { %vm785_vm6 = vcmp.eq.f32.partialorder %v5853_v28, %v708_v21  ;;  %vm786_vm7 = vcmp.eq.f32.partialorder %v5855_v29, %v708_v21  ;;  %1173 = vmin.xlane.f32.xlu1 %v6331_v7  ;;  %v936_v47 = vsel %vm935_vm10, %v931_v3, inf  ;;  %v897_v21 = vand.u32 65535, %v6058_v6 }
 0x2e1   : > { %v849_v62 = vsel %vm785_vm6, %v5950_v53, 256  ;;  %v850_v42 = vsel %vm786_vm7, %v5953_v26, 256 }
 0x2e2   : > { %vm1151_vm8 = vcmp.lt.s32.totalorder %v849_v62, %v850_v42  ;;  %969 = vmin.xlane.f32.xlu0 %v968_v60  ;;  %v899_v56 = vcvt.s32.f32 %v897_v21 }
 0x2e3   : > { %v6343_v33 = vpop.xlane.xlu1 %949  ;;  %v6345_v45 = vsel %vm1151_vm8, %v849_v62, %v850_v42  ;;  %v881_v42 = vand.u32 65535, %v6132_v54 }
 0x2e4   : > { %vm951_vm9 = vcmp.eq.f32.partialorder %v6124_v4, %v6343_v33  ;;  %v1154_v61 = vshra.s32 %v6345_v45, 16 }
 0x2e5   : > { %v952_v5 = vsel %vm951_vm9, %v947_v44, inf }
 0x2e6   : > { %953 = vmin.xlane.f32.xlu0 %v952_v5  ;;  %v6351_v14 = vcvt.s32.f32 %v1154_v61  ;;  %v904_v61 = vsel %vm903_vm15, %v899_v56, inf  ;;  %v883_v5 = vcvt.s32.f32 %v881_v42 }
 0x2e7   : > { %v705_v12 = vpop.xlane.xlu1 %704 }
 0x2e8   : > { %vm783_vm11 = vcmp.eq.f32.partialorder %v10852_v25, %v705_v12  ;;  %vm784_vm12 = vcmp.eq.f32.partialorder %v10851_v43, %v705_v12  ;;  %1157 = vmin.xlane.f32.xlu1 %v6351_v14  ;;  %v10883_v12 = vld [vmem:[#allocation64_spill] sm:$0xff]  ;;  %v10895_v43 = vld [vmem:[#allocation77_spill] sm:$0xff] }
 0x2e9   : > { %v847_v17 = vsel %vm783_vm11, %v5950_v53, 256  ;;  %v848_v4 = vsel %vm784_vm12, %v5953_v26, 256  ;;  %v1329_v3 = vand.u32 65535, %v10883_v12 }
 0x2ea   : > { %vm1135_vm13 = vcmp.lt.s32.totalorder %v847_v17, %v848_v4  ;;  %937 = vmin.xlane.f32.xlu0 %v936_v47 }
 0x2eb   : > { %v6364_v48 = vpop.xlane.xlu1 %917  ;;  %v6366_v57 = vsel %vm1135_vm13, %v847_v17, %v848_v4  ;;  %v1331_v21 = vcvt.s32.f32 %v1329_v3 }
 0x2ec   : > { %vm919_vm14 = vcmp.eq.f32.partialorder %v6138_v63, %v6364_v48  ;;  %v1138_v62 = vshra.s32 %v6366_v57, 16  ;;  %v1361_v63 = vand.u32 65535, %v6152_v23 }
 0x2ed   : > { %v920_v60 = vsel %vm919_vm14, %v915_v8, inf  ;;  %v10885_v8 = vld [vmem:[#allocation67_spill] sm:$0xff] }
 0x2ee   : > { %921 = vmin.xlane.f32.xlu0 %v920_v60  ;;  %v6372_v44 = vcvt.s32.f32 %v1138_v62  ;;  %v1363_v46 = vcvt.s32.f32 %v1361_v63  ;;  %v10886_v60 = vld [vmem:[#allocation68_spill] sm:$0xff]  ;;  %v10887_v63 = vld [vmem:[#allocation69_spill] sm:$0xff] }
 0x2ef   : > { %v6376_v6 = vpop.xlane.xlu1 %885  ;;  %v1297_v56 = vand.u32 65535, %v10886_v60 }
 0x2f0   : > { %1141 = vmin.xlane.f32.xlu1 %v6372_v44  ;;  %vm887_vm1 = vcmp.eq.f32.partialorder %v6150_v49, %v6376_v6  ;;  %v10884_v49 = vld [vmem:[#allocation66_spill] sm:$0xff] }
 0x2f1   : > { %v888_v52 = vsel %vm887_vm1, %v883_v5, inf  ;;  %v1313_v47 = vand.u32 65535, %v10884_v49 }
 0x2f2   : > { %905 = vmin.xlane.f32.xlu0 %v904_v61 }
 0x2f3   : > { %v6382_v54 = vpop.xlane.xlu1 %1365 }
 0x2f4   : > { %889 = vmin.xlane.f32.xlu1 %v888_v52  ;;  %vm1367_vm3 = vcmp.eq.f32.partialorder %v6162_v0, %v6382_v54  ;;  %v1315_v0 = vcvt.s32.f32 %v1313_v47  ;;  %v1299_v52 = vcvt.s32.f32 %v1297_v56  ;;  %v10889_v47 = vld [vmem:[#allocation71_spill] sm:$0xff] }
 0x2f5   : > { %v1368_v4 = vsel %vm1367_vm3, %v1363_v46, inf  ;;  %v10888_v46 = vld [vmem:[#allocation70_spill] sm:$0xff] }
 0x2f6   : > { %v1281_v12 = vand.u32 65535, %v10888_v46  ;;  %v10893_v46 = vld [vmem:[#allocation63_spill] sm:$0xff] }
 0x2f7   : > { %v6387_v17 = vpop.xlane.xlu1 %1349 }
 0x2f8   : > { %1369 = vmin.xlane.f32.xlu1 %v1368_v4  ;;  %v1283_v49 = vcvt.s32.f32 %v1281_v12  ;;  %v1345_v12 = vand.u32 65535, %v10893_v46 }
 0x2fa   : > { %v1347_v46 = vcvt.s32.f32 %v1345_v12 }
 0x2fb   : > { %v6390_v23 = vpop.xlane.xlu1 %1333 }
 0x2fc   : > { %vm1335_vm4 = vcmp.eq.f32.partialorder %v10885_v8, %v6390_v23 }
 0x2fd   : > { %v1336_v62 = vsel %vm1335_vm4, %v1331_v21, inf  ;;  %v1265_v21 = vand.u32 65535, %v10889_v47 }
 0x2fe   : > { %1337 = vmin.xlane.f32.xlu1 %v1336_v62  ;;  %v10890_v62 = vld [vmem:[#allocation74_spill] sm:$0xff] }
 0x2ff   : > { %v6394_v42 = vpop.xlane.xlu1 %1317  ;;  %v1267_v56 = vcvt.s32.f32 %v1265_v21  ;;  %v10896_v21 = vld [vmem:[#allocation76_spill] sm:$0xff] }
 0x300   : > { %vm1319_vm5 = vcmp.eq.f32.partialorder %v10887_v63, %v6394_v42  ;;  %v10891_v63 = vld [vmem:[#allocation72_spill] sm:$0xff] }
 0x301   : > { %v1320_v61 = vsel %vm1319_vm5, %v1315_v0, inf  ;;  %v1377_v0 = vand.u32 65535, %v10890_v62 }
 0x302   : > { %1321 = vmin.xlane.f32.xlu1 %v1320_v61  ;;  %v1249_v61 = vand.u32 65535, %v10891_v63 }
 0x303   : > { %v6399_v5 = vpop.xlane.xlu1 %1301 }
 0x304   : > { %vm1303_vm6 = vcmp.eq.f32.partialorder %v6202_v55, %v6399_v5  ;;  %v10892_v55 = vld [vmem:[#allocation73_spill] sm:$0xff] }
 0x305   : > { %v1304_v3 = vsel %vm1303_vm6, %v1299_v52, inf }
 0x306   : > { %1305 = vmin.xlane.f32.xlu1 %v1304_v3 }
 0x307   : > { %v6404_v4 = vpop.xlane.xlu1 %1285 }
 0x308   : > { %vm1287_vm7 = vcmp.eq.f32.partialorder %v6212_v18, %v6404_v4  ;;  %v1379_v18 = vcvt.s32.f32 %v1377_v0 }
 0x309   : > { %v1288_v8 = vsel %vm1287_vm7, %v1283_v49, inf  ;;  %v1251_v49 = vcvt.s32.f32 %v1249_v61  ;;  %v10898_v61 = vld [vmem:[#allocation78_spill] sm:$0xff] }
 0x30a   : > { %1289 = vmin.xlane.f32.xlu1 %v1288_v8  ;;  %v10894_v8 = vld [vmem:[#allocation75_spill] sm:$0xff] }
 0x30b   : > { %v6410_v60 = vpop.xlane.xlu1 %1269  ;;  %v1233_v62 = vand.u32 65535, %v10894_v8 }
 0x30c   : > { %vm1271_vm8 = vcmp.eq.f32.partialorder %v10892_v55, %v6410_v60 }
 0x30d   : > { %v1272_v52 = vsel %vm1271_vm8, %v1267_v56, inf  ;;  %v10897_v56 = vld [vmem:[#allocation65_spill] sm:$0xff]  ;;  %v1235_v0 = vcvt.s32.f32 %v1233_v62 }
 0x30e   : > { %1273 = vmin.xlane.f32.xlu1 %v1272_v52  ;;  %vm1351_vm11 = vcmp.eq.f32.partialorder %v10897_v56, %v6387_v17  ;;  %v1100_v56 = vcvt.f32.s32 %v6247_v9 }
 0x30f   : > { %v6416_v3 = vpop.xlane.xlu0 %1381  ;;  %v6418_v47 = vpop.xlane.xlu1 %1253  ;;  %v1352_v8 = vsel %vm1351_vm11, %v1347_v46, inf  ;;  %v10900_v46 = vld [vmem:[#allocation35_spill] sm:$0xff] }
 0x310   : > { %vm1383_vm9 = vcmp.eq.f32.partialorder %v10895_v43, %v6416_v3  ;;  %vm1255_vm10 = vcmp.eq.f32.partialorder %v10896_v21, %v6418_v47  ;;  %v1132_v43 = vcvt.f32.s32 %v6252_v58 }
 0x311   : > { %v1384_v63 = vsel %vm1383_vm9, %v1379_v18, inf  ;;  %v1256_v55 = vsel %vm1255_vm10, %v1251_v49, inf  ;;  %v1116_v49 = vcvt.f32.s32 %v6249_v51  ;;  %v10902_v51 = vld [vmem:[#allocation36_spill] sm:$0xff] }
 0x312   : > { %1385 = vmin.xlane.f32.xlu0 %v1384_v63  ;;  %1257 = vmin.xlane.f32.xlu1 %v1256_v55  ;;  %v1133_v21 = vshll.u32 %v1132_v43, 16 }
 0x313   : > { %v6427_v52 = vpop.xlane.xlu1 %1237  ;;  %v1117_v62 = vshll.u32 %v1116_v49, 16 }
 0x314   : > { %vm1239_vm12 = vcmp.eq.f32.partialorder %v10898_v61, %v6427_v52 }
 0x315   : > { %v1240_v25 = vsel %vm1239_vm12, %v1235_v0, inf }
 0x316   : > { %1353 = vmin.xlane.f32.xlu0 %v1352_v8  ;;  %1241 = vmin.xlane.f32.xlu1 %v1240_v25  ;;  %v1084_v8 = vcvt.f32.s32 %v6245_v15 }
 0x343   : > { %v1130_v18 = vpop.xlane.xlu0 %1129 }
 0x344   : > { %v1131_v63 = vcvt.f32.s32 %v1130_v18  ;;  %v1101_v18 = vshll.u32 %v1100_v56, 16  ;;  %v1217_v56 = vand.u32 65535, %v6273_v22  ;;  %v10910_v22 = vld [vmem:[#allocation31_spill] sm:$0xff] }
 0x346   : > { %v6433_v55 = vadd.s32 %v1133_v21, %v1131_v63  ;;  %v10905_v21 = vld [vmem:[#allocation33_spill] sm:$0xff] }
 0x347   : > { %v1114_v12 = vpop.xlane.xlu0 %1113 }
 0x348   : > { %10899 = vst [vmem:[#allocation64_spill] sm:$0xff] %v6433_v55  ;;  %vm1421_vm13 = vcmp.eq.s32.totalorder %v5950_v53, %v6433_v55  ;;  %vm1422_vm14 = vcmp.eq.s32.totalorder %v5953_v26, %v6433_v55  ;;  %v1115_v25 = vcvt.f32.s32 %v1114_v12  ;;  %v10907_v12 = vld [vmem:[#allocation34_spill] sm:$0xff] }
 0x349   : > { %v6444_v58 = vsel %vm1421_vm13, inf, %v10900_v46  ;;  %v6450_v9 = vsel %vm1422_vm14, inf, %v10902_v51  ;;  %v1068_v46 = vcvt.f32.s32 %v6243_v59 }
 0x34a   : > { %10901 = vst [vmem:[#allocation66_spill] sm:$0xff] %v6444_v58  ;;  %10903 = vst [vmem:[#allocation67_spill] sm:$0xff] %v6450_v9  ;;  %v6452_v0 = vadd.s32 %v1117_v62, %v1115_v25  ;;  %v1756_v61 = vmin.f32 %v6444_v58, %v6450_v9 }
 0x34b   : > { %v1098_v43 = vpop.xlane.xlu0 %1097  ;;  %v1069_v55 = vshll.u32 %v1068_v46, 16  ;;  %v1201_v46 = vand.u32 65535, %v6291_v41  ;;  %v10920_v41 = vld [vmem:[#allocation27_spill] sm:$0xff] }
 0x34c   : > { %10904 = vst [vmem:[#allocation68_spill] sm:$0xff] %v6452_v0  ;;  %vm1419_vm15 = vcmp.eq.s32.totalorder %v5950_v53, %v6452_v0  ;;  %vm1420_vm1 = vcmp.eq.s32.totalorder %v5953_v26, %v6452_v0  ;;  %v1099_v49 = vcvt.f32.s32 %v1098_v43  ;;  %1757 = vmin.xlane.f32.xlu0 %v1756_v61  ;;  %v1085_v61 = vshll.u32 %v1084_v8, 16 }
 0x34d   : > { %v6465_v63 = vsel %vm1419_vm15, inf, %v10905_v21  ;;  %v6471_v15 = vsel %vm1420_vm1, inf, %v10907_v12  ;;  %v1219_v8 = vcvt.s32.f32 %v1217_v56 }
 0x34e   : > { %10906 = vst [vmem:[#allocation69_spill] sm:$0xff] %v6465_v63  ;;  %10908 = vst [vmem:[#allocation70_spill] sm:$0xff] %v6471_v15  ;;  %v6474_v62 = vadd.s32 %v1101_v18, %v1099_v49  ;;  %v1753_v25 = vmin.f32 %v6465_v63, %v6471_v15  ;;  %v10912_v49 = vld [vmem:[#allocation32_spill] sm:$0xff] }
 0x34f   : > { %v1082_v51 = vpop.xlane.xlu0 %1081 }
 0x350   : > { %10909 = vst [vmem:[#allocation71_spill] sm:$0xff] %v6474_v62  ;;  %vm1417_vm3 = vcmp.eq.s32.totalorder %v5950_v53, %v6474_v62  ;;  %vm1418_vm4 = vcmp.eq.s32.totalorder %v5953_v26, %v6474_v62  ;;  %v1083_v43 = vcvt.f32.s32 %v1082_v51  ;;  %1754 = vmin.xlane.f32.xlu0 %v1753_v25  ;;  %v1052_v51 = vcvt.f32.s32 %v6241_v27 }
 0x351   : > { %v6483_v21 = vpop.xlane.xlu1 %1221  ;;  %v6489_v18 = vsel %vm1417_vm3, inf, %v10910_v22  ;;  %v6495_v59 = vsel %vm1418_vm4, inf, %v10912_v49 }
 0x352   : > { %10911 = vst [vmem:[#allocation74_spill] sm:$0xff] %v6489_v18  ;;  %10913 = vst [vmem:[#allocation72_spill] sm:$0xff] %v6495_v59  ;;  %v6497_v12 = vadd.s32 %v1085_v61, %v1083_v43  ;;  %v1750_v25 = vmin.f32 %v6489_v18, %v6495_v59  ;;  %vm1223_vm5 = vcmp.eq.f32.partialorder %v6277_v19, %v6483_v21  ;;  %v10915_v61 = vld [vmem:[#allocation29_spill] sm:$0xff]  ;;  %v10917_v19 = vld [vmem:[#allocation30_spill] sm:$0xff] }
 0x353   : > { %v1066_v0 = vpop.xlane.xlu0 %1065  ;;  %v1224_v22 = vsel %vm1223_vm5, %v1219_v8, inf  ;;  %v1036_v8 = vcvt.f32.s32 %v6259_v36 }
 0x354   : > { %10914 = vst [vmem:[#allocation73_spill] sm:$0xff] %v6497_v12  ;;  %vm1415_vm6 = vcmp.eq.s32.totalorder %v5950_v53, %v6497_v12  ;;  %vm10650_vm7 = vcmp.eq.s32.totalorder %v5953_v26, %v6497_v12  ;;  %v1067_v56 = vcvt.f32.s32 %v1066_v0  ;;  %1751 = vmin.xlane.f32.xlu0 %v1750_v25  ;;  %1225 = vmin.xlane.f32.xlu1 %v1224_v22  ;;  %v1053_v22 = vshll.u32 %v1052_v51, 16 }
 0x355   : > { %v6512_v43 = vsel %vm1415_vm6, inf, %v10915_v61  ;;  %v6518_v27 = vsel %vm10650_vm7, inf, %v10917_v19  ;;  %v1203_v51 = vcvt.s32.f32 %v1201_v46 }
 0x356   : > { %10916 = vst [vmem:[#allocation63_spill] sm:$0xff] %v6512_v43  ;;  %10918 = vst [vmem:[#allocation75_spill] sm:$0xff] %v6518_v27  ;;  %v6521_v49 = vadd.s32 %v1069_v55, %v1067_v56  ;;  %v1747_v0 = vmin.f32 %v6512_v43, %v6518_v27  ;;  %v10922_v56 = vld [vmem:[#allocation28_spill] sm:$0xff] }
 0x357   : > { %v1050_v25 = vpop.xlane.xlu0 %1049 }
 0x358   : > { %10919 = vst [vmem:[#allocation77_spill] sm:$0xff] %v6521_v49  ;;  %vm10645_vm8 = vcmp.eq.s32.totalorder %v5950_v53, %v6521_v49  ;;  %vm10643_vm9 = vcmp.eq.s32.totalorder %v5953_v26, %v6521_v49  ;;  %v1051_v61 = vcvt.f32.s32 %v1050_v25  ;;  %1748 = vmin.xlane.f32.xlu0 %v1747_v0  ;;  %v1037_v25 = vshll.u32 %v1036_v8, 16 }
 0x359   : > { %v6530_v19 = vpop.xlane.xlu1 %1205  ;;  %v6536_v55 = vsel %vm10645_vm8, inf, %v10920_v41  ;;  %v6542_v36 = vsel %vm10643_vm9, inf, %v10922_v56  ;;  %v1020_v41 = vcvt.f32.s32 %v6271_v30  ;;  %v1185_v8 = vand.u32 65535, %v6309_v20  ;;  %v10930_v20 = vld [vmem:[#allocation23_spill] sm:$0xff] }
 0x35a   : > { %10921 = vst [vmem:[#allocation76_spill] sm:$0xff] %v6536_v55  ;;  %10923 = vst [vmem:[#allocation65_spill] sm:$0xff] %v6542_v36  ;;  %v6544_v12 = vadd.s32 %v1053_v22, %v1051_v61  ;;  %v1744_v0 = vmin.f32 %v6536_v55, %v6542_v36  ;;  %vm1207_vm10 = vcmp.eq.f32.partialorder %v6295_v10, %v6530_v19  ;;  %v10925_v22 = vld [vmem:[#allocation25_spill] sm:$0xff]  ;;  %v10927_v10 = vld [vmem:[#allocation26_spill] sm:$0xff] }
 0x35b   : > { %v1034_v62 = vpop.xlane.xlu0 %1033  ;;  %v1208_v29 = vsel %vm1207_vm10, %v1203_v51, inf }
 0x35c   : > { %10924 = vst [vmem:[#allocation78_spill] sm:$0xff] %v6544_v12  ;;  %vm10576_vm11 = vcmp.eq.s32.totalorder %v5950_v53, %v6544_v12  ;;  %vm10575_vm12 = vcmp.eq.s32.totalorder %v5953_v26, %v6544_v12  ;;  %v1035_v46 = vcvt.f32.s32 %v1034_v62  ;;  %1745 = vmin.xlane.f32.xlu0 %v1744_v0  ;;  %1209 = vmin.xlane.f32.xlu1 %v1208_v29  ;;  %v1004_v29 = vcvt.f32.s32 %v6289_v11 }
 0x35d   : > { %v6559_v61 = vsel %vm10576_vm11, inf, %v10925_v22  ;;  %v6565_v30 = vsel %vm10575_vm12, inf, %v10927_v10  ;;  %v1021_v0 = vshll.u32 %v1020_v41, 16  ;;  %v1187_v41 = vcvt.s32.f32 %v1185_v8 }
 0x35e   : > { %10926 = vst [vmem:[#allocation35_spill] sm:$0xff] %v6559_v61  ;;  %10928 = vst [vmem:[#allocation36_spill] sm:$0xff] %v6565_v30  ;;  %v6568_v56 = vadd.s32 %v1037_v25, %v1035_v46  ;;  %v1741_v62 = vmin.f32 %v6559_v61, %v6565_v30  ;;  %v10932_v46 = vld [vmem:[#allocation24_spill] sm:$0xff] }
 0x35f   : > { %v1018_v51 = vpop.xlane.xlu0 %1017 }
 0x360   : > { %10929 = vst [vmem:[#allocation33_spill] sm:$0xff] %v6568_v56  ;;  %vm10506_vm5 = vcmp.eq.s32.totalorder %v5950_v53, %v6568_v56  ;;  %vm10473_vm10 = vcmp.eq.s32.totalorder %v5953_v26, %v6568_v56  ;;  %v1019_v22 = vcvt.f32.s32 %v1018_v51  ;;  %1742 = vmin.xlane.f32.xlu0 %v1741_v62  ;;  %v1005_v51 = vshll.u32 %v1004_v29, 16 }
 0x361   : > { %v6577_v10 = vpop.xlane.xlu1 %1189  ;;  %v6583_v25 = vsel %vm10506_vm5, inf, %v10930_v20  ;;  %v6589_v11 = vsel %vm10473_vm10, inf, %v10932_v46  ;;  %v988_v20 = vcvt.f32.s32 %v6307_v50  ;;  %v1169_v29 = vand.u32 65535, %v6327_v2  ;;  %v10940_v2 = vld [vmem:[#allocation19_spill] sm:$0xff] }
 0x362   : > { %10931 = vst [vmem:[#allocation34_spill] sm:$0xff] %v6583_v25  ;;  %10933 = vst [vmem:[#allocation31_spill] sm:$0xff] %v6589_v11  ;;  %v6591_v12 = vadd.s32 %v1021_v0, %v1019_v22  ;;  %v1738_v62 = vmin.f32 %v6583_v25, %v6589_v11  ;;  %vm1191_vm0 = vcmp.eq.f32.partialorder %v6313_v1, %v6577_v10  ;;  %v10935_v0 = vld [vmem:[#allocation21_spill] sm:$0xff]  ;;  %v10937_v1 = vld [vmem:[#allocation22_spill] sm:$0xff] }
 0x363   : > { %v1002_v49 = vpop.xlane.xlu0 %1001  ;;  %v1192_v28 = vsel %vm1191_vm0, %v1187_v41, inf }
 0x364   : > { %10934 = vst [vmem:[#allocation32_spill] sm:$0xff] %v6591_v12  ;;  %vm10474_vm2 = vcmp.eq.s32.totalorder %v5950_v53, %v6591_v12  ;;  %vm10477_vm10 = vcmp.eq.s32.totalorder %v5953_v26, %v6591_v12  ;;  %v1003_v8 = vcvt.f32.s32 %v1002_v49  ;;  %1739 = vmin.xlane.f32.xlu0 %v1738_v62  ;;  %1193 = vmin.xlane.f32.xlu1 %v1192_v28  ;;  %v972_v28 = vcvt.f32.s32 %v6325_v24 }
 0x365   : > { %v6606_v22 = vsel %vm10474_vm2, inf, %v10935_v0  ;;  %v6612_v50 = vsel %vm10477_vm10, inf, %v10937_v1  ;;  %v989_v62 = vshll.u32 %v988_v20, 16  ;;  %v1171_v20 = vcvt.s32.f32 %v1169_v29 }
 0x366   : > { %10936 = vst [vmem:[#allocation29_spill] sm:$0xff] %v6606_v22  ;;  %10938 = vst [vmem:[#allocation30_spill] sm:$0xff] %v6612_v50  ;;  %v6615_v46 = vadd.s32 %v1005_v51, %v1003_v8  ;;  %v1735_v49 = vmin.f32 %v6606_v22, %v6612_v50  ;;  %v10942_v8 = vld [vmem:[#allocation20_spill] sm:$0xff] }
 0x367   : > { %v986_v41 = vpop.xlane.xlu0 %985 }
 0x368   : > { %10939 = vst [vmem:[#allocation27_spill] sm:$0xff] %v6615_v46  ;;  %vm10481_vm0 = vcmp.eq.s32.totalorder %v5950_v53, %v6615_v46  ;;  %vm10482_vm2 = vcmp.eq.s32.totalorder %v5953_v26, %v6615_v46  ;;  %v987_v0 = vcvt.f32.s32 %v986_v41  ;;  %1736 = vmin.xlane.f32.xlu0 %v1735_v49  ;;  %v973_v41 = vshll.u32 %v972_v28, 16 }
 0x369   : > { %v6624_v1 = vpop.xlane.xlu1 %1173  ;;  %v6630_v51 = vsel %vm10481_vm0, inf, %v10940_v2  ;;  %v6636_v24 = vsel %vm10482_vm2, inf, %v10942_v8  ;;  %v956_v2 = vcvt.f32.s32 %v6343_v33  ;;  %v1153_v28 = vand.u32 65535, %v6345_v45  ;;  %v10950_v45 = vld [vmem:[#allocation15_spill] sm:$0xff] }
 0x36a   : > { %10941 = vst [vmem:[#allocation28_spill] sm:$0xff] %v6630_v51  ;;  %10943 = vst [vmem:[#allocation25_spill] sm:$0xff] %v6636_v24  ;;  %v6638_v12 = vadd.s32 %v989_v62, %v987_v0  ;;  %v1732_v49 = vmin.f32 %v6630_v51, %v6636_v24  ;;  %vm1175_vm10 = vcmp.eq.f32.partialorder %v6331_v7, %v6624_v1  ;;  %v10945_v62 = vld [vmem:[#allocation17_spill] sm:$0xff]  ;;  %v10947_v7 = vld [vmem:[#allocation18_spill] sm:$0xff] }
 0x36b   : > { %v970_v56 = vpop.xlane.xlu0 %969  ;;  %v1176_v32 = vsel %vm1175_vm10, %v1171_v20, inf }
 0x36c   : > { %10944 = vst [vmem:[#allocation26_spill] sm:$0xff] %v6638_v12  ;;  %vm10483_vm0 = vcmp.eq.s32.totalorder %v5950_v53, %v6638_v12  ;;  %vm10486_vm2 = vcmp.eq.s32.totalorder %v5953_v26, %v6638_v12  ;;  %v971_v29 = vcvt.f32.s32 %v970_v56  ;;  %1733 = vmin.xlane.f32.xlu0 %v1732_v49  ;;  %1177 = vmin.xlane.f32.xlu1 %v1176_v32  ;;  %v940_v32 = vcvt.f32.s32 %v6341_v13 }
 0x36d   : > { %v6653_v0 = vsel %vm10483_vm0, inf, %v10945_v62  ;;  %v6659_v33 = vsel %vm10486_vm2, inf, %v10947_v7  ;;  %v957_v49 = vshll.u32 %v956_v2, 16  ;;  %v1155_v2 = vcvt.s32.f32 %v1153_v28 }
 0x36e   : > { %10946 = vst [vmem:[#allocation23_spill] sm:$0xff] %v6653_v0  ;;  %10948 = vst [vmem:[#allocation24_spill] sm:$0xff] %v6659_v33  ;;  %v6662_v8 = vadd.s32 %v973_v41, %v971_v29  ;;  %v1729_v56 = vmin.f32 %v6653_v0, %v6659_v33  ;;  %v10952_v29 = vld [vmem:[#allocation16_spill] sm:$0xff] }
 0x36f   : > { %v954_v20 = vpop.xlane.xlu0 %953 }
 0x370   : > { %10949 = vst [vmem:[#allocation21_spill] sm:$0xff] %v6662_v8  ;;  %vm10490_vm10 = vcmp.eq.s32.totalorder %v5950_v53, %v6662_v8  ;;  %vm10491_vm0 = vcmp.eq.s32.totalorder %v5953_v26, %v6662_v8  ;;  %v955_v62 = vcvt.f32.s32 %v954_v20  ;;  %1730 = vmin.xlane.f32.xlu0 %v1729_v56  ;;  %v941_v20 = vshll.u32 %v940_v32, 16 }
 0x371   : > { %v6671_v7 = vpop.xlane.xlu1 %1157  ;;  %v6677_v41 = vsel %vm10490_vm10, inf, %v10950_v45  ;;  %v6683_v13 = vsel %vm10491_vm0, inf, %v10952_v29  ;;  %v924_v45 = vcvt.f32.s32 %v6364_v48  ;;  %v1137_v32 = vand.u32 65535, %v6366_v57  ;;  %v10960_v57 = vld [vmem:[#allocation11_spill] sm:$0xff] }
 0x372   : > { %10951 = vst [vmem:[#allocation22_spill] sm:$0xff] %v6677_v41  ;;  %10953 = vst [vmem:[#allocation19_spill] sm:$0xff] %v6683_v13  ;;  %v6685_v12 = vadd.s32 %v957_v49, %v955_v62  ;;  %v1726_v56 = vmin.f32 %v6677_v41, %v6683_v13  ;;  %vm1159_vm2 = vcmp.eq.f32.partialorder %v6351_v14, %v6671_v7  ;;  %v10955_v49 = vld [vmem:[#allocation13_spill] sm:$0xff]  ;;  %v10957_v14 = vld [vmem:[#allocation14_spill] sm:$0xff] }
 0x373   : > { %v938_v46 = vpop.xlane.xlu0 %937  ;;  %v1160_v31 = vsel %vm1159_vm2, %v1155_v2, inf }
 0x374   : > { %10954 = vst [vmem:[#allocation20_spill] sm:$0xff] %v6685_v12  ;;  %vm10492_vm10 = vcmp.eq.s32.totalorder %v5950_v53, %v6685_v12  ;;  %vm10497_vm0 = vcmp.eq.s32.totalorder %v5953_v26, %v6685_v12  ;;  %v939_v28 = vcvt.f32.s32 %v938_v46  ;;  %1727 = vmin.xlane.f32.xlu0 %v1726_v56  ;;  %1161 = vmin.xlane.f32.xlu1 %v1160_v31  ;;  %v908_v31 = vcvt.f32.s32 %v6362_v16 }
 0x375   : > { %v6700_v62 = vsel %vm10492_vm10, inf, %v10955_v49  ;;  %v6706_v48 = vsel %vm10497_vm0, inf, %v10957_v14  ;;  %v925_v56 = vshll.u32 %v924_v45, 16  ;;  %v1139_v45 = vcvt.s32.f32 %v1137_v32 }
 0x376   : > { %10956 = vst [vmem:[#allocation17_spill] sm:$0xff] %v6700_v62  ;;  %10958 = vst [vmem:[#allocation18_spill] sm:$0xff] %v6706_v48  ;;  %v6709_v29 = vadd.s32 %v941_v20, %v939_v28  ;;  %v1723_v46 = vmin.f32 %v6700_v62, %v6706_v48  ;;  %v10962_v28 = vld [vmem:[#allocation12_spill] sm:$0xff]  ;;  %v892_v12 = vcvt.f32.s32 %v6376_v6  ;;  %v909_v48 = vshll.u32 %v908_v31, 16 }
 0x377   : > { %v922_v2 = vpop.xlane.xlu0 %921  ;;  %v1372_v6 = vcvt.f32.s32 %v6382_v54 }
 0x378   : > { %10959 = vst [vmem:[#allocation15_spill] sm:$0xff] %v6709_v29  ;;  %vm10500_vm2 = vcmp.eq.s32.totalorder %v5950_v53, %v6709_v29  ;;  %vm10501_vm10 = vcmp.eq.s32.totalorder %v5953_v26, %v6709_v29  ;;  %v923_v49 = vcvt.f32.s32 %v922_v2  ;;  %1724 = vmin.xlane.f32.xlu0 %v1723_v46 }
 0x379   : > { %v6718_v14 = vpop.xlane.xlu1 %1141  ;;  %v6724_v20 = vsel %vm10500_vm2, inf, %v10960_v57  ;;  %v6730_v16 = vsel %vm10501_vm10, inf, %v10962_v28  ;;  %v10967_v28 = vld [vmem:[#allocation10_spill] sm:$0xff] }
 0x37a   : > { %10961 = vst [vmem:[#allocation16_spill] sm:$0xff] %v6724_v20  ;;  %10963 = vst [vmem:[#allocation13_spill] sm:$0xff] %v6730_v16  ;;  %v6733_v8 = vadd.s32 %v925_v56, %v923_v49  ;;  %v1720_v46 = vmin.f32 %v6724_v20, %v6730_v16  ;;  %vm1143_vm0 = vcmp.eq.f32.partialorder %v6372_v44, %v6718_v14  ;;  %v10965_v49 = vld [vmem:[#allocation9_spill] sm:$0xff] }
 0x37b   : > { %v906_v2 = vpop.xlane.xlu0 %905  ;;  %v1144_v57 = vsel %vm1143_vm0, %v1139_v45, inf  ;;  %v893_v45 = vshll.u32 %v892_v12, 16 }
 0x37c   : > { %10964 = vst [vmem:[#allocation14_spill] sm:$0xff] %v6733_v8  ;;  %vm10504_vm2 = vcmp.eq.s32.totalorder %v5950_v53, %v6733_v8  ;;  %vm10505_vm10 = vcmp.eq.s32.totalorder %v5953_v26, %v6733_v8  ;;  %v907_v32 = vcvt.f32.s32 %v906_v2  ;;  %1721 = vmin.xlane.f32.xlu0 %v1720_v46  ;;  %1145 = vmin.xlane.f32.xlu1 %v1144_v57  ;;  %v1373_v57 = vshll.u32 %v1372_v6, 16 }
 0x37d   : > { %v890_v56 = vpop.xlane.xlu1 %889  ;;  %v6748_v44 = vsel %vm10504_vm2, inf, %v10965_v49  ;;  %v6754_v31 = vsel %vm10505_vm10, inf, %v10967_v28  ;;  %v10971_v28 = vld [vmem:[#allocation7_spill] sm:$0xff] }
 0x37e   : > { %10966 = vst [vmem:[#allocation11_spill] sm:$0xff] %v6748_v44  ;;  %10968 = vst [vmem:[#allocation12_spill] sm:$0xff] %v6754_v31  ;;  %v6756_v29 = vadd.s32 %v909_v48, %v907_v32  ;;  %v891_v46 = vcvt.f32.s32 %v890_v56  ;;  %v1717_v54 = vmin.f32 %v6748_v44, %v6754_v31  ;;  %v10973_v48 = vld [vmem:[#allocation8_spill] sm:$0xff] }
 0x380   : > { %10969 = vst [vmem:[#allocation9_spill] sm:$0xff] %v6756_v29  ;;  %vm10553_vm0 = vcmp.eq.s32.totalorder %v5950_v53, %v6756_v29  ;;  %vm10509_vm2 = vcmp.eq.s32.totalorder %v5953_v26, %v6756_v29  ;;  %v6764_v2 = vadd.s32 %v893_v45, %v891_v46  ;;  %1718 = vmin.xlane.f32.xlu1 %v1717_v54  ;;  %v10975_v45 = vld [vmem:[#allocation5_spill] sm:$0xff]  ;;  %v10977_v54 = vld [vmem:[#allocation6_spill] sm:$0xff] }
 0x381   : > { %v1370_v49 = vpop.xlane.xlu1 %1369  ;;  %v6770_v12 = vsel %vm10553_vm0, inf, %v10971_v28  ;;  %v6776_v32 = vsel %vm10509_vm2, inf, %v10973_v48  ;;  %v1340_v48 = vcvt.f32.s32 %v6390_v23 }
 0x382   : > { %10970 = vst [vmem:[#allocation10_spill] sm:$0xff] %v6764_v2  ;;  %10972 = vst [vmem:[#allocation7_spill] sm:$0xff] %v6770_v12  ;;  %vm10510_vm10 = vcmp.eq.s32.totalorder %v5950_v53, %v6764_v2  ;;  %vm10522_vm5 = vcmp.eq.s32.totalorder %v5953_v26, %v6764_v2  ;;  %v1371_v6 = vcvt.f32.s32 %v1370_v49  ;;  %v1714_v56 = vmin.f32 %v6770_v12, %v6776_v32 }
 0x383   : > { %10974 = vst [vmem:[#allocation8_spill] sm:$0xff] %v6776_v32  ;;  %v6788_v46 = vsel %vm10510_vm10, inf, %v10975_v45  ;;  %v6794_v28 = vsel %vm10522_vm5, inf, %v10977_v54  ;;  %v1324_v45 = vcvt.f32.s32 %v6394_v42  ;;  %v10980_v54 = vld [vmem:[#allocation59_spill] sm:$0xff]  ;;  %v1308_v32 = vcvt.f32.s32 %v6399_v5 }
 0x384   : > { %10976 = vst [vmem:[#allocation5_spill] sm:$0xff] %v6788_v46  ;;  %10978 = vst [vmem:[#allocation6_spill] sm:$0xff] %v6794_v28  ;;  %v6797_v29 = vadd.s32 %v1373_v57, %v1371_v6  ;;  %1715 = vmin.xlane.f32.xlu0 %v1714_v56  ;;  %v1711_v49 = vmin.f32 %v6788_v46, %v6794_v28  ;;  %v10982_v57 = vld [vmem:[#allocation60_spill] sm:$0xff]  ;;  %v1341_v56 = vshll.u32 %v1340_v48, 16 }
 0x385   : > { %v1325_v42 = vshll.u32 %v1324_v45, 16 }
 0x386   : > { %10979 = vst [vmem:[#allocation79_spill] sm:$0xff] %v6797_v29  ;;  %vm10521_vm2 = vcmp.eq.s32.totalorder %v5950_v53, %v6797_v29  ;;  %vm10523_vm10 = vcmp.eq.s32.totalorder %v5953_v26, %v6797_v29  ;;  %1712 = vmin.xlane.f32.xlu1 %v1711_v49 }
 0x387   : > { %v1338_v2 = vpop.xlane.xlu1 %1337  ;;  %v6810_v23 = vsel %vm10521_vm2, inf, %v10980_v54  ;;  %v6816_v6 = vsel %vm10523_vm10, inf, %v10982_v57  ;;  %v10985_v57 = vld [vmem:[#allocation55_spill] sm:$0xff] }
 0x388   : > { %10981 = vst [vmem:[#allocation59_spill] sm:$0xff] %v6810_v23  ;;  %10983 = vst [vmem:[#allocation60_spill] sm:$0xff] %v6816_v6  ;;  %v1339_v8 = vcvt.f32.s32 %v1338_v2  ;;  %v1801_v49 = vmin.f32 %v6810_v23, %v6816_v6 }
 0x38a   : > { %v6820_v28 = vadd.s32 %v1341_v56, %v1339_v8  ;;  %1802 = vmin.xlane.f32.xlu1 %v1801_v49  ;;  %v10987_v8 = vld [vmem:[#allocation56_spill] sm:$0xff]  ;;  %v1292_v56 = vcvt.f32.s32 %v6404_v4  ;;  %v1309_v49 = vshll.u32 %v1308_v32, 16 }
 0x38b   : > { %v1322_v46 = vpop.xlane.xlu1 %1321 }
 0x38c   : > { %10984 = vst [vmem:[#allocation80_spill] sm:$0xff] %v6820_v28  ;;  %vm10524_vm2 = vcmp.eq.s32.totalorder %v5950_v53, %v6820_v28  ;;  %vm10529_vm5 = vcmp.eq.s32.totalorder %v5953_v26, %v6820_v28  ;;  %v1323_v54 = vcvt.f32.s32 %v1322_v46  ;;  %v10990_v28 = vld [vmem:[#allocation53_spill] sm:$0xff]  ;;  %v1293_v29 = vshll.u32 %v1292_v56, 16 }
 0x38d   : > { %v6831_v2 = vsel %vm10524_vm2, inf, %v10985_v57  ;;  %v6837_v48 = vsel %vm10529_vm5, inf, %v10987_v8 }
 0x38e   : > { %10986 = vst [vmem:[#allocation55_spill] sm:$0xff] %v6831_v2  ;;  %10988 = vst [vmem:[#allocation56_spill] sm:$0xff] %v6837_v48  ;;  %v6839_v5 = vadd.s32 %v1325_v42, %v1323_v54  ;;  %v1795_v45 = vmin.f32 %v6831_v2, %v6837_v48  ;;  %v10992_v54 = vld [vmem:[#allocation54_spill] sm:$0xff] }
 0x38f   : > { %v1306_v46 = vpop.xlane.xlu1 %1305 }
 0x390   : > { %10989 = vst [vmem:[#allocation81_spill] sm:$0xff] %v6839_v5  ;;  %vm10530_vm10 = vcmp.eq.s32.totalorder %v5950_v53, %v6839_v5  ;;  %vm10538_vm2 = vcmp.eq.s32.totalorder %v5953_v26, %v6839_v5  ;;  %v1307_v57 = vcvt.f32.s32 %v1306_v46  ;;  %1796 = vmin.xlane.f32.xlu1 %v1795_v45  ;;  %v1276_v45 = vcvt.f32.s32 %v6410_v60  ;;  %v10995_v5 = vld [vmem:[#allocation51_spill] sm:$0xff] }
 0x391   : > { %v6852_v42 = vsel %vm10530_vm10, inf, %v10990_v28  ;;  %v6858_v4 = vsel %vm10538_vm2, inf, %v10992_v54 }
 0x392   : > { %10991 = vst [vmem:[#allocation53_spill] sm:$0xff] %v6852_v42  ;;  %10993 = vst [vmem:[#allocation54_spill] sm:$0xff] %v6858_v4  ;;  %v6860_v32 = vadd.s32 %v1309_v49, %v1307_v57  ;;  %v1792_v8 = vmin.f32 %v6852_v42, %v6858_v4  ;;  %v10997_v57 = vld [vmem:[#allocation52_spill] sm:$0xff]  ;;  %v1277_v42 = vshll.u32 %v1276_v45, 16 }
 0x393   : > { %v1290_v46 = vpop.xlane.xlu1 %1289 }
 0x394   : > { %10994 = vst [vmem:[#allocation82_spill] sm:$0xff] %v6860_v32  ;;  %vm10537_vm5 = vcmp.eq.s32.totalorder %v5950_v53, %v6860_v32  ;;  %vm10543_vm10 = vcmp.eq.s32.totalorder %v5953_v26, %v6860_v32  ;;  %v1291_v28 = vcvt.f32.s32 %v1290_v46  ;;  %1793 = vmin.xlane.f32.xlu1 %v1792_v8  ;;  %v1388_v46 = vcvt.f32.s32 %v6416_v3 }
 0x395   : > { %v6873_v49 = vsel %vm10537_vm5, inf, %v10995_v5  ;;  %v6879_v56 = vsel %vm10543_vm10, inf, %v10997_v57  ;;  %v1260_v8 = vcvt.f32.s32 %v6418_v47  ;;  %v11000_v57 = vld [vmem:[#allocation49_spill] sm:$0xff] }
 0x396   : > { %10996 = vst [vmem:[#allocation51_spill] sm:$0xff] %v6873_v49  ;;  %10998 = vst [vmem:[#allocation52_spill] sm:$0xff] %v6879_v56  ;;  %v6881_v60 = vadd.s32 %v1293_v29, %v1291_v28  ;;  %v1789_v54 = vmin.f32 %v6873_v49, %v6879_v56  ;;  %v11002_v28 = vld [vmem:[#allocation50_spill] sm:$0xff]  ;;  %v1389_v32 = vshll.u32 %v1388_v46, 16 }
 0x397   : > { %v1274_v4 = vpop.xlane.xlu1 %1273 }
 0x398   : > { %10999 = vst [vmem:[#allocation83_spill] sm:$0xff] %v6881_v60  ;;  %vm10544_vm5 = vcmp.eq.s32.totalorder %v5950_v53, %v6881_v60  ;;  %vm10551_vm2 = vcmp.eq.s32.totalorder %v5953_v26, %v6881_v60  ;;  %v1275_v5 = vcvt.f32.s32 %v1274_v4  ;;  %1790 = vmin.xlane.f32.xlu1 %v1789_v54  ;;  %v1261_v4 = vshll.u32 %v1260_v8, 16  ;;  %v11007_v8 = vld [vmem:[#allocation48_spill] sm:$0xff] }
 0x399   : > { %v6895_v29 = vsel %vm10544_vm5, inf, %v11000_v57  ;;  %v6901_v3 = vsel %vm10551_vm2, inf, %v11002_v28  ;;  %v1356_v28 = vcvt.f32.s32 %v6387_v17 }
 0x39a   : > { %11001 = vst [vmem:[#allocation49_spill] sm:$0xff] %v6895_v29  ;;  %11003 = vst [vmem:[#allocation50_spill] sm:$0xff] %v6901_v3  ;;  %v6903_v47 = vadd.s32 %v1277_v42, %v1275_v5  ;;  %v1786_v45 = vmin.f32 %v6895_v29, %v6901_v3  ;;  %v1244_v42 = vcvt.f32.s32 %v6427_v52  ;;  %v11005_v5 = vld [vmem:[#allocation47_spill] sm:$0xff] }
 0x39b   : > { %v1386_v54 = vpop.xlane.xlu0 %1385  ;;  %v1258_v56 = vpop.xlane.xlu1 %1257 }
 0x39c   : > { %11004 = vst [vmem:[#allocation84_spill] sm:$0xff] %v6903_v47  ;;  %vm10552_vm10 = vcmp.eq.s32.totalorder %v5950_v53, %v6903_v47  ;;  %vm10554_vm5 = vcmp.eq.s32.totalorder %v5953_v26, %v6903_v47  ;;  %v1387_v57 = vcvt.f32.s32 %v1386_v54  ;;  %v1259_v49 = vcvt.f32.s32 %v1258_v56  ;;  %1787 = vmin.xlane.f32.xlu1 %v1786_v45 }
 0x39d   : > { %v6917_v46 = vsel %vm10552_vm10, inf, %v11005_v5  ;;  %v6923_v60 = vsel %vm10554_vm5, inf, %v11007_v8  ;;  %v11013_v8 = vld [vmem:[#allocation62_spill] sm:$0xff] }
 0x39e   : > { %11006 = vst [vmem:[#allocation47_spill] sm:$0xff] %v6917_v46  ;;  %11008 = vst [vmem:[#allocation48_spill] sm:$0xff] %v6923_v60  ;;  %v6925_v3 = vadd.s32 %v1389_v32, %v1387_v57  ;;  %v6927_v56 = vadd.s32 %v1261_v4, %v1259_v49  ;;  %v1783_v17 = vmin.f32 %v6917_v46, %v6923_v60  ;;  %v1357_v32 = vshll.u32 %v1356_v28, 16  ;;  %v11011_v57 = vld [vmem:[#allocation61_spill] sm:$0xff] }
 0x39f   : > { %v1354_v52 = vpop.xlane.xlu0 %1353  ;;  %v1242_v45 = vpop.xlane.xlu1 %1241  ;;  %v1245_v49 = vshll.u32 %v1244_v42, 16  ;;  %v11017_v42 = vld [vmem:[#allocation46_spill] sm:$0xff] }
 0x3a0   : > { %11009 = vst [vmem:[#allocation85_spill] sm:$0xff] %v6925_v3  ;;  %11010 = vst [vmem:[#allocation86_spill] sm:$0xff] %v6927_v56  ;;  %vm10561_vm2 = vcmp.eq.s32.totalorder %v5950_v53, %v6925_v3  ;;  %vm10559_vm10 = vcmp.eq.s32.totalorder %v5953_v26, %v6925_v3  ;;  %vm10560_vm0 = vcmp.eq.s32.totalorder %v5950_v53, %v6927_v56  ;;  %1784 = vmin.xlane.f32.xlu1 %v1783_v17  ;;  %v11015_v17 = vld [vmem:[#allocation45_spill] sm:$0xff] }
 0x3a1   : > { %vm10562_vm5 = vcmp.eq.s32.totalorder %v5953_v26, %v6927_v56  ;;  %v1355_v4 = vcvt.f32.s32 %v1354_v52  ;;  %v1243_v54 = vcvt.f32.s32 %v1242_v45  ;;  %v6943_v5 = vsel %vm10561_vm2, inf, %v11011_v57 }
 0x3a2   : > { %11012 = vst [vmem:[#allocation61_spill] sm:$0xff] %v6943_v5  ;;  %v6949_v47 = vsel %vm10559_vm10, inf, %v11013_v8  ;;  %v6957_v28 = vsel %vm10560_vm0, inf, %v11015_v17  ;;  %v6963_v52 = vsel %vm10562_vm5, inf, %v11017_v42  ;;  %v11027_v42 = vld [vmem:[#allocation44_spill] sm:$0xff] }
 0x3a3   : > { %11014 = vst [vmem:[#allocation62_spill] sm:$0xff] %v6949_v47  ;;  %v1804_v60 = vmin.f32 %v6943_v5, %v6949_v47  ;;  %11016 = vst [vmem:[#allocation45_spill] sm:$0xff] %v6957_v28  ;;  %v6965_v45 = vadd.s32 %v1357_v32, %v1355_v4  ;;  %v6967_v57 = vadd.s32 %v1245_v49, %v1243_v54  ;;  %v11021_v32 = vld [vmem:[#allocation57_spill] sm:$0xff]  ;;  %v11025_v54 = vld [vmem:[#allocation43_spill] sm:$0xff] }
 0x3a4   : > { %11018 = vst [vmem:[#allocation46_spill] sm:$0xff] %v6963_v52  ;;  %v1780_v8 = vmin.f32 %v6957_v28, %v6963_v52 }
 0x3a5   : > { %11019 = vst [vmem:[#allocation87_spill] sm:$0xff] %v6965_v45  ;;  %11020 = vst [vmem:[#allocation88_spill] sm:$0xff] %v6967_v57  ;;  %1805 = vmin.xlane.f32.xlu0 %v1804_v60  ;;  %vm10569_vm10 = vcmp.eq.s32.totalorder %v5950_v53, %v6965_v45  ;;  %vm10565_vm0 = vcmp.eq.s32.totalorder %v5953_v26, %v6965_v45  ;;  %vm10566_vm2 = vcmp.eq.s32.totalorder %v5950_v53, %v6967_v57  ;;  %v11023_v60 = vld [vmem:[#allocation58_spill] sm:$0xff] }
 0x3a6   : > { %vm10574_vm5 = vcmp.eq.s32.totalorder %v5953_v26, %v6967_v57  ;;  %1781 = vmin.xlane.f32.xlu1 %v1780_v8  ;;  %v6983_v49 = vsel %vm10569_vm10, inf, %v11021_v32  ;;  %v6989_v4 = vsel %vm10565_vm0, inf, %v11023_v60  ;;  %v6995_v17 = vsel %vm10566_vm2, inf, %v11025_v54 }
 0x3a7   : > { %11022 = vst [vmem:[#allocation57_spill] sm:$0xff] %v6983_v49  ;;  %11024 = vst [vmem:[#allocation58_spill] sm:$0xff] %v6989_v4  ;;  %v7001_v8 = vsel %vm10574_vm5, inf, %v11027_v42  ;;  %v1798_v32 = vmin.f32 %v6983_v49, %v6989_v4  ;;  %v1228_v42 = vcvt.f32.s32 %v6483_v21 }
 0x3a8   : > { %11026 = vst [vmem:[#allocation43_spill] sm:$0xff] %v6995_v17  ;;  %11028 = vst [vmem:[#allocation44_spill] sm:$0xff] %v7001_v8  ;;  %v1777_v56 = vmin.f32 %v6995_v17, %v7001_v8 }
 0x3a9   : > { %1799 = vmin.xlane.f32.xlu0 %v1798_v32 }
 0x3aa   : > { %1778 = vmin.xlane.f32.xlu1 %v1777_v56 }
 0x3d5   : > { %v1758_v60 = vpop.xlane.xlu0 %1757 }
 0x3d6   : > { %vm1837_vm0 = vcmp.eq.f32.partialorder %v6444_v58, %v1758_v60  ;;  %vm1838_vm2 = vcmp.eq.f32.partialorder %v6450_v9, %v1758_v60  ;;  %v1229_v58 = vshll.u32 %v1228_v42, 16 }
 0x3d7   : > { %v1901_v54 = vsel %vm1837_vm0, %v5950_v53, 256  ;;  %v1902_v45 = vsel %vm1838_vm2, %v5953_v26, 256 }
 0x3d8   : > { %vm2175_vm10 = vcmp.lt.s32.totalorder %v1901_v54, %v1902_v45 }
 0x3d9   : > { %v1755_v57 = vpop.xlane.xlu0 %1754  ;;  %v7012_v3 = vsel %vm2175_vm10, %v1901_v54, %v1902_v45 }
 0x3da   : > { %vm1835_vm5 = vcmp.eq.f32.partialorder %v6465_v63, %v1755_v57  ;;  %vm1836_vm12 = vcmp.eq.f32.partialorder %v6471_v15, %v1755_v57  ;;  %v2178_v56 = vshra.s32 %v7012_v3, 16 }
 0x3db   : > { %v1899_v32 = vsel %vm1835_vm5, %v5950_v53, 256  ;;  %v1900_v60 = vsel %vm1836_vm12, %v5953_v26, 256 }
 0x3dc   : > { %vm2159_vm11 = vcmp.lt.s32.totalorder %v1899_v32, %v1900_v60  ;;  %v7019_v9 = vcvt.s32.f32 %v2178_v56 }
 0x3dd   : > { %v1752_v8 = vpop.xlane.xlu0 %1751  ;;  %v1226_v17 = vpop.xlane.xlu1 %1225  ;;  %v7021_v21 = vsel %vm2159_vm11, %v1899_v32, %v1900_v60  ;;  %v1212_v32 = vcvt.f32.s32 %v6530_v19 }
 0x3de   : > { %vm1833_vm10 = vcmp.eq.f32.partialorder %v6489_v18, %v1752_v8  ;;  %vm1834_vm2 = vcmp.eq.f32.partialorder %v6495_v59, %v1752_v8  ;;  %v1227_v45 = vcvt.f32.s32 %v1226_v17  ;;  %2181 = vmin.xlane.f32.xlu0 %v7019_v9  ;;  %v2162_v57 = vshra.s32 %v7021_v21, 16 }
 0x3df   : > { %v1897_v54 = vsel %vm1833_vm10, %v5950_v53, 256  ;;  %v1898_v15 = vsel %vm1834_vm2, %v5953_v26, 256 }
 0x3e0   : > { %vm2143_vm12 = vcmp.lt.s32.totalorder %v1897_v54, %v1898_v15  ;;  %v7029_v56 = vadd.s32 %v1229_v58, %v1227_v45  ;;  %v7031_v42 = vcvt.s32.f32 %v2162_v57  ;;  %v1213_v45 = vshll.u32 %v1212_v32, 16 }
 0x3e1   : > { %v1749_v60 = vpop.xlane.xlu0 %1748  ;;  %v7034_v18 = vsel %vm2143_vm12, %v1897_v54, %v1898_v15 }
 0x3e2   : > { %11029 = vst [vmem:[#allocation89_spill] sm:$0xff] %v7029_v56  ;;  %vm10592_vm11 = vcmp.eq.s32.totalorder %v5950_v53, %v7029_v56  ;;  %vm10591_vm5 = vcmp.eq.s32.totalorder %v5953_v26, %v7029_v56  ;;  %vm1831_vm0 = vcmp.eq.f32.partialorder %v6512_v43, %v1749_v60  ;;  %vm1832_vm10 = vcmp.eq.f32.partialorder %v6518_v27, %v1749_v60 }
 0x3e3   : > { %2165 = vmin.xlane.f32.xlu0 %v7031_v42  ;;  %v1895_v58 = vsel %vm1831_vm0, %v5950_v53, 256  ;;  %v1896_v17 = vsel %vm1832_vm10, %v5953_v26, 256  ;;  %v2146_v15 = vshra.s32 %v7034_v18, 16  ;;  %v7050_v19 = vsel %vm10592_vm11, inf, %v5875_v39 }
 0x3e4   : > { %vm2127_vm2 = vcmp.lt.s32.totalorder %v1895_v58, %v1896_v17  ;;  %11030 = vst [vmem:[#allocation90_spill] sm:$0xff] %v7050_v19  ;;  %v7056_v8 = vsel %vm10591_vm5, inf, %v5877_v40 }
 0x3e5   : > { %11031 = vst [vmem:[#allocation91_spill] sm:$0xff] %v7056_v8  ;;  %v1746_v57 = vpop.xlane.xlu0 %1745  ;;  %v1210_v54 = vpop.xlane.xlu1 %1209  ;;  %v1774_v60 = vmin.f32 %v7050_v19, %v7056_v8  ;;  %v7060_v27 = vsel %vm2127_vm2, %v1895_v58, %v1896_v17  ;;  %v7064_v43 = vcvt.s32.f32 %v2146_v15  ;;  %v1196_v58 = vcvt.f32.s32 %v6577_v10 }
 0x3e6   : > { %vm1829_vm12 = vcmp.eq.f32.partialorder %v6536_v55, %v1746_v57  ;;  %vm1830_vm0 = vcmp.eq.f32.partialorder %v6542_v36, %v1746_v57  ;;  %v1211_v39 = vcvt.f32.s32 %v1210_v54  ;;  %v2130_v32 = vshra.s32 %v7060_v27, 16 }
 0x3e7   : > { %v1893_v59 = vsel %vm1829_vm12, %v5950_v53, 256  ;;  %v1894_v40 = vsel %vm1830_vm0, %v5953_v26, 256  ;;  %1775 = vmin.xlane.f32.xlu1 %v1774_v60  ;;  %2149 = vmin.xlane.f32.xlu0 %v7064_v43  ;;  %v1197_v60 = vshll.u32 %v1196_v58, 16 }
 0x3e8   : > { %vm2111_vm10 = vcmp.lt.s32.totalorder %v1893_v59, %v1894_v40  ;;  %v7069_v56 = vadd.s32 %v1213_v45, %v1211_v39  ;;  %v7073_v55 = vcvt.s32.f32 %v2130_v32 }
 0x3e9   : > { %v1743_v17 = vpop.xlane.xlu0 %1742  ;;  %v7075_v57 = vsel %vm2111_vm10, %v1893_v59, %v1894_v40 }
 0x3ea   : > { %11032 = vst [vmem:[#allocation92_spill] sm:$0xff] %v7069_v56  ;;  %vm10599_vm2 = vcmp.eq.s32.totalorder %v5950_v53, %v7069_v56  ;;  %vm10598_vm12 = vcmp.eq.s32.totalorder %v5953_v26, %v7069_v56  ;;  %vm1827_vm0 = vcmp.eq.f32.partialorder %v6559_v61, %v1743_v17  ;;  %vm1828_vm5 = vcmp.eq.f32.partialorder %v6565_v30, %v1743_v17 }
 0x3eb   : > { %v1891_v15 = vsel %vm1827_vm0, %v5950_v53, 256  ;;  %v1892_v45 = vsel %vm1828_vm5, %v5953_v26, 256  ;;  %2133 = vmin.xlane.f32.xlu0 %v7073_v55  ;;  %v2114_v59 = vshra.s32 %v7075_v57, 16  ;;  %v7091_v10 = vsel %vm10599_vm2, inf, %v5871_v37 }
 0x3ec   : > { %vm2095_vm11 = vcmp.lt.s32.totalorder %v1891_v15, %v1892_v45  ;;  %11033 = vst [vmem:[#allocation93_spill] sm:$0xff] %v7091_v10  ;;  %v7097_v54 = vsel %vm10598_vm12, inf, %v5873_v38 }
 0x3ed   : > { %11034 = vst [vmem:[#allocation94_spill] sm:$0xff] %v7097_v54  ;;  %v1740_v39 = vpop.xlane.xlu0 %1739  ;;  %v1194_v40 = vpop.xlane.xlu1 %1193  ;;  %v1771_v32 = vmin.f32 %v7091_v10, %v7097_v54  ;;  %v7101_v17 = vsel %vm2095_vm11, %v1891_v15, %v1892_v45  ;;  %v7105_v30 = vcvt.s32.f32 %v2114_v59  ;;  %v1180_v15 = vcvt.f32.s32 %v6624_v1 }
 0x3ee   : > { %vm1825_vm5 = vcmp.eq.f32.partialorder %v6583_v25, %v1740_v39  ;;  %vm1826_vm10 = vcmp.eq.f32.partialorder %v6589_v11, %v1740_v39  ;;  %v1195_v37 = vcvt.f32.s32 %v1194_v40  ;;  %v2098_v58 = vshra.s32 %v7101_v17, 16 }
 0x3ef   : > { %v1889_v61 = vsel %vm1825_vm5, %v5950_v53, 256  ;;  %v1890_v38 = vsel %vm1826_vm10, %v5953_v26, 256  ;;  %1772 = vmin.xlane.f32.xlu1 %v1771_v32  ;;  %2117 = vmin.xlane.f32.xlu0 %v7105_v30  ;;  %v1181_v32 = vshll.u32 %v1180_v15, 16 }
 0x3f0   : > { %vm2079_vm0 = vcmp.lt.s32.totalorder %v1889_v61, %v1890_v38  ;;  %v7110_v56 = vadd.s32 %v1197_v60, %v1195_v37  ;;  %v7114_v25 = vcvt.s32.f32 %v2098_v58 }
 0x3f1   : > { %v1737_v45 = vpop.xlane.xlu0 %1736  ;;  %v7116_v39 = vsel %vm2079_vm0, %v1889_v61, %v1890_v38 }
 0x3f2   : > { %11035 = vst [vmem:[#allocation95_spill] sm:$0xff] %v7110_v56  ;;  %vm10606_vm11 = vcmp.eq.s32.totalorder %v5950_v53, %v7110_v56  ;;  %vm10605_vm5 = vcmp.eq.s32.totalorder %v5953_v26, %v7110_v56  ;;  %vm1823_vm10 = vcmp.eq.f32.partialorder %v6606_v22, %v1737_v45  ;;  %vm1824_vm12 = vcmp.eq.f32.partialorder %v6612_v50, %v1737_v45 }
 0x3f3   : > { %v1887_v59 = vsel %vm1823_vm10, %v5950_v53, 256  ;;  %v1888_v60 = vsel %vm1824_vm12, %v5953_v26, 256  ;;  %2101 = vmin.xlane.f32.xlu0 %v7114_v25  ;;  %v2082_v61 = vshra.s32 %v7116_v39, 16  ;;  %v7132_v1 = vsel %vm10606_vm11, inf, %v5865_v34 }
 0x3f4   : > { %vm2063_vm2 = vcmp.lt.s32.totalorder %v1887_v59, %v1888_v60  ;;  %11036 = vst [vmem:[#allocation96_spill] sm:$0xff] %v7132_v1  ;;  %v7138_v40 = vsel %vm10605_vm5, inf, %v5867_v35 }
 0x3f5   : > { %11037 = vst [vmem:[#allocation97_spill] sm:$0xff] %v7138_v40  ;;  %v1734_v37 = vpop.xlane.xlu0 %1733  ;;  %v1178_v38 = vpop.xlane.xlu1 %1177  ;;  %v1768_v58 = vmin.f32 %v7132_v1, %v7138_v40  ;;  %v7142_v45 = vsel %vm2063_vm2, %v1887_v59, %v1888_v60  ;;  %v7146_v50 = vcvt.s32.f32 %v2082_v61  ;;  %v1164_v59 = vcvt.f32.s32 %v6671_v7  ;;  %v11039_v7 = vld [vmem:[#allocation41_spill] sm:$0xff] }
 0x3f6   : > { %vm1821_vm12 = vcmp.eq.f32.partialorder %v6630_v51, %v1734_v37  ;;  %vm1822_vm0 = vcmp.eq.f32.partialorder %v6636_v24, %v1734_v37  ;;  %v1179_v34 = vcvt.f32.s32 %v1178_v38  ;;  %v2066_v15 = vshra.s32 %v7142_v45, 16 }
 0x3f7   : > { %v1885_v22 = vsel %vm1821_vm12, %v5950_v53, 256  ;;  %v1886_v35 = vsel %vm1822_vm0, %v5953_v26, 256  ;;  %1769 = vmin.xlane.f32.xlu1 %v1768_v58  ;;  %2085 = vmin.xlane.f32.xlu0 %v7146_v50  ;;  %v11041_v58 = vld [vmem:[#allocation42_spill] sm:$0xff] }
 0x3f8   : > { %vm2047_vm10 = vcmp.lt.s32.totalorder %v1885_v22, %v1886_v35  ;;  %v7151_v56 = vadd.s32 %v1181_v32, %v1179_v34  ;;  %v7155_v51 = vcvt.s32.f32 %v2066_v15 }
 0x3f9   : > { %v1731_v60 = vpop.xlane.xlu0 %1730  ;;  %v7157_v37 = vsel %vm2047_vm10, %v1885_v22, %v1886_v35  ;;  %v1165_v35 = vshll.u32 %v1164_v59, 16 }
 0x3fa   : > { %11038 = vst [vmem:[#allocation98_spill] sm:$0xff] %v7151_v56  ;;  %vm10615_vm2 = vcmp.eq.s32.totalorder %v5950_v53, %v7151_v56  ;;  %vm10614_vm12 = vcmp.eq.s32.totalorder %v5953_v26, %v7151_v56  ;;  %vm1819_vm0 = vcmp.eq.f32.partialorder %v6653_v0, %v1731_v60  ;;  %vm1820_vm5 = vcmp.eq.f32.partialorder %v6659_v33, %v1731_v60 }
 0x3fb   : > { %v1883_v61 = vsel %vm1819_vm0, %v5950_v53, 256  ;;  %v1884_v32 = vsel %vm1820_vm5, %v5953_v26, 256  ;;  %2069 = vmin.xlane.f32.xlu0 %v7155_v51  ;;  %v2050_v22 = vshra.s32 %v7157_v37, 16  ;;  %v7173_v38 = vsel %vm10615_vm2, inf, %v11039_v7 }
 0x3fc   : > { %vm2031_vm11 = vcmp.lt.s32.totalorder %v1883_v61, %v1884_v32  ;;  %11040 = vst [vmem:[#allocation41_spill] sm:$0xff] %v7173_v38  ;;  %v7179_v34 = vsel %vm10614_vm12, inf, %v11041_v58 }
 0x3fd   : > { %11042 = vst [vmem:[#allocation42_spill] sm:$0xff] %v7179_v34  ;;  %v1728_v15 = vpop.xlane.xlu0 %1727  ;;  %v1162_v60 = vpop.xlane.xlu1 %1161  ;;  %v1765_v33 = vmin.f32 %v7173_v38, %v7179_v34  ;;  %v7183_v0 = vsel %vm2031_vm11, %v1883_v61, %v1884_v32  ;;  %v7187_v24 = vcvt.s32.f32 %v2050_v22  ;;  %v1148_v61 = vcvt.f32.s32 %v6718_v14  ;;  %v11045_v14 = vld [vmem:[#allocation39_spill] sm:$0xff] }
 0x3fe   : > { %vm1817_vm5 = vcmp.eq.f32.partialorder %v6677_v41, %v1728_v15  ;;  %vm1818_vm10 = vcmp.eq.f32.partialorder %v6683_v13, %v1728_v15  ;;  %v1163_v7 = vcvt.f32.s32 %v1162_v60  ;;  %v2034_v59 = vshra.s32 %v7183_v0, 16 }
 0x3ff   : > { %v1881_v11 = vsel %vm1817_vm5, %v5950_v53, 256  ;;  %v1882_v58 = vsel %vm1818_vm10, %v5953_v26, 256  ;;  %1766 = vmin.xlane.f32.xlu1 %v1765_v33  ;;  %2053 = vmin.xlane.f32.xlu0 %v7187_v24  ;;  %v11044_v33 = vld [vmem:[#allocation18_spill] sm:$0xff] }
 0x400   : > { %vm2015_vm0 = vcmp.lt.s32.totalorder %v1881_v11, %v1882_v58  ;;  %v7192_v56 = vadd.s32 %v1165_v35, %v1163_v7  ;;  %v7196_v41 = vcvt.s32.f32 %v2034_v59  ;;  %v11047_v7 = vld [vmem:[#allocation40_spill] sm:$0xff]  ;;  %v1149_v59 = vshll.u32 %v1148_v61, 16 }
 0x401   : > { %v1725_v32 = vpop.xlane.xlu0 %1724  ;;  %v7198_v15 = vsel %vm2015_vm0, %v1881_v11, %v1882_v58 }
 0x402   : > { %11043 = vst [vmem:[#allocation99_spill] sm:$0xff] %v7192_v56  ;;  %vm10624_vm11 = vcmp.eq.s32.totalorder %v5950_v53, %v7192_v56  ;;  %vm10623_vm5 = vcmp.eq.s32.totalorder %v5953_v26, %v7192_v56  ;;  %vm1815_vm10 = vcmp.eq.f32.partialorder %v6700_v62, %v1725_v32  ;;  %vm1816_vm12 = vcmp.eq.f32.partialorder %v11044_v33, %v1725_v32 }
 0x403   : > { %v1879_v22 = vsel %vm1815_vm10, %v5950_v53, 256  ;;  %v1880_v35 = vsel %vm1816_vm12, %v5953_v26, 256  ;;  %2037 = vmin.xlane.f32.xlu0 %v7196_v41  ;;  %v2018_v11 = vshra.s32 %v7198_v15, 16  ;;  %v7214_v60 = vsel %vm10624_vm11, inf, %v11045_v14 }
 0x404   : > { %vm1999_vm2 = vcmp.lt.s32.totalorder %v1879_v22, %v1880_v35  ;;  %11046 = vst [vmem:[#allocation39_spill] sm:$0xff] %v7214_v60  ;;  %v7220_v58 = vsel %vm10623_vm5, inf, %v11047_v7 }
 0x405   : > { %11048 = vst [vmem:[#allocation40_spill] sm:$0xff] %v7220_v58  ;;  %v1722_v32 = vpop.xlane.xlu0 %1721  ;;  %v1146_v33 = vpop.xlane.xlu1 %1145  ;;  %v1762_v62 = vmin.f32 %v7214_v60, %v7220_v58  ;;  %v7224_v13 = vsel %vm1999_vm2, %v1879_v22, %v1880_v35  ;;  %v7228_v36 = vcvt.s32.f32 %v2018_v11  ;;  %v11050_v11 = vld [vmem:[#allocation37_spill] sm:$0xff] }
 0x406   : > { %vm1813_vm12 = vcmp.eq.f32.partialorder %v6724_v20, %v1722_v32  ;;  %vm1814_vm0 = vcmp.eq.f32.partialorder %v6730_v16, %v1722_v32  ;;  %v1147_v14 = vcvt.f32.s32 %v1146_v33  ;;  %v2002_v61 = vshra.s32 %v7224_v13, 16  ;;  %v11052_v32 = vld [vmem:[#allocation38_spill] sm:$0xff] }
 0x407   : > { %v1877_v63 = vsel %vm1813_vm12, %v5950_v53, 256  ;;  %v1878_v7 = vsel %vm1814_vm0, %v5953_v26, 256  ;;  %1763 = vmin.xlane.f32.xlu1 %v1762_v62  ;;  %2021 = vmin.xlane.f32.xlu0 %v7228_v36 }
 0x408   : > { %vm1983_vm10 = vcmp.lt.s32.totalorder %v1877_v63, %v1878_v7  ;;  %v7233_v56 = vadd.s32 %v1149_v59, %v1147_v14  ;;  %v7236_v35 = vcvt.s32.f32 %v2002_v61 }
 0x409   : > { %v1719_v22 = vpop.xlane.xlu1 %1718  ;;  %v7238_v20 = vsel %vm1983_vm10, %v1877_v63, %v1878_v7 }
 0x40a   : > { %11049 = vst [vmem:[#allocation100_spill] sm:$0xff] %v7233_v56  ;;  %vm10636_vm2 = vcmp.eq.s32.totalorder %v5950_v53, %v7233_v56  ;;  %vm10632_vm12 = vcmp.eq.s32.totalorder %v5953_v26, %v7233_v56  ;;  %vm1811_vm0 = vcmp.eq.f32.partialorder %v6748_v44, %v1719_v22  ;;  %vm1812_vm5 = vcmp.eq.f32.partialorder %v6754_v31, %v1719_v22  ;;  %v11054_v31 = vld [vmem:[#allocation8_spill] sm:$0xff] }
 0x40b   : > { %v1875_v62 = vsel %vm1811_vm0, %v5950_v53, 256  ;;  %v1876_v33 = vsel %vm1812_vm5, %v5953_v26, 256  ;;  %2005 = vmin.xlane.f32.xlu0 %v7236_v35  ;;  %v1986_v63 = vshra.s32 %v7238_v20, 16  ;;  %v7254_v59 = vsel %vm10636_vm2, inf, %v11050_v11 }
 0x40c   : > { %vm1967_vm11 = vcmp.lt.s32.totalorder %v1875_v62, %v1876_v33  ;;  %11051 = vst [vmem:[#allocation37_spill] sm:$0xff] %v7254_v59  ;;  %v7260_v14 = vsel %vm10632_vm12, inf, %v11052_v32 }
 0x40d   : > { %11053 = vst [vmem:[#allocation38_spill] sm:$0xff] %v7260_v14  ;;  %v1716_v7 = vpop.xlane.xlu0 %1715  ;;  %v1759_v61 = vmin.f32 %v7254_v59, %v7260_v14  ;;  %v7264_v22 = vsel %vm1967_vm11, %v1875_v62, %v1876_v33  ;;  %v7268_v44 = vcvt.s32.f32 %v1986_v63  ;;  %v11055_v14 = vld [vmem:[#allocation5_spill] sm:$0xff]  ;;  %v11056_v62 = vld [vmem:[#allocation6_spill] sm:$0xff] }
 0x40e   : > { %vm1809_vm5 = vcmp.eq.f32.partialorder %v6770_v12, %v1716_v7  ;;  %vm1810_vm10 = vcmp.eq.f32.partialorder %v11054_v31, %v1716_v7  ;;  %v1970_v11 = vshra.s32 %v7264_v22, 16 }
 0x40f   : > { %v1873_v16 = vsel %vm1809_vm5, %v5950_v53, 256  ;;  %v1874_v56 = vsel %vm1810_vm10, %v5953_v26, 256  ;;  %1760 = vmin.xlane.f32.xlu1 %v1759_v61  ;;  %v1713_v32 = vpop.xlane.xlu1 %1712  ;;  %1989 = vmin.xlane.f32.xlu0 %v7268_v44 }
 0x410   : > { %vm1951_vm0 = vcmp.lt.s32.totalorder %v1873_v16, %v1874_v56  ;;  %vm1807_vm11 = vcmp.eq.f32.partialorder %v11055_v14, %v1713_v32  ;;  %vm1808_vm12 = vcmp.eq.f32.partialorder %v11056_v62, %v1713_v32  ;;  %v7276_v33 = vcvt.s32.f32 %v1970_v11 }
 0x411   : > { %v1871_v63 = vsel %vm1807_vm11, %v5950_v53, 256  ;;  %v1872_v7 = vsel %vm1808_vm12, %v5953_v26, 256  ;;  %v7280_v31 = vsel %vm1951_vm0, %v1873_v16, %v1874_v56 }
 0x412   : > { %vm1935_vm5 = vcmp.lt.s32.totalorder %v1871_v63, %v1872_v7  ;;  %v1954_v12 = vshra.s32 %v7280_v31, 16 }
 0x413   : > { %1973 = vmin.xlane.f32.xlu1 %v7276_v33  ;;  %v1803_v61 = vpop.xlane.xlu1 %1802  ;;  %v7284_v59 = vsel %vm1935_vm5, %v1871_v63, %v1872_v7 }
 0x414   : > { %vm1867_vm10 = vcmp.eq.f32.partialorder %v6810_v23, %v1803_v61  ;;  %vm1868_vm2 = vcmp.eq.f32.partialorder %v6816_v6, %v1803_v61  ;;  %v7288_v11 = vcvt.s32.f32 %v1954_v12  ;;  %v1938_v32 = vshra.s32 %v7284_v59, 16 }
 0x415   : > { %v1931_v62 = vsel %vm1867_vm10, %v5950_v53, 256  ;;  %v1932_v16 = vsel %vm1868_vm2, %v5953_v26, 256 }
 0x416   : > { %11057 = vst [vmem:[#allocation101_spill] sm:$0xff] %v7288_v11  ;;  %vm2415_vm12 = vcmp.lt.s32.totalorder %v1931_v62, %v1932_v16  ;;  %1957 = vmin.xlane.f32.xlu0 %v7288_v11  ;;  %v7294_v56 = vcvt.s32.f32 %v1938_v32 }
 0x417   : > { %v7296_v14 = vsel %vm2415_vm12, %v1931_v62, %v1932_v16 }
 0x418   : > { %11058 = vst [vmem:[#allocation102_spill] sm:$0xff] %v7294_v56  ;;  %11059 = vst [vmem:[#allocation103_spill] sm:$0xff] %v7296_v14  ;;  %1941 = vmin.xlane.f32.xlu1 %v7294_v56  ;;  %v2418_v63 = vshra.s32 %v7296_v14, 16  ;;  %v11062_v14 = vld [vmem:[#allocation53_spill] sm:$0xff] }
 0x419   : > { %v1797_v12 = vpop.xlane.xlu1 %1796 }
 0x41a   : > { %v7300_v7 = vcvt.s32.f32 %v2418_v63  ;;  %vm1863_vm2 = vcmp.eq.f32.partialorder %v6831_v2, %v1797_v12  ;;  %vm1864_vm0 = vcmp.eq.f32.partialorder %v6837_v48, %v1797_v12  ;;  %v11063_v2 = vld [vmem:[#allocation54_spill] sm:$0xff] }
 0x41b   : > { %v1927_v16 = vsel %vm1863_vm2, %v5950_v53, 256  ;;  %v1928_v63 = vsel %vm1864_vm0, %v5953_v26, 256 }
 0x41c   : > { %11060 = vst [vmem:[#allocation104_spill] sm:$0xff] %v7300_v7  ;;  %2421 = vmin.xlane.f32.xlu1 %v7300_v7  ;;  %vm2383_vm8 = vcmp.lt.s32.totalorder %v1927_v16, %v1928_v63 }
 0x41d   : > { %v1794_v61 = vpop.xlane.xlu1 %1793 }
 0x41e   : > { %vm1861_vm12 = vcmp.eq.f32.partialorder %v11062_v14, %v1794_v61  ;;  %vm1862_vm9 = vcmp.eq.f32.partialorder %v11063_v2, %v1794_v61  ;;  %v11065_v14 = vld [vmem:[#allocation52_spill] sm:$0xff] }
 0x421   : > { %v1791_v6 = vpop.xlane.xlu1 %1790 }
 0x422   : > { %vm1860_vm0 = vcmp.eq.f32.partialorder %v11065_v14, %v1791_v6 }
 0x423   : > { %v1924_v11 = vsel %vm1860_vm0, %v5953_v26, 256 }
 0x425   : > { %v1788_v7 = vpop.xlane.xlu1 %1787 }
 0x429   : > { %v1785_v2 = vpop.xlane.xlu1 %1784 }
 0x42e   : > { %v1806_v23 = vpop.xlane.xlu0 %1805 }
 0x42f   : > { %vm1869_vm11 = vcmp.eq.f32.partialorder %v6943_v5, %v1806_v23  ;;  %vm1870_vm5 = vcmp.eq.f32.partialorder %v6949_v47, %v1806_v23  ;;  %v1925_v23 = vsel %vm1861_vm12, %v5950_v53, 256  ;;  %v1926_v47 = vsel %vm1862_vm9, %v5953_v26, 256  ;;  %v1782_v14 = vpop.xlane.xlu1 %1781 }
 0x430   : > { %v1933_v62 = vsel %vm1869_vm11, %v5950_v53, 256  ;;  %v1934_v32 = vsel %vm1870_vm5, %v5953_v26, 256  ;;  %vm2367_vm7 = vcmp.lt.s32.totalorder %v1925_v23, %v1926_v47  ;;  %vm1857_vm9 = vcmp.eq.f32.partialorder %v6895_v29, %v1788_v7 }
 0x431   : > { %vm2431_vm10 = vcmp.lt.s32.totalorder %v1933_v62, %v1934_v32  ;;  %vm1854_vm0 = vcmp.eq.f32.partialorder %v6963_v52, %v1782_v14 }
 0x432   : > { %v7311_v56 = vsel %vm2431_vm10, %v1933_v62, %v1934_v32  ;;  %v1800_v48 = vpop.xlane.xlu0 %1799  ;;  %v11064_v32 = vld [vmem:[#allocation51_spill] sm:$0xff] }
 0x433   : > { %11061 = vst [vmem:[#allocation105_spill] sm:$0xff] %v7311_v56  ;;  %v2434_v12 = vshra.s32 %v7311_v56, 16  ;;  %vm1865_vm11 = vcmp.eq.f32.partialorder %v6983_v49, %v1800_v48  ;;  %vm1866_vm5 = vcmp.eq.f32.partialorder %v6989_v4, %v1800_v48  ;;  %vm1859_vm2 = vcmp.eq.f32.partialorder %v11064_v32, %v1791_v6  ;;  %v11066_v6 = vld [vmem:[#allocation50_spill] sm:$0xff]  ;;  %v11067_v32 = vld [vmem:[#allocation48_spill] sm:$0xff] }
 0x434   : > { %v1929_v5 = vsel %vm1865_vm11, %v5950_v53, 256  ;;  %v1930_v62 = vsel %vm1866_vm5, %v5953_v26, 256  ;;  %v7328_v49 = vsel %vm2383_vm8, %v1927_v16, %v1928_v63  ;;  %v1923_v4 = vsel %vm1859_vm2, %v5950_v53, 256 }
 0x435   : > { %vm2399_vm10 = vcmp.lt.s32.totalorder %v1929_v5, %v1930_v62  ;;  %v7324_v61 = vcvt.s32.f32 %v2434_v12  ;;  %vm1858_vm12 = vcmp.eq.f32.partialorder %v11066_v6, %v1788_v7  ;;  %vm2351_vm8 = vcmp.lt.s32.totalorder %v1923_v4, %v1924_v11  ;;  %v11070_v6 = vld [vmem:[#allocation43_spill] sm:$0xff] }
 0x436   : > { %v7326_v56 = vsel %vm2399_vm10, %v1929_v5, %v1930_v62  ;;  %v2386_v5 = vshra.s32 %v7328_v49, 16  ;;  %v7339_v62 = vsel %vm2367_vm7, %v1925_v23, %v1926_v47  ;;  %v1921_v16 = vsel %vm1857_vm9, %v5950_v53, 256 }
 0x437   : > { %2437 = vmin.xlane.f32.xlu0 %v7324_v61  ;;  %v2402_v48 = vshra.s32 %v7326_v56, 16  ;;  %v1922_v63 = vsel %vm1858_vm12, %v5953_v26, 256  ;;  %vm1855_vm11 = vcmp.eq.f32.partialorder %v6917_v46, %v1785_v2  ;;  %vm1856_vm5 = vcmp.eq.f32.partialorder %v11067_v32, %v1785_v2 }
 0x438   : > { %v7346_v29 = vcvt.s32.f32 %v2386_v5  ;;  %v2370_v7 = vshra.s32 %v7339_v62, 16  ;;  %vm2335_vm7 = vcmp.lt.s32.totalorder %v1921_v16, %v1922_v63  ;;  %v1919_v47 = vsel %vm1855_vm11, %v5950_v53, 256  ;;  %v1779_v5 = vpop.xlane.xlu1 %1778 }
 0x439   : > { %v7336_v12 = vcvt.s32.f32 %v2402_v48  ;;  %v7349_v48 = vsel %vm2351_vm8, %v1923_v4, %v1924_v11  ;;  %v1920_v23 = vsel %vm1856_vm5, %v5953_v26, 256  ;;  %vm1853_vm2 = vcmp.eq.f32.partialorder %v6957_v28, %v1782_v14 }
 0x43a   : > { %11068 = vst [vmem:[#allocation106_spill] sm:$0xff] %v7346_v29  ;;  %v7356_v46 = vcvt.s32.f32 %v2370_v7  ;;  %v2354_v2 = vshra.s32 %v7349_v48, 16  ;;  %v7359_v32 = vsel %vm2335_vm7, %v1921_v16, %v1922_v63  ;;  %vm2319_vm10 = vcmp.lt.s32.totalorder %v1919_v47, %v1920_v23 }
 0x43b   : > { %2405 = vmin.xlane.f32.xlu1 %v7336_v12  ;;  %v1917_v4 = vsel %vm1853_vm2, %v5950_v53, 256  ;;  %v1918_v11 = vsel %vm1854_vm0, %v5953_v26, 256  ;;  %vm1851_vm9 = vcmp.eq.f32.partialorder %v11070_v6, %v1779_v5  ;;  %v2338_v14 = vshra.s32 %v7359_v32, 16 }
 0x43c   : > { %11069 = vst [vmem:[#allocation107_spill] sm:$0xff] %v7356_v46  ;;  %v7366_v28 = vcvt.s32.f32 %v2354_v2  ;;  %v7369_v7 = vsel %vm2319_vm10, %v1919_v47, %v1920_v23  ;;  %vm2303_vm8 = vcmp.lt.s32.totalorder %v1917_v4, %v1918_v11  ;;  %v1915_v16 = vsel %vm1851_vm9, %v5950_v53, 256 }
 0x43d   : > { %v7374_v52 = vcvt.s32.f32 %v2338_v14  ;;  %v7377_v6 = vsel %vm2303_vm8, %v1917_v4, %v1918_v11  ;;  %v2177_v4 = vand.u32 65535, %v7012_v3 }
 0x43e   : > { %v2306_v47 = vshra.s32 %v7377_v6, 16 }
 0x43f   : > { %2389 = vmin.xlane.f32.xlu1 %v7346_v29  ;;  %v11071_v29 = vld [vmem:[#allocation44_spill] sm:$0xff]  ;;  %v2179_v11 = vcvt.s32.f32 %v2177_v4 }
 0x440   : > { %vm1852_vm12 = vcmp.eq.f32.partialorder %v11071_v29, %v1779_v5  ;;  %v7386_v5 = vcvt.s32.f32 %v2306_v47 }
 0x441   : > { %v1916_v63 = vsel %vm1852_vm12, %v5953_v26, 256 }
 0x442   : > { %vm2287_vm11 = vcmp.lt.s32.totalorder %v1915_v16, %v1916_v63  ;;  %11073 = vst [vmem:[#allocation109_spill] sm:$0xff] %v7386_v5 }
 0x443   : > { %2373 = vmin.xlane.f32.xlu1 %v7356_v46  ;;  %v2322_v46 = vshra.s32 %v7369_v7, 16  ;;  %v7383_v23 = vsel %vm2287_vm11, %v1915_v16, %v1916_v63  ;;  %v2161_v16 = vand.u32 65535, %v7021_v21  ;;  %v2129_v21 = vand.u32 65535, %v7060_v27 }
 0x444   : > { %11072 = vst [vmem:[#allocation108_spill] sm:$0xff] %v7383_v23  ;;  %v2290_v14 = vshra.s32 %v7383_v23, 16 }
 0x445   : > { %v7380_v2 = vcvt.s32.f32 %v2322_v46  ;;  %v2163_v23 = vcvt.s32.f32 %v2161_v16  ;;  %v2131_v16 = vcvt.s32.f32 %v2129_v21  ;;  %v2097_v21 = vand.u32 65535, %v7101_v17 }
 0x446   : > { %v7390_v29 = vcvt.s32.f32 %v2290_v14 }
 0x447   : > { %2357 = vmin.xlane.f32.xlu1 %v7366_v28 }
 0x448   : > { %11074 = vst [vmem:[#allocation110_spill] sm:$0xff] %v7390_v29 }
 0x44b   : > { %2341 = vmin.xlane.f32.xlu1 %v7374_v52 }
 0x44f   : > { %2325 = vmin.xlane.f32.xlu1 %v7380_v2 }
 0x453   : > { %2309 = vmin.xlane.f32.xlu1 %v7386_v5 }
 0x457   : > { %2293 = vmin.xlane.f32.xlu1 %v7390_v29  ;;  %v2145_v29 = vand.u32 65535, %v7034_v18 }
 0x467   : > { %v7394_v46 = vpop.xlane.xlu0 %2181 }
 0x468   : > { %vm2183_vm5 = vcmp.eq.f32.partialorder %v7019_v9, %v7394_v46  ;;  %v2147_v9 = vcvt.s32.f32 %v2145_v29  ;;  %v2113_v29 = vand.u32 65535, %v7075_v57 }
 0x469   : > { %v2184_v63 = vsel %vm2183_vm5, %v2179_v11, inf }
 0x46a   : > { %2185 = vmin.xlane.f32.xlu0 %v2184_v63 }
 0x46c   : > { %v7399_v47 = vpop.xlane.xlu0 %2165 }
 0x46d   : > { %vm2167_vm7 = vcmp.eq.f32.partialorder %v7031_v42, %v7399_v47 }
 0x46e   : > { %v2168_v14 = vsel %vm2167_vm7, %v2163_v23, inf }
 0x46f   : > { %2169 = vmin.xlane.f32.xlu0 %v2168_v14 }
 0x470   : > { %v1776_v3 = vpop.xlane.xlu1 %1775  ;;  %v7404_v5 = vpop.xlane.xlu0 %2149 }
 0x471   : > { %vm1849_vm2 = vcmp.eq.f32.partialorder %v7050_v19, %v1776_v3  ;;  %vm1850_vm0 = vcmp.eq.f32.partialorder %v7056_v8, %v1776_v3  ;;  %vm2151_vm10 = vcmp.eq.f32.partialorder %v7064_v43, %v7404_v5  ;;  %v11126_v8 = vld [vmem:[#allocation26_spill] sm:$0xff] }
 0x472   : > { %v1913_v4 = vsel %vm1849_vm2, %v5950_v53, 256  ;;  %v1914_v11 = vsel %vm1850_vm0, %v5953_v26, 256  ;;  %v2152_v18 = vsel %vm2151_vm10, %v2147_v9, inf  ;;  %v2115_v9 = vcvt.s32.f32 %v2113_v29 }
 0x473   : > { %vm2271_vm9 = vcmp.lt.s32.totalorder %v1913_v4, %v1914_v11  ;;  %2153 = vmin.xlane.f32.xlu0 %v2152_v18  ;;  %v2081_v29 = vand.u32 65535, %v7116_v39 }
 0x474   : > { %v7413_v42 = vsel %vm2271_vm9, %v1913_v4, %v1914_v11  ;;  %v7415_v23 = vpop.xlane.xlu0 %2133 }
 0x475   : > { %v2274_v63 = vshra.s32 %v7413_v42, 16  ;;  %vm2135_vm12 = vcmp.eq.f32.partialorder %v7073_v55, %v7415_v23 }
 0x476   : > { %v2136_v27 = vsel %vm2135_vm12, %v2131_v16, inf  ;;  %v2099_v16 = vcvt.s32.f32 %v2097_v21  ;;  %v2065_v21 = vand.u32 65535, %v7142_v45 }
 0x477   : > { %v7421_v14 = vcvt.s32.f32 %v2274_v63  ;;  %2137 = vmin.xlane.f32.xlu0 %v2136_v27 }
 0x478   : > { %v1773_v43 = vpop.xlane.xlu1 %1772  ;;  %v7423_v3 = vpop.xlane.xlu0 %2117 }
 0x479   : > { %vm1847_vm8 = vcmp.eq.f32.partialorder %v7091_v10, %v1773_v43  ;;  %vm1848_vm11 = vcmp.eq.f32.partialorder %v7097_v54, %v1773_v43  ;;  %2277 = vmin.xlane.f32.xlu1 %v7421_v14  ;;  %vm2119_vm5 = vcmp.eq.f32.partialorder %v7105_v30, %v7423_v3 }
 0x47a   : > { %v1911_v57 = vsel %vm1847_vm8, %v5950_v53, 256  ;;  %v1912_v55 = vsel %vm1848_vm11, %v5953_v26, 256  ;;  %v2120_v4 = vsel %vm2119_vm5, %v2115_v9, inf  ;;  %v2083_v9 = vcvt.s32.f32 %v2081_v29 }
 0x47b   : > { %vm2255_vm7 = vcmp.lt.s32.totalorder %v1911_v57, %v1912_v55  ;;  %2121 = vmin.xlane.f32.xlu0 %v2120_v4  ;;  %v2049_v29 = vand.u32 65535, %v7157_v37 }
 0x47c   : > { %v7433_v11 = vsel %vm2255_vm7, %v1911_v57, %v1912_v55  ;;  %v7435_v18 = vpop.xlane.xlu0 %2101 }
 0x47d   : > { %v2258_v63 = vshra.s32 %v7433_v11, 16  ;;  %vm2103_vm2 = vcmp.eq.f32.partialorder %v7114_v25, %v7435_v18 }
 0x47e   : > { %v2104_v17 = vsel %vm2103_vm2, %v2099_v16, inf  ;;  %v2067_v16 = vcvt.s32.f32 %v2065_v21  ;;  %v2033_v21 = vand.u32 65535, %v7183_v0 }
 0x47f   : > { %v7441_v27 = vcvt.s32.f32 %v2258_v63  ;;  %2105 = vmin.xlane.f32.xlu0 %v2104_v17 }
 0x480   : > { %v1770_v30 = vpop.xlane.xlu1 %1769  ;;  %v7443_v43 = vpop.xlane.xlu0 %2085 }
 0x481   : > { %vm1845_vm0 = vcmp.eq.f32.partialorder %v7132_v1, %v1770_v30  ;;  %vm1846_vm10 = vcmp.eq.f32.partialorder %v7138_v40, %v1770_v30  ;;  %2261 = vmin.xlane.f32.xlu1 %v7441_v27  ;;  %vm2087_vm9 = vcmp.eq.f32.partialorder %v7146_v50, %v7443_v43 }
 0x482   : > { %v1909_v39 = vsel %vm1845_vm0, %v5950_v53, 256  ;;  %v1910_v25 = vsel %vm1846_vm10, %v5953_v26, 256  ;;  %v2088_v57 = vsel %vm2087_vm9, %v2083_v9, inf  ;;  %v2051_v9 = vcvt.s32.f32 %v2049_v29 }
 0x483   : > { %vm2239_vm12 = vcmp.lt.s32.totalorder %v1909_v39, %v1910_v25  ;;  %2089 = vmin.xlane.f32.xlu0 %v2088_v57  ;;  %v2017_v29 = vand.u32 65535, %v7198_v15 }
 0x484   : > { %v7453_v55 = vsel %vm2239_vm12, %v1909_v39, %v1910_v25  ;;  %v7455_v4 = vpop.xlane.xlu0 %2069 }
 0x485   : > { %v2242_v63 = vshra.s32 %v7453_v55, 16  ;;  %vm2071_vm8 = vcmp.eq.f32.partialorder %v7155_v51, %v7455_v4 }
 0x486   : > { %v2072_v45 = vsel %vm2071_vm8, %v2067_v16, inf  ;;  %v2035_v16 = vcvt.s32.f32 %v2033_v21  ;;  %v2001_v21 = vand.u32 65535, %v7224_v13 }
 0x487   : > { %v7461_v17 = vcvt.s32.f32 %v2242_v63  ;;  %2073 = vmin.xlane.f32.xlu0 %v2072_v45 }
 0x488   : > { %v1767_v50 = vpop.xlane.xlu1 %1766  ;;  %v7463_v30 = vpop.xlane.xlu0 %2053 }
 0x489   : > { %vm1843_vm11 = vcmp.eq.f32.partialorder %v7173_v38, %v1767_v50  ;;  %vm1844_vm5 = vcmp.eq.f32.partialorder %v7179_v34, %v1767_v50  ;;  %2245 = vmin.xlane.f32.xlu1 %v7461_v17  ;;  %vm2055_vm7 = vcmp.eq.f32.partialorder %v7187_v24, %v7463_v30  ;;  %v11101_v34 = vld [vmem:[#allocation67_spill] sm:$0xff] }
 0x48a   : > { %v1907_v37 = vsel %vm1843_vm11, %v5950_v53, 256  ;;  %v1908_v51 = vsel %vm1844_vm5, %v5953_v26, 256  ;;  %v2056_v39 = vsel %vm2055_vm7, %v2051_v9, inf  ;;  %v2019_v9 = vcvt.s32.f32 %v2017_v29 }
 0x48b   : > { %vm2223_vm2 = vcmp.lt.s32.totalorder %v1907_v37, %v1908_v51  ;;  %2057 = vmin.xlane.f32.xlu0 %v2056_v39  ;;  %v1985_v29 = vand.u32 65535, %v7238_v20 }
 0x48c   : > { %v7473_v25 = vsel %vm2223_vm2, %v1907_v37, %v1908_v51  ;;  %v7475_v57 = vpop.xlane.xlu0 %2037 }
 0x48d   : > { %v2226_v63 = vshra.s32 %v7473_v25, 16  ;;  %vm2039_vm0 = vcmp.eq.f32.partialorder %v7196_v41, %v7475_v57 }
 0x48e   : > { %v2040_v0 = vsel %vm2039_vm0, %v2035_v16, inf  ;;  %v2003_v16 = vcvt.s32.f32 %v2001_v21  ;;  %v1987_v21 = vcvt.s32.f32 %v1985_v29 }
 0x48f   : > { %v7481_v45 = vcvt.s32.f32 %v2226_v63  ;;  %2041 = vmin.xlane.f32.xlu0 %v2040_v0 }
 0x490   : > { %v1764_v24 = vpop.xlane.xlu1 %1763  ;;  %v7483_v50 = vpop.xlane.xlu0 %2021 }
 0x491   : > { %vm1841_vm10 = vcmp.eq.f32.partialorder %v7214_v60, %v1764_v24  ;;  %vm1842_vm9 = vcmp.eq.f32.partialorder %v7220_v58, %v1764_v24  ;;  %2229 = vmin.xlane.f32.xlu1 %v7481_v45  ;;  %vm2023_vm12 = vcmp.eq.f32.partialorder %v7228_v36, %v7483_v50  ;;  %v1969_v24 = vand.u32 65535, %v7264_v22  ;;  %v11081_v58 = vld [vmem:[#allocation105_spill] sm:$0xff] }
 0x492   : > { %v1905_v15 = vsel %vm1841_vm10, %v5950_v53, 256  ;;  %v1906_v41 = vsel %vm1842_vm9, %v5953_v26, 256  ;;  %v2024_v37 = vsel %vm2023_vm12, %v2019_v9, inf  ;;  %v1953_v22 = vand.u32 65535, %v7280_v31  ;;  %v11077_v31 = vld [vmem:[#allocation101_spill] sm:$0xff] }
 0x493   : > { %vm2207_vm8 = vcmp.lt.s32.totalorder %v1905_v15, %v1906_v41  ;;  %2025 = vmin.xlane.f32.xlu0 %v2024_v37  ;;  %v2433_v60 = vand.u32 65535, %v11081_v58 }
 0x494   : > { %v7493_v51 = vsel %vm2207_vm8, %v1905_v15, %v1906_v41  ;;  %v7495_v39 = vpop.xlane.xlu0 %2005  ;;  %v11075_v15 = vld [vmem:[#allocation37_spill] sm:$0xff]  ;;  %v11076_v41 = vld [vmem:[#allocation38_spill] sm:$0xff] }
 0x495   : > { %v2210_v63 = vshra.s32 %v7493_v51, 16  ;;  %vm2007_vm11 = vcmp.eq.f32.partialorder %v7236_v35, %v7495_v39 }
 0x496   : > { %v2008_v13 = vsel %vm2007_vm11, %v2003_v16, inf }
 0x497   : > { %v7501_v0 = vcvt.s32.f32 %v2210_v63  ;;  %2009 = vmin.xlane.f32.xlu0 %v2008_v13  ;;  %v1971_v63 = vcvt.s32.f32 %v1969_v24 }
 0x498   : > { %v1761_v36 = vpop.xlane.xlu1 %1760  ;;  %v7504_v9 = vpop.xlane.xlu0 %1989 }
 0x499   : > { %vm1839_vm5 = vcmp.eq.f32.partialorder %v11075_v15, %v1761_v36  ;;  %vm1840_vm7 = vcmp.eq.f32.partialorder %v11076_v41, %v1761_v36  ;;  %2213 = vmin.xlane.f32.xlu1 %v7501_v0  ;;  %vm1991_vm2 = vcmp.eq.f32.partialorder %v7268_v44, %v7504_v9  ;;  %v1937_v36 = vand.u32 65535, %v7284_v59  ;;  %v11079_v59 = vld [vmem:[#allocation102_spill] sm:$0xff] }
 0x49a   : > { %v1903_v20 = vsel %vm1839_vm5, %v5950_v53, 256  ;;  %v1904_v35 = vsel %vm1840_vm7, %v5953_v26, 256  ;;  %v1992_v37 = vsel %vm1991_vm2, %v1987_v21, inf  ;;  %v1955_v21 = vcvt.s32.f32 %v1953_v22  ;;  %v11080_v22 = vld [vmem:[#allocation104_spill] sm:$0xff] }
 0x49b   : > { %vm2191_vm0 = vcmp.lt.s32.totalorder %v1903_v20, %v1904_v35  ;;  %1993 = vmin.xlane.f32.xlu0 %v1992_v37 }
 0x49c   : > { %v7514_v16 = vpop.xlane.xlu1 %1973  ;;  %v7516_v13 = vsel %vm2191_vm0, %v1903_v20, %v1904_v35  ;;  %v11078_v35 = vld [vmem:[#allocation103_spill] sm:$0xff] }
 0x49d   : > { %vm1975_vm10 = vcmp.eq.f32.partialorder %v7276_v33, %v7514_v16  ;;  %v2194_v29 = vshra.s32 %v7516_v13, 16  ;;  %v1939_v33 = vcvt.s32.f32 %v1937_v36  ;;  %v2417_v37 = vand.u32 65535, %v11078_v35 }
 0x49e   : > { %v1976_v41 = vsel %vm1975_vm10, %v1971_v63, inf  ;;  %v2435_v36 = vcvt.s32.f32 %v2433_v60  ;;  %v2401_v35 = vand.u32 65535, %v7326_v56  ;;  %v2369_v56 = vand.u32 65535, %v7339_v62 }
 0x49f   : > { %v7522_v15 = vpop.xlane.xlu0 %1957  ;;  %v7524_v44 = vcvt.s32.f32 %v2194_v29  ;;  %1977 = vmin.xlane.f32.xlu0 %v1976_v41  ;;  %v2419_v41 = vcvt.s32.f32 %v2417_v37  ;;  %v2337_v62 = vand.u32 65535, %v7359_v32  ;;  %v2305_v32 = vand.u32 65535, %v7377_v6  ;;  %v11092_v6 = vld [vmem:[#allocation110_spill] sm:$0xff] }
 0x4a0   : > { %vm1959_vm9 = vcmp.eq.f32.partialorder %v11077_v31, %v7522_v15  ;;  %v2403_v37 = vcvt.s32.f32 %v2401_v35 }
 0x4a1   : > { %2197 = vmin.xlane.f32.xlu1 %v7524_v44  ;;  %v7529_v24 = vpop.xlane.xlu1 %1941  ;;  %v1960_v20 = vsel %vm1959_vm9, %v1955_v21, inf }
 0x4a2   : > { %vm1943_vm12 = vcmp.eq.f32.partialorder %v11079_v59, %v7529_v24  ;;  %v2385_v59 = vand.u32 65535, %v7328_v49  ;;  %v2353_v49 = vand.u32 65535, %v7349_v48  ;;  %v2321_v48 = vand.u32 65535, %v7369_v7 }
 0x4a3   : > { %v1944_v63 = vsel %vm1943_vm12, %v1939_v33, inf  ;;  %1961 = vmin.xlane.f32.xlu0 %v1960_v20 }
 0x4a4   : > { %v2387_v60 = vcvt.s32.f32 %v2385_v59 }
 0x4a5   : > { %1945 = vmin.xlane.f32.xlu1 %v1944_v63  ;;  %v7534_v29 = vpop.xlane.xlu1 %2421 }
 0x4a6   : > { %vm2423_vm8 = vcmp.eq.f32.partialorder %v11080_v22, %v7534_v29 }
 0x4a7   : > { %v2424_v31 = vsel %vm2423_vm8, %v2419_v41, inf  ;;  %v11082_v41 = vld [vmem:[#allocation106_spill] sm:$0xff] }
 0x4a9   : > { %2425 = vmin.xlane.f32.xlu1 %v2424_v31  ;;  %v2371_v31 = vcvt.s32.f32 %v2369_v56 }
 0x4c0   : > { %v7539_v21 = vpop.xlane.xlu0 %2437 }
 0x4c1   : > { %vm2439_vm11 = vcmp.eq.f32.partialorder %v7324_v61, %v7539_v21 }
 0x4c2   : > { %v2440_v20 = vsel %vm2439_vm11, %v2435_v36, inf  ;;  %v11084_v36 = vld [vmem:[#allocation107_spill] sm:$0xff] }
 0x4c3   : > { %2441 = vmin.xlane.f32.xlu0 %v2440_v20  ;;  %v2355_v20 = vcvt.s32.f32 %v2353_v49  ;;  %v11089_v49 = vld [vmem:[#allocation108_spill] sm:$0xff] }
 0x4c4   : > { %v7544_v33 = vpop.xlane.xlu1 %2405  ;;  %v2289_v7 = vand.u32 65535, %v11089_v49  ;;  %v11099_v49 = vld [vmem:[#allocation66_spill] sm:$0xff] }
 0x4c5   : > { %vm2407_vm5 = vcmp.eq.f32.partialorder %v7336_v12, %v7544_v33 }
 0x4c6   : > { %v2408_v63 = vsel %vm2407_vm5, %v2403_v37, inf }
 0x4c7   : > { %2409 = vmin.xlane.f32.xlu0 %v2408_v63  ;;  %v2339_v63 = vcvt.s32.f32 %v2337_v62 }
 0x4c8   : > { %v7549_v58 = vpop.xlane.xlu1 %2389 }
 0x4c9   : > { %vm2391_vm7 = vcmp.eq.f32.partialorder %v11082_v41, %v7549_v58  ;;  %v2323_v41 = vcvt.s32.f32 %v2321_v48  ;;  %v2172_v48 = vcvt.f32.s32 %v7399_v47 }
 0x4ca   : > { %v2392_v61 = vsel %vm2391_vm7, %v2387_v60, inf }
 0x4cb   : > { %2393 = vmin.xlane.f32.xlu1 %v2392_v61 }
 0x4cc   : > { %v7554_v22 = vpop.xlane.xlu1 %2373 }
 0x4cd   : > { %11083 = vst [vmem:[#allocation101_spill] sm:$0xff] %v7554_v22  ;;  %vm2375_vm2 = vcmp.eq.f32.partialorder %v11084_v36, %v7554_v22  ;;  %v11090_v36 = vld [vmem:[#allocation109_spill] sm:$0xff] }
 0x4ce   : > { %v2376_v12 = vsel %vm2375_vm2, %v2371_v31, inf  ;;  %v2307_v31 = vcvt.s32.f32 %v2305_v32 }
 0x4cf   : > { %2377 = vmin.xlane.f32.xlu1 %v2376_v12 }
 0x4d0   : > { %v7559_v35 = vpop.xlane.xlu1 %2357 }
 0x4d1   : > { %11085 = vst [vmem:[#allocation103_spill] sm:$0xff] %v7559_v35  ;;  %vm2359_vm0 = vcmp.eq.f32.partialorder %v7366_v28, %v7559_v35 }
 0x4d2   : > { %v2360_v37 = vsel %vm2359_vm0, %v2355_v20, inf  ;;  %v2291_v20 = vcvt.s32.f32 %v2289_v7 }
 0x4d3   : > { %2361 = vmin.xlane.f32.xlu1 %v2360_v37 }
 0x4d4   : > { %v7564_v59 = vpop.xlane.xlu1 %2341 }
 0x4d5   : > { %11086 = vst [vmem:[#allocation102_spill] sm:$0xff] %v7564_v59  ;;  %vm2343_vm10 = vcmp.eq.f32.partialorder %v7374_v52, %v7564_v59 }
 0x4d6   : > { %v2344_v60 = vsel %vm2343_vm10, %v2339_v63, inf }
 0x4d7   : > { %2345 = vmin.xlane.f32.xlu1 %v2344_v60 }
 0x4d8   : > { %v7569_v56 = vpop.xlane.xlu1 %2325 }
 0x4d9   : > { %11087 = vst [vmem:[#allocation104_spill] sm:$0xff] %v7569_v56  ;;  %vm2327_vm9 = vcmp.eq.f32.partialorder %v7380_v2, %v7569_v56  ;;  %v2188_v2 = vcvt.f32.s32 %v7394_v46  ;;  %v11132_v56 = vld [vmem:[#allocation72_spill] sm:$0xff] }
 0x4da   : > { %v2328_v28 = vsel %vm2327_vm9, %v2323_v41, inf  ;;  %v11093_v41 = vmov 0.0  }
 0x4db   : > { %2329 = vmin.xlane.f32.xlu1 %v2328_v28  ;;  %v2189_v63 = vshll.u32 %v2188_v2, 16  ;;  %v5220_v28 = vsel %vm1422_vm14, 1.0, %v11093_v41  ;;  %v5217_v46 = vsel %vm1419_vm15, 1.0, %v11093_v41  ;;  %v5218_v47 = vsel %vm1420_vm1, 1.0, %v11093_v41 }
 0x4dc   : > { %v7574_v61 = vpop.xlane.xlu1 %2309 }
 0x4dd   : > { %11088 = vst [vmem:[#allocation105_spill] sm:$0xff] %v7574_v61  ;;  %vm2311_vm12 = vcmp.eq.f32.partialorder %v11090_v36, %v7574_v61  ;;  %v5215_v36 = vsel %vm1417_vm3, 1.0, %v11093_v41  ;;  %v2257_v61 = vand.u32 65535, %v7433_v11 }
 0x4de   : > { %v2312_v52 = vsel %vm2311_vm12, %v2307_v31, inf  ;;  %v5219_v31 = vsel %vm1421_vm13, 1.0, %v11093_v41 }
 0x4df   : > { %2313 = vmin.xlane.f32.xlu1 %v2312_v52 }
 0x4e0   : > { %v7579_v12 = vpop.xlane.xlu1 %2293 }
 0x4e1   : > { %11091 = vst [vmem:[#allocation106_spill] sm:$0xff] %v7579_v12  ;;  %vm2295_vm8 = vcmp.eq.f32.partialorder %v11092_v6, %v7579_v12  ;;  %v11097_v6 = vld [vmem:[#allocation73_spill] sm:$0xff] }
 0x4e2   : > { %v2296_v62 = vsel %vm2295_vm8, %v2291_v20, inf  ;;  %v5216_v20 = vsel %vm1418_vm4, 1.0, %v11093_v41  ;;  %vm11098_vm13 = vcmp.eq.s32.totalorder %v5953_v26, %v11097_v6  ;;  %vm11127_vm8 = vcmp.eq.s32.totalorder %v5950_v53, %v11126_v8 }
 0x4e3   : > { %2297 = vmin.xlane.f32.xlu1 %v2296_v62  ;;  %v7613_v62 = vsel %vm1415_vm6, 1.0, %v11093_v41  ;;  %v7619_v2 = vsel %vm11098_vm13, 1.0, %v11093_v41 }
 0x4f3   : > { %v2186_v37 = vpop.xlane.xlu0 %2185 }
 0x4f4   : > { %v2187_v60 = vcvt.f32.s32 %v2186_v37  ;;  %v2156_v37 = vcvt.f32.s32 %v7404_v5 }
 0x4f6   : > { %v2190_v52 = vadd.s32 %v2189_v63, %v2187_v60  ;;  %v2173_v60 = vshll.u32 %v2172_v48, 16 }
 0x4f8   : > { %v2170_v63 = vpop.xlane.xlu0 %2169  ;;  %vm2477_vm14 = vcmp.eq.s32.totalorder %v5950_v53, %v2190_v52  ;;  %vm2478_vm15 = vcmp.eq.s32.totalorder %v5953_v26, %v2190_v52  ;;  %v11105_v52 = vld [vmem:[#allocation77_spill] sm:$0xff] }
 0x4f9   : > { %v2171_v32 = vcvt.f32.s32 %v2170_v63  ;;  %v7625_v7 = vsel %vm2477_vm14, inf, %v11099_v49  ;;  %v7628_v38 = vsel %vm2478_vm15, inf, %v11101_v34  ;;  %v5284_v40 = vsel %vm2478_vm15, 1.0, %v11093_v41 }
 0x4fa   : > { %11100 = vst [vmem:[#allocation107_spill] sm:$0xff] %v7625_v7  ;;  %11102 = vst [vmem:[#allocation108_spill] sm:$0xff] %v7628_v38  ;;  %v5283_v6 = vsel %vm2477_vm14, 1.0, %v11093_v41  ;;  %v2812_v5 = vmin.f32 %v7625_v7, %v7628_v38  ;;  %v7634_v48 = vadd.f32 %v5284_v40, %v5220_v28  ;;  %vm11106_vm1 = vcmp.eq.s32.totalorder %v5950_v53, %v11105_v52  ;;  %v11128_v7 = vld [vmem:[#allocation74_spill] sm:$0xff] }
 0x4fb   : > { %v2174_v1 = vadd.s32 %v2173_v60, %v2171_v32  ;;  %v7636_v54 = vadd.f32 %v5283_v6, %v5219_v31  ;;  %v7642_v63 = vsel %vm11106_vm1, 1.0, %v11093_v41  ;;  %vm11107_vm3 = vcmp.eq.s32.totalorder %v5953_v26, %v11105_v52  ;;  %v11108_v52 = vld [vmem:[#allocation69_spill] sm:$0xff] }
 0x4fc   : > { %11103 = vst [vmem:[#allocation109_spill] sm:$0xff] %v7634_v48  ;;  %v7648_v34 = vsel %vm11107_vm3, 1.0, %v11093_v41  ;;  %v2157_v60 = vshll.u32 %v2156_v37, 16  ;;  %v2273_v32 = vand.u32 65535, %v7413_v42  ;;  %v2140_v40 = vcvt.f32.s32 %v7415_v23  ;;  %2813 = vmin.xlane.f32.xlu0 %v2812_v5  ;;  %v2154_v6 = vpop.xlane.xlu0 %2153  ;;  %v11110_v37 = vld [vmem:[#allocation70_spill] sm:$0xff] }
 0x4fd   : > { %11104 = vst [vmem:[#allocation110_spill] sm:$0xff] %v7636_v54  ;;  %v2124_v28 = vcvt.f32.s32 %v7423_v3  ;;  %vm2475_vm4 = vcmp.eq.s32.totalorder %v5950_v53, %v2174_v1  ;;  %vm2476_vm6 = vcmp.eq.s32.totalorder %v5953_v26, %v2174_v1  ;;  %v2155_v3 = vcvt.f32.s32 %v2154_v6  ;;  %v11114_v5 = vld [vmem:[#allocation78_spill] sm:$0xff] }
 0x4fe   : > { %v5281_v31 = vsel %vm2475_vm4, 1.0, %v11093_v41  ;;  %v5282_v49 = vsel %vm2476_vm6, 1.0, %v11093_v41  ;;  %v7658_v54 = vsel %vm2475_vm4, inf, %v11108_v52  ;;  %v7661_v48 = vsel %vm2476_vm6, inf, %v11110_v37 }
 0x4ff   : > { %11109 = vst [vmem:[#allocation64_spill] sm:$0xff] %v7658_v54  ;;  %11111 = vst [vmem:[#allocation68_spill] sm:$0xff] %v7661_v48  ;;  %v7663_v42 = vadd.f32 %v5281_v31, %v5217_v46  ;;  %v7665_v23 = vadd.f32 %v5282_v49, %v5218_v47  ;;  %v2809_v1 = vmin.f32 %v7658_v54, %v7661_v48  ;;  %v11117_v46 = vld [vmem:[#allocation33_spill] sm:$0xff]  ;;  %v11120_v49 = vld [vmem:[#allocation32_spill] sm:$0xff]  ;;  %v2141_v19 = vshll.u32 %v2140_v40, 16 }
 0x500   : > { %vm11115_vm11 = vcmp.eq.s32.totalorder %v5950_v53, %v11114_v5  ;;  %vm11116_vm5 = vcmp.eq.s32.totalorder %v5953_v26, %v11114_v5  ;;  %vm11118_vm7 = vcmp.eq.s32.totalorder %v5950_v53, %v11117_v46  ;;  %vm11119_vm2 = vcmp.eq.s32.totalorder %v5953_v26, %v11117_v46  ;;  %v11123_v5 = vld [vmem:[#allocation27_spill] sm:$0xff]  ;;  %v2138_v48 = vpop.xlane.xlu0 %2137 }
 0x501   : > { %11112 = vst [vmem:[#allocation71_spill] sm:$0xff] %v7663_v42  ;;  %11113 = vst [vmem:[#allocation73_spill] sm:$0xff] %v7665_v23  ;;  %v7673_v10 = vsel %vm11115_vm11, 1.0, %v11093_v41  ;;  %v7679_v52 = vsel %vm11116_vm5, 1.0, %v11093_v41  ;;  %v7685_v47 = vsel %vm11118_vm7, 1.0, %v11093_v41  ;;  %v7691_v31 = vsel %vm11119_vm2, 1.0, %v11093_v41  ;;  %2810 = vmin.xlane.f32.xlu0 %v2809_v1 }
 0x502   : > { %vm11121_vm0 = vcmp.eq.s32.totalorder %v5950_v53, %v11120_v49  ;;  %vm11122_vm10 = vcmp.eq.s32.totalorder %v5953_v26, %v11120_v49  ;;  %vm11124_vm9 = vcmp.eq.s32.totalorder %v5950_v53, %v11123_v5  ;;  %v2158_v46 = vadd.s32 %v2157_v60, %v2155_v3  ;;  %v7725_v3 = vpop.xlane.xlu1 %2277 }
 0x503   : > { %v7697_v6 = vsel %vm11121_vm0, 1.0, %v11093_v41  ;;  %v7703_v37 = vsel %vm11122_vm10, 1.0, %v11093_v41  ;;  %v7709_v42 = vsel %vm11124_vm9, 1.0, %v11093_v41  ;;  %vm11125_vm12 = vcmp.eq.s32.totalorder %v5953_v26, %v11123_v5 }
 0x504   : > { %v7715_v23 = vsel %vm11125_vm12, 1.0, %v11093_v41  ;;  %v7721_v49 = vsel %vm11127_vm8, 1.0, %v11093_v41  ;;  %v2275_v54 = vcvt.s32.f32 %v2273_v32  ;;  %v2125_v38 = vshll.u32 %v2124_v28, 16  ;;  %v2122_v35 = vpop.xlane.xlu0 %2121 }
 0x505   : > { %vm2473_vm13 = vcmp.eq.s32.totalorder %v5950_v53, %v2158_v46  ;;  %vm2474_vm14 = vcmp.eq.s32.totalorder %v5953_v26, %v2158_v46  ;;  %v2139_v60 = vcvt.f32.s32 %v2138_v48  ;;  %v2108_v48 = vcvt.f32.s32 %v7435_v18  ;;  %v11134_v18 = vld [vmem:[#allocation63_spill] sm:$0xff] }
 0x506   : > { %v5279_v1 = vsel %vm2473_vm13, 1.0, %v11093_v41  ;;  %v5280_v5 = vsel %vm2474_vm14, 1.0, %v11093_v41  ;;  %v7730_v12 = vsel %vm2473_vm13, inf, %v11128_v7  ;;  %v7738_v59 = vsel %vm2474_vm14, inf, %v11132_v56 }
 0x507   : > { %11129 = vst [vmem:[#allocation66_spill] sm:$0xff] %v7730_v12  ;;  %v7733_v40 = vadd.f32 %v5279_v1, %v5215_v36  ;;  %v7735_v32 = vadd.f32 %v5280_v5, %v5216_v20  ;;  %v2142_v28 = vadd.s32 %v2141_v19, %v2139_v60  ;;  %11133 = vst [vmem:[#allocation69_spill] sm:$0xff] %v7738_v59  ;;  %v2092_v46 = vcvt.f32.s32 %v7443_v43  ;;  %v11136_v20 = vld [vmem:[#allocation75_spill] sm:$0xff]  ;;  %v11141_v1 = vld [vmem:[#allocation21_spill] sm:$0xff] }
 0x508   : > { %v2806_v22 = vmin.f32 %v7730_v12, %v7738_v59  ;;  %vm2279_vm15 = vcmp.eq.f32.partialorder %v7421_v14, %v7725_v3  ;;  %v2123_v11 = vcvt.f32.s32 %v2122_v35  ;;  %vm11140_vm4 = vcmp.eq.s32.totalorder %v5953_v26, %v11126_v8 }
 0x509   : > { %11130 = vst [vmem:[#allocation67_spill] sm:$0xff] %v7733_v40  ;;  %11131 = vst [vmem:[#allocation77_spill] sm:$0xff] %v7735_v32  ;;  %vm2471_vm1 = vcmp.eq.s32.totalorder %v5950_v53, %v2142_v28  ;;  %vm2472_vm3 = vcmp.eq.s32.totalorder %v5953_v26, %v2142_v28  ;;  %v2280_v19 = vsel %vm2279_vm15, %v2275_v54, inf  ;;  %vm11142_vm6 = vcmp.eq.s32.totalorder %v5950_v53, %v11141_v1  ;;  %v2106_v28 = vpop.xlane.xlu0 %2105 }
 0x50a   : > { %v5277_v56 = vsel %vm2471_vm1, 1.0, %v11093_v41  ;;  %v5278_v36 = vsel %vm2472_vm3, 1.0, %v11093_v41  ;;  %2807 = vmin.xlane.f32.xlu0 %v2806_v22  ;;  %2281 = vmin.xlane.f32.xlu1 %v2280_v19  ;;  %v7751_v43 = vsel %vm2471_vm1, inf, %v11134_v18  ;;  %v7754_v7 = vsel %vm2472_vm3, inf, %v11136_v20 }
 0x50b   : > { %11135 = vst [vmem:[#allocation70_spill] sm:$0xff] %v7751_v43  ;;  %11137 = vst [vmem:[#allocation78_spill] sm:$0xff] %v7754_v7  ;;  %v7757_v14 = vadd.f32 %v5277_v56, %v7613_v62  ;;  %v7760_v60 = vadd.f32 %v5278_v36, %v7619_v2  ;;  %v2126_v35 = vadd.s32 %v2125_v38, %v2123_v11  ;;  %v7768_v22 = vsel %vm11140_vm4, 1.0, %v11093_v41  ;;  %v7778_v11 = vpop.xlane.xlu1 %2261  ;;  %v11143_v36 = vld [vmem:[#allocation76_spill] sm:$0xff] }
 0x50c   : > { %v2803_v54 = vmin.f32 %v7751_v43, %v7754_v7  ;;  %v7774_v5 = vsel %vm11142_vm6, 1.0, %v11093_v41  ;;  %v2109_v62 = vshll.u32 %v2108_v48, 16  ;;  %v2259_v2 = vcvt.s32.f32 %v2257_v61 }
 0x50d   : > { %11138 = vst [vmem:[#allocation33_spill] sm:$0xff] %v7757_v14  ;;  %11139 = vst [vmem:[#allocation32_spill] sm:$0xff] %v7760_v60  ;;  %v2093_v19 = vshll.u32 %v2092_v46, 16  ;;  %vm2469_vm11 = vcmp.eq.s32.totalorder %v5950_v53, %v2126_v35  ;;  %vm2470_vm5 = vcmp.eq.s32.totalorder %v5953_v26, %v2126_v35  ;;  %v2107_v38 = vcvt.f32.s32 %v2106_v28  ;;  %v11147_v35 = vld [vmem:[#allocation65_spill] sm:$0xff] }
 0x50e   : > { %v5275_v8 = vsel %vm2469_vm11, 1.0, %v11093_v41  ;;  %v5276_v56 = vsel %vm2470_vm5, 1.0, %v11093_v41  ;;  %2804 = vmin.xlane.f32.xlu0 %v2803_v54  ;;  %v7783_v18 = vsel %vm2469_vm11, inf, %v11143_v36  ;;  %v2241_v48 = vand.u32 65535, %v7453_v55  ;;  %v2090_v54 = vpop.xlane.xlu0 %2089 }
 0x50f   : > { %11144 = vst [vmem:[#allocation27_spill] sm:$0xff] %v7783_v18  ;;  %v7787_v61 = vadd.f32 %v5275_v8, %v7642_v63  ;;  %v7790_v46 = vadd.f32 %v5276_v56, %v7648_v34  ;;  %v2110_v20 = vadd.s32 %v2109_v62, %v2107_v38  ;;  %v7793_v28 = vsel %vm2470_vm5, inf, %v11147_v35  ;;  %v11151_v38 = vld [vmem:[#allocation36_spill] sm:$0xff] }
 0x510   : > { %11148 = vst [vmem:[#allocation72_spill] sm:$0xff] %v7793_v28  ;;  %v2076_v14 = vcvt.f32.s32 %v7455_v4  ;;  %v2060_v60 = vcvt.f32.s32 %v7463_v30  ;;  %v2800_v36 = vmin.f32 %v7783_v18, %v7793_v28  ;;  %vm2263_vm7 = vcmp.eq.f32.partialorder %v7441_v27, %v7778_v11  ;;  %v11149_v4 = vld [vmem:[#allocation35_spill] sm:$0xff] }
 0x511   : > { %11145 = vst [vmem:[#allocation26_spill] sm:$0xff] %v7787_v61  ;;  %11146 = vst [vmem:[#allocation74_spill] sm:$0xff] %v7790_v46  ;;  %vm2467_vm2 = vcmp.eq.s32.totalorder %v5950_v53, %v2110_v20  ;;  %vm2468_vm0 = vcmp.eq.s32.totalorder %v5953_v26, %v2110_v20  ;;  %v2091_v55 = vcvt.f32.s32 %v2090_v54  ;;  %v2264_v63 = vsel %vm2263_vm7, %v2259_v2, inf  ;;  %v11156_v54 = vld [vmem:[#allocation20_spill] sm:$0xff] }
 0x512   : > { %v5273_v34 = vsel %vm2467_vm2, 1.0, %v11093_v41  ;;  %v5274_v62 = vsel %vm2468_vm0, 1.0, %v11093_v41  ;;  %2801 = vmin.xlane.f32.xlu0 %v2800_v36  ;;  %2265 = vmin.xlane.f32.xlu1 %v2264_v63  ;;  %v7806_v30 = vsel %vm2467_vm2, inf, %v11149_v4  ;;  %v7809_v8 = vsel %vm2468_vm0, inf, %v11151_v38  ;;  %v2074_v63 = vpop.xlane.xlu0 %2073  ;;  %v11158_v4 = vld [vmem:[#allocation34_spill] sm:$0xff] }
 0x513   : > { %11150 = vst [vmem:[#allocation63_spill] sm:$0xff] %v7806_v30  ;;  %11152 = vst [vmem:[#allocation75_spill] sm:$0xff] %v7809_v8  ;;  %v7812_v27 = vadd.f32 %v5273_v34, %v7673_v10  ;;  %v7815_v56 = vadd.f32 %v5274_v62, %v7679_v52  ;;  %v2094_v20 = vadd.s32 %v2093_v19, %v2091_v55  ;;  %v2077_v10 = vshll.u32 %v2076_v14, 16  ;;  %v7833_v55 = vpop.xlane.xlu1 %2245 }
 0x514   : > { %v2797_v2 = vmin.f32 %v7806_v30, %v7809_v8  ;;  %vm11155_vm10 = vcmp.eq.s32.totalorder %v5953_v26, %v11141_v1  ;;  %vm11157_vm9 = vcmp.eq.s32.totalorder %v5950_v53, %v11156_v54  ;;  %v2243_v52 = vcvt.s32.f32 %v2241_v48 }
 0x515   : > { %11153 = vst [vmem:[#allocation21_spill] sm:$0xff] %v7812_v27  ;;  %11154 = vst [vmem:[#allocation76_spill] sm:$0xff] %v7815_v56  ;;  %v7823_v35 = vsel %vm11155_vm10, 1.0, %v11093_v41  ;;  %v7829_v36 = vsel %vm11157_vm9, 1.0, %v11093_v41  ;;  %v2061_v34 = vshll.u32 %v2060_v60, 16  ;;  %vm2465_vm12 = vcmp.eq.s32.totalorder %v5950_v53, %v2094_v20 }
 0x516   : > { %vm2466_vm8 = vcmp.eq.s32.totalorder %v5953_v26, %v2094_v20  ;;  %v2075_v19 = vcvt.f32.s32 %v2074_v63  ;;  %v5271_v1 = vsel %vm2465_vm12, 1.0, %v11093_v41  ;;  %2798 = vmin.xlane.f32.xlu0 %v2797_v2  ;;  %v7838_v38 = vsel %vm2465_vm12, inf, %v11158_v4  ;;  %v11162_v63 = vld [vmem:[#allocation31_spill] sm:$0xff]  ;;  %v2058_v2 = vpop.xlane.xlu0 %2057 }
 0x517   : > { %v5272_v62 = vsel %vm2466_vm8, 1.0, %v11093_v41  ;;  %11159 = vst [vmem:[#allocation65_spill] sm:$0xff] %v7838_v38  ;;  %v2225_v14 = vand.u32 65535, %v7473_v25  ;;  %v7842_v48 = vadd.f32 %v5271_v1, %v7685_v47  ;;  %v7848_v27 = vsel %vm2466_vm8, inf, %v11162_v63 }
 0x518   : > { %v7845_v60 = vadd.f32 %v5272_v62, %v7691_v31  ;;  %v2078_v20 = vadd.s32 %v2077_v10, %v2075_v19  ;;  %11163 = vst [vmem:[#allocation20_spill] sm:$0xff] %v7848_v27  ;;  %v2044_v56 = vcvt.f32.s32 %v7475_v57  ;;  %v2028_v61 = vcvt.f32.s32 %v7483_v50  ;;  %v11164_v57 = vld [vmem:[#allocation29_spill] sm:$0xff]  ;;  %v11166_v19 = vld [vmem:[#allocation30_spill] sm:$0xff] }
 0x519   : > { %11160 = vst [vmem:[#allocation35_spill] sm:$0xff] %v7842_v48  ;;  %v2794_v4 = vmin.f32 %v7838_v38, %v7848_v27  ;;  %vm2247_vm13 = vcmp.eq.f32.partialorder %v7461_v17, %v7833_v55  ;;  %v2059_v25 = vcvt.f32.s32 %v2058_v2  ;;  %vm11170_vm1 = vcmp.eq.s32.totalorder %v5953_v26, %v11156_v54  ;;  %v11171_v2 = vld [vmem:[#allocation15_spill] sm:$0xff] }
 0x51a   : > { %11161 = vst [vmem:[#allocation36_spill] sm:$0xff] %v7845_v60  ;;  %vm2463_vm14 = vcmp.eq.s32.totalorder %v5950_v53, %v2078_v20  ;;  %vm2464_vm15 = vcmp.eq.s32.totalorder %v5953_v26, %v2078_v20  ;;  %v2248_v47 = vsel %vm2247_vm13, %v2243_v52, inf  ;;  %v7878_v63 = vsel %vm11170_vm1, 1.0, %v11093_v41 }
 0x51b   : > { %v5269_v31 = vsel %vm2463_vm14, 1.0, %v11093_v41  ;;  %v5270_v10 = vsel %vm2464_vm15, 1.0, %v11093_v41  ;;  %2795 = vmin.xlane.f32.xlu0 %v2794_v4  ;;  %2249 = vmin.xlane.f32.xlu1 %v2248_v47  ;;  %v7861_v50 = vsel %vm2463_vm14, inf, %v11164_v57  ;;  %v7864_v1 = vsel %vm2464_vm15, inf, %v11166_v19  ;;  %v2042_v47 = vpop.xlane.xlu0 %2041  ;;  %v11173_v57 = vld [vmem:[#allocation28_spill] sm:$0xff] }
 0x51c   : > { %11165 = vst [vmem:[#allocation34_spill] sm:$0xff] %v7861_v50  ;;  %11167 = vst [vmem:[#allocation31_spill] sm:$0xff] %v7864_v1  ;;  %v7867_v17 = vadd.f32 %v5269_v31, %v7697_v6  ;;  %v7870_v62 = vadd.f32 %v5270_v10, %v7703_v37  ;;  %v2062_v20 = vadd.s32 %v2061_v34, %v2059_v25  ;;  %v2045_v6 = vshll.u32 %v2044_v56, 16  ;;  %v7888_v25 = vpop.xlane.xlu1 %2229 }
 0x51d   : > { %v2791_v52 = vmin.f32 %v7861_v50, %v7864_v1  ;;  %vm11172_vm3 = vcmp.eq.s32.totalorder %v5950_v53, %v11171_v2  ;;  %v2227_v37 = vcvt.s32.f32 %v2225_v14  ;;  %v2029_v31 = vshll.u32 %v2028_v61, 16 }
 0x51e   : > { %11168 = vst [vmem:[#allocation29_spill] sm:$0xff] %v7867_v17  ;;  %11169 = vst [vmem:[#allocation30_spill] sm:$0xff] %v7870_v62  ;;  %v7884_v4 = vsel %vm11172_vm3, 1.0, %v11093_v41  ;;  %vm2461_vm4 = vcmp.eq.s32.totalorder %v5950_v53, %v2062_v20  ;;  %vm2462_vm6 = vcmp.eq.s32.totalorder %v5953_v26, %v2062_v20  ;;  %v2043_v34 = vcvt.f32.s32 %v2042_v47  ;;  %v11177_v47 = vld [vmem:[#allocation25_spill] sm:$0xff] }
 0x51f   : > { %v5267_v54 = vsel %vm2461_vm4, 1.0, %v11093_v41  ;;  %v5268_v10 = vsel %vm2462_vm6, 1.0, %v11093_v41  ;;  %2792 = vmin.xlane.f32.xlu0 %v2791_v52  ;;  %v7893_v19 = vsel %vm2461_vm4, inf, %v11173_v57  ;;  %v2209_v56 = vand.u32 65535, %v7493_v51  ;;  %v2026_v52 = vpop.xlane.xlu0 %2025 }
 0x520   : > { %11174 = vst [vmem:[#allocation15_spill] sm:$0xff] %v7893_v19  ;;  %v7897_v14 = vadd.f32 %v5267_v54, %v7709_v42  ;;  %v7900_v61 = vadd.f32 %v5268_v10, %v7715_v23  ;;  %v2046_v20 = vadd.s32 %v2045_v6, %v2043_v34  ;;  %v7903_v17 = vsel %vm2462_vm6, inf, %v11177_v47  ;;  %v11181_v34 = vld [vmem:[#allocation24_spill] sm:$0xff] }
 0x521   : > { %11178 = vst [vmem:[#allocation25_spill] sm:$0xff] %v7903_v17  ;;  %v2012_v62 = vcvt.f32.s32 %v7495_v39  ;;  %v1996_v48 = vcvt.f32.s32 %v7504_v9  ;;  %v2788_v57 = vmin.f32 %v7893_v19, %v7903_v17  ;;  %vm2231_vm11 = vcmp.eq.f32.partialorder %v7481_v45, %v7888_v25  ;;  %v11179_v39 = vld [vmem:[#allocation23_spill] sm:$0xff] }
 0x522   : > { %11175 = vst [vmem:[#allocation28_spill] sm:$0xff] %v7897_v14  ;;  %11176 = vst [vmem:[#allocation111_spill] sm:$0xff] %v7900_v61  ;;  %vm2459_vm5 = vcmp.eq.s32.totalorder %v5950_v53, %v2046_v20  ;;  %vm2460_vm7 = vcmp.eq.s32.totalorder %v5953_v26, %v2046_v20  ;;  %v2027_v51 = vcvt.f32.s32 %v2026_v52  ;;  %v2232_v42 = vsel %vm2231_vm11, %v2227_v37, inf  ;;  %v11186_v52 = vld [vmem:[#allocation14_spill] sm:$0xff] }
 0x523   : > { %v5265_v23 = vsel %vm2459_vm5, 1.0, %v11093_v41  ;;  %v5266_v6 = vsel %vm2460_vm7, 1.0, %v11093_v41  ;;  %2789 = vmin.xlane.f32.xlu0 %v2788_v57  ;;  %2233 = vmin.xlane.f32.xlu1 %v2232_v42  ;;  %v7916_v9 = vsel %vm2459_vm5, inf, %v11179_v39  ;;  %v7919_v54 = vsel %vm2460_vm7, inf, %v11181_v34  ;;  %v2010_v42 = vpop.xlane.xlu0 %2009  ;;  %v11188_v34 = vld [vmem:[#allocation22_spill] sm:$0xff] }
 0x524   : > { %11180 = vst [vmem:[#allocation23_spill] sm:$0xff] %v7916_v9  ;;  %11182 = vst [vmem:[#allocation24_spill] sm:$0xff] %v7919_v54  ;;  %v7922_v45 = vadd.f32 %v5265_v23, %v7721_v49  ;;  %v7925_v10 = vadd.f32 %v5266_v6, %v7768_v22  ;;  %v2030_v20 = vadd.s32 %v2029_v31, %v2027_v51  ;;  %v2013_v49 = vshll.u32 %v2012_v62, 16  ;;  %v7941_v51 = vpop.xlane.xlu1 %2213 }
 0x525   : > { %v2785_v37 = vmin.f32 %v7916_v9, %v7919_v54  ;;  %vm11185_vm2 = vcmp.eq.s32.totalorder %v5953_v26, %v11171_v2  ;;  %vm11187_vm0 = vcmp.eq.s32.totalorder %v5950_v53, %v11186_v52  ;;  %v2211_v23 = vcvt.s32.f32 %v2209_v56 }
 0x526   : > { %11183 = vst [vmem:[#allocation112_spill] sm:$0xff] %v7922_v45  ;;  %11184 = vst [vmem:[#allocation113_spill] sm:$0xff] %v7925_v10  ;;  %v5196_v47 = vsel %vm11185_vm2, 1.0, %v11093_v41  ;;  %v7937_v57 = vsel %vm11187_vm0, 1.0, %v11093_v41  ;;  %v1997_v22 = vshll.u32 %v1996_v48, 16  ;;  %vm2457_vm10 = vcmp.eq.s32.totalorder %v5950_v53, %v2030_v20 }
 0x527   : > { %vm2458_vm9 = vcmp.eq.s32.totalorder %v5953_v26, %v2030_v20  ;;  %v2011_v31 = vcvt.f32.s32 %v2010_v42  ;;  %v1980_v2 = vcvt.f32.s32 %v7514_v16  ;;  %v5263_v6 = vsel %vm2457_vm10, 1.0, %v11093_v41  ;;  %2786 = vmin.xlane.f32.xlu0 %v2785_v37  ;;  %v11192_v20 = vld [vmem:[#allocation19_spill] sm:$0xff]  ;;  %v1994_v10 = vpop.xlane.xlu0 %1993 }
 0x528   : > { %v5264_v39 = vsel %vm2458_vm9, 1.0, %v11093_v41  ;;  %v7947_v45 = vsel %vm2457_vm10, inf, %v11188_v34  ;;  %v7950_v62 = vadd.f32 %v5263_v6, %v7774_v5  ;;  %v7956_v42 = vsel %vm2458_vm9, inf, %v11192_v20 }
 0x529   : > { %11189 = vst [vmem:[#allocation14_spill] sm:$0xff] %v7947_v45  ;;  %v7953_v48 = vadd.f32 %v5264_v39, %v7823_v35  ;;  %v2014_v56 = vadd.s32 %v2013_v49, %v2011_v31  ;;  %11193 = vst [vmem:[#allocation19_spill] sm:$0xff] %v7956_v42  ;;  %v1964_v16 = vcvt.f32.s32 %v7522_v15  ;;  %v2782_v14 = vmin.f32 %v7947_v45, %v7956_v42  ;;  %v11194_v15 = vld [vmem:[#allocation17_spill] sm:$0xff]  ;;  %v11196_v39 = vld [vmem:[#allocation18_spill] sm:$0xff] }
 0x52a   : > { %11190 = vst [vmem:[#allocation22_spill] sm:$0xff] %v7950_v62  ;;  %vm2215_vm12 = vcmp.eq.f32.partialorder %v7501_v0, %v7941_v51  ;;  %v2193_v37 = vand.u32 65535, %v7516_v13  ;;  %v1995_v5 = vcvt.f32.s32 %v1994_v10  ;;  %vm11200_vm14 = vcmp.eq.s32.totalorder %v5953_v26, %v11186_v52 }
 0x52b   : > { %11191 = vst [vmem:[#allocation114_spill] sm:$0xff] %v7953_v48  ;;  %vm2455_vm8 = vcmp.eq.s32.totalorder %v5950_v53, %v2014_v56  ;;  %vm2456_vm13 = vcmp.eq.s32.totalorder %v5953_v26, %v2014_v56  ;;  %v2216_v35 = vsel %vm2215_vm12, %v2211_v23, inf  ;;  %2783 = vmin.xlane.f32.xlu0 %v2782_v14  ;;  %v5194_v14 = vsel %vm11200_vm14, 1.0, %v11093_v41  ;;  %v11201_v56 = vld [vmem:[#allocation9_spill] sm:$0xff] }
 0x52c   : > { %v5261_v49 = vsel %vm2455_vm8, 1.0, %v11093_v41  ;;  %v5262_v31 = vsel %vm2456_vm13, 1.0, %v11093_v41  ;;  %2217 = vmin.xlane.f32.xlu1 %v2216_v35  ;;  %v7969_v6 = vsel %vm2455_vm8, inf, %v11194_v15  ;;  %v7972_v34 = vsel %vm2456_vm13, inf, %v11196_v39  ;;  %v11203_v39 = vld [vmem:[#allocation16_spill] sm:$0xff] }
 0x52d   : > { %11195 = vst [vmem:[#allocation17_spill] sm:$0xff] %v7969_v6  ;;  %11197 = vst [vmem:[#allocation18_spill] sm:$0xff] %v7972_v34  ;;  %v7975_v0 = vadd.f32 %v5261_v49, %v7829_v36  ;;  %v7978_v13 = vadd.f32 %v5262_v31, %v7878_v63  ;;  %v1998_v10 = vadd.s32 %v1997_v22, %v1995_v5  ;;  %v1981_v35 = vshll.u32 %v1980_v2, 16  ;;  %v1978_v49 = vpop.xlane.xlu0 %1977  ;;  %v7993_v22 = vpop.xlane.xlu1 %2197 }
 0x52e   : > { %v2779_v23 = vmin.f32 %v7969_v6, %v7972_v34  ;;  %vm11202_vm15 = vcmp.eq.s32.totalorder %v5950_v53, %v11201_v56  ;;  %v1948_v36 = vcvt.f32.s32 %v7529_v24  ;;  %v1979_v63 = vcvt.f32.s32 %v1978_v49 }
 0x52f   : > { %11198 = vst [vmem:[#allocation115_spill] sm:$0xff] %v7975_v0  ;;  %11199 = vst [vmem:[#allocation116_spill] sm:$0xff] %v7978_v13  ;;  %v5191_v20 = vsel %vm11202_vm15, 1.0, %v11093_v41  ;;  %vm2453_vm1 = vcmp.eq.s32.totalorder %v5950_v53, %v1998_v10  ;;  %vm2454_vm3 = vcmp.eq.s32.totalorder %v5953_v26, %v1998_v10  ;;  %v2195_v5 = vcvt.s32.f32 %v2193_v37  ;;  %v11207_v10 = vld [vmem:[#allocation13_spill] sm:$0xff] }
 0x530   : > { %v1965_v31 = vshll.u32 %v1964_v16, 16  ;;  %v5259_v52 = vsel %vm2453_vm1, 1.0, %v11093_v41  ;;  %v5260_v15 = vsel %vm2454_vm3, 1.0, %v11093_v41  ;;  %2780 = vmin.xlane.f32.xlu0 %v2779_v23  ;;  %v7998_v0 = vsel %vm2453_vm1, inf, %v11203_v39 }
 0x531   : > { %11204 = vst [vmem:[#allocation9_spill] sm:$0xff] %v7998_v0  ;;  %v8001_v24 = vadd.f32 %v5259_v52, %v7884_v4  ;;  %v8003_v2 = vadd.f32 %v5260_v15, %v5196_v47  ;;  %v1982_v13 = vadd.s32 %v1981_v35, %v1979_v63  ;;  %v8006_v49 = vsel %vm2454_vm3, inf, %v11207_v10  ;;  %v1962_v37 = vpop.xlane.xlu0 %1961  ;;  %v1946_v23 = vpop.xlane.xlu1 %1945  ;;  %v11209_v63 = vld [vmem:[#allocation11_spill] sm:$0xff] }
 0x532   : > { %11208 = vst [vmem:[#allocation13_spill] sm:$0xff] %v8006_v49  ;;  %v1949_v62 = vshll.u32 %v1948_v36, 16  ;;  %v2428_v16 = vcvt.f32.s32 %v7534_v29  ;;  %v2776_v48 = vmin.f32 %v7998_v0, %v8006_v49  ;;  %vm2199_vm4 = vcmp.eq.f32.partialorder %v7524_v44, %v7993_v22 }
 0x533   : > { %11205 = vst [vmem:[#allocation16_spill] sm:$0xff] %v8001_v24  ;;  %11206 = vst [vmem:[#allocation117_spill] sm:$0xff] %v8003_v2  ;;  %vm2451_vm6 = vcmp.eq.s32.totalorder %v5950_v53, %v1982_v13  ;;  %vm2452_vm11 = vcmp.eq.s32.totalorder %v5953_v26, %v1982_v13  ;;  %v1963_v4 = vcvt.f32.s32 %v1962_v37  ;;  %v2200_v47 = vsel %vm2199_vm4, %v2195_v5, inf  ;;  %v11213_v13 = vld [vmem:[#allocation12_spill] sm:$0xff] }
 0x534   : > { %v5257_v35 = vsel %vm2451_vm6, 1.0, %v11093_v41  ;;  %v5258_v36 = vsel %vm2452_vm11, 1.0, %v11093_v41  ;;  %2777 = vmin.xlane.f32.xlu0 %v2776_v48  ;;  %2201 = vmin.xlane.f32.xlu1 %v2200_v47  ;;  %v1947_v29 = vcvt.f32.s32 %v1946_v23  ;;  %v8018_v52 = vsel %vm2451_vm6, inf, %v11209_v63  ;;  %v11216_v48 = vld [vmem:[#allocation10_spill] sm:$0xff] }
 0x535   : > { %11210 = vst [vmem:[#allocation11_spill] sm:$0xff] %v8018_v52  ;;  %v8021_v15 = vadd.f32 %v5257_v35, %v7937_v57  ;;  %v8023_v44 = vadd.f32 %v5258_v36, %v5194_v14  ;;  %v1966_v39 = vadd.s32 %v1965_v31, %v1963_v4  ;;  %v8026_v10 = vsel %vm2452_vm11, inf, %v11213_v13  ;;  %v11223_v13 = vld [vmem:[#allocation7_spill] sm:$0xff] }
 0x536   : > { %11214 = vst [vmem:[#allocation12_spill] sm:$0xff] %v8026_v10  ;;  %vm11215_vm5 = vcmp.eq.s32.totalorder %v5953_v26, %v11201_v56  ;;  %vm11217_vm7 = vcmp.eq.s32.totalorder %v5950_v53, %v11216_v48  ;;  %v1950_v47 = vadd.s32 %v1949_v62, %v1947_v29  ;;  %v2773_v57 = vmin.f32 %v8018_v52, %v8026_v10  ;;  %v2426_v56 = vpop.xlane.xlu1 %2425 }
 0x537   : > { %11211 = vst [vmem:[#allocation118_spill] sm:$0xff] %v8021_v15  ;;  %11212 = vst [vmem:[#allocation119_spill] sm:$0xff] %v8023_v44  ;;  %v5192_v5 = vsel %vm11215_vm5, 1.0, %v11093_v41  ;;  %v5189_v37 = vsel %vm11217_vm7, 1.0, %v11093_v41  ;;  %vm11218_vm2 = vcmp.eq.s32.totalorder %v5953_v26, %v11216_v48  ;;  %v2429_v31 = vshll.u32 %v2428_v16, 16  ;;  %v11225_v15 = vld [vmem:[#allocation8_spill] sm:$0xff] }
 0x538   : > { %v5190_v14 = vsel %vm11218_vm2, 1.0, %v11093_v41  ;;  %vm2449_vm0 = vcmp.eq.s32.totalorder %v5950_v53, %v1966_v39  ;;  %vm2450_vm10 = vcmp.eq.s32.totalorder %v5953_v26, %v1966_v39  ;;  %vm2447_vm9 = vcmp.eq.s32.totalorder %v5950_v53, %v1950_v47  ;;  %2774 = vmin.xlane.f32.xlu1 %v2773_v57 }
 0x539   : > { %v5255_v4 = vsel %vm2449_vm0, 1.0, %v11093_v41  ;;  %v5256_v23 = vsel %vm2450_vm10, 1.0, %v11093_v41  ;;  %vm2448_vm12 = vcmp.eq.s32.totalorder %v5953_v26, %v1950_v47  ;;  %v5253_v16 = vsel %vm2447_vm9, 1.0, %v11093_v41  ;;  %v11227_v47 = vld [vmem:[#allocation5_spill] sm:$0xff] }
 0x53a   : > { %v8048_v62 = vadd.f32 %v5255_v4, %v5191_v20  ;;  %v8050_v35 = vadd.f32 %v5256_v23, %v5192_v5  ;;  %v5254_v36 = vsel %vm2448_vm12, 1.0, %v11093_v41  ;;  %v8054_v29 = vadd.f32 %v5253_v16, %v5189_v37  ;;  %v11229_v5 = vld [vmem:[#allocation6_spill] sm:$0xff] }
 0x53b   : > { %v8056_v63 = vadd.f32 %v5254_v36, %v5190_v14  ;;  %v2427_v39 = vcvt.f32.s32 %v2426_v56  ;;  %v8059_v48 = vsel %vm2449_vm0, inf, %v11223_v13  ;;  %v8062_v44 = vsel %vm2450_vm10, inf, %v11225_v15  ;;  %v11231_v56 = vld [vmem:[#allocation79_spill] sm:$0xff]  ;;  %v11236_v13 = vld [vmem:[#allocation60_spill] sm:$0xff] }
 0x53c   : > { %11219 = vst [vmem:[#allocation10_spill] sm:$0xff] %v8048_v62  ;;  %11220 = vst [vmem:[#allocation120_spill] sm:$0xff] %v8050_v35  ;;  %v8065_v20 = vsel %vm2447_vm9, inf, %v11227_v47  ;;  %v8068_v57 = vsel %vm2448_vm12, inf, %v11229_v5  ;;  %v2770_v37 = vmin.f32 %v8059_v48, %v8062_v44  ;;  %vm11232_vm8 = vcmp.eq.s32.totalorder %v5950_v53, %v11231_v56  ;;  %v11234_v36 = vld [vmem:[#allocation59_spill] sm:$0xff] }
 0x53d   : > { %11221 = vst [vmem:[#allocation121_spill] sm:$0xff] %v8054_v29  ;;  %11222 = vst [vmem:[#allocation122_spill] sm:$0xff] %v8056_v63  ;;  %v2430_v4 = vadd.s32 %v2429_v31, %v2427_v39  ;;  %v2767_v14 = vmin.f32 %v8065_v20, %v8068_v57  ;;  %v5249_v23 = vsel %vm11232_vm8, 1.0, %v11093_v41  ;;  %vm11233_vm13 = vcmp.eq.s32.totalorder %v5953_v26, %v11231_v56 }
 0x53e   : > { %11224 = vst [vmem:[#allocation7_spill] sm:$0xff] %v8059_v48  ;;  %11226 = vst [vmem:[#allocation8_spill] sm:$0xff] %v8062_v44  ;;  %v5250_v15 = vsel %vm11233_vm13, 1.0, %v11093_v41  ;;  %2771 = vmin.xlane.f32.xlu0 %v2770_v37  ;;  %v2412_v37 = vcvt.f32.s32 %v7544_v33 }
 0x53f   : > { %11228 = vst [vmem:[#allocation5_spill] sm:$0xff] %v8065_v20  ;;  %11230 = vst [vmem:[#allocation6_spill] sm:$0xff] %v8068_v57  ;;  %vm2507_vm14 = vcmp.eq.s32.totalorder %v5950_v53, %v2430_v4  ;;  %vm2508_vm15 = vcmp.eq.s32.totalorder %v5953_v26, %v2430_v4  ;;  %2768 = vmin.xlane.f32.xlu1 %v2767_v14  ;;  %v2444_v4 = vcvt.f32.s32 %v7539_v21  ;;  %v2396_v21 = vcvt.f32.s32 %v7549_v58 }
 0x540   : > { %v5313_v31 = vsel %vm2507_vm14, 1.0, %v11093_v41  ;;  %v5314_v16 = vsel %vm2508_vm15, 1.0, %v11093_v41  ;;  %v8087_v39 = vsel %vm2507_vm14, inf, %v11234_v36  ;;  %v8090_v47 = vsel %vm2508_vm15, inf, %v11236_v13  ;;  %v11240_v13 = vld [vmem:[#allocation85_spill] sm:$0xff] }
 0x541   : > { %11235 = vst [vmem:[#allocation79_spill] sm:$0xff] %v8087_v39  ;;  %11237 = vst [vmem:[#allocation59_spill] sm:$0xff] %v8090_v47  ;;  %v8092_v5 = vadd.f32 %v5313_v31, %v5249_v23  ;;  %v8094_v56 = vadd.f32 %v5314_v16, %v5250_v15  ;;  %v2857_v29 = vmin.f32 %v8087_v39, %v8090_v47  ;;  %v2445_v63 = vshll.u32 %v2444_v4, 16  ;;  %v11243_v16 = vld [vmem:[#allocation61_spill] sm:$0xff] }
 0x542   : > { %vm11241_vm1 = vcmp.eq.s32.totalorder %v5950_v53, %v11240_v13  ;;  %vm11242_vm3 = vcmp.eq.s32.totalorder %v5953_v26, %v11240_v13  ;;  %v2413_v31 = vshll.u32 %v2412_v37, 16 }
 0x543   : > { %11238 = vst [vmem:[#allocation60_spill] sm:$0xff] %v8092_v5  ;;  %11239 = vst [vmem:[#allocation123_spill] sm:$0xff] %v8094_v56  ;;  %2858 = vmin.xlane.f32.xlu1 %v2857_v29  ;;  %v5251_v23 = vsel %vm11241_vm1, 1.0, %v11093_v41  ;;  %v5252_v15 = vsel %vm11242_vm3, 1.0, %v11093_v41 }
 0x54c   : > { %v2442_v14 = vpop.xlane.xlu0 %2441 }
 0x54d   : > { %v2443_v62 = vcvt.f32.s32 %v2442_v14  ;;  %v11245_v14 = vld [vmem:[#allocation62_spill] sm:$0xff] }
 0x54f   : > { %v2446_v36 = vadd.s32 %v2445_v63, %v2443_v62 }
 0x550   : > { %v2410_v29 = vpop.xlane.xlu0 %2409 }
 0x551   : > { %vm2509_vm4 = vcmp.eq.s32.totalorder %v5950_v53, %v2446_v36  ;;  %vm2510_vm6 = vcmp.eq.s32.totalorder %v5953_v26, %v2446_v36  ;;  %v2411_v33 = vcvt.f32.s32 %v2410_v29  ;;  %v11249_v36 = vld [vmem:[#allocation87_spill] sm:$0xff] }
 0x552   : > { %v5315_v62 = vsel %vm2509_vm4, 1.0, %v11093_v41  ;;  %v5316_v63 = vsel %vm2510_vm6, 1.0, %v11093_v41  ;;  %v8114_v4 = vsel %vm2509_vm4, inf, %v11243_v16  ;;  %v8117_v5 = vsel %vm2510_vm6, inf, %v11245_v14  ;;  %v11252_v14 = vld [vmem:[#allocation101_spill] sm:$0xff] }
 0x553   : > { %11244 = vst [vmem:[#allocation85_spill] sm:$0xff] %v8114_v4  ;;  %11246 = vst [vmem:[#allocation61_spill] sm:$0xff] %v8117_v5  ;;  %v8119_v13 = vadd.f32 %v5315_v62, %v5251_v23  ;;  %v8121_v37 = vadd.f32 %v5316_v63, %v5252_v15  ;;  %v2414_v58 = vadd.s32 %v2413_v31, %v2411_v33  ;;  %v2380_v35 = vcvt.f32.s32 %v11252_v14  ;;  %v11253_v63 = vld [vmem:[#allocation57_spill] sm:$0xff] }
 0x554   : > { %v2860_v56 = vmin.f32 %v8114_v4, %v8117_v5  ;;  %vm11250_vm11 = vcmp.eq.s32.totalorder %v5950_v53, %v11249_v36  ;;  %vm11251_vm5 = vcmp.eq.s32.totalorder %v5953_v26, %v11249_v36  ;;  %v2394_v23 = vpop.xlane.xlu1 %2393  ;;  %v2397_v62 = vshll.u32 %v2396_v21, 16 }
 0x555   : > { %11247 = vst [vmem:[#allocation62_spill] sm:$0xff] %v8119_v13  ;;  %11248 = vst [vmem:[#allocation124_spill] sm:$0xff] %v8121_v37  ;;  %v5247_v29 = vsel %vm11250_vm11, 1.0, %v11093_v41  ;;  %v5248_v16 = vsel %vm11251_vm5, 1.0, %v11093_v41  ;;  %vm2505_vm7 = vcmp.eq.s32.totalorder %v5950_v53, %v2414_v58  ;;  %vm2506_vm2 = vcmp.eq.s32.totalorder %v5953_v26, %v2414_v58  ;;  %v11255_v37 = vld [vmem:[#allocation58_spill] sm:$0xff] }
 0x556   : > { %v2395_v15 = vcvt.f32.s32 %v2394_v23  ;;  %2861 = vmin.xlane.f32.xlu0 %v2860_v56  ;;  %v5311_v31 = vsel %vm2505_vm7, 1.0, %v11093_v41  ;;  %v5312_v33 = vsel %vm2506_vm2, 1.0, %v11093_v41  ;;  %v8139_v13 = vsel %vm2505_vm7, inf, %v11253_v63  ;;  %v11259_v56 = vld [vmem:[#allocation80_spill] sm:$0xff] }
 0x557   : > { %11254 = vst [vmem:[#allocation87_spill] sm:$0xff] %v8139_v13  ;;  %v8142_v36 = vsel %vm2506_vm2, inf, %v11255_v37  ;;  %v8144_v24 = vadd.f32 %v5311_v31, %v5247_v29  ;;  %v8146_v14 = vadd.f32 %v5312_v33, %v5248_v16  ;;  %vm11260_vm0 = vcmp.eq.s32.totalorder %v5950_v53, %v11259_v56  ;;  %v11262_v29 = vld [vmem:[#allocation103_spill] sm:$0xff] }
 0x558   : > { %11256 = vst [vmem:[#allocation101_spill] sm:$0xff] %v8142_v36  ;;  %v2398_v21 = vadd.s32 %v2397_v62, %v2395_v15  ;;  %v2854_v58 = vmin.f32 %v8139_v13, %v8142_v36  ;;  %v5245_v23 = vsel %vm11260_vm0, 1.0, %v11093_v41  ;;  %vm11261_vm10 = vcmp.eq.s32.totalorder %v5953_v26, %v11259_v56  ;;  %v2378_v2 = vpop.xlane.xlu1 %2377  ;;  %v11263_v33 = vld [vmem:[#allocation55_spill] sm:$0xff] }
 0x559   : > { %11257 = vst [vmem:[#allocation57_spill] sm:$0xff] %v8144_v24  ;;  %11258 = vst [vmem:[#allocation58_spill] sm:$0xff] %v8146_v14  ;;  %v5246_v63 = vsel %vm11261_vm10, 1.0, %v11093_v41  ;;  %v2381_v37 = vshll.u32 %v2380_v35, 16  ;;  %v2364_v31 = vcvt.f32.s32 %v11262_v29  ;;  %v2379_v16 = vcvt.f32.s32 %v2378_v2  ;;  %v11265_v14 = vld [vmem:[#allocation56_spill] sm:$0xff]  ;;  %v11269_v2 = vld [vmem:[#allocation81_spill] sm:$0xff] }
 0x55a   : > { %vm2503_vm9 = vcmp.eq.s32.totalorder %v5950_v53, %v2398_v21  ;;  %vm2504_vm12 = vcmp.eq.s32.totalorder %v5953_v26, %v2398_v21  ;;  %2855 = vmin.xlane.f32.xlu0 %v2854_v58  ;;  %vm11270_vm8 = vcmp.eq.s32.totalorder %v5950_v53, %v11269_v2  ;;  %vm11271_vm13 = vcmp.eq.s32.totalorder %v5953_v26, %v11269_v2 }
 0x55b   : > { %v5309_v62 = vsel %vm2503_vm9, 1.0, %v11093_v41  ;;  %v5310_v15 = vsel %vm2504_vm12, 1.0, %v11093_v41  ;;  %v8164_v24 = vsel %vm2503_vm9, inf, %v11263_v33  ;;  %v8167_v56 = vsel %vm2504_vm12, inf, %v11265_v14  ;;  %v11272_v14 = vld [vmem:[#allocation102_spill] sm:$0xff] }
 0x55c   : > { %11264 = vst [vmem:[#allocation80_spill] sm:$0xff] %v8164_v24  ;;  %11266 = vst [vmem:[#allocation103_spill] sm:$0xff] %v8167_v56  ;;  %v8169_v35 = vadd.f32 %v5309_v62, %v5245_v23  ;;  %v8171_v61 = vadd.f32 %v5310_v15, %v5246_v63  ;;  %v2382_v29 = vadd.s32 %v2381_v37, %v2379_v16  ;;  %v5243_v58 = vsel %vm11270_vm8, 1.0, %v11093_v41  ;;  %v2362_v23 = vpop.xlane.xlu1 %2361  ;;  %v11273_v15 = vld [vmem:[#allocation53_spill] sm:$0xff] }
 0x55d   : > { %v2851_v21 = vmin.f32 %v8164_v24, %v8167_v56  ;;  %v5244_v33 = vsel %vm11271_vm13, 1.0, %v11093_v41  ;;  %v2348_v60 = vcvt.f32.s32 %v11272_v14  ;;  %v2365_v62 = vshll.u32 %v2364_v31, 16 }
 0x55e   : > { %11267 = vst [vmem:[#allocation55_spill] sm:$0xff] %v8169_v35  ;;  %11268 = vst [vmem:[#allocation56_spill] sm:$0xff] %v8171_v61  ;;  %vm2501_vm14 = vcmp.eq.s32.totalorder %v5950_v53, %v2382_v29  ;;  %vm2502_vm15 = vcmp.eq.s32.totalorder %v5953_v26, %v2382_v29  ;;  %v2363_v63 = vcvt.f32.s32 %v2362_v23  ;;  %v11275_v61 = vld [vmem:[#allocation54_spill] sm:$0xff] }
 0x55f   : > { %2852 = vmin.xlane.f32.xlu1 %v2851_v21  ;;  %v5307_v37 = vsel %vm2501_vm14, 1.0, %v11093_v41  ;;  %v5308_v16 = vsel %vm2502_vm15, 1.0, %v11093_v41  ;;  %v8189_v35 = vsel %vm2501_vm14, inf, %v11273_v15  ;;  %v8192_v2 = vsel %vm2502_vm15, inf, %v11275_v61  ;;  %v11279_v21 = vld [vmem:[#allocation82_spill] sm:$0xff] }
 0x560   : > { %11274 = vst [vmem:[#allocation81_spill] sm:$0xff] %v8189_v35  ;;  %11276 = vst [vmem:[#allocation102_spill] sm:$0xff] %v8192_v2  ;;  %v8194_v46 = vadd.f32 %v5307_v37, %v5243_v58  ;;  %v8196_v14 = vadd.f32 %v5308_v16, %v5244_v33  ;;  %v2366_v31 = vadd.s32 %v2365_v62, %v2363_v63  ;;  %v2349_v61 = vshll.u32 %v2348_v60, 16  ;;  %v2346_v40 = vpop.xlane.xlu1 %2345  ;;  %v11282_v58 = vld [vmem:[#allocation104_spill] sm:$0xff]  ;;  %v11283_v16 = vld [vmem:[#allocation51_spill] sm:$0xff] }
 0x561   : > { %v2848_v29 = vmin.f32 %v8189_v35, %v8192_v2  ;;  %vm11280_vm1 = vcmp.eq.s32.totalorder %v5950_v53, %v11279_v21  ;;  %vm11281_vm3 = vcmp.eq.s32.totalorder %v5953_v26, %v11279_v21  ;;  %v2332_v37 = vcvt.f32.s32 %v11282_v58 }
 0x562   : > { %11277 = vst [vmem:[#allocation53_spill] sm:$0xff] %v8194_v46  ;;  %11278 = vst [vmem:[#allocation54_spill] sm:$0xff] %v8196_v14  ;;  %v5241_v23 = vsel %vm11280_vm1, 1.0, %v11093_v41  ;;  %v5242_v15 = vsel %vm11281_vm3, 1.0, %v11093_v41  ;;  %vm2499_vm4 = vcmp.eq.s32.totalorder %v5950_v53, %v2366_v31  ;;  %vm2500_vm6 = vcmp.eq.s32.totalorder %v5953_v26, %v2366_v31  ;;  %v11285_v14 = vld [vmem:[#allocation52_spill] sm:$0xff] }
 0x563   : > { %v2347_v33 = vcvt.f32.s32 %v2346_v40  ;;  %2849 = vmin.xlane.f32.xlu1 %v2848_v29  ;;  %v5305_v62 = vsel %vm2499_vm4, 1.0, %v11093_v41  ;;  %v5306_v63 = vsel %vm2500_vm6, 1.0, %v11093_v41  ;;  %v8214_v46 = vsel %vm2499_vm4, inf, %v11283_v16  ;;  %v11289_v40 = vld [vmem:[#allocation83_spill] sm:$0xff] }
 0x564   : > { %11284 = vst [vmem:[#allocation82_spill] sm:$0xff] %v8214_v46  ;;  %v8217_v21 = vsel %vm2500_vm6, inf, %v11285_v14  ;;  %v8219_v60 = vadd.f32 %v5305_v62, %v5241_v23  ;;  %v8221_v32 = vadd.f32 %v5306_v63, %v5242_v15  ;;  %vm11290_vm11 = vcmp.eq.s32.totalorder %v5950_v53, %v11289_v40  ;;  %v11292_v14 = vld [vmem:[#allocation105_spill] sm:$0xff]  ;;  %v2330_v23 = vpop.xlane.xlu1 %2329 }
 0x565   : > { %11286 = vst [vmem:[#allocation104_spill] sm:$0xff] %v8217_v21  ;;  %v2350_v58 = vadd.s32 %v2349_v61, %v2347_v33  ;;  %v2845_v31 = vmin.f32 %v8214_v46, %v8217_v21  ;;  %v5239_v29 = vsel %vm11290_vm11, 1.0, %v11093_v41  ;;  %vm11291_vm5 = vcmp.eq.s32.totalorder %v5953_v26, %v11289_v40  ;;  %v11293_v63 = vld [vmem:[#allocation49_spill] sm:$0xff] }
 0x566   : > { %11287 = vst [vmem:[#allocation51_spill] sm:$0xff] %v8219_v60  ;;  %11288 = vst [vmem:[#allocation52_spill] sm:$0xff] %v8221_v32  ;;  %v5240_v16 = vsel %vm11291_vm5, 1.0, %v11093_v41  ;;  %v2316_v2 = vcvt.f32.s32 %v11292_v14  ;;  %v2333_v62 = vshll.u32 %v2332_v37, 16  ;;  %v2331_v15 = vcvt.f32.s32 %v2330_v23  ;;  %v11295_v32 = vld [vmem:[#allocation50_spill] sm:$0xff] }
 0x567   : > { %vm2497_vm7 = vcmp.eq.s32.totalorder %v5950_v53, %v2350_v58  ;;  %vm2498_vm2 = vcmp.eq.s32.totalorder %v5953_v26, %v2350_v58  ;;  %2846 = vmin.xlane.f32.xlu1 %v2845_v31  ;;  %v11299_v31 = vld [vmem:[#allocation84_spill] sm:$0xff] }
 0x568   : > { %v5303_v61 = vsel %vm2497_vm7, 1.0, %v11093_v41  ;;  %v5304_v33 = vsel %vm2498_vm2, 1.0, %v11093_v41  ;;  %v8239_v60 = vsel %vm2497_vm7, inf, %v11293_v63  ;;  %v8242_v40 = vsel %vm2498_vm2, inf, %v11295_v32  ;;  %v2314_v46 = vpop.xlane.xlu1 %2313 }
 0x569   : > { %11294 = vst [vmem:[#allocation83_spill] sm:$0xff] %v8239_v60  ;;  %11296 = vst [vmem:[#allocation105_spill] sm:$0xff] %v8242_v40  ;;  %v8244_v21 = vadd.f32 %v5303_v61, %v5239_v29  ;;  %v8246_v14 = vadd.f32 %v5304_v33, %v5240_v16  ;;  %v2334_v37 = vadd.s32 %v2333_v62, %v2331_v15  ;;  %v2317_v32 = vshll.u32 %v2316_v2, 16  ;;  %v11302_v29 = vld [vmem:[#allocation106_spill] sm:$0xff]  ;;  %v11303_v33 = vld [vmem:[#allocation47_spill] sm:$0xff] }
 0x56a   : > { %v2842_v58 = vmin.f32 %v8239_v60, %v8242_v40  ;;  %vm11300_vm0 = vcmp.eq.s32.totalorder %v5950_v53, %v11299_v31  ;;  %vm11301_vm10 = vcmp.eq.s32.totalorder %v5953_v26, %v11299_v31  ;;  %v2300_v61 = vcvt.f32.s32 %v11302_v29 }
 0x56b   : > { %11297 = vst [vmem:[#allocation49_spill] sm:$0xff] %v8244_v21  ;;  %11298 = vst [vmem:[#allocation50_spill] sm:$0xff] %v8246_v14  ;;  %v5237_v23 = vsel %vm11300_vm0, 1.0, %v11093_v41  ;;  %v5238_v63 = vsel %vm11301_vm10, 1.0, %v11093_v41  ;;  %vm2495_vm9 = vcmp.eq.s32.totalorder %v5950_v53, %v2334_v37  ;;  %vm2496_vm12 = vcmp.eq.s32.totalorder %v5953_v26, %v2334_v37  ;;  %v11305_v14 = vld [vmem:[#allocation48_spill] sm:$0xff] }
 0x56c   : > { %v2315_v16 = vcvt.f32.s32 %v2314_v46  ;;  %2843 = vmin.xlane.f32.xlu1 %v2842_v58  ;;  %v5301_v62 = vsel %vm2495_vm9, 1.0, %v11093_v41  ;;  %v5302_v15 = vsel %vm2496_vm12, 1.0, %v11093_v41  ;;  %v8264_v21 = vsel %vm2495_vm9, inf, %v11303_v33  ;;  %v11309_v46 = vld [vmem:[#allocation86_spill] sm:$0xff] }
 0x56d   : > { %11304 = vst [vmem:[#allocation84_spill] sm:$0xff] %v8264_v21  ;;  %v8267_v31 = vsel %vm2496_vm12, inf, %v11305_v14  ;;  %v8269_v2 = vadd.f32 %v5301_v62, %v5237_v23  ;;  %v8271_v40 = vadd.f32 %v5302_v15, %v5238_v63  ;;  %vm11310_vm8 = vcmp.eq.s32.totalorder %v5950_v53, %v11309_v46  ;;  %v2298_v14 = vpop.xlane.xlu1 %2297  ;;  %v11314_v15 = vld [vmem:[#allocation46_spill] sm:$0xff] }
 0x56e   : > { %11306 = vst [vmem:[#allocation106_spill] sm:$0xff] %v8267_v31  ;;  %v2318_v29 = vadd.s32 %v2317_v32, %v2315_v16  ;;  %v2839_v37 = vmin.f32 %v8264_v21, %v8267_v31  ;;  %v5235_v58 = vsel %vm11310_vm8, 1.0, %v11093_v41  ;;  %vm11311_vm13 = vcmp.eq.s32.totalorder %v5953_v26, %v11309_v46  ;;  %v11312_v16 = vld [vmem:[#allocation45_spill] sm:$0xff] }
 0x56f   : > { %11307 = vst [vmem:[#allocation47_spill] sm:$0xff] %v8269_v2  ;;  %11308 = vst [vmem:[#allocation48_spill] sm:$0xff] %v8271_v40  ;;  %v5236_v33 = vsel %vm11311_vm13, 1.0, %v11093_v41  ;;  %v2301_v60 = vshll.u32 %v2300_v61, 16  ;;  %v2299_v23 = vcvt.f32.s32 %v2298_v14 }
 0x570   : > { %vm2493_vm14 = vcmp.eq.s32.totalorder %v5950_v53, %v2318_v29  ;;  %vm2494_vm15 = vcmp.eq.s32.totalorder %v5953_v26, %v2318_v29  ;;  %2840 = vmin.xlane.f32.xlu1 %v2839_v37  ;;  %v11318_v37 = vld [vmem:[#allocation88_spill] sm:$0xff] }
 0x571   : > { %v5299_v63 = vsel %vm2493_vm14, 1.0, %v11093_v41  ;;  %v5300_v32 = vsel %vm2494_vm15, 1.0, %v11093_v41  ;;  %v8288_v62 = vsel %vm2493_vm14, inf, %v11312_v16  ;;  %v8291_v2 = vsel %vm2494_vm15, inf, %v11314_v15 }
 0x572   : > { %11313 = vst [vmem:[#allocation86_spill] sm:$0xff] %v8288_v62  ;;  %11315 = vst [vmem:[#allocation45_spill] sm:$0xff] %v8291_v2  ;;  %v8293_v46 = vadd.f32 %v5299_v63, %v5235_v58  ;;  %v8295_v40 = vadd.f32 %v5300_v32, %v5236_v33  ;;  %v2302_v61 = vadd.s32 %v2301_v60, %v2299_v23  ;;  %v11321_v33 = vld [vmem:[#allocation43_spill] sm:$0xff]  ;;  %v11323_v63 = vld [vmem:[#allocation44_spill] sm:$0xff] }
 0x573   : > { %v2836_v29 = vmin.f32 %v8288_v62, %v8291_v2  ;;  %vm11319_vm1 = vcmp.eq.s32.totalorder %v5950_v53, %v11318_v37  ;;  %vm11320_vm3 = vcmp.eq.s32.totalorder %v5953_v26, %v11318_v37 }
 0x574   : > { %11316 = vst [vmem:[#allocation46_spill] sm:$0xff] %v8293_v46  ;;  %11317 = vst [vmem:[#allocation125_spill] sm:$0xff] %v8295_v40  ;;  %v5233_v14 = vsel %vm11319_vm1, 1.0, %v11093_v41  ;;  %v5234_v16 = vsel %vm11320_vm3, 1.0, %v11093_v41  ;;  %vm2491_vm4 = vcmp.eq.s32.totalorder %v5950_v53, %v2302_v61  ;;  %vm2492_vm6 = vcmp.eq.s32.totalorder %v5953_v26, %v2302_v61  ;;  %v11328_v40 = vld [vmem:[#allocation108_spill] sm:$0xff] }
 0x575   : > { %2837 = vmin.xlane.f32.xlu1 %v2836_v29  ;;  %v5297_v60 = vsel %vm2491_vm4, 1.0, %v11093_v41  ;;  %v5298_v58 = vsel %vm2492_vm6, 1.0, %v11093_v41  ;;  %v8312_v23 = vsel %vm2491_vm4, inf, %v11321_v33  ;;  %v8315_v32 = vsel %vm2492_vm6, inf, %v11323_v63  ;;  %v11327_v29 = vld [vmem:[#allocation107_spill] sm:$0xff] }
 0x576   : > { %11322 = vst [vmem:[#allocation88_spill] sm:$0xff] %v8312_v23  ;;  %11324 = vst [vmem:[#allocation43_spill] sm:$0xff] %v8315_v32  ;;  %v8317_v15 = vadd.f32 %v5297_v60, %v5233_v14  ;;  %v8319_v46 = vadd.f32 %v5298_v58, %v5234_v16  ;;  %v2833_v37 = vmin.f32 %v8312_v23, %v8315_v32  ;;  %v11329_v14 = vld [vmem:[#allocation64_spill] sm:$0xff] }
 0x577   : > { %v11330_v16 = vld [vmem:[#allocation68_spill] sm:$0xff] }
 0x578   : > { %11325 = vst [vmem:[#allocation44_spill] sm:$0xff] %v8317_v15  ;;  %11326 = vst [vmem:[#allocation126_spill] sm:$0xff] %v8319_v46  ;;  %v2284_v15 = vcvt.f32.s32 %v7725_v3 }
 0x579   : > { %2834 = vmin.xlane.f32.xlu1 %v2833_v37 }
 0x585   : > { %v2814_v61 = vpop.xlane.xlu0 %2813 }
 0x586   : > { %vm2893_vm11 = vcmp.eq.f32.partialorder %v11327_v29, %v2814_v61  ;;  %vm2894_vm5 = vcmp.eq.f32.partialorder %v11328_v40, %v2814_v61 }
 0x587   : > { %v2957_v2 = vsel %vm2893_vm11, %v5950_v53, 256  ;;  %v2958_v33 = vsel %vm2894_vm5, %v5953_v26, 256 }
 0x588   : > { %vm3231_vm7 = vcmp.lt.s32.totalorder %v2957_v2, %v2958_v33 }
 0x589   : > { %v8327_v62 = vsel %vm3231_vm7, %v2957_v2, %v2958_v33 }
 0x58a   : > { %v2811_v63 = vpop.xlane.xlu0 %2810  ;;  %v3234_v60 = vshra.s32 %v8327_v62, 16 }
 0x58b   : > { %vm2891_vm2 = vcmp.eq.f32.partialorder %v11329_v14, %v2811_v63  ;;  %vm2892_vm0 = vcmp.eq.f32.partialorder %v11330_v16, %v2811_v63  ;;  %v2285_v16 = vshll.u32 %v2284_v15, 16 }
 0x58c   : > { %v2955_v58 = vsel %vm2891_vm2, %v5950_v53, 256  ;;  %v2956_v37 = vsel %vm2892_vm0, %v5953_v26, 256  ;;  %v8334_v61 = vcvt.s32.f32 %v3234_v60 }
 0x58d   : > { %vm3215_vm10 = vcmp.lt.s32.totalorder %v2955_v58, %v2956_v37 }
 0x58e   : > { %11331 = vst [vmem:[#allocation127_spill] sm:$0xff] %v8334_v61  ;;  %v8337_v46 = vsel %vm3215_vm10, %v2955_v58, %v2956_v37  ;;  %3237 = vmin.xlane.f32.xlu0 %v8334_v61  ;;  %v11334_v37 = vld [vmem:[#allocation89_spill] sm:$0xff] }
 0x58f   : > { %11332 = vst [vmem:[#allocation128_spill] sm:$0xff] %v8337_v46  ;;  %v3218_v2 = vshra.s32 %v8337_v46, 16  ;;  %vm11335_vm13 = vcmp.eq.s32.totalorder %v5950_v53, %v11334_v37  ;;  %vm11336_vm14 = vcmp.eq.s32.totalorder %v5953_v26, %v11334_v37 }
 0x590   : > { %v5232_v15 = vsel %vm11336_vm14, 1.0, %v11093_v41 }
 0x591   : > { %v8341_v63 = vcvt.s32.f32 %v3218_v2  ;;  %v5231_v2 = vsel %vm11335_vm13, 1.0, %v11093_v41 }
 0x593   : > { %v2808_v33 = vpop.xlane.xlu0 %2807  ;;  %v2282_v14 = vpop.xlane.xlu1 %2281  ;;  %11333 = vst [vmem:[#allocation129_spill] sm:$0xff] %v8341_v63  ;;  %3221 = vmin.xlane.f32.xlu0 %v8341_v63  ;;  %v11339_v63 = vld [vmem:[#allocation90_spill] sm:$0xff] }
 0x594   : > { %vm2889_vm9 = vcmp.eq.f32.partialorder %v7730_v12, %v2808_v33  ;;  %vm2890_vm12 = vcmp.eq.f32.partialorder %v7738_v59, %v2808_v33  ;;  %v2283_v40 = vcvt.f32.s32 %v2282_v14  ;;  %v2268_v14 = vcvt.f32.s32 %v7778_v11 }
 0x595   : > { %v2953_v60 = vsel %vm2889_vm9, %v5950_v53, 256  ;;  %v2954_v3 = vsel %vm2890_vm12, %v5953_v26, 256 }
 0x596   : > { %vm3199_vm8 = vcmp.lt.s32.totalorder %v2953_v60, %v2954_v3  ;;  %v2286_v58 = vadd.s32 %v2285_v16, %v2283_v40 }
 0x597   : > { %v2805_v33 = vpop.xlane.xlu0 %2804  ;;  %v8357_v59 = vsel %vm3199_vm8, %v2953_v60, %v2954_v3 }
 0x598   : > { %vm2489_vm15 = vcmp.eq.s32.totalorder %v5950_v53, %v2286_v58  ;;  %vm2490_vm1 = vcmp.eq.s32.totalorder %v5953_v26, %v2286_v58  ;;  %vm2887_vm3 = vcmp.eq.f32.partialorder %v7751_v43, %v2805_v33  ;;  %vm2888_vm4 = vcmp.eq.f32.partialorder %v7754_v7, %v2805_v33  ;;  %v11340_v7 = vld [vmem:[#allocation91_spill] sm:$0xff] }
 0x599   : > { %v5295_v40 = vsel %vm2489_vm15, 1.0, %v11093_v41  ;;  %v5296_v16 = vsel %vm2490_vm1, 1.0, %v11093_v41  ;;  %v2951_v37 = vsel %vm2887_vm3, %v5950_v53, 256  ;;  %v2952_v12 = vsel %vm2888_vm4, %v5953_v26, 256 }
 0x59a   : > { %v8367_v11 = vadd.f32 %v5295_v40, %v5231_v2  ;;  %v8369_v60 = vadd.f32 %v5296_v16, %v5232_v15  ;;  %vm3183_vm6 = vcmp.lt.s32.totalorder %v2951_v37, %v2952_v12  ;;  %v3202_v3 = vshra.s32 %v8357_v59, 16 }
 0x59b   : > { %v2269_v58 = vshll.u32 %v2268_v14, 16  ;;  %v2802_v29 = vpop.xlane.xlu0 %2801  ;;  %v2266_v43 = vpop.xlane.xlu1 %2265  ;;  %v8373_v33 = vsel %vm2489_vm15, inf, %v11339_v63  ;;  %v8376_v61 = vsel %vm2490_vm1, inf, %v11340_v7  ;;  %v8378_v46 = vsel %vm3183_vm6, %v2951_v37, %v2952_v12  ;;  %v11341_v12 = vld [vmem:[#allocation92_spill] sm:$0xff] }
 0x59c   : > { %11337 = vst [vmem:[#allocation89_spill] sm:$0xff] %v8367_v11  ;;  %11338 = vst [vmem:[#allocation130_spill] sm:$0xff] %v8369_v60  ;;  %vm2885_vm11 = vcmp.eq.f32.partialorder %v7783_v18, %v2802_v29  ;;  %vm2886_vm5 = vcmp.eq.f32.partialorder %v7793_v28, %v2802_v29  ;;  %v2267_v2 = vcvt.f32.s32 %v2266_v43  ;;  %v8382_v15 = vcvt.s32.f32 %v3202_v3  ;;  %v11347_v18 = vld [vmem:[#allocation94_spill] sm:$0xff] }
 0x59d   : > { %v2949_v40 = vsel %vm2885_vm11, %v5950_v53, 256  ;;  %v2950_v14 = vsel %vm2886_vm5, %v5953_v26, 256  ;;  %v2830_v63 = vmin.f32 %v8373_v33, %v8376_v61  ;;  %v3186_v16 = vshra.s32 %v8378_v46, 16 }
 0x59e   : > { %vm11342_vm7 = vcmp.eq.s32.totalorder %v5950_v53, %v11341_v12  ;;  %vm3167_vm2 = vcmp.lt.s32.totalorder %v2949_v40, %v2950_v14  ;;  %v2270_v37 = vadd.s32 %v2269_v58, %v2267_v2  ;;  %3205 = vmin.xlane.f32.xlu0 %v8382_v15  ;;  %vm11343_vm0 = vcmp.eq.s32.totalorder %v5953_v26, %v11341_v12 }
 0x59f   : > { %v5229_v7 = vsel %vm11342_vm7, 1.0, %v11093_v41  ;;  %v5230_v43 = vsel %vm11343_vm0, 1.0, %v11093_v41  ;;  %v2252_v29 = vcvt.f32.s32 %v7833_v55  ;;  %2831 = vmin.xlane.f32.xlu1 %v2830_v63  ;;  %v2799_v3 = vpop.xlane.xlu0 %2798  ;;  %v8399_v11 = vcvt.s32.f32 %v3186_v16 }
 0x5a0   : > { %v8401_v60 = vsel %vm3167_vm2, %v2949_v40, %v2950_v14  ;;  %vm2487_vm10 = vcmp.eq.s32.totalorder %v5950_v53, %v2270_v37  ;;  %vm2488_vm9 = vcmp.eq.s32.totalorder %v5953_v26, %v2270_v37  ;;  %vm2883_vm12 = vcmp.eq.f32.partialorder %v7806_v30, %v2799_v3  ;;  %v11346_v30 = vld [vmem:[#allocation93_spill] sm:$0xff] }
 0x5a1   : > { %vm2884_vm8 = vcmp.eq.f32.partialorder %v7809_v8, %v2799_v3  ;;  %v5293_v58 = vsel %vm2487_vm10, 1.0, %v11093_v41  ;;  %v5294_v55 = vsel %vm2488_vm9, 1.0, %v11093_v41  ;;  %v2947_v2 = vsel %vm2883_vm12, %v5950_v53, 256 }
 0x5a2   : > { %v2948_v40 = vsel %vm2884_vm8, %v5953_v26, 256  ;;  %v8415_v14 = vadd.f32 %v5293_v58, %v5229_v7  ;;  %v8417_v63 = vadd.f32 %v5294_v55, %v5230_v43  ;;  %3189 = vmin.xlane.f32.xlu0 %v8399_v11  ;;  %v3170_v16 = vshra.s32 %v8401_v60, 16 }
 0x5a3   : > { %vm3151_vm13 = vcmp.lt.s32.totalorder %v2947_v2, %v2948_v40  ;;  %v2253_v12 = vshll.u32 %v2252_v29, 16  ;;  %v8424_v28 = vsel %vm2487_vm10, inf, %v11346_v30  ;;  %v8429_v7 = vsel %vm2488_vm9, inf, %v11347_v18  ;;  %v11349_v18 = vld [vmem:[#allocation95_spill] sm:$0xff] }
 0x5a4   : > { %11344 = vst [vmem:[#allocation90_spill] sm:$0xff] %v8415_v14  ;;  %11345 = vst [vmem:[#allocation91_spill] sm:$0xff] %v8417_v63  ;;  %v2796_v3 = vpop.xlane.xlu0 %2795  ;;  %v2250_v8 = vpop.xlane.xlu1 %2249  ;;  %v8431_v43 = vsel %vm3151_vm13, %v2947_v2, %v2948_v40  ;;  %v8435_v29 = vcvt.s32.f32 %v3170_v16  ;;  %v2827_v30 = vmin.f32 %v8424_v28, %v8429_v7  ;;  %vm11350_vm1 = vcmp.eq.s32.totalorder %v5950_v53, %v11349_v18 }
 0x5a5   : > { %11348 = vst [vmem:[#allocation92_spill] sm:$0xff] %v8429_v7  ;;  %vm2881_vm14 = vcmp.eq.f32.partialorder %v7838_v38, %v2796_v3  ;;  %vm2882_vm15 = vcmp.eq.f32.partialorder %v7848_v27, %v2796_v3  ;;  %v2251_v58 = vcvt.f32.s32 %v2250_v8  ;;  %v3154_v37 = vshra.s32 %v8431_v43, 16  ;;  %v11356_v7 = vld [vmem:[#allocation97_spill] sm:$0xff] }
 0x5a6   : > { %v2945_v55 = vsel %vm2881_vm14, %v5950_v53, 256  ;;  %v2946_v14 = vsel %vm2882_vm15, %v5953_v26, 256  ;;  %v5227_v2 = vsel %vm11350_vm1, 1.0, %v11093_v41  ;;  %3173 = vmin.xlane.f32.xlu0 %v8435_v29  ;;  %vm11351_vm4 = vcmp.eq.s32.totalorder %v5953_v26, %v11349_v18  ;;  %2828 = vmin.xlane.f32.xlu1 %v2827_v30 }
 0x5a7   : > { %vm3135_vm3 = vcmp.lt.s32.totalorder %v2945_v55, %v2946_v14  ;;  %v2254_v40 = vadd.s32 %v2253_v12, %v2251_v58  ;;  %v5228_v8 = vsel %vm11351_vm4, 1.0, %v11093_v41  ;;  %v2236_v16 = vcvt.f32.s32 %v7888_v25 }
 0x5a8   : > { %v2793_v3 = vpop.xlane.xlu0 %2792  ;;  %v8452_v63 = vcvt.s32.f32 %v3154_v37  ;;  %v8454_v27 = vsel %vm3135_vm3, %v2945_v55, %v2946_v14 }
 0x5a9   : > { %vm2485_vm6 = vcmp.eq.s32.totalorder %v5950_v53, %v2254_v40  ;;  %vm2486_vm11 = vcmp.eq.s32.totalorder %v5953_v26, %v2254_v40  ;;  %vm2879_vm5 = vcmp.eq.f32.partialorder %v7861_v50, %v2793_v3  ;;  %vm2880_vm7 = vcmp.eq.f32.partialorder %v7864_v1, %v2793_v3  ;;  %v11354_v50 = vld [vmem:[#allocation96_spill] sm:$0xff] }
 0x5aa   : > { %v5291_v12 = vsel %vm2485_vm6, 1.0, %v11093_v41  ;;  %v5292_v25 = vsel %vm2486_vm11, 1.0, %v11093_v41  ;;  %v2943_v58 = vsel %vm2879_vm5, %v5950_v53, 256  ;;  %v2944_v14 = vsel %vm2880_vm7, %v5953_v26, 256  ;;  %3157 = vmin.xlane.f32.xlu0 %v8452_v63 }
 0x5ab   : > { %v8468_v55 = vadd.f32 %v5291_v12, %v5227_v2  ;;  %v8470_v30 = vadd.f32 %v5292_v25, %v5228_v8  ;;  %vm3119_vm2 = vcmp.lt.s32.totalorder %v2943_v58, %v2944_v14  ;;  %v3138_v37 = vshra.s32 %v8454_v27, 16 }
 0x5ac   : > { %v2237_v18 = vshll.u32 %v2236_v16, 16  ;;  %v2790_v3 = vpop.xlane.xlu0 %2789  ;;  %v2234_v1 = vpop.xlane.xlu1 %2233  ;;  %v8477_v38 = vsel %vm2485_vm6, inf, %v11354_v50  ;;  %v8482_v2 = vsel %vm2486_vm11, inf, %v11356_v7  ;;  %v8484_v8 = vsel %vm3119_vm2, %v2943_v58, %v2944_v14  ;;  %v11358_v7 = vld [vmem:[#allocation98_spill] sm:$0xff] }
 0x5ad   : > { %11352 = vst [vmem:[#allocation93_spill] sm:$0xff] %v8468_v55  ;;  %11353 = vst [vmem:[#allocation94_spill] sm:$0xff] %v8470_v30  ;;  %vm2877_vm0 = vcmp.eq.f32.partialorder %v7893_v19, %v2790_v3  ;;  %vm2878_vm10 = vcmp.eq.f32.partialorder %v7903_v17, %v2790_v3  ;;  %v2235_v12 = vcvt.f32.s32 %v2234_v1  ;;  %v8488_v16 = vcvt.s32.f32 %v3138_v37 }
 0x5ae   : > { %11355 = vst [vmem:[#allocation95_spill] sm:$0xff] %v8477_v38  ;;  %11357 = vst [vmem:[#allocation96_spill] sm:$0xff] %v8482_v2  ;;  %v2941_v25 = vsel %vm2877_vm0, %v5950_v53, 256  ;;  %v2942_v55 = vsel %vm2878_vm10, %v5953_v26, 256  ;;  %v2824_v50 = vmin.f32 %v8477_v38, %v8482_v2  ;;  %v3122_v40 = vshra.s32 %v8484_v8, 16  ;;  %v11365_v2 = vld [vmem:[#allocation42_spill] sm:$0xff] }
 0x5af   : > { %vm11359_vm9 = vcmp.eq.s32.totalorder %v5950_v53, %v11358_v7  ;;  %vm3103_vm12 = vcmp.lt.s32.totalorder %v2941_v25, %v2942_v55  ;;  %v2238_v14 = vadd.s32 %v2237_v18, %v2235_v12  ;;  %3141 = vmin.xlane.f32.xlu0 %v8488_v16  ;;  %vm11360_vm8 = vcmp.eq.s32.totalorder %v5953_v26, %v11358_v7 }
 0x5b0   : > { %v5225_v58 = vsel %vm11359_vm9, 1.0, %v11093_v41  ;;  %v5226_v1 = vsel %vm11360_vm8, 1.0, %v11093_v41  ;;  %v2220_v37 = vcvt.f32.s32 %v7941_v51  ;;  %2825 = vmin.xlane.f32.xlu1 %v2824_v50  ;;  %v2787_v3 = vpop.xlane.xlu0 %2786  ;;  %v8505_v30 = vcvt.s32.f32 %v3122_v40 }
 0x5b1   : > { %v8507_v17 = vsel %vm3103_vm12, %v2941_v25, %v2942_v55  ;;  %vm2483_vm13 = vcmp.eq.s32.totalorder %v5950_v53, %v2238_v14  ;;  %vm2484_vm14 = vcmp.eq.s32.totalorder %v5953_v26, %v2238_v14  ;;  %vm2875_vm15 = vcmp.eq.f32.partialorder %v7916_v9, %v2787_v3  ;;  %v11363_v9 = vld [vmem:[#allocation41_spill] sm:$0xff] }
 0x5b2   : > { %vm2876_vm1 = vcmp.eq.f32.partialorder %v7919_v54, %v2787_v3  ;;  %v5289_v18 = vsel %vm2483_vm13, 1.0, %v11093_v41  ;;  %v5290_v51 = vsel %vm2484_vm14, 1.0, %v11093_v41  ;;  %v2939_v12 = vsel %vm2875_vm15, %v5950_v53, 256 }
 0x5b3   : > { %v2940_v55 = vsel %vm2876_vm1, %v5953_v26, 256  ;;  %v8521_v25 = vadd.f32 %v5289_v18, %v5225_v58  ;;  %v8523_v50 = vadd.f32 %v5290_v51, %v5226_v1  ;;  %3125 = vmin.xlane.f32.xlu0 %v8505_v30  ;;  %v3106_v40 = vshra.s32 %v8507_v17, 16 }
 0x5b4   : > { %vm3087_vm3 = vcmp.lt.s32.totalorder %v2939_v12, %v2940_v55  ;;  %v2221_v7 = vshll.u32 %v2220_v37, 16  ;;  %v2784_v3 = vpop.xlane.xlu0 %2783  ;;  %v8530_v19 = vsel %vm2483_vm13, inf, %v11363_v9  ;;  %v8535_v58 = vsel %vm2484_vm14, inf, %v11365_v2  ;;  %v11367_v2 = vld [vmem:[#allocation99_spill] sm:$0xff] }
 0x5b5   : > { %11361 = vst [vmem:[#allocation97_spill] sm:$0xff] %v8521_v25  ;;  %11362 = vst [vmem:[#allocation98_spill] sm:$0xff] %v8523_v50  ;;  %v2218_v54 = vpop.xlane.xlu1 %2217  ;;  %v8537_v1 = vsel %vm3087_vm3, %v2939_v12, %v2940_v55  ;;  %vm2873_vm4 = vcmp.eq.f32.partialorder %v7947_v45, %v2784_v3  ;;  %vm2874_vm6 = vcmp.eq.f32.partialorder %v7956_v42, %v2784_v3  ;;  %v8541_v37 = vcvt.s32.f32 %v3106_v40 }
 0x5b6   : > { %11364 = vst [vmem:[#allocation41_spill] sm:$0xff] %v8530_v19  ;;  %11366 = vst [vmem:[#allocation42_spill] sm:$0xff] %v8535_v58  ;;  %v2219_v18 = vcvt.f32.s32 %v2218_v54  ;;  %v2937_v51 = vsel %vm2873_vm4, %v5950_v53, 256  ;;  %v2938_v25 = vsel %vm2874_vm6, %v5953_v26, 256  ;;  %v2821_v9 = vmin.f32 %v8530_v19, %v8535_v58  ;;  %v11374_v58 = vld [vmem:[#allocation40_spill] sm:$0xff] }
 0x5b7   : > { %v3090_v14 = vshra.s32 %v8537_v1, 16  ;;  %vm11368_vm11 = vcmp.eq.s32.totalorder %v5950_v53, %v11367_v2  ;;  %vm3071_vm5 = vcmp.lt.s32.totalorder %v2937_v51, %v2938_v25  ;;  %3109 = vmin.xlane.f32.xlu0 %v8541_v37  ;;  %vm11369_vm7 = vcmp.eq.s32.totalorder %v5953_v26, %v11367_v2 }
 0x5b8   : > { %v5223_v12 = vsel %vm11368_vm11, 1.0, %v11093_v41  ;;  %v2222_v55 = vadd.s32 %v2221_v7, %v2219_v18  ;;  %v5224_v54 = vsel %vm11369_vm7, 1.0, %v11093_v41  ;;  %v2204_v40 = vcvt.f32.s32 %v7993_v22  ;;  %2822 = vmin.xlane.f32.xlu1 %v2821_v9 }
 0x5b9   : > { %v2781_v3 = vpop.xlane.xlu0 %2780  ;;  %v8558_v50 = vcvt.s32.f32 %v3090_v14  ;;  %v8560_v42 = vsel %vm3071_vm5, %v2937_v51, %v2938_v25 }
 0x5ba   : > { %vm2481_vm2 = vcmp.eq.s32.totalorder %v5950_v53, %v2222_v55  ;;  %vm2482_vm0 = vcmp.eq.s32.totalorder %v5953_v26, %v2222_v55  ;;  %vm2871_vm10 = vcmp.eq.f32.partialorder %v7969_v6, %v2781_v3  ;;  %vm2872_vm9 = vcmp.eq.f32.partialorder %v7972_v34, %v2781_v3  ;;  %v11372_v6 = vld [vmem:[#allocation39_spill] sm:$0xff] }
 0x5bb   : > { %v5287_v7 = vsel %vm2481_vm2, 1.0, %v11093_v41  ;;  %v5288_v22 = vsel %vm2482_vm0, 1.0, %v11093_v41  ;;  %v2935_v18 = vsel %vm2871_vm10, %v5950_v53, 256  ;;  %v2936_v25 = vsel %vm2872_vm9, %v5953_v26, 256  ;;  %3093 = vmin.xlane.f32.xlu0 %v8558_v50 }
 0x5bc   : > { %v8574_v51 = vadd.f32 %v5287_v7, %v5223_v12  ;;  %v8576_v9 = vadd.f32 %v5288_v22, %v5224_v54  ;;  %vm3055_vm12 = vcmp.lt.s32.totalorder %v2935_v18, %v2936_v25  ;;  %v3074_v14 = vshra.s32 %v8560_v42, 16 }
 0x5bd   : > { %v2205_v2 = vshll.u32 %v2204_v40, 16  ;;  %v2778_v3 = vpop.xlane.xlu0 %2777  ;;  %v2202_v34 = vpop.xlane.xlu1 %2201  ;;  %v8583_v45 = vsel %vm2481_vm2, inf, %v11372_v6  ;;  %v8588_v12 = vsel %vm2482_vm0, inf, %v11374_v58  ;;  %v8590_v54 = vsel %vm3055_vm12, %v2935_v18, %v2936_v25  ;;  %v11376_v18 = vld [vmem:[#allocation100_spill] sm:$0xff] }
 0x5be   : > { %11370 = vst [vmem:[#allocation99_spill] sm:$0xff] %v8574_v51  ;;  %11371 = vst [vmem:[#allocation131_spill] sm:$0xff] %v8576_v9  ;;  %vm2869_vm8 = vcmp.eq.f32.partialorder %v7998_v0, %v2778_v3  ;;  %vm2870_vm13 = vcmp.eq.f32.partialorder %v8006_v49, %v2778_v3  ;;  %v2203_v7 = vcvt.f32.s32 %v2202_v34  ;;  %v8594_v40 = vcvt.s32.f32 %v3074_v14 }
 0x5bf   : > { %11373 = vst [vmem:[#allocation39_spill] sm:$0xff] %v8583_v45  ;;  %11375 = vst [vmem:[#allocation40_spill] sm:$0xff] %v8588_v12  ;;  %v2933_v22 = vsel %vm2869_vm8, %v5950_v53, 256  ;;  %v2934_v51 = vsel %vm2870_vm13, %v5953_v26, 256  ;;  %v2818_v6 = vmin.f32 %v8583_v45, %v8588_v12  ;;  %v3058_v55 = vshra.s32 %v8590_v54, 16 }
 0x5c0   : > { %vm3039_vm14 = vcmp.lt.s32.totalorder %v2933_v22, %v2934_v51  ;;  %v2206_v58 = vadd.s32 %v2205_v2, %v2203_v7  ;;  %3077 = vmin.xlane.f32.xlu0 %v8594_v40  ;;  %vm11377_vm15 = vcmp.eq.s32.totalorder %v5950_v53, %v11376_v18  ;;  %vm11378_vm1 = vcmp.eq.s32.totalorder %v5953_v26, %v11376_v18 }
 0x5c1   : > { %v5221_v34 = vsel %vm11377_vm15, 1.0, %v11093_v41  ;;  %v5222_v25 = vsel %vm11378_vm1, 1.0, %v11093_v41  ;;  %2819 = vmin.xlane.f32.xlu1 %v2818_v6  ;;  %v2775_v14 = vpop.xlane.xlu1 %2774  ;;  %v8610_v3 = vcvt.s32.f32 %v3058_v55  ;;  %v8612_v9 = vsel %vm3039_vm14, %v2933_v22, %v2934_v51 }
 0x5c2   : > { %vm2479_vm3 = vcmp.eq.s32.totalorder %v5950_v53, %v2206_v58  ;;  %vm2480_vm4 = vcmp.eq.s32.totalorder %v5953_v26, %v2206_v58  ;;  %vm2867_vm6 = vcmp.eq.f32.partialorder %v8018_v52, %v2775_v14  ;;  %vm2868_vm11 = vcmp.eq.f32.partialorder %v8026_v10, %v2775_v14  ;;  %v11381_v58 = vld [vmem:[#allocation37_spill] sm:$0xff]  ;;  %v11383_v14 = vld [vmem:[#allocation38_spill] sm:$0xff] }
 0x5c3   : > { %v5285_v2 = vsel %vm2479_vm3, 1.0, %v11093_v41  ;;  %v5286_v7 = vsel %vm2480_vm4, 1.0, %v11093_v41  ;;  %v2931_v18 = vsel %vm2867_vm6, %v5950_v53, 256  ;;  %v2932_v6 = vsel %vm2868_vm11, %v5953_v26, 256 }
 0x5c4   : > { %v8622_v55 = vadd.f32 %v5285_v2, %v5221_v34  ;;  %v8624_v51 = vadd.f32 %v5286_v7, %v5222_v25  ;;  %vm3023_vm5 = vcmp.lt.s32.totalorder %v2931_v18, %v2932_v6  ;;  %3061 = vmin.xlane.f32.xlu0 %v8610_v3  ;;  %v3042_v22 = vshra.s32 %v8612_v9, 16 }
 0x5c5   : > { %v8629_v52 = vsel %vm2479_vm3, inf, %v11381_v58  ;;  %v8632_v10 = vsel %vm2480_vm4, inf, %v11383_v14  ;;  %v8634_v49 = vsel %vm3023_vm5, %v2931_v18, %v2932_v6 }
 0x5c6   : > { %11379 = vst [vmem:[#allocation100_spill] sm:$0xff] %v8622_v55  ;;  %11380 = vst [vmem:[#allocation132_spill] sm:$0xff] %v8624_v51  ;;  %v8636_v0 = vcvt.s32.f32 %v3042_v22  ;;  %v2815_v34 = vmin.f32 %v8629_v52, %v8632_v10  ;;  %v3026_v25 = vshra.s32 %v8634_v49, 16 }
 0x5c7   : > { %11382 = vst [vmem:[#allocation37_spill] sm:$0xff] %v8629_v52  ;;  %11384 = vst [vmem:[#allocation38_spill] sm:$0xff] %v8632_v10  ;;  %v2772_v2 = vpop.xlane.xlu0 %2771 }
 0x5c8   : > { %v2769_v7 = vpop.xlane.xlu1 %2768  ;;  %vm2865_vm7 = vcmp.eq.f32.partialorder %v8059_v48, %v2772_v2  ;;  %vm2866_vm2 = vcmp.eq.f32.partialorder %v8062_v44, %v2772_v2  ;;  %3045 = vmin.xlane.f32.xlu0 %v8636_v0  ;;  %2816 = vmin.xlane.f32.xlu1 %v2815_v34  ;;  %v8645_v18 = vcvt.s32.f32 %v3026_v25 }
 0x5c9   : > { %vm2863_vm0 = vcmp.eq.f32.partialorder %v8065_v20, %v2769_v7  ;;  %v2929_v6 = vsel %vm2865_vm7, %v5950_v53, 256  ;;  %v2930_v22 = vsel %vm2866_vm2, %v5953_v26, 256  ;;  %vm2864_vm10 = vcmp.eq.f32.partialorder %v8068_v57, %v2769_v7 }
 0x5ca   : > { %v2927_v58 = vsel %vm2863_vm0, %v5950_v53, 256  ;;  %vm3007_vm9 = vcmp.lt.s32.totalorder %v2929_v6, %v2930_v22  ;;  %v2928_v14 = vsel %vm2864_vm10, %v5953_v26, 256 }
 0x5cb   : > { %vm2991_vm12 = vcmp.lt.s32.totalorder %v2927_v58, %v2928_v14  ;;  %v8652_v55 = vsel %vm3007_vm9, %v2929_v6, %v2930_v22 }
 0x5cc   : > { %v2859_v2 = vpop.xlane.xlu1 %2858  ;;  %3029 = vmin.xlane.f32.xlu1 %v8645_v18  ;;  %v3010_v34 = vshra.s32 %v8652_v55, 16  ;;  %v8658_v25 = vsel %vm2991_vm12, %v2927_v58, %v2928_v14 }
 0x5cd   : > { %vm2923_vm8 = vcmp.eq.f32.partialorder %v8087_v39, %v2859_v2  ;;  %vm2924_vm13 = vcmp.eq.f32.partialorder %v8090_v47, %v2859_v2  ;;  %v2994_v57 = vshra.s32 %v8658_v25, 16 }
 0x5ce   : > { %v2987_v7 = vsel %vm2923_vm8, %v5950_v53, 256  ;;  %v2988_v51 = vsel %vm2924_vm13, %v5953_v26, 256  ;;  %v8663_v20 = vcvt.s32.f32 %v3010_v34 }
 0x5cf   : > { %vm3471_vm14 = vcmp.lt.s32.totalorder %v2987_v7, %v2988_v51  ;;  %v8665_v6 = vcvt.s32.f32 %v2994_v57 }
 0x5d0   : > { %v8667_v22 = vsel %vm3471_vm14, %v2987_v7, %v2988_v51  ;;  %3013 = vmin.xlane.f32.xlu0 %v8663_v20 }
 0x5d1   : > { %v3474_v2 = vshra.s32 %v8667_v22, 16  ;;  %2997 = vmin.xlane.f32.xlu1 %v8665_v6 }
 0x5d3   : > { %v8672_v58 = vcvt.s32.f32 %v3474_v2 }
 0x5d5   : > { %3477 = vmin.xlane.f32.xlu1 %v8672_v58 }
 0x5df   : > { %v2862_v14 = vpop.xlane.xlu0 %2861 }
 0x5e0   : > { %vm2925_vm15 = vcmp.eq.f32.partialorder %v8114_v4, %v2862_v14  ;;  %vm2926_vm1 = vcmp.eq.f32.partialorder %v8117_v5, %v2862_v14 }
 0x5e1   : > { %v2989_v57 = vsel %vm2925_vm15, %v5950_v53, 256  ;;  %v2990_v51 = vsel %vm2926_vm1, %v5953_v26, 256 }
 0x5e2   : > { %vm3487_vm3 = vcmp.lt.s32.totalorder %v2989_v57, %v2990_v51 }
 0x5e3   : > { %v2856_v34 = vpop.xlane.xlu0 %2855  ;;  %v8679_v7 = vsel %vm3487_vm3, %v2989_v57, %v2990_v51 }
 0x5e4   : > { %vm2921_vm4 = vcmp.eq.f32.partialorder %v8139_v13, %v2856_v34  ;;  %vm2922_vm6 = vcmp.eq.f32.partialorder %v8142_v36, %v2856_v34  ;;  %v3490_v2 = vshra.s32 %v8679_v7, 16 }
 0x5e5   : > { %v2985_v47 = vsel %vm2921_vm4, %v5950_v53, 256  ;;  %v2986_v4 = vsel %vm2922_vm6, %v5953_v26, 256 }
 0x5e6   : > { %vm3455_vm11 = vcmp.lt.s32.totalorder %v2985_v47, %v2986_v4  ;;  %v8686_v14 = vcvt.s32.f32 %v3490_v2 }
 0x5e7   : > { %v8688_v39 = vsel %vm3455_vm11, %v2985_v47, %v2986_v4  ;;  %v11385_v47 = vld [vmem:[#allocation102_spill] sm:$0xff] }
 0x5e8   : > { %v2853_v5 = vpop.xlane.xlu1 %2852  ;;  %3493 = vmin.xlane.f32.xlu0 %v8686_v14  ;;  %v3458_v57 = vshra.s32 %v8688_v39, 16 }
 0x5e9   : > { %vm2919_vm5 = vcmp.eq.f32.partialorder %v8164_v24, %v2853_v5  ;;  %vm2920_vm7 = vcmp.eq.f32.partialorder %v8167_v56, %v2853_v5 }
 0x5ea   : > { %v2983_v51 = vsel %vm2919_vm5, %v5950_v53, 256  ;;  %v2984_v34 = vsel %vm2920_vm7, %v5953_v26, 256  ;;  %v8696_v36 = vcvt.s32.f32 %v3458_v57 }
 0x5eb   : > { %vm3439_vm2 = vcmp.lt.s32.totalorder %v2983_v51, %v2984_v34 }
 0x5ec   : > { %v2850_v2 = vpop.xlane.xlu1 %2849  ;;  %v8698_v13 = vsel %vm3439_vm2, %v2983_v51, %v2984_v34  ;;  %3461 = vmin.xlane.f32.xlu1 %v8696_v36  ;;  %v11388_v51 = vld [vmem:[#allocation82_spill] sm:$0xff]  ;;  %v11389_v34 = vld [vmem:[#allocation104_spill] sm:$0xff] }
 0x5ed   : > { %vm2917_vm0 = vcmp.eq.f32.partialorder %v8189_v35, %v2850_v2  ;;  %vm2918_vm10 = vcmp.eq.f32.partialorder %v11385_v47, %v2850_v2  ;;  %v3442_v5 = vshra.s32 %v8698_v13, 16 }
 0x5ee   : > { %v2981_v4 = vsel %vm2917_vm0, %v5950_v53, 256  ;;  %v2982_v56 = vsel %vm2918_vm10, %v5953_v26, 256 }
 0x5ef   : > { %vm3423_vm9 = vcmp.lt.s32.totalorder %v2981_v4, %v2982_v56  ;;  %v8706_v24 = vcvt.s32.f32 %v3442_v5 }
 0x5f0   : > { %v2847_v57 = vpop.xlane.xlu1 %2846  ;;  %v8708_v44 = vsel %vm3423_vm9, %v2981_v4, %v2982_v56  ;;  %v11390_v56 = vld [vmem:[#allocation83_spill] sm:$0xff]  ;;  %v11391_v4 = vld [vmem:[#allocation105_spill] sm:$0xff] }
 0x5f1   : > { %11386 = vst [vmem:[#allocation133_spill] sm:$0xff] %v8706_v24  ;;  %11387 = vst [vmem:[#allocation134_spill] sm:$0xff] %v8708_v44  ;;  %vm2915_vm12 = vcmp.eq.f32.partialorder %v11388_v51, %v2847_v57  ;;  %vm2916_vm8 = vcmp.eq.f32.partialorder %v11389_v34, %v2847_v57  ;;  %3445 = vmin.xlane.f32.xlu1 %v8706_v24  ;;  %v3426_v2 = vshra.s32 %v8708_v44, 16 }
 0x5f2   : > { %v2979_v47 = vsel %vm2915_vm12, %v5950_v53, 256  ;;  %v2980_v35 = vsel %vm2916_vm8, %v5953_v26, 256 }
 0x5f3   : > { %vm3407_vm13 = vcmp.lt.s32.totalorder %v2979_v47, %v2980_v35  ;;  %v8716_v48 = vcvt.s32.f32 %v3426_v2 }
 0x5f4   : > { %v8718_v41 = vsel %vm3407_vm13, %v2979_v47, %v2980_v35 }
 0x5f5   : > { %v2844_v5 = vpop.xlane.xlu1 %2843  ;;  %3429 = vmin.xlane.f32.xlu1 %v8716_v48  ;;  %v3410_v57 = vshra.s32 %v8718_v41, 16 }
 0x5f6   : > { %vm2913_vm14 = vcmp.eq.f32.partialorder %v11390_v56, %v2844_v5  ;;  %vm2914_vm15 = vcmp.eq.f32.partialorder %v11391_v4, %v2844_v5 }
 0x5f7   : > { %v2977_v34 = vsel %vm2913_vm14, %v5950_v53, 256  ;;  %v2978_v51 = vsel %vm2914_vm15, %v5953_v26, 256  ;;  %v8726_v24 = vcvt.s32.f32 %v3410_v57 }
 0x5f8   : > { %vm3391_vm1 = vcmp.lt.s32.totalorder %v2977_v34, %v2978_v51 }
 0x5f9   : > { %11392 = vst [vmem:[#allocation135_spill] sm:$0xff] %v8726_v24  ;;  %v2841_v2 = vpop.xlane.xlu1 %2840  ;;  %v8728_v44 = vsel %vm3391_vm1, %v2977_v34, %v2978_v51  ;;  %3413 = vmin.xlane.f32.xlu1 %v8726_v24  ;;  %v11394_v51 = vld [vmem:[#allocation86_spill] sm:$0xff]  ;;  %v11395_v34 = vld [vmem:[#allocation45_spill] sm:$0xff] }
 0x5fa   : > { %11393 = vst [vmem:[#allocation136_spill] sm:$0xff] %v8728_v44  ;;  %vm2911_vm3 = vcmp.eq.f32.partialorder %v8264_v21, %v2841_v2  ;;  %vm2912_vm4 = vcmp.eq.f32.partialorder %v8267_v31, %v2841_v2  ;;  %v3394_v35 = vshra.s32 %v8728_v44, 16 }
 0x5fb   : > { %v2975_v47 = vsel %vm2911_vm3, %v5950_v53, 256  ;;  %v2976_v5 = vsel %vm2912_vm4, %v5953_v26, 256 }
 0x5fc   : > { %vm3375_vm6 = vcmp.lt.s32.totalorder %v2975_v47, %v2976_v5  ;;  %v8736_v4 = vcvt.s32.f32 %v3394_v35 }
 0x5fd   : > { %v8738_v56 = vsel %vm3375_vm6, %v2975_v47, %v2976_v5 }
 0x5fe   : > { %v2838_v57 = vpop.xlane.xlu1 %2837  ;;  %3397 = vmin.xlane.f32.xlu1 %v8736_v4  ;;  %v3378_v2 = vshra.s32 %v8738_v56, 16 }
 0x5ff   : > { %vm2909_vm11 = vcmp.eq.f32.partialorder %v11394_v51, %v2838_v57  ;;  %vm2910_vm5 = vcmp.eq.f32.partialorder %v11395_v34, %v2838_v57  ;;  %v11401_v51 = vld [vmem:[#allocation128_spill] sm:$0xff] }
 0x600   : > { %v2973_v31 = vsel %vm2909_vm11, %v5950_v53, 256  ;;  %v2974_v21 = vsel %vm2910_vm5, %v5953_v26, 256  ;;  %v8746_v24 = vcvt.s32.f32 %v3378_v2 }
 0x601   : > { %vm3359_vm7 = vcmp.lt.s32.totalorder %v2973_v31, %v2974_v21 }
 0x602   : > { %11396 = vst [vmem:[#allocation137_spill] sm:$0xff] %v8746_v24  ;;  %v2835_v35 = vpop.xlane.xlu1 %2834  ;;  %v8748_v44 = vsel %vm3359_vm7, %v2973_v31, %v2974_v21  ;;  %3381 = vmin.xlane.f32.xlu1 %v8746_v24  ;;  %v3217_v24 = vand.u32 65535, %v11401_v51  ;;  %v3185_v51 = vand.u32 65535, %v8378_v46  ;;  %v3169_v46 = vand.u32 65535, %v8401_v60 }
 0x603   : > { %11397 = vst [vmem:[#allocation138_spill] sm:$0xff] %v8748_v44  ;;  %vm2907_vm2 = vcmp.eq.f32.partialorder %v8312_v23, %v2835_v35  ;;  %vm2908_vm0 = vcmp.eq.f32.partialorder %v8315_v32, %v2835_v35  ;;  %v3362_v47 = vshra.s32 %v8748_v44, 16  ;;  %v3233_v35 = vand.u32 65535, %v8327_v62 }
 0x604   : > { %v2971_v5 = vsel %vm2907_vm2, %v5950_v53, 256  ;;  %v2972_v57 = vsel %vm2908_vm0, %v5953_v26, 256  ;;  %v3201_v62 = vand.u32 65535, %v8357_v59 }
 0x605   : > { %vm3343_vm10 = vcmp.lt.s32.totalorder %v2971_v5, %v2972_v57  ;;  %v8756_v34 = vcvt.s32.f32 %v3362_v47  ;;  %v3235_v23 = vcvt.s32.f32 %v3233_v35  ;;  %v11402_v47 = vld [vmem:[#allocation127_spill] sm:$0xff] }
 0x606   : > { %v8758_v2 = vsel %vm3343_vm10, %v2971_v5, %v2972_v57  ;;  %v3203_v35 = vcvt.s32.f32 %v3201_v62  ;;  %v3171_v62 = vcvt.s32.f32 %v3169_v46 }
 0x607   : > { %11398 = vst [vmem:[#allocation139_spill] sm:$0xff] %v8756_v34  ;;  %11399 = vst [vmem:[#allocation140_spill] sm:$0xff] %v8758_v2  ;;  %3365 = vmin.xlane.f32.xlu1 %v8756_v34  ;;  %v3346_v21 = vshra.s32 %v8758_v2, 16  ;;  %v3219_v34 = vcvt.s32.f32 %v3217_v24 }
 0x609   : > { %v8762_v31 = vcvt.s32.f32 %v3346_v21  ;;  %v11403_v21 = vld [vmem:[#allocation129_spill] sm:$0xff] }
 0x60b   : > { %11400 = vst [vmem:[#allocation141_spill] sm:$0xff] %v8762_v31  ;;  %3349 = vmin.xlane.f32.xlu1 %v8762_v31 }
 0x617   : > { %v8766_v32 = vpop.xlane.xlu0 %3237 }
 0x618   : > { %vm3239_vm9 = vcmp.eq.f32.partialorder %v11402_v47, %v8766_v32 }
 0x619   : > { %v3240_v5 = vsel %vm3239_vm9, %v3235_v23, inf }
 0x61a   : > { %3241 = vmin.xlane.f32.xlu0 %v3240_v5 }
 0x61c   : > { %v8771_v57 = vpop.xlane.xlu0 %3221 }
 0x61d   : > { %vm3223_vm12 = vcmp.eq.f32.partialorder %v11403_v21, %v8771_v57 }
 0x61e   : > { %v3224_v2 = vsel %vm3223_vm12, %v3219_v34, inf }
 0x61f   : > { %3225 = vmin.xlane.f32.xlu0 %v3224_v2  ;;  %v3187_v2 = vcvt.s32.f32 %v3185_v51 }
 0x627   : > { %v8776_v31 = vpop.xlane.xlu0 %3205 }
 0x628   : > { %v2832_v44 = vpop.xlane.xlu1 %2831  ;;  %vm3207_vm8 = vcmp.eq.f32.partialorder %v8382_v15, %v8776_v31 }
 0x629   : > { %vm2905_vm13 = vcmp.eq.f32.partialorder %v8373_v33, %v2832_v44  ;;  %vm2906_vm14 = vcmp.eq.f32.partialorder %v8376_v61, %v2832_v44  ;;  %v3208_v24 = vsel %vm3207_vm8, %v3203_v35, inf  ;;  %v3153_v35 = vand.u32 65535, %v8431_v43 }
 0x62a   : > { %v2969_v23 = vsel %vm2905_vm13, %v5950_v53, 256  ;;  %v2970_v34 = vsel %vm2906_vm14, %v5953_v26, 256  ;;  %3209 = vmin.xlane.f32.xlu0 %v3208_v24 }
 0x62b   : > { %vm3327_vm15 = vcmp.lt.s32.totalorder %v2969_v23, %v2970_v34  ;;  %v8785_v59 = vpop.xlane.xlu0 %3189  ;;  %v3155_v43 = vcvt.s32.f32 %v3153_v35 }
 0x62c   : > { %vm3191_vm1 = vcmp.eq.f32.partialorder %v8399_v11, %v8785_v59  ;;  %v8790_v15 = vsel %vm3327_vm15, %v2969_v23, %v2970_v34  ;;  %v11404_v11 = vld [vmem:[#allocation92_spill] sm:$0xff] }
 0x62d   : > { %v3192_v47 = vsel %vm3191_vm1, %v3187_v2, inf  ;;  %v3330_v44 = vshra.s32 %v8790_v15, 16  ;;  %v3137_v2 = vand.u32 65535, %v8454_v27  ;;  %v11405_v27 = vld [vmem:[#allocation96_spill] sm:$0xff] }
 0x62e   : > { %3193 = vmin.xlane.f32.xlu0 %v3192_v47 }
 0x62f   : > { %v8793_v5 = vpop.xlane.xlu0 %3173  ;;  %v8795_v21 = vcvt.s32.f32 %v3330_v44  ;;  %v2829_v24 = vpop.xlane.xlu1 %2828 }
 0x630   : > { %vm3175_vm3 = vcmp.eq.f32.partialorder %v8435_v29, %v8793_v5  ;;  %vm2903_vm4 = vcmp.eq.f32.partialorder %v8424_v28, %v2829_v24  ;;  %vm2904_vm6 = vcmp.eq.f32.partialorder %v11404_v11, %v2829_v24  ;;  %v3139_v24 = vcvt.s32.f32 %v3137_v2 }
 0x631   : > { %3333 = vmin.xlane.f32.xlu1 %v8795_v21  ;;  %v3176_v60 = vsel %vm3175_vm3, %v3171_v62, inf  ;;  %v2967_v51 = vsel %vm2903_vm4, %v5950_v53, 256  ;;  %v2968_v23 = vsel %vm2904_vm6, %v5953_v26, 256 }
 0x632   : > { %3177 = vmin.xlane.f32.xlu0 %v3176_v60  ;;  %vm3311_vm11 = vcmp.lt.s32.totalorder %v2967_v51, %v2968_v23  ;;  %v3121_v60 = vand.u32 65535, %v8484_v8 }
 0x633   : > { %v8805_v34 = vpop.xlane.xlu0 %3157  ;;  %v8810_v29 = vsel %vm3311_vm11, %v2967_v51, %v2968_v23 }
 0x634   : > { %vm3159_vm5 = vcmp.eq.f32.partialorder %v8452_v63, %v8805_v34  ;;  %v3314_v47 = vshra.s32 %v8810_v29, 16  ;;  %v3123_v8 = vcvt.s32.f32 %v3121_v60 }
 0x635   : > { %v3160_v46 = vsel %vm3159_vm5, %v3155_v43, inf  ;;  %v3105_v43 = vand.u32 65535, %v8507_v17  ;;  %v11406_v17 = vld [vmem:[#allocation42_spill] sm:$0xff] }
 0x636   : > { %3161 = vmin.xlane.f32.xlu0 %v3160_v46  ;;  %v8815_v62 = vcvt.s32.f32 %v3314_v47 }
 0x638   : > { %v8813_v44 = vpop.xlane.xlu0 %3141  ;;  %3317 = vmin.xlane.f32.xlu1 %v8815_v62 }
 0x639   : > { %v2826_v11 = vpop.xlane.xlu1 %2825  ;;  %vm3143_vm7 = vcmp.eq.f32.partialorder %v8488_v16, %v8813_v44 }
 0x63a   : > { %vm2901_vm2 = vcmp.eq.f32.partialorder %v8477_v38, %v2826_v11  ;;  %vm2902_vm0 = vcmp.eq.f32.partialorder %v11405_v27, %v2826_v11  ;;  %v3144_v63 = vsel %vm3143_vm7, %v3139_v24, inf  ;;  %v3107_v24 = vcvt.s32.f32 %v3105_v43 }
 0x63b   : > { %v2965_v35 = vsel %vm2901_vm2, %v5950_v53, 256  ;;  %v2966_v51 = vsel %vm2902_vm0, %v5953_v26, 256  ;;  %3145 = vmin.xlane.f32.xlu0 %v3144_v63  ;;  %v3089_v63 = vand.u32 65535, %v8537_v1 }
 0x63c   : > { %vm3295_vm10 = vcmp.lt.s32.totalorder %v2965_v35, %v2966_v51  ;;  %v8825_v23 = vpop.xlane.xlu0 %3125 }
 0x63d   : > { %vm3127_vm9 = vcmp.eq.f32.partialorder %v8505_v30, %v8825_v23  ;;  %v8830_v16 = vsel %vm3295_vm10, %v2965_v35, %v2966_v51  ;;  %v3091_v1 = vcvt.s32.f32 %v3089_v63 }
 0x63e   : > { %v3128_v11 = vsel %vm3127_vm9, %v3123_v8, inf  ;;  %v3298_v2 = vshra.s32 %v8830_v16, 16  ;;  %v3073_v8 = vand.u32 65535, %v8560_v42 }
 0x63f   : > { %3129 = vmin.xlane.f32.xlu0 %v3128_v11 }
 0x640   : > { %v8833_v46 = vpop.xlane.xlu0 %3109  ;;  %v8835_v47 = vcvt.s32.f32 %v3298_v2 }
 0x641   : > { %v2823_v27 = vpop.xlane.xlu1 %2822  ;;  %vm3111_vm12 = vcmp.eq.f32.partialorder %v8541_v37, %v8833_v46 }
 0x642   : > { %vm2899_vm8 = vcmp.eq.f32.partialorder %v8530_v19, %v2823_v27  ;;  %vm2900_vm13 = vcmp.eq.f32.partialorder %v11406_v17, %v2823_v27  ;;  %3301 = vmin.xlane.f32.xlu1 %v8835_v47  ;;  %v3112_v30 = vsel %vm3111_vm12, %v3107_v24, inf  ;;  %v3075_v24 = vcvt.s32.f32 %v3073_v8 }
 0x643   : > { %v2963_v60 = vsel %vm2899_vm8, %v5950_v53, 256  ;;  %v2964_v35 = vsel %vm2900_vm13, %v5953_v26, 256  ;;  %3113 = vmin.xlane.f32.xlu0 %v3112_v30  ;;  %v3057_v30 = vand.u32 65535, %v8590_v54 }
 0x644   : > { %vm3279_vm14 = vcmp.lt.s32.totalorder %v2963_v60, %v2964_v35  ;;  %v8845_v51 = vpop.xlane.xlu0 %3093 }
 0x645   : > { %vm3095_vm15 = vcmp.eq.f32.partialorder %v8558_v50, %v8845_v51  ;;  %v8850_v37 = vsel %vm3279_vm14, %v2963_v60, %v2964_v35  ;;  %v3059_v54 = vcvt.s32.f32 %v3057_v30  ;;  %v3041_v35 = vand.u32 65535, %v8612_v9 }
 0x646   : > { %v3096_v27 = vsel %vm3095_vm15, %v3091_v1, inf  ;;  %v3282_v43 = vshra.s32 %v8850_v37, 16 }
 0x647   : > { %3097 = vmin.xlane.f32.xlu0 %v3096_v27 }
 0x648   : > { %v8855_v2 = vcvt.s32.f32 %v3282_v43 }
 0x649   : > { %v8853_v11 = vpop.xlane.xlu0 %3077 }
 0x64a   : > { %v2820_v17 = vpop.xlane.xlu1 %2819  ;;  %vm3079_vm1 = vcmp.eq.f32.partialorder %v8594_v40, %v8853_v11  ;;  %3285 = vmin.xlane.f32.xlu1 %v8855_v2 }
 0x64b   : > { %vm2897_vm3 = vcmp.eq.f32.partialorder %v8583_v45, %v2820_v17  ;;  %vm2898_vm4 = vcmp.eq.f32.partialorder %v8588_v12, %v2820_v17  ;;  %v3080_v42 = vsel %vm3079_vm1, %v3075_v24, inf  ;;  %v3043_v24 = vcvt.s32.f32 %v3041_v35 }
 0x64c   : > { %v2961_v50 = vsel %vm2897_vm3, %v5950_v53, 256  ;;  %v2962_v63 = vsel %vm2898_vm4, %v5953_v26, 256  ;;  %3081 = vmin.xlane.f32.xlu0 %v3080_v42  ;;  %v3025_v42 = vand.u32 65535, %v8634_v49  ;;  %v2993_v35 = vand.u32 65535, %v8658_v25 }
 0x64d   : > { %vm3263_vm6 = vcmp.lt.s32.totalorder %v2961_v50, %v2962_v63  ;;  %v8865_v60 = vpop.xlane.xlu0 %3061  ;;  %v3180_v12 = vcvt.f32.s32 %v8793_v5 }
 0x64e   : > { %vm3063_vm11 = vcmp.eq.f32.partialorder %v8610_v3, %v8865_v60  ;;  %v8870_v40 = vsel %vm3263_vm6, %v2961_v50, %v2962_v63  ;;  %v3027_v63 = vcvt.s32.f32 %v3025_v42 }
 0x64f   : > { %v3064_v17 = vsel %vm3063_vm11, %v3059_v54, inf  ;;  %v3266_v1 = vshra.s32 %v8870_v40, 16  ;;  %v3009_v54 = vand.u32 65535, %v8652_v55  ;;  %v2995_v55 = vcvt.s32.f32 %v2993_v35 }
 0x650   : > { %3065 = vmin.xlane.f32.xlu0 %v3064_v17 }
 0x651   : > { %v8873_v8 = vpop.xlane.xlu0 %3045  ;;  %v2817_v27 = vpop.xlane.xlu1 %2816  ;;  %v8875_v43 = vcvt.s32.f32 %v3266_v1 }
 0x652   : > { %vm2895_vm5 = vcmp.eq.f32.partialorder %v8629_v52, %v2817_v27  ;;  %vm2896_vm7 = vcmp.eq.f32.partialorder %v8632_v10, %v2817_v27  ;;  %vm3047_vm2 = vcmp.eq.f32.partialorder %v8636_v0, %v8873_v8 }
 0x653   : > { %v2959_v9 = vsel %vm2895_vm5, %v5950_v53, 256  ;;  %v2960_v3 = vsel %vm2896_vm7, %v5953_v26, 256  ;;  %3269 = vmin.xlane.f32.xlu1 %v8875_v43  ;;  %v3048_v30 = vsel %vm3047_vm2, %v3043_v24, inf  ;;  %v3011_v24 = vcvt.s32.f32 %v3009_v54 }
 0x654   : > { %vm3247_vm0 = vcmp.lt.s32.totalorder %v2959_v9, %v2960_v3  ;;  %3049 = vmin.xlane.f32.xlu0 %v3048_v30 }
 0x655   : > { %v8885_v50 = vpop.xlane.xlu1 %3029  ;;  %v8887_v49 = vsel %vm3247_vm0, %v2959_v9, %v2960_v3 }
 0x656   : > { %vm3031_vm10 = vcmp.eq.f32.partialorder %v8645_v18, %v8885_v50  ;;  %v3250_v0 = vshra.s32 %v8887_v49, 16  ;;  %v3473_v18 = vand.u32 65535, %v8667_v22 }
 0x657   : > { %v3032_v17 = vsel %vm3031_vm10, %v3027_v63, inf }
 0x658   : > { %3033 = vmin.xlane.f32.xlu0 %v3032_v17  ;;  %v8894_v1 = vcvt.s32.f32 %v3250_v0  ;;  %v3475_v30 = vcvt.s32.f32 %v3473_v18  ;;  %v3457_v0 = vand.u32 65535, %v8688_v39  ;;  %v11407_v18 = vld [vmem:[#allocation134_spill] sm:$0xff] }
 0x659   : > { %v8896_v27 = vpop.xlane.xlu0 %3013  ;;  %v3425_v39 = vand.u32 65535, %v11407_v18 }
 0x65a   : > { %3253 = vmin.xlane.f32.xlu1 %v8894_v1  ;;  %v8899_v42 = vpop.xlane.xlu1 %2997  ;;  %vm3015_vm9 = vcmp.eq.f32.partialorder %v8663_v20, %v8896_v27  ;;  %v3489_v20 = vand.u32 65535, %v8679_v7  ;;  %v3459_v17 = vcvt.s32.f32 %v3457_v0 }
 0x65b   : > { %v3016_v9 = vsel %vm3015_vm9, %v3011_v24, inf  ;;  %vm2999_vm12 = vcmp.eq.f32.partialorder %v8665_v6, %v8899_v42  ;;  %v3441_v24 = vand.u32 65535, %v8698_v13  ;;  %v3409_v13 = vand.u32 65535, %v8718_v41 }
 0x65c   : > { %3017 = vmin.xlane.f32.xlu0 %v3016_v9  ;;  %v3000_v25 = vsel %vm2999_vm12, %v2995_v55, inf  ;;  %v3491_v22 = vcvt.s32.f32 %v3489_v20  ;;  %v11408_v9 = vld [vmem:[#allocation133_spill] sm:$0xff]  ;;  %v3377_v41 = vand.u32 65535, %v8738_v56 }
 0x65d   : > { %v3443_v55 = vcvt.s32.f32 %v3441_v24  ;;  %v3411_v20 = vcvt.s32.f32 %v3409_v13 }
 0x65e   : > { %3001 = vmin.xlane.f32.xlu1 %v3000_v25  ;;  %v8906_v3 = vpop.xlane.xlu1 %3477  ;;  %v3379_v18 = vcvt.s32.f32 %v3377_v41  ;;  %v3244_v41 = vcvt.f32.s32 %v8766_v32  ;;  %v11418_v32 = vmov 0.0  }
 0x65f   : > { %vm3479_vm8 = vcmp.eq.f32.partialorder %v8672_v58, %v8906_v3 }
 0x660   : > { %v3480_v63 = vsel %vm3479_vm8, %v3475_v30, inf  ;;  %v3427_v30 = vcvt.s32.f32 %v3425_v39  ;;  %v11411_v39 = vld [vmem:[#allocation138_spill] sm:$0xff] }
 0x662   : > { %3481 = vmin.xlane.f32.xlu1 %v3480_v63 }
 0x671   : > { %v8911_v54 = vpop.xlane.xlu0 %3493 }
 0x672   : > { %vm3495_vm13 = vcmp.eq.f32.partialorder %v8686_v14, %v8911_v54 }
 0x673   : > { %v3496_v6 = vsel %vm3495_vm13, %v3491_v22, inf  ;;  %v11409_v22 = vld [vmem:[#allocation136_spill] sm:$0xff] }
 0x674   : > { %3497 = vmin.xlane.f32.xlu0 %v3496_v6  ;;  %v3393_v0 = vand.u32 65535, %v11409_v22  ;;  %v11410_v6 = vld [vmem:[#allocation135_spill] sm:$0xff] }
 0x675   : > { %v8916_v35 = vpop.xlane.xlu1 %3461  ;;  %v11414_v22 = vld [vmem:[#allocation139_spill] sm:$0xff] }
 0x676   : > { %vm3463_vm14 = vcmp.eq.f32.partialorder %v8696_v36, %v8916_v35 }
 0x677   : > { %v3464_v58 = vsel %vm3463_vm14, %v3459_v17, inf }
 0x678   : > { %3465 = vmin.xlane.f32.xlu0 %v3464_v58  ;;  %v3395_v58 = vcvt.s32.f32 %v3393_v0 }
 0x67a   : > { %v8921_v7 = vpop.xlane.xlu1 %3445 }
 0x67b   : > { %vm3447_vm15 = vcmp.eq.f32.partialorder %v11408_v9, %v8921_v7  ;;  %v3361_v9 = vand.u32 65535, %v11411_v39  ;;  %v3228_v39 = vcvt.f32.s32 %v8771_v57 }
 0x67c   : > { %v3448_v14 = vsel %vm3447_vm15, %v3443_v55, inf }
 0x67d   : > { %3449 = vmin.xlane.f32.xlu1 %v3448_v14  ;;  %v11412_v14 = vld [vmem:[#allocation137_spill] sm:$0xff] }
 0x67e   : > { %v8926_v25 = vpop.xlane.xlu1 %3429 }
 0x67f   : > { %vm3431_vm1 = vcmp.eq.f32.partialorder %v8716_v48, %v8926_v25 }
 0x680   : > { %v3432_v36 = vsel %vm3431_vm1, %v3427_v30, inf }
 0x681   : > { %3433 = vmin.xlane.f32.xlu1 %v3432_v36  ;;  %v3363_v36 = vcvt.s32.f32 %v3361_v9 }
 0x682   : > { %v8931_v63 = vpop.xlane.xlu1 %3413 }
 0x683   : > { %vm3415_vm3 = vcmp.eq.f32.partialorder %v11410_v6, %v8931_v63 }
 0x684   : > { %v3416_v17 = vsel %vm3415_vm3, %v3411_v20, inf  ;;  %v11413_v20 = vld [vmem:[#allocation140_spill] sm:$0xff] }
 0x685   : > { %3417 = vmin.xlane.f32.xlu1 %v3416_v17  ;;  %v3345_v56 = vand.u32 65535, %v11413_v20  ;;  %v11415_v17 = vld [vmem:[#allocation141_spill] sm:$0xff]  ;;  %v3229_v20 = vshll.u32 %v3228_v39, 16  ;;  %v11421_v39 = vld [vmem:[#allocation110_spill] sm:$0xff] }
 0x687   : > { %v8936_v24 = vpop.xlane.xlu1 %3397  ;;  %v3347_v6 = vcvt.s32.f32 %v3345_v56  ;;  %v11416_v56 = vld [vmem:[#allocation107_spill] sm:$0xff] }
 0x688   : > { %vm3399_vm4 = vcmp.eq.f32.partialorder %v8736_v4, %v8936_v24 }
 0x689   : > { %v3400_v48 = vsel %vm3399_vm4, %v3395_v58, inf }
 0x68a   : > { %3401 = vmin.xlane.f32.xlu1 %v3400_v48 }
 0x68b   : > { %v8941_v55 = vpop.xlane.xlu1 %3381 }
 0x68c   : > { %vm3383_vm6 = vcmp.eq.f32.partialorder %v11412_v14, %v8941_v55 }
 0x68d   : > { %v3384_v30 = vsel %vm3383_vm6, %v3379_v18, inf  ;;  %v3245_v18 = vshll.u32 %v3244_v41, 16 }
 0x68e   : > { %3385 = vmin.xlane.f32.xlu1 %v3384_v30 }
 0x690   : > { %v8946_v13 = vpop.xlane.xlu1 %3365 }
 0x691   : > { %vm3367_vm11 = vcmp.eq.f32.partialorder %v11414_v22, %v8946_v13 }
 0x692   : > { %v3368_v4 = vsel %vm3367_vm11, %v3363_v36, inf }
 0x693   : > { %3369 = vmin.xlane.f32.xlu1 %v3368_v4  ;;  %v11417_v4 = vld [vmem:[#allocation108_spill] sm:$0xff] }
 0x694   : > { %v8951_v0 = vpop.xlane.xlu1 %3349 }
 0x695   : > { %vm3351_vm5 = vcmp.eq.f32.partialorder %v11415_v17, %v8951_v0 }
 0x696   : > { %v3352_v58 = vsel %vm3351_vm5, %v3347_v6, inf }
 0x697   : > { %3353 = vmin.xlane.f32.xlu1 %v3352_v58 }
 0x6a3   : > { %v3242_v48 = vpop.xlane.xlu0 %3241 }
 0x6a4   : > { %v3243_v9 = vcvt.f32.s32 %v3242_v48  ;;  %v11419_v48 = vld [vmem:[#allocation109_spill] sm:$0xff] }
 0x6a6   : > { %v3246_v14 = vadd.s32 %v3245_v18, %v3243_v9 }
 0x6a8   : > { %v3226_v30 = vpop.xlane.xlu0 %3225  ;;  %vm3533_vm7 = vcmp.eq.s32.totalorder %v5950_v53, %v3246_v14  ;;  %vm3534_vm2 = vcmp.eq.s32.totalorder %v5953_v26, %v3246_v14  ;;  %v3212_v14 = vcvt.f32.s32 %v8776_v31 }
 0x6a9   : > { %v3227_v36 = vcvt.f32.s32 %v3226_v30  ;;  %v8960_v22 = vsel %vm3533_vm7, inf, %v11416_v56  ;;  %v8963_v6 = vsel %vm3534_vm2, inf, %v11417_v4  ;;  %v5348_v17 = vsel %vm3534_vm2, 1.0, %v11418_v32  ;;  %v11424_v4 = vld [vmem:[#allocation68_spill] sm:$0xff] }
 0x6aa   : > { %v5347_v58 = vsel %vm3533_vm7, 1.0, %v11418_v32  ;;  %v3868_v41 = vmin.f32 %v8960_v22, %v8963_v6  ;;  %v8970_v18 = vadd.f32 %v5348_v17, %v11419_v48  ;;  %v11425_v48 = vld [vmem:[#allocation73_spill] sm:$0xff] }
 0x6ab   : > { %v3230_v57 = vadd.s32 %v3229_v20, %v3227_v36  ;;  %v8973_v9 = vadd.f32 %v5347_v58, %v11421_v39  ;;  %v11423_v36 = vld [vmem:[#allocation64_spill] sm:$0xff]  ;;  %v11427_v39 = vld [vmem:[#allocation71_spill] sm:$0xff] }
 0x6ac   : > { %11420 = vst [vmem:[#allocation128_spill] sm:$0xff] %v8970_v18  ;;  %3869 = vmin.xlane.f32.xlu0 %v3868_v41  ;;  %v3213_v18 = vshll.u32 %v3212_v14, 16 }
 0x6ad   : > { %11422 = vst [vmem:[#allocation127_spill] sm:$0xff] %v8973_v9  ;;  %vm3531_vm0 = vcmp.eq.s32.totalorder %v5950_v53, %v3230_v57  ;;  %vm3532_vm10 = vcmp.eq.s32.totalorder %v5953_v26, %v3230_v57  ;;  %v3196_v57 = vcvt.f32.s32 %v8785_v59 }
 0x6ae   : > { %v5345_v30 = vsel %vm3531_vm0, 1.0, %v11418_v32  ;;  %v5346_v20 = vsel %vm3532_vm10, 1.0, %v11418_v32  ;;  %v8981_v56 = vsel %vm3531_vm0, inf, %v11423_v36  ;;  %v8984_v17 = vsel %vm3532_vm10, inf, %v11424_v4 }
 0x6af   : > { %v3865_v58 = vmin.f32 %v8981_v56, %v8984_v17  ;;  %v8989_v31 = vadd.f32 %v5346_v20, %v11425_v48  ;;  %v8992_v9 = vadd.f32 %v5345_v30, %v11427_v39  ;;  %v3329_v36 = vand.u32 65535, %v8790_v15  ;;  %v11430_v39 = vld [vmem:[#allocation69_spill] sm:$0xff] }
 0x6b0   : > { %v3197_v4 = vshll.u32 %v3196_v57, 16  ;;  %v11431_v57 = vld [vmem:[#allocation77_spill] sm:$0xff] }
 0x6b1   : > { %11426 = vst [vmem:[#allocation129_spill] sm:$0xff] %v8989_v31  ;;  %11428 = vst [vmem:[#allocation134_spill] sm:$0xff] %v8992_v9  ;;  %3866 = vmin.xlane.f32.xlu0 %v3865_v58  ;;  %v3331_v30 = vcvt.s32.f32 %v3329_v36  ;;  %v11429_v58 = vld [vmem:[#allocation66_spill] sm:$0xff]  ;;  %v3181_v36 = vshll.u32 %v3180_v12, 16  ;;  %v3164_v9 = vcvt.f32.s32 %v8805_v34 }
 0x6b2   : > { %v11435_v12 = vld [vmem:[#allocation70_spill] sm:$0xff] }
 0x6b3   : > { %v3210_v41 = vpop.xlane.xlu0 %3209 }
 0x6b4   : > { %v3211_v10 = vcvt.f32.s32 %v3210_v41 }
 0x6b6   : > { %v3214_v52 = vadd.s32 %v3213_v18, %v3211_v10 }
 0x6b7   : > { %v3194_v45 = vpop.xlane.xlu0 %3193 }
 0x6b8   : > { %vm3529_vm9 = vcmp.eq.s32.totalorder %v5950_v53, %v3214_v52  ;;  %vm3530_vm12 = vcmp.eq.s32.totalorder %v5953_v26, %v3214_v52  ;;  %v3195_v20 = vcvt.f32.s32 %v3194_v45  ;;  %v11433_v45 = vld [vmem:[#allocation67_spill] sm:$0xff] }
 0x6b9   : > { %v5343_v48 = vsel %vm3529_vm9, 1.0, %v11418_v32  ;;  %v5344_v59 = vsel %vm3530_vm12, 1.0, %v11418_v32  ;;  %v9002_v14 = vsel %vm3529_vm9, inf, %v11429_v58  ;;  %v9005_v15 = vsel %vm3530_vm12, inf, %v11430_v39 }
 0x6ba   : > { %v3198_v10 = vadd.s32 %v3197_v4, %v3195_v20  ;;  %v9007_v18 = vpop.xlane.xlu1 %3333  ;;  %v3862_v5 = vmin.f32 %v9002_v14, %v9005_v15  ;;  %v9012_v52 = vadd.f32 %v5344_v59, %v11431_v57  ;;  %v9015_v41 = vadd.f32 %v5343_v48, %v11433_v45  ;;  %v11436_v45 = vld [vmem:[#allocation78_spill] sm:$0xff] }
 0x6bb   : > { %v3178_v58 = vpop.xlane.xlu0 %3177  ;;  %vm3335_vm8 = vcmp.eq.f32.partialorder %v8795_v21, %v9007_v18  ;;  %v3313_v4 = vand.u32 65535, %v8810_v29  ;;  %v11437_v29 = vld [vmem:[#allocation32_spill] sm:$0xff] }
 0x6bc   : > { %11432 = vst [vmem:[#allocation133_spill] sm:$0xff] %v9012_v52  ;;  %11434 = vst [vmem:[#allocation136_spill] sm:$0xff] %v9015_v41  ;;  %vm3527_vm13 = vcmp.eq.s32.totalorder %v5950_v53, %v3198_v10  ;;  %vm3528_vm14 = vcmp.eq.s32.totalorder %v5953_v26, %v3198_v10  ;;  %v3179_v20 = vcvt.f32.s32 %v3178_v58  ;;  %3863 = vmin.xlane.f32.xlu0 %v3862_v5  ;;  %v3336_v59 = vsel %vm3335_vm8, %v3331_v30, inf  ;;  %v11439_v52 = vld [vmem:[#allocation33_spill] sm:$0xff] }
 0x6bd   : > { %v5341_v39 = vsel %vm3527_vm13, 1.0, %v11418_v32  ;;  %v5342_v48 = vsel %vm3528_vm14, 1.0, %v11418_v32  ;;  %3337 = vmin.xlane.f32.xlu1 %v3336_v59  ;;  %v9026_v34 = vsel %vm3527_vm13, inf, %v11435_v12  ;;  %v9029_v21 = vsel %vm3528_vm14, inf, %v11436_v45 }
 0x6be   : > { %v3182_v57 = vadd.s32 %v3181_v36, %v3179_v20  ;;  %v9032_v41 = vadd.f32 %v5342_v48, %v11437_v29  ;;  %v9035_v10 = vadd.f32 %v5341_v39, %v11439_v52  ;;  %v3165_v5 = vshll.u32 %v3164_v9, 16  ;;  %v11441_v52 = vld [vmem:[#allocation27_spill] sm:$0xff]  ;;  %v11442_v9 = vld [vmem:[#allocation72_spill] sm:$0xff] }
 0x6bf   : > { %v3148_v30 = vcvt.f32.s32 %v8813_v44  ;;  %v3162_v58 = vpop.xlane.xlu0 %3161  ;;  %v3859_v59 = vmin.f32 %v9026_v34, %v9029_v21  ;;  %v3315_v20 = vcvt.s32.f32 %v3313_v4  ;;  %v11445_v4 = vld [vmem:[#allocation26_spill] sm:$0xff] }
 0x6c0   : > { %11438 = vst [vmem:[#allocation135_spill] sm:$0xff] %v9032_v41  ;;  %11440 = vst [vmem:[#allocation138_spill] sm:$0xff] %v9035_v10  ;;  %vm3525_vm15 = vcmp.eq.s32.totalorder %v5950_v53, %v3182_v57  ;;  %vm3526_vm1 = vcmp.eq.s32.totalorder %v5953_v26, %v3182_v57  ;;  %v3163_v36 = vcvt.f32.s32 %v3162_v58  ;;  %v11443_v57 = vld [vmem:[#allocation74_spill] sm:$0xff] }
 0x6c1   : > { %v5339_v12 = vsel %vm3525_vm15, 1.0, %v11418_v32  ;;  %v5340_v48 = vsel %vm3526_vm1, 1.0, %v11418_v32  ;;  %3860 = vmin.xlane.f32.xlu0 %v3859_v59  ;;  %v9045_v39 = vsel %vm3525_vm15, inf, %v11441_v52  ;;  %v9048_v44 = vsel %vm3526_vm1, inf, %v11442_v9  ;;  %v9050_v29 = vpop.xlane.xlu1 %3317 }
 0x6c2   : > { %v3166_v45 = vadd.s32 %v3165_v5, %v3163_v36  ;;  %v3856_v10 = vmin.f32 %v9045_v39, %v9048_v44  ;;  %v9055_v58 = vadd.f32 %v5340_v48, %v11443_v57  ;;  %v9058_v41 = vadd.f32 %v5339_v12, %v11445_v4  ;;  %v11448_v4 = vld [vmem:[#allocation75_spill] sm:$0xff] }
 0x6c3   : > { %v3149_v31 = vshll.u32 %v3148_v30, 16  ;;  %v3132_v59 = vcvt.f32.s32 %v8825_v23  ;;  %vm3319_vm3 = vcmp.eq.f32.partialorder %v8815_v62, %v9050_v29  ;;  %v3297_v5 = vand.u32 65535, %v8830_v16  ;;  %v11447_v30 = vld [vmem:[#allocation63_spill] sm:$0xff]  ;;  %v11449_v16 = vld [vmem:[#allocation76_spill] sm:$0xff] }
 0x6c4   : > { %11444 = vst [vmem:[#allocation137_spill] sm:$0xff] %v9055_v58  ;;  %11446 = vst [vmem:[#allocation140_spill] sm:$0xff] %v9058_v41  ;;  %v3146_v52 = vpop.xlane.xlu0 %3145  ;;  %vm3523_vm4 = vcmp.eq.s32.totalorder %v5950_v53, %v3166_v45  ;;  %vm3524_vm6 = vcmp.eq.s32.totalorder %v5953_v26, %v3166_v45  ;;  %v3320_v9 = vsel %vm3319_vm3, %v3315_v20, inf  ;;  %v11451_v58 = vld [vmem:[#allocation21_spill] sm:$0xff] }
 0x6c5   : > { %v3147_v36 = vcvt.f32.s32 %v3146_v52  ;;  %v5337_v48 = vsel %vm3523_vm4, 1.0, %v11418_v32  ;;  %v5338_v12 = vsel %vm3524_vm6, 1.0, %v11418_v32  ;;  %3857 = vmin.xlane.f32.xlu0 %v3856_v10  ;;  %3321 = vmin.xlane.f32.xlu1 %v3320_v9  ;;  %v9069_v23 = vsel %vm3523_vm4, inf, %v11447_v30 }
 0x6c6   : > { %v9072_v62 = vsel %vm3524_vm6, inf, %v11448_v4  ;;  %v9075_v41 = vadd.f32 %v5338_v12, %v11449_v16  ;;  %v9078_v45 = vadd.f32 %v5337_v48, %v11451_v58  ;;  %v3133_v20 = vshll.u32 %v3132_v59, 16  ;;  %v11453_v58 = vld [vmem:[#allocation65_spill] sm:$0xff]  ;;  %v11454_v59 = vld [vmem:[#allocation20_spill] sm:$0xff] }
 0x6c7   : > { %v3150_v57 = vadd.s32 %v3149_v31, %v3147_v36  ;;  %v3116_v52 = vcvt.f32.s32 %v8833_v46  ;;  %v3853_v10 = vmin.f32 %v9069_v23, %v9072_v62  ;;  %v3299_v36 = vcvt.s32.f32 %v3297_v5  ;;  %v11457_v5 = vld [vmem:[#allocation35_spill] sm:$0xff] }
 0x6c8   : > { %11450 = vst [vmem:[#allocation139_spill] sm:$0xff] %v9075_v41  ;;  %11452 = vst [vmem:[#allocation141_spill] sm:$0xff] %v9078_v45  ;;  %v3130_v19 = vpop.xlane.xlu0 %3129 }
 0x6c9   : > { %vm3521_vm11 = vcmp.eq.s32.totalorder %v5950_v53, %v3150_v57  ;;  %vm3522_vm5 = vcmp.eq.s32.totalorder %v5953_v26, %v3150_v57  ;;  %v3131_v31 = vcvt.f32.s32 %v3130_v19  ;;  %3854 = vmin.xlane.f32.xlu0 %v3853_v10  ;;  %v11455_v57 = vld [vmem:[#allocation36_spill] sm:$0xff]  ;;  %v3117_v41 = vshll.u32 %v3116_v52, 16  ;;  %v11459_v52 = vld [vmem:[#allocation34_spill] sm:$0xff] }
 0x6ca   : > { %v5335_v9 = vsel %vm3521_vm11, 1.0, %v11418_v32  ;;  %v5336_v12 = vsel %vm3522_vm5, 1.0, %v11418_v32  ;;  %v9088_v48 = vsel %vm3521_vm11, inf, %v11453_v58  ;;  %v9091_v46 = vsel %vm3522_vm5, inf, %v11454_v59 }
 0x6cb   : > { %v3134_v30 = vadd.s32 %v3133_v20, %v3131_v31  ;;  %v9093_v4 = vpop.xlane.xlu1 %3301  ;;  %v3850_v16 = vmin.f32 %v9088_v48, %v9091_v46  ;;  %v9098_v19 = vadd.f32 %v5336_v12, %v11455_v57  ;;  %v9101_v45 = vadd.f32 %v5335_v9, %v11457_v5  ;;  %v11460_v5 = vld [vmem:[#allocation31_spill] sm:$0xff] }
 0x6cc   : > { %v3100_v10 = vcvt.f32.s32 %v8845_v51  ;;  %v3114_v58 = vpop.xlane.xlu0 %3113  ;;  %vm3303_vm7 = vcmp.eq.f32.partialorder %v8835_v47, %v9093_v4  ;;  %v3281_v20 = vand.u32 65535, %v8850_v37  ;;  %v11461_v37 = vld [vmem:[#allocation30_spill] sm:$0xff] }
 0x6cd   : > { %11456 = vst [vmem:[#allocation107_spill] sm:$0xff] %v9098_v19  ;;  %11458 = vst [vmem:[#allocation108_spill] sm:$0xff] %v9101_v45  ;;  %vm3519_vm2 = vcmp.eq.s32.totalorder %v5950_v53, %v3134_v30  ;;  %vm3520_vm0 = vcmp.eq.s32.totalorder %v5953_v26, %v3134_v30  ;;  %v3115_v31 = vcvt.f32.s32 %v3114_v58  ;;  %v3304_v59 = vsel %vm3303_vm7, %v3299_v36, inf  ;;  %3851 = vmin.xlane.f32.xlu0 %v3850_v16  ;;  %v11463_v19 = vld [vmem:[#allocation29_spill] sm:$0xff] }
 0x6ce   : > { %v5333_v12 = vsel %vm3519_vm2, 1.0, %v11418_v32  ;;  %v5334_v9 = vsel %vm3520_vm0, 1.0, %v11418_v32  ;;  %3305 = vmin.xlane.f32.xlu1 %v3304_v59  ;;  %v9112_v51 = vsel %vm3519_vm2, inf, %v11459_v52  ;;  %v9115_v47 = vsel %vm3520_vm0, inf, %v11460_v5 }
 0x6cf   : > { %v3118_v57 = vadd.s32 %v3117_v41, %v3115_v31  ;;  %v9118_v45 = vadd.f32 %v5334_v9, %v11461_v37  ;;  %v9121_v30 = vadd.f32 %v5333_v12, %v11463_v19  ;;  %v3101_v36 = vshll.u32 %v3100_v10, 16  ;;  %v11465_v19 = vld [vmem:[#allocation15_spill] sm:$0xff]  ;;  %v11466_v10 = vld [vmem:[#allocation25_spill] sm:$0xff] }
 0x6d0   : > { %v3084_v58 = vcvt.f32.s32 %v8853_v11  ;;  %v3098_v38 = vpop.xlane.xlu0 %3097  ;;  %v3847_v16 = vmin.f32 %v9112_v51, %v9115_v47  ;;  %v3283_v31 = vcvt.s32.f32 %v3281_v20  ;;  %v11470_v20 = vld [vmem:[#allocation28_spill] sm:$0xff] }
 0x6d1   : > { %11462 = vst [vmem:[#allocation109_spill] sm:$0xff] %v9118_v45  ;;  %11464 = vst [vmem:[#allocation110_spill] sm:$0xff] %v9121_v30  ;;  %vm3517_vm10 = vcmp.eq.s32.totalorder %v5950_v53, %v3118_v57  ;;  %vm3518_vm9 = vcmp.eq.s32.totalorder %v5953_v26, %v3118_v57  ;;  %v3099_v41 = vcvt.f32.s32 %v3098_v38  ;;  %v11468_v57 = vld [vmem:[#allocation111_spill] sm:$0xff] }
 0x6d2   : > { %v5331_v59 = vsel %vm3517_vm10, 1.0, %v11418_v32  ;;  %v5332_v9 = vsel %vm3518_vm9, 1.0, %v11418_v32  ;;  %3848 = vmin.xlane.f32.xlu0 %v3847_v16  ;;  %v9131_v12 = vsel %vm3517_vm10, inf, %v11465_v19  ;;  %v9134_v11 = vsel %vm3518_vm9, inf, %v11466_v10 }
 0x6d3   : > { %11467 = vst [vmem:[#allocation64_spill] sm:$0xff] %v9134_v11  ;;  %v3102_v52 = vadd.s32 %v3101_v36, %v3099_v41  ;;  %v9136_v5 = vpop.xlane.xlu1 %3285  ;;  %v3844_v37 = vmin.f32 %v9131_v12, %v9134_v11  ;;  %v9141_v38 = vadd.f32 %v5332_v9, %v11468_v57  ;;  %v9144_v30 = vadd.f32 %v5331_v59, %v11470_v20  ;;  %v11473_v20 = vld [vmem:[#allocation24_spill] sm:$0xff] }
 0x6d4   : > { %v3085_v45 = vshll.u32 %v3084_v58, 16  ;;  %v3068_v16 = vcvt.f32.s32 %v8865_v60  ;;  %vm3287_vm12 = vcmp.eq.f32.partialorder %v8855_v2, %v9136_v5  ;;  %v3265_v36 = vand.u32 65535, %v8870_v40  ;;  %v11472_v58 = vld [vmem:[#allocation23_spill] sm:$0xff]  ;;  %v11474_v40 = vld [vmem:[#allocation113_spill] sm:$0xff] }
 0x6d5   : > { %11469 = vst [vmem:[#allocation68_spill] sm:$0xff] %v9141_v38  ;;  %11471 = vst [vmem:[#allocation73_spill] sm:$0xff] %v9144_v30  ;;  %v3082_v19 = vpop.xlane.xlu0 %3081  ;;  %vm3515_vm8 = vcmp.eq.s32.totalorder %v5950_v53, %v3102_v52  ;;  %vm3516_vm13 = vcmp.eq.s32.totalorder %v5953_v26, %v3102_v52  ;;  %v3288_v10 = vsel %vm3287_vm12, %v3283_v31, inf  ;;  %v11476_v38 = vld [vmem:[#allocation112_spill] sm:$0xff] }
 0x6d6   : > { %v3083_v41 = vcvt.f32.s32 %v3082_v19  ;;  %v5329_v9 = vsel %vm3515_vm8, 1.0, %v11418_v32  ;;  %v5330_v59 = vsel %vm3516_vm13, 1.0, %v11418_v32  ;;  %3845 = vmin.xlane.f32.xlu0 %v3844_v37  ;;  %3289 = vmin.xlane.f32.xlu1 %v3288_v10  ;;  %v9155_v60 = vsel %vm3515_vm8, inf, %v11472_v58 }
 0x6d7   : > { %v9158_v2 = vsel %vm3516_vm13, inf, %v11473_v20  ;;  %v9161_v30 = vadd.f32 %v5330_v59, %v11474_v40  ;;  %v9164_v52 = vadd.f32 %v5329_v9, %v11476_v38  ;;  %v3069_v31 = vshll.u32 %v3068_v16, 16  ;;  %v11478_v38 = vld [vmem:[#allocation14_spill] sm:$0xff]  ;;  %v11479_v16 = vld [vmem:[#allocation19_spill] sm:$0xff] }
 0x6d8   : > { %v3086_v57 = vadd.s32 %v3085_v45, %v3083_v41  ;;  %v3052_v19 = vcvt.f32.s32 %v8873_v8  ;;  %v3841_v37 = vmin.f32 %v9155_v60, %v9158_v2  ;;  %v3267_v41 = vcvt.s32.f32 %v3265_v36  ;;  %v11483_v36 = vld [vmem:[#allocation22_spill] sm:$0xff] }
 0x6d9   : > { %11475 = vst [vmem:[#allocation71_spill] sm:$0xff] %v9161_v30  ;;  %11477 = vst [vmem:[#allocation66_spill] sm:$0xff] %v9164_v52  ;;  %v3066_v11 = vpop.xlane.xlu0 %3065 }
 0x6da   : > { %vm3513_vm14 = vcmp.eq.s32.totalorder %v5950_v53, %v3086_v57  ;;  %vm3514_vm15 = vcmp.eq.s32.totalorder %v5953_v26, %v3086_v57  ;;  %v3067_v45 = vcvt.f32.s32 %v3066_v11  ;;  %3842 = vmin.xlane.f32.xlu0 %v3841_v37  ;;  %v11481_v57 = vld [vmem:[#allocation114_spill] sm:$0xff]  ;;  %v3053_v30 = vshll.u32 %v3052_v19, 16 }
 0x6db   : > { %v5327_v10 = vsel %vm3513_vm14, 1.0, %v11418_v32  ;;  %v5328_v59 = vsel %vm3514_vm15, 1.0, %v11418_v32  ;;  %v9174_v9 = vsel %vm3513_vm14, inf, %v11478_v38  ;;  %v9177_v8 = vsel %vm3514_vm15, inf, %v11479_v16 }
 0x6dc   : > { %11480 = vst [vmem:[#allocation69_spill] sm:$0xff] %v9177_v8  ;;  %v3070_v58 = vadd.s32 %v3069_v31, %v3067_v45  ;;  %v9179_v20 = vpop.xlane.xlu1 %3269  ;;  %v3838_v40 = vmin.f32 %v9174_v9, %v9177_v8  ;;  %v9184_v11 = vadd.f32 %v5328_v59, %v11481_v57  ;;  %v9187_v52 = vadd.f32 %v5327_v10, %v11483_v36  ;;  %v11486_v36 = vld [vmem:[#allocation18_spill] sm:$0xff] }
 0x6dd   : > { %v3036_v37 = vcvt.f32.s32 %v8885_v50  ;;  %v3050_v38 = vpop.xlane.xlu0 %3049  ;;  %vm3271_vm1 = vcmp.eq.f32.partialorder %v8875_v43, %v9179_v20  ;;  %v3249_v31 = vand.u32 65535, %v8887_v49  ;;  %v3020_v59 = vcvt.f32.s32 %v8896_v27  ;;  %v11485_v50 = vld [vmem:[#allocation17_spill] sm:$0xff] }
 0x6de   : > { %11482 = vst [vmem:[#allocation77_spill] sm:$0xff] %v9184_v11  ;;  %11484 = vst [vmem:[#allocation67_spill] sm:$0xff] %v9187_v52  ;;  %vm3511_vm3 = vcmp.eq.s32.totalorder %v5950_v53, %v3070_v58  ;;  %vm3512_vm4 = vcmp.eq.s32.totalorder %v5953_v26, %v3070_v58  ;;  %v3051_v45 = vcvt.f32.s32 %v3050_v38  ;;  %v3272_v16 = vsel %vm3271_vm1, %v3267_v41, inf  ;;  %3839 = vmin.xlane.f32.xlu0 %v3838_v40  ;;  %v11488_v52 = vld [vmem:[#allocation116_spill] sm:$0xff]  ;;  %v11490_v58 = vld [vmem:[#allocation115_spill] sm:$0xff] }
 0x6df   : > { %v5325_v10 = vsel %vm3511_vm3, 1.0, %v11418_v32  ;;  %v5326_v19 = vsel %vm3512_vm4, 1.0, %v11418_v32  ;;  %3273 = vmin.xlane.f32.xlu1 %v3272_v16  ;;  %v9199_v57 = vsel %vm3511_vm3, inf, %v11485_v50  ;;  %v9202_v49 = vsel %vm3512_vm4, inf, %v11486_v36 }
 0x6e0   : > { %v3054_v43 = vadd.s32 %v3053_v30, %v3051_v45  ;;  %11487 = vst [vmem:[#allocation70_spill] sm:$0xff] %v9202_v49  ;;  %v9205_v11 = vadd.f32 %v5326_v19, %v11488_v52  ;;  %v9208_v41 = vadd.f32 %v5325_v10, %v11490_v58  ;;  %v3037_v27 = vshll.u32 %v3036_v37, 16  ;;  %v11492_v37 = vld [vmem:[#allocation9_spill] sm:$0xff] }
 0x6e1   : > { %v3004_v38 = vcvt.f32.s32 %v8899_v42  ;;  %v3034_v8 = vpop.xlane.xlu0 %3033  ;;  %v3835_v40 = vmin.f32 %v9199_v57, %v9202_v49  ;;  %v3251_v45 = vcvt.s32.f32 %v3249_v31  ;;  %v11493_v42 = vld [vmem:[#allocation13_spill] sm:$0xff]  ;;  %v3021_v36 = vshll.u32 %v3020_v59, 16  ;;  %v11496_v49 = vld [vmem:[#allocation16_spill] sm:$0xff] }
 0x6e2   : > { %11489 = vst [vmem:[#allocation78_spill] sm:$0xff] %v9205_v11  ;;  %11491 = vst [vmem:[#allocation32_spill] sm:$0xff] %v9208_v41  ;;  %vm3509_vm6 = vcmp.eq.s32.totalorder %v5950_v53, %v3054_v43  ;;  %vm3510_vm11 = vcmp.eq.s32.totalorder %v5953_v26, %v3054_v43  ;;  %v3035_v30 = vcvt.f32.s32 %v3034_v8 }
 0x6e3   : > { %v5323_v16 = vsel %vm3509_vm6, 1.0, %v11418_v32  ;;  %v5324_v52 = vsel %vm3510_vm11, 1.0, %v11418_v32  ;;  %3836 = vmin.xlane.f32.xlu0 %v3835_v40  ;;  %v9217_v10 = vpop.xlane.xlu1 %3253  ;;  %v9220_v19 = vsel %vm3509_vm6, inf, %v11492_v37  ;;  %v9223_v50 = vsel %vm3510_vm11, inf, %v11493_v42  ;;  %v11494_v40 = vld [vmem:[#allocation117_spill] sm:$0xff] }
 0x6e4   : > { %v3038_v58 = vadd.s32 %v3037_v27, %v3035_v30  ;;  %v3832_v43 = vmin.f32 %v9220_v19, %v9223_v50  ;;  %vm3255_vm5 = vcmp.eq.f32.partialorder %v8894_v1, %v9217_v10  ;;  %v3005_v8 = vshll.u32 %v3004_v38, 16  ;;  %v11498_v30 = vld [vmem:[#allocation11_spill] sm:$0xff] }
 0x6e5   : > { %v3018_v31 = vpop.xlane.xlu0 %3017  ;;  %v3256_v41 = vsel %vm3255_vm5, %v3251_v45, inf  ;;  %v9230_v11 = vadd.f32 %v5324_v52, %v11494_v40  ;;  %v9233_v37 = vadd.f32 %v5323_v16, %v11496_v49  ;;  %v3484_v42 = vcvt.f32.s32 %v8906_v3  ;;  %v11500_v52 = vld [vmem:[#allocation12_spill] sm:$0xff] }
 0x6e6   : > { %vm3507_vm7 = vcmp.eq.s32.totalorder %v5950_v53, %v3038_v58  ;;  %vm3508_vm2 = vcmp.eq.s32.totalorder %v5953_v26, %v3038_v58  ;;  %v3019_v59 = vcvt.f32.s32 %v3018_v31  ;;  %3257 = vmin.xlane.f32.xlu1 %v3256_v41  ;;  %v11502_v58 = vld [vmem:[#allocation119_spill] sm:$0xff]  ;;  %v11504_v41 = vld [vmem:[#allocation118_spill] sm:$0xff] }
 0x6e7   : > { %11495 = vst [vmem:[#allocation33_spill] sm:$0xff] %v9230_v11  ;;  %11497 = vst [vmem:[#allocation27_spill] sm:$0xff] %v9233_v37  ;;  %v5321_v27 = vsel %vm3507_vm7, 1.0, %v11418_v32  ;;  %v5322_v1 = vsel %vm3508_vm2, 1.0, %v11418_v32  ;;  %3833 = vmin.xlane.f32.xlu0 %v3832_v43  ;;  %v3002_v38 = vpop.xlane.xlu1 %3001  ;;  %v9241_v45 = vsel %vm3507_vm7, inf, %v11498_v30  ;;  %v9244_v49 = vsel %vm3508_vm2, inf, %v11500_v52 }
 0x6e8   : > { %11499 = vst [vmem:[#allocation72_spill] sm:$0xff] %v9241_v45  ;;  %11501 = vst [vmem:[#allocation74_spill] sm:$0xff] %v9244_v49  ;;  %v3022_v16 = vadd.s32 %v3021_v36, %v3019_v59  ;;  %v3003_v3 = vcvt.f32.s32 %v3002_v38  ;;  %v3829_v40 = vmin.f32 %v9241_v45, %v9244_v49  ;;  %v9249_v31 = vadd.f32 %v5322_v1, %v11502_v58  ;;  %v11506_v38 = vld [vmem:[#allocation7_spill] sm:$0xff]  ;;  %v11508_v1 = vld [vmem:[#allocation8_spill] sm:$0xff] }
 0x6e9   : > { %v9252_v37 = vadd.f32 %v5321_v27, %v11504_v41  ;;  %v3485_v11 = vshll.u32 %v3484_v42, 16  ;;  %v11511_v41 = vld [vmem:[#allocation6_spill] sm:$0xff]  ;;  %v11518_v45 = vld [vmem:[#allocation121_spill] sm:$0xff] }
 0x6ea   : > { %11503 = vst [vmem:[#allocation26_spill] sm:$0xff] %v9249_v31  ;;  %vm3505_vm0 = vcmp.eq.s32.totalorder %v5950_v53, %v3022_v16  ;;  %vm3506_vm10 = vcmp.eq.s32.totalorder %v5953_v26, %v3022_v16  ;;  %v3006_v43 = vadd.s32 %v3005_v8, %v3003_v3  ;;  %3830 = vmin.xlane.f32.xlu1 %v3829_v40  ;;  %v11510_v3 = vld [vmem:[#allocation5_spill] sm:$0xff]  ;;  %v11514_v31 = vld [vmem:[#allocation10_spill] sm:$0xff] }
 0x6eb   : > { %11505 = vst [vmem:[#allocation63_spill] sm:$0xff] %v9252_v37  ;;  %v5319_v30 = vsel %vm3505_vm0, 1.0, %v11418_v32  ;;  %v5320_v36 = vsel %vm3506_vm10, 1.0, %v11418_v32  ;;  %v3482_v59 = vpop.xlane.xlu1 %3481  ;;  %v9259_v52 = vsel %vm3505_vm0, inf, %v11506_v38  ;;  %v9262_v58 = vsel %vm3506_vm10, inf, %v11508_v1 }
 0x6ec   : > { %11507 = vst [vmem:[#allocation75_spill] sm:$0xff] %v9259_v52  ;;  %11509 = vst [vmem:[#allocation76_spill] sm:$0xff] %v9262_v58  ;;  %vm3503_vm9 = vcmp.eq.s32.totalorder %v5950_v53, %v3006_v43  ;;  %vm3504_vm12 = vcmp.eq.s32.totalorder %v5953_v26, %v3006_v43  ;;  %v3483_v42 = vcvt.f32.s32 %v3482_v59  ;;  %v3826_v8 = vmin.f32 %v9259_v52, %v9262_v58  ;;  %v11512_v43 = vld [vmem:[#allocation120_spill] sm:$0xff]  ;;  %v11516_v52 = vld [vmem:[#allocation122_spill] sm:$0xff] }
 0x6ed   : > { %v5317_v27 = vsel %vm3503_vm9, 1.0, %v11418_v32  ;;  %v5318_v16 = vsel %vm3504_vm12, 1.0, %v11418_v32  ;;  %v9271_v40 = vsel %vm3503_vm9, inf, %v11510_v3  ;;  %v9274_v38 = vsel %vm3504_vm12, inf, %v11511_v41 }
 0x6ee   : > { %v3486_v1 = vadd.s32 %v3485_v11, %v3483_v42  ;;  %3827 = vmin.xlane.f32.xlu0 %v3826_v8  ;;  %v3823_v37 = vmin.f32 %v9271_v40, %v9274_v38  ;;  %v9279_v59 = vadd.f32 %v5320_v36, %v11512_v43  ;;  %v9282_v58 = vadd.f32 %v5319_v30, %v11514_v31  ;;  %v11520_v36 = vld [vmem:[#allocation79_spill] sm:$0xff] }
 0x6ef   : > { %v9285_v49 = vadd.f32 %v5318_v16, %v11516_v52  ;;  %v9288_v3 = vadd.f32 %v5317_v27, %v11518_v45  ;;  %v11521_v31 = vld [vmem:[#allocation59_spill] sm:$0xff]  ;;  %v11524_v16 = vld [vmem:[#allocation60_spill] sm:$0xff] }
 0x6f0   : > { %11513 = vst [vmem:[#allocation21_spill] sm:$0xff] %v9279_v59  ;;  %11515 = vst [vmem:[#allocation65_spill] sm:$0xff] %v9282_v58  ;;  %vm3563_vm8 = vcmp.eq.s32.totalorder %v5950_v53, %v3486_v1  ;;  %vm3564_vm13 = vcmp.eq.s32.totalorder %v5953_v26, %v3486_v1  ;;  %3824 = vmin.xlane.f32.xlu1 %v3823_v37  ;;  %v11522_v45 = vld [vmem:[#allocation123_spill] sm:$0xff]  ;;  %v3500_v37 = vcvt.f32.s32 %v8911_v54  ;;  %v3468_v1 = vcvt.f32.s32 %v8916_v35  ;;  %v11526_v54 = vld [vmem:[#allocation85_spill] sm:$0xff] }
 0x6f1   : > { %11517 = vst [vmem:[#allocation20_spill] sm:$0xff] %v9285_v49  ;;  %11519 = vst [vmem:[#allocation36_spill] sm:$0xff] %v9288_v3  ;;  %v5377_v11 = vsel %vm3563_vm8, 1.0, %v11418_v32  ;;  %v5378_v42 = vsel %vm3564_vm13, 1.0, %v11418_v32  ;;  %v9295_v8 = vsel %vm3563_vm8, inf, %v11520_v36  ;;  %v9298_v30 = vsel %vm3564_vm13, inf, %v11521_v31 }
 0x6f2   : > { %v3913_v52 = vmin.f32 %v9295_v8, %v9298_v30  ;;  %v9303_v27 = vadd.f32 %v5378_v42, %v11522_v45  ;;  %v9306_v41 = vadd.f32 %v5377_v11, %v11524_v16  ;;  %v3501_v36 = vshll.u32 %v3500_v37, 16  ;;  %v11527_v35 = vld [vmem:[#allocation61_spill] sm:$0xff] }
 0x6f3   : > { %v3469_v31 = vshll.u32 %v3468_v1, 16  ;;  %v3452_v59 = vcvt.f32.s32 %v8921_v7  ;;  %v11528_v7 = vld [vmem:[#allocation124_spill] sm:$0xff] }
 0x6f4   : > { %11523 = vst [vmem:[#allocation35_spill] sm:$0xff] %v9303_v27  ;;  %11525 = vst [vmem:[#allocation34_spill] sm:$0xff] %v9306_v41  ;;  %3914 = vmin.xlane.f32.xlu1 %v3913_v52  ;;  %v3420_v27 = vcvt.f32.s32 %v8931_v63 }
 0x6f5   : > { %v3453_v41 = vshll.u32 %v3452_v59, 16  ;;  %v11535_v59 = vld [vmem:[#allocation58_spill] sm:$0xff] }
 0x6fd   : > { %v3498_v43 = vpop.xlane.xlu0 %3497 }
 0x6fe   : > { %v3499_v3 = vcvt.f32.s32 %v3498_v43  ;;  %v11530_v43 = vld [vmem:[#allocation62_spill] sm:$0xff] }
 0x700   : > { %v3502_v49 = vadd.s32 %v3501_v36, %v3499_v3 }
 0x701   : > { %v3466_v58 = vpop.xlane.xlu0 %3465 }
 0x702   : > { %vm3565_vm14 = vcmp.eq.s32.totalorder %v5950_v53, %v3502_v49  ;;  %vm3566_vm15 = vcmp.eq.s32.totalorder %v5953_v26, %v3502_v49  ;;  %v3467_v42 = vcvt.f32.s32 %v3466_v58  ;;  %v3436_v58 = vcvt.f32.s32 %v8926_v25 }
 0x703   : > { %v5379_v11 = vsel %vm3565_vm14, 1.0, %v11418_v32  ;;  %v5380_v52 = vsel %vm3566_vm15, 1.0, %v11418_v32  ;;  %v9316_v45 = vsel %vm3565_vm14, inf, %v11526_v54  ;;  %v9319_v16 = vsel %vm3566_vm15, inf, %v11527_v35  ;;  %v11532_v35 = vld [vmem:[#allocation87_spill] sm:$0xff] }
 0x704   : > { %v3470_v3 = vadd.s32 %v3469_v31, %v3467_v42  ;;  %v3916_v37 = vmin.f32 %v9316_v45, %v9319_v16  ;;  %v9324_v1 = vadd.f32 %v5380_v52, %v11528_v7  ;;  %v9327_v49 = vadd.f32 %v5379_v11, %v11530_v43  ;;  %v11533_v7 = vld [vmem:[#allocation101_spill] sm:$0xff] }
 0x706   : > { %11529 = vst [vmem:[#allocation31_spill] sm:$0xff] %v9324_v1  ;;  %11531 = vst [vmem:[#allocation30_spill] sm:$0xff] %v9327_v49  ;;  %v3450_v36 = vpop.xlane.xlu1 %3449  ;;  %vm3561_vm1 = vcmp.eq.s32.totalorder %v5950_v53, %v3470_v3  ;;  %vm3562_vm3 = vcmp.eq.s32.totalorder %v5953_v26, %v3470_v3  ;;  %3917 = vmin.xlane.f32.xlu0 %v3916_v37  ;;  %v11537_v3 = vld [vmem:[#allocation57_spill] sm:$0xff]  ;;  %v3437_v37 = vshll.u32 %v3436_v58, 16 }
 0x707   : > { %v3451_v54 = vcvt.f32.s32 %v3450_v36  ;;  %v5375_v31 = vsel %vm3561_vm1, 1.0, %v11418_v32  ;;  %v5376_v42 = vsel %vm3562_vm3, 1.0, %v11418_v32  ;;  %v9335_v52 = vsel %vm3561_vm1, inf, %v11532_v35 }
 0x708   : > { %v9338_v11 = vsel %vm3562_vm3, inf, %v11533_v7  ;;  %v9343_v49 = vadd.f32 %v5376_v42, %v11535_v59  ;;  %v9346_v36 = vadd.f32 %v5375_v31, %v11537_v3  ;;  %v11539_v7 = vld [vmem:[#allocation80_spill] sm:$0xff]  ;;  %v11540_v59 = vld [vmem:[#allocation103_spill] sm:$0xff] }
 0x709   : > { %11534 = vst [vmem:[#allocation29_spill] sm:$0xff] %v9338_v11  ;;  %v3454_v43 = vadd.s32 %v3453_v41, %v3451_v54  ;;  %v3910_v25 = vmin.f32 %v9335_v52, %v9338_v11  ;;  %v11542_v3 = vld [vmem:[#allocation56_spill] sm:$0xff]  ;;  %v3421_v11 = vshll.u32 %v3420_v27, 16  ;;  %v11549_v27 = vld [vmem:[#allocation54_spill] sm:$0xff] }
 0x70a   : > { %11536 = vst [vmem:[#allocation15_spill] sm:$0xff] %v9343_v49  ;;  %11538 = vst [vmem:[#allocation25_spill] sm:$0xff] %v9346_v36  ;;  %v3434_v1 = vpop.xlane.xlu1 %3433 }
 0x70b   : > { %vm3559_vm4 = vcmp.eq.s32.totalorder %v5950_v53, %v3454_v43  ;;  %vm3560_vm6 = vcmp.eq.s32.totalorder %v5953_v26, %v3454_v43  ;;  %v3435_v35 = vcvt.f32.s32 %v3434_v1  ;;  %3911 = vmin.xlane.f32.xlu0 %v3910_v25  ;;  %v11544_v43 = vld [vmem:[#allocation55_spill] sm:$0xff]  ;;  %v3404_v25 = vcvt.f32.s32 %v8936_v24 }
 0x70c   : > { %v5373_v41 = vsel %vm3559_vm4, 1.0, %v11418_v32  ;;  %v5374_v54 = vsel %vm3560_vm6, 1.0, %v11418_v32  ;;  %v9354_v42 = vsel %vm3559_vm4, inf, %v11539_v7  ;;  %v9357_v31 = vsel %vm3560_vm6, inf, %v11540_v59  ;;  %v11546_v59 = vld [vmem:[#allocation81_spill] sm:$0xff] }
 0x70d   : > { %11541 = vst [vmem:[#allocation111_spill] sm:$0xff] %v9357_v31  ;;  %v3438_v58 = vadd.s32 %v3437_v37, %v3435_v35  ;;  %v3907_v63 = vmin.f32 %v9354_v42, %v9357_v31  ;;  %v9362_v36 = vadd.f32 %v5374_v54, %v11542_v3  ;;  %v9365_v1 = vadd.f32 %v5373_v41, %v11544_v43  ;;  %v11547_v3 = vld [vmem:[#allocation102_spill] sm:$0xff] }
 0x70e   : > { %v3418_v49 = vpop.xlane.xlu1 %3417  ;;  %v3388_v31 = vcvt.f32.s32 %v8941_v55 }
 0x70f   : > { %11543 = vst [vmem:[#allocation28_spill] sm:$0xff] %v9362_v36  ;;  %11545 = vst [vmem:[#allocation23_spill] sm:$0xff] %v9365_v1  ;;  %vm3557_vm11 = vcmp.eq.s32.totalorder %v5950_v53, %v3438_v58  ;;  %vm3558_vm5 = vcmp.eq.s32.totalorder %v5953_v26, %v3438_v58  ;;  %v3419_v7 = vcvt.f32.s32 %v3418_v49  ;;  %3908 = vmin.xlane.f32.xlu1 %v3907_v63  ;;  %v11551_v58 = vld [vmem:[#allocation53_spill] sm:$0xff]  ;;  %v3405_v63 = vshll.u32 %v3404_v25, 16 }
 0x710   : > { %v5371_v37 = vsel %vm3557_vm11, 1.0, %v11418_v32  ;;  %v5372_v35 = vsel %vm3558_vm5, 1.0, %v11418_v32  ;;  %v9373_v54 = vsel %vm3557_vm11, inf, %v11546_v59  ;;  %v9376_v41 = vsel %vm3558_vm5, inf, %v11547_v3  ;;  %v11553_v3 = vld [vmem:[#allocation82_spill] sm:$0xff] }
 0x711   : > { %11548 = vst [vmem:[#allocation24_spill] sm:$0xff] %v9376_v41  ;;  %v3422_v43 = vadd.s32 %v3421_v11, %v3419_v7  ;;  %v3904_v24 = vmin.f32 %v9373_v54, %v9376_v41  ;;  %v9381_v1 = vadd.f32 %v5372_v35, %v11549_v27  ;;  %v9384_v49 = vadd.f32 %v5371_v37, %v11551_v58  ;;  %v11554_v27 = vld [vmem:[#allocation104_spill] sm:$0xff] }
 0x712   : > { %v11556_v58 = vld [vmem:[#allocation52_spill] sm:$0xff]  ;;  %v3389_v41 = vshll.u32 %v3388_v31, 16  ;;  %v11562_v31 = vld [vmem:[#allocation50_spill] sm:$0xff] }
 0x713   : > { %11550 = vst [vmem:[#allocation113_spill] sm:$0xff] %v9381_v1  ;;  %11552 = vst [vmem:[#allocation112_spill] sm:$0xff] %v9384_v49  ;;  %v3402_v36 = vpop.xlane.xlu1 %3401  ;;  %vm3555_vm7 = vcmp.eq.s32.totalorder %v5950_v53, %v3422_v43  ;;  %vm3556_vm2 = vcmp.eq.s32.totalorder %v5953_v26, %v3422_v43  ;;  %3905 = vmin.xlane.f32.xlu1 %v3904_v24  ;;  %v11558_v43 = vld [vmem:[#allocation51_spill] sm:$0xff]  ;;  %v3372_v24 = vcvt.f32.s32 %v8946_v13 }
 0x714   : > { %v3403_v59 = vcvt.f32.s32 %v3402_v36  ;;  %v5369_v11 = vsel %vm3555_vm7, 1.0, %v11418_v32  ;;  %v5370_v7 = vsel %vm3556_vm2, 1.0, %v11418_v32  ;;  %v9392_v35 = vsel %vm3555_vm7, inf, %v11553_v3 }
 0x715   : > { %v9395_v37 = vsel %vm3556_vm2, inf, %v11554_v27  ;;  %v9400_v49 = vadd.f32 %v5370_v7, %v11556_v58  ;;  %v9403_v36 = vadd.f32 %v5369_v11, %v11558_v43  ;;  %v11560_v27 = vld [vmem:[#allocation83_spill] sm:$0xff]  ;;  %v11561_v58 = vld [vmem:[#allocation105_spill] sm:$0xff] }
 0x716   : > { %11555 = vst [vmem:[#allocation14_spill] sm:$0xff] %v9395_v37  ;;  %v3406_v25 = vadd.s32 %v3405_v63, %v3403_v59  ;;  %v3901_v55 = vmin.f32 %v9392_v35, %v9395_v37  ;;  %v3356_v37 = vcvt.f32.s32 %v8951_v0 }
 0x717   : > { %11557 = vst [vmem:[#allocation19_spill] sm:$0xff] %v9400_v49  ;;  %11559 = vst [vmem:[#allocation114_spill] sm:$0xff] %v9403_v36  ;;  %v3386_v1 = vpop.xlane.xlu1 %3385 }
 0x718   : > { %vm3553_vm0 = vcmp.eq.s32.totalorder %v5950_v53, %v3406_v25  ;;  %vm3554_vm10 = vcmp.eq.s32.totalorder %v5953_v26, %v3406_v25  ;;  %v3387_v3 = vcvt.f32.s32 %v3386_v1  ;;  %3902 = vmin.xlane.f32.xlu1 %v3901_v55  ;;  %v11564_v25 = vld [vmem:[#allocation49_spill] sm:$0xff]  ;;  %v3373_v55 = vshll.u32 %v3372_v24, 16 }
 0x719   : > { %v5367_v63 = vsel %vm3553_vm0, 1.0, %v11418_v32  ;;  %v5368_v59 = vsel %vm3554_vm10, 1.0, %v11418_v32  ;;  %v9411_v7 = vsel %vm3553_vm0, inf, %v11560_v27  ;;  %v9414_v11 = vsel %vm3554_vm10, inf, %v11561_v58  ;;  %v11566_v58 = vld [vmem:[#allocation84_spill] sm:$0xff] }
 0x71a   : > { %v3390_v43 = vadd.s32 %v3389_v41, %v3387_v3  ;;  %v3898_v13 = vmin.f32 %v9411_v7, %v9414_v11  ;;  %v9419_v36 = vadd.f32 %v5368_v59, %v11562_v31  ;;  %v9422_v1 = vadd.f32 %v5367_v63, %v11564_v25  ;;  %v11567_v31 = vld [vmem:[#allocation106_spill] sm:$0xff]  ;;  %v11569_v25 = vld [vmem:[#allocation48_spill] sm:$0xff] }
 0x71c   : > { %11563 = vst [vmem:[#allocation22_spill] sm:$0xff] %v9419_v36  ;;  %11565 = vst [vmem:[#allocation17_spill] sm:$0xff] %v9422_v1  ;;  %v3370_v49 = vpop.xlane.xlu1 %3369  ;;  %vm3551_vm9 = vcmp.eq.s32.totalorder %v5950_v53, %v3390_v43  ;;  %vm3552_vm12 = vcmp.eq.s32.totalorder %v5953_v26, %v3390_v43  ;;  %3899 = vmin.xlane.f32.xlu1 %v3898_v13  ;;  %v11571_v43 = vld [vmem:[#allocation47_spill] sm:$0xff]  ;;  %v3357_v36 = vshll.u32 %v3356_v37, 16 }
 0x71d   : > { %v3371_v27 = vcvt.f32.s32 %v3370_v49  ;;  %v5365_v41 = vsel %vm3551_vm9, 1.0, %v11418_v32  ;;  %v5366_v3 = vsel %vm3552_vm12, 1.0, %v11418_v32  ;;  %v9430_v59 = vsel %vm3551_vm9, inf, %v11566_v58 }
 0x71e   : > { %v9433_v63 = vsel %vm3552_vm12, inf, %v11567_v31  ;;  %v9438_v1 = vadd.f32 %v5366_v3, %v11569_v25  ;;  %v9441_v49 = vadd.f32 %v5365_v41, %v11571_v43  ;;  %v11574_v3 = vld [vmem:[#allocation45_spill] sm:$0xff] }
 0x71f   : > { %11568 = vst [vmem:[#allocation18_spill] sm:$0xff] %v9433_v63  ;;  %v3374_v24 = vadd.s32 %v3373_v55, %v3371_v27  ;;  %v3895_v0 = vmin.f32 %v9430_v59, %v9433_v63  ;;  %v11573_v27 = vld [vmem:[#allocation86_spill] sm:$0xff]  ;;  %v11575_v43 = vld [vmem:[#allocation125_spill] sm:$0xff] }
 0x720   : > { %11570 = vst [vmem:[#allocation116_spill] sm:$0xff] %v9438_v1  ;;  %11572 = vst [vmem:[#allocation115_spill] sm:$0xff] %v9441_v49  ;;  %v3354_v13 = vpop.xlane.xlu1 %3353 }
 0x721   : > { %vm3549_vm8 = vcmp.eq.s32.totalorder %v5950_v53, %v3374_v24  ;;  %vm3550_vm13 = vcmp.eq.s32.totalorder %v5953_v26, %v3374_v24  ;;  %v3355_v58 = vcvt.f32.s32 %v3354_v13  ;;  %3896 = vmin.xlane.f32.xlu1 %v3895_v0  ;;  %v11577_v24 = vld [vmem:[#allocation46_spill] sm:$0xff] }
 0x722   : > { %v5363_v31 = vsel %vm3549_vm8, 1.0, %v11418_v32  ;;  %v5364_v55 = vsel %vm3550_vm13, 1.0, %v11418_v32  ;;  %v9448_v63 = vsel %vm3549_vm8, inf, %v11573_v27  ;;  %v9451_v25 = vsel %vm3550_vm13, inf, %v11574_v3  ;;  %v11579_v3 = vld [vmem:[#allocation88_spill] sm:$0xff] }
 0x723   : > { %v3358_v41 = vadd.s32 %v3357_v36, %v3355_v58  ;;  %v3892_v37 = vmin.f32 %v9448_v63, %v9451_v25  ;;  %v9456_v49 = vadd.f32 %v5364_v55, %v11575_v43  ;;  %v9459_v13 = vadd.f32 %v5363_v31, %v11577_v24  ;;  %v11580_v58 = vld [vmem:[#allocation43_spill] sm:$0xff]  ;;  %v11581_v31 = vld [vmem:[#allocation126_spill] sm:$0xff]  ;;  %v11583_v24 = vld [vmem:[#allocation44_spill] sm:$0xff] }
 0x725   : > { %11576 = vst [vmem:[#allocation9_spill] sm:$0xff] %v9456_v49  ;;  %11578 = vst [vmem:[#allocation13_spill] sm:$0xff] %v9459_v13  ;;  %vm3547_vm14 = vcmp.eq.s32.totalorder %v5950_v53, %v3358_v41  ;;  %vm3548_vm15 = vcmp.eq.s32.totalorder %v5953_v26, %v3358_v41  ;;  %3893 = vmin.xlane.f32.xlu1 %v3892_v37 }
 0x726   : > { %v5361_v0 = vsel %vm3547_vm14, 1.0, %v11418_v32  ;;  %v5362_v27 = vsel %vm3548_vm15, 1.0, %v11418_v32  ;;  %v9466_v36 = vsel %vm3547_vm14, inf, %v11579_v3  ;;  %v9469_v1 = vsel %vm3548_vm15, inf, %v11580_v58 }
 0x727   : > { %v3889_v55 = vmin.f32 %v9466_v36, %v9469_v1  ;;  %v9474_v43 = vadd.f32 %v5362_v27, %v11581_v31  ;;  %v9477_v13 = vadd.f32 %v5361_v0, %v11583_v24  ;;  %v3340_v24 = vcvt.f32.s32 %v9007_v18 }
 0x728   : > { %v3324_v18 = vcvt.f32.s32 %v9050_v29 }
 0x729   : > { %11582 = vst [vmem:[#allocation117_spill] sm:$0xff] %v9474_v43  ;;  %11584 = vst [vmem:[#allocation16_spill] sm:$0xff] %v9477_v13  ;;  %3890 = vmin.xlane.f32.xlu1 %v3889_v55 }
 0x735   : > { %v3870_v41 = vpop.xlane.xlu0 %3869 }
 0x736   : > { %vm3949_vm1 = vcmp.eq.f32.partialorder %v8960_v22, %v3870_v41  ;;  %vm3950_vm3 = vcmp.eq.f32.partialorder %v8963_v6, %v3870_v41 }
 0x737   : > { %v4013_v37 = vsel %vm3949_vm1, %v5950_v53, 256  ;;  %v4014_v3 = vsel %vm3950_vm3, %v5953_v26, 256 }
 0x738   : > { %vm4287_vm4 = vcmp.lt.s32.totalorder %v4013_v37, %v4014_v3 }
 0x739   : > { %v9483_v49 = vsel %vm4287_vm4, %v4013_v37, %v4014_v3  ;;  %v3341_v37 = vshll.u32 %v3340_v24, 16 }
 0x73a   : > { %v3867_v58 = vpop.xlane.xlu0 %3866  ;;  %v4290_v0 = vshra.s32 %v9483_v49, 16 }
 0x73b   : > { %vm3947_vm6 = vcmp.eq.f32.partialorder %v8981_v56, %v3867_v58  ;;  %vm3948_vm11 = vcmp.eq.f32.partialorder %v8984_v17, %v3867_v58 }
 0x73c   : > { %v4011_v27 = vsel %vm3947_vm6, %v5950_v53, 256  ;;  %v4012_v22 = vsel %vm3948_vm11, %v5953_v26, 256  ;;  %v9490_v6 = vcvt.s32.f32 %v4290_v0 }
 0x73d   : > { %vm4271_vm5 = vcmp.lt.s32.totalorder %v4011_v27, %v4012_v22 }
 0x73e   : > { %v9492_v55 = vsel %vm4271_vm5, %v4011_v27, %v4012_v22  ;;  %4293 = vmin.xlane.f32.xlu0 %v9490_v6 }
 0x73f   : > { %v4274_v31 = vshra.s32 %v9492_v55, 16 }
 0x741   : > { %v9497_v56 = vcvt.s32.f32 %v4274_v31 }
 0x743   : > { %4277 = vmin.xlane.f32.xlu0 %v9497_v56 }
 0x745   : > { %v3864_v17 = vpop.xlane.xlu0 %3863 }
 0x746   : > { %vm3945_vm7 = vcmp.eq.f32.partialorder %v9002_v14, %v3864_v17  ;;  %vm3946_vm2 = vcmp.eq.f32.partialorder %v9005_v15, %v3864_v17  ;;  %v3338_v41 = vpop.xlane.xlu1 %3337 }
 0x747   : > { %v4009_v3 = vsel %vm3945_vm7, %v5950_v53, 256  ;;  %v4010_v58 = vsel %vm3946_vm2, %v5953_v26, 256  ;;  %v3339_v0 = vcvt.f32.s32 %v3338_v41 }
 0x748   : > { %vm4255_vm0 = vcmp.lt.s32.totalorder %v4009_v3, %v4010_v58 }
 0x749   : > { %v3342_v27 = vadd.s32 %v3341_v37, %v3339_v0  ;;  %v9504_v22 = vsel %vm4255_vm0, %v4009_v3, %v4010_v58 }
 0x74a   : > { %v3861_v31 = vpop.xlane.xlu0 %3860  ;;  %v4258_v13 = vshra.s32 %v9504_v22, 16 }
 0x74b   : > { %vm3545_vm10 = vcmp.eq.s32.totalorder %v5950_v53, %v3342_v27  ;;  %vm3546_vm9 = vcmp.eq.s32.totalorder %v5953_v26, %v3342_v27  ;;  %vm3943_vm12 = vcmp.eq.f32.partialorder %v9026_v34, %v3861_v31  ;;  %vm3944_vm8 = vcmp.eq.f32.partialorder %v9029_v21, %v3861_v31  ;;  %v11585_v27 = vld [vmem:[#allocation130_spill] sm:$0xff] }
 0x74c   : > { %v5359_v14 = vsel %vm3545_vm10, 1.0, %v11418_v32  ;;  %v5360_v15 = vsel %vm3546_vm9, 1.0, %v11418_v32  ;;  %v4007_v24 = vsel %vm3943_vm12, %v5950_v53, 256  ;;  %v4008_v17 = vsel %vm3944_vm8, %v5953_v26, 256 }
 0x74d   : > { %vm4239_vm13 = vcmp.lt.s32.totalorder %v4007_v24, %v4008_v17  ;;  %v9516_v29 = vcvt.s32.f32 %v4258_v13  ;;  %v9519_v41 = vsel %vm3545_vm10, inf, %v8373_v33  ;;  %v9522_v37 = vsel %vm3546_vm9, inf, %v8376_v61 }
 0x74e   : > { %v3325_v34 = vshll.u32 %v3324_v18, 16  ;;  %v3858_v3 = vpop.xlane.xlu0 %3857  ;;  %v3322_v21 = vpop.xlane.xlu1 %3321  ;;  %v3886_v58 = vmin.f32 %v9519_v41, %v9522_v37  ;;  %v9526_v0 = vsel %vm4239_vm13, %v4007_v24, %v4008_v17  ;;  %v9529_v31 = vadd.f32 %v5360_v15, %v11585_v27  ;;  %v11587_v24 = vld [vmem:[#allocation89_spill] sm:$0xff]  ;;  %v11589_v27 = vld [vmem:[#allocation92_spill] sm:$0xff] }
 0x74f   : > { %vm3941_vm14 = vcmp.eq.f32.partialorder %v9045_v39, %v3858_v3  ;;  %vm3942_vm15 = vcmp.eq.f32.partialorder %v9048_v44, %v3858_v3  ;;  %v3323_v33 = vcvt.f32.s32 %v3322_v21  ;;  %4261 = vmin.xlane.f32.xlu0 %v9516_v29  ;;  %v4242_v61 = vshra.s32 %v9526_v0, 16 }
 0x750   : > { %11586 = vst [vmem:[#allocation11_spill] sm:$0xff] %v9529_v31  ;;  %v3308_v13 = vcvt.f32.s32 %v9093_v4  ;;  %v4005_v18 = vsel %vm3941_vm14, %v5950_v53, 256  ;;  %v4006_v43 = vsel %vm3942_vm15, %v5953_v26, 256  ;;  %3887 = vmin.xlane.f32.xlu1 %v3886_v58  ;;  %v9539_v17 = vadd.f32 %v5359_v14, %v11587_v24  ;;  %v11590_v24 = vld [vmem:[#allocation91_spill] sm:$0xff] }
 0x751   : > { %vm4223_vm1 = vcmp.lt.s32.totalorder %v4005_v18, %v4006_v43  ;;  %v3326_v15 = vadd.s32 %v3325_v34, %v3323_v33  ;;  %v9541_v39 = vcvt.s32.f32 %v4242_v61 }
 0x752   : > { %11588 = vst [vmem:[#allocation12_spill] sm:$0xff] %v9539_v17  ;;  %v3855_v44 = vpop.xlane.xlu0 %3854  ;;  %v9543_v3 = vsel %vm4223_vm1, %v4005_v18, %v4006_v43  ;;  %v3309_v4 = vshll.u32 %v3308_v13, 16 }
 0x753   : > { %vm3543_vm3 = vcmp.eq.s32.totalorder %v5950_v53, %v3326_v15  ;;  %vm3544_vm4 = vcmp.eq.s32.totalorder %v5953_v26, %v3326_v15  ;;  %vm3939_vm6 = vcmp.eq.f32.partialorder %v9069_v23, %v3855_v44  ;;  %vm3940_vm11 = vcmp.eq.f32.partialorder %v9072_v62, %v3855_v44  ;;  %4245 = vmin.xlane.f32.xlu0 %v9541_v39 }
 0x754   : > { %v5358_v14 = vsel %vm3544_vm4, 1.0, %v11418_v32  ;;  %v4003_v34 = vsel %vm3939_vm6, %v5950_v53, 256  ;;  %v4004_v21 = vsel %vm3940_vm11, %v5953_v26, 256  ;;  %v4226_v43 = vshra.s32 %v9543_v3, 16 }
 0x755   : > { %vm4207_vm5 = vcmp.lt.s32.totalorder %v4003_v34, %v4004_v21  ;;  %v9555_v58 = vsel %vm3543_vm3, inf, %v8424_v28  ;;  %v9558_v33 = vsel %vm3544_vm4, inf, %v11589_v27  ;;  %v5357_v23 = vsel %vm3543_vm3, 1.0, %v11418_v32 }
 0x756   : > { %v3852_v62 = vpop.xlane.xlu0 %3851  ;;  %v3883_v13 = vmin.f32 %v9555_v58, %v9558_v33  ;;  %v9563_v18 = vsel %vm4207_vm5, %v4003_v34, %v4004_v21  ;;  %v9566_v15 = vadd.f32 %v5358_v14, %v11590_v24  ;;  %v9570_v44 = vcvt.s32.f32 %v4226_v43  ;;  %v11592_v14 = vld [vmem:[#allocation90_spill] sm:$0xff] }
 0x757   : > { %v3306_v61 = vpop.xlane.xlu1 %3305  ;;  %vm3937_vm7 = vcmp.eq.f32.partialorder %v9088_v48, %v3852_v62  ;;  %vm3938_vm2 = vcmp.eq.f32.partialorder %v9091_v46, %v3852_v62  ;;  %v3292_v27 = vcvt.f32.s32 %v9136_v5  ;;  %v4210_v34 = vshra.s32 %v9563_v18, 16 }
 0x758   : > { %11591 = vst [vmem:[#allocation119_spill] sm:$0xff] %v9566_v15  ;;  %v3307_v28 = vcvt.f32.s32 %v3306_v61  ;;  %v4001_v17 = vsel %vm3937_vm7, %v5950_v53, 256  ;;  %v4002_v31 = vsel %vm3938_vm2, %v5953_v26, 256  ;;  %3884 = vmin.xlane.f32.xlu1 %v3883_v13  ;;  %4229 = vmin.xlane.f32.xlu0 %v9570_v44  ;;  %v9578_v48 = vadd.f32 %v5357_v23, %v11592_v14  ;;  %v11595_v13 = vld [vmem:[#allocation96_spill] sm:$0xff] }
 0x759   : > { %vm4191_vm0 = vcmp.lt.s32.totalorder %v4001_v17, %v4002_v31  ;;  %v9582_v62 = vcvt.s32.f32 %v4210_v34  ;;  %v3293_v5 = vshll.u32 %v3292_v27, 16  ;;  %v11597_v14 = vld [vmem:[#allocation64_spill] sm:$0xff] }
 0x75a   : > { %v3310_v21 = vadd.s32 %v3309_v4, %v3307_v28  ;;  %11593 = vst [vmem:[#allocation118_spill] sm:$0xff] %v9578_v48  ;;  %v9580_v46 = vsel %vm4191_vm0, %v4001_v17, %v4002_v31  ;;  %v11594_v17 = vld [vmem:[#allocation95_spill] sm:$0xff] }
 0x75b   : > { %v3849_v43 = vpop.xlane.xlu0 %3848  ;;  %v4194_v31 = vshra.s32 %v9580_v46, 16 }
 0x75c   : > { %vm3541_vm10 = vcmp.eq.s32.totalorder %v5950_v53, %v3310_v21  ;;  %vm3542_vm9 = vcmp.eq.s32.totalorder %v5953_v26, %v3310_v21  ;;  %vm3935_vm12 = vcmp.eq.f32.partialorder %v9112_v51, %v3849_v43  ;;  %vm3936_vm8 = vcmp.eq.f32.partialorder %v9115_v47, %v3849_v43  ;;  %4213 = vmin.xlane.f32.xlu0 %v9582_v62 }
 0x75d   : > { %v3999_v4 = vsel %vm3935_vm12, %v5950_v53, 256  ;;  %v4000_v61 = vsel %vm3936_vm8, %v5953_v26, 256  ;;  %v9593_v23 = vsel %vm3541_vm10, inf, %v11594_v17  ;;  %v9596_v24 = vsel %vm3542_vm9, inf, %v11595_v13 }
 0x75e   : > { %vm4175_vm13 = vcmp.lt.s32.totalorder %v3999_v4, %v4000_v61  ;;  %11596 = vst [vmem:[#allocation7_spill] sm:$0xff] %v9596_v24  ;;  %v5355_v51 = vsel %vm3541_vm10, 1.0, %v11418_v32  ;;  %v5356_v47 = vsel %vm3542_vm9, 1.0, %v11418_v32  ;;  %v3880_v21 = vmin.f32 %v9593_v23, %v9596_v24  ;;  %v11598_v24 = vld [vmem:[#allocation94_spill] sm:$0xff] }
 0x75f   : > { %v9600_v28 = vsel %vm4175_vm13, %v3999_v4, %v4000_v61  ;;  %v3846_v27 = vpop.xlane.xlu0 %3845  ;;  %v3290_v34 = vpop.xlane.xlu1 %3289  ;;  %v9606_v17 = vcvt.s32.f32 %v4194_v31  ;;  %v3276_v13 = vcvt.f32.s32 %v9179_v20  ;;  %v11601_v20 = vld [vmem:[#allocation93_spill] sm:$0xff] }
 0x760   : > { %vm3933_vm14 = vcmp.eq.f32.partialorder %v9131_v12, %v3846_v27  ;;  %vm3934_vm15 = vcmp.eq.f32.partialorder %v11597_v14, %v3846_v27  ;;  %v3291_v43 = vcvt.f32.s32 %v3290_v34  ;;  %3881 = vmin.xlane.f32.xlu1 %v3880_v21  ;;  %v4178_v4 = vshra.s32 %v9600_v28, 16  ;;  %v11604_v21 = vld [vmem:[#allocation42_spill] sm:$0xff] }
 0x761   : > { %v3997_v48 = vsel %vm3933_vm14, %v5950_v53, 256  ;;  %v3998_v15 = vsel %vm3934_vm15, %v5953_v26, 256  ;;  %4197 = vmin.xlane.f32.xlu0 %v9606_v17  ;;  %v9614_v12 = vadd.f32 %v5356_v47, %v11598_v24  ;;  %v9621_v14 = vadd.f32 %v5355_v51, %v11601_v20  ;;  %v11603_v51 = vld [vmem:[#allocation41_spill] sm:$0xff] }
 0x762   : > { %vm4159_vm1 = vcmp.lt.s32.totalorder %v3997_v48, %v3998_v15  ;;  %v3294_v61 = vadd.s32 %v3293_v5, %v3291_v43  ;;  %v9618_v34 = vcvt.s32.f32 %v4178_v4  ;;  %v3277_v5 = vshll.u32 %v3276_v13, 16  ;;  %v11606_v20 = vld [vmem:[#allocation69_spill] sm:$0xff] }
 0x763   : > { %11599 = vst [vmem:[#allocation8_spill] sm:$0xff] %v9614_v12  ;;  %v9616_v27 = vsel %vm4159_vm1, %v3997_v48, %v3998_v15  ;;  %v3843_v31 = vpop.xlane.xlu0 %3842  ;;  %11602 = vst [vmem:[#allocation6_spill] sm:$0xff] %v9621_v14 }
 0x764   : > { %11600 = vst [vmem:[#allocation5_spill] sm:$0xff] %v9618_v34  ;;  %vm3539_vm3 = vcmp.eq.s32.totalorder %v5950_v53, %v3294_v61  ;;  %vm3540_vm4 = vcmp.eq.s32.totalorder %v5953_v26, %v3294_v61  ;;  %vm3931_vm6 = vcmp.eq.f32.partialorder %v9155_v60, %v3843_v31  ;;  %vm3932_vm11 = vcmp.eq.f32.partialorder %v9158_v2, %v3843_v31 }
 0x765   : > { %v3995_v24 = vsel %vm3931_vm6, %v5950_v53, 256  ;;  %v3996_v15 = vsel %vm3932_vm11, %v5953_v26, 256  ;;  %4181 = vmin.xlane.f32.xlu0 %v9618_v34  ;;  %v4162_v48 = vshra.s32 %v9616_v27, 16  ;;  %v9632_v47 = vsel %vm3539_vm3, inf, %v11603_v51 }
 0x766   : > { %vm4143_vm5 = vcmp.lt.s32.totalorder %v3995_v24, %v3996_v15  ;;  %v9635_v43 = vsel %vm3540_vm4, inf, %v11604_v21  ;;  %v5353_v60 = vsel %vm3539_vm3, 1.0, %v11418_v32  ;;  %v5354_v2 = vsel %vm3540_vm4, 1.0, %v11418_v32 }
 0x767   : > { %11605 = vst [vmem:[#allocation120_spill] sm:$0xff] %v9635_v43  ;;  %v9639_v13 = vsel %vm4143_vm5, %v3995_v24, %v3996_v15  ;;  %v3840_v4 = vpop.xlane.xlu0 %3839  ;;  %v3877_v31 = vmin.f32 %v9632_v47, %v9635_v43  ;;  %v9645_v14 = vcvt.s32.f32 %v4162_v48  ;;  %v3260_v21 = vcvt.f32.s32 %v9217_v10  ;;  %v11607_v43 = vld [vmem:[#allocation98_spill] sm:$0xff]  ;;  %v11611_v10 = vld [vmem:[#allocation97_spill] sm:$0xff] }
 0x768   : > { %v3274_v61 = vpop.xlane.xlu1 %3273  ;;  %vm3929_vm7 = vcmp.eq.f32.partialorder %v9174_v9, %v3840_v4  ;;  %vm3930_vm2 = vcmp.eq.f32.partialorder %v11606_v20, %v3840_v4  ;;  %v4146_v24 = vshra.s32 %v9639_v13, 16  ;;  %v9653_v9 = vadd.f32 %v5354_v2, %v11607_v43  ;;  %v11614_v2 = vld [vmem:[#allocation39_spill] sm:$0xff] }
 0x769   : > { %v3275_v51 = vcvt.f32.s32 %v3274_v61  ;;  %v3993_v12 = vsel %vm3929_vm7, %v5950_v53, 256  ;;  %v3994_v34 = vsel %vm3930_vm2, %v5953_v26, 256  ;;  %3878 = vmin.xlane.f32.xlu1 %v3877_v31  ;;  %4165 = vmin.xlane.f32.xlu0 %v9645_v14  ;;  %v9660_v20 = vadd.f32 %v5353_v60, %v11611_v10 }
 0x76a   : > { %vm4127_vm0 = vcmp.lt.s32.totalorder %v3993_v12, %v3994_v34  ;;  %11608 = vst [vmem:[#allocation10_spill] sm:$0xff] %v9653_v9  ;;  %v9657_v61 = vcvt.s32.f32 %v4146_v24  ;;  %v3261_v31 = vshll.u32 %v3260_v21, 16  ;;  %v11615_v24 = vld [vmem:[#allocation40_spill] sm:$0xff] }
 0x76b   : > { %v3278_v15 = vadd.s32 %v3277_v5, %v3275_v51  ;;  %v9655_v4 = vsel %vm4127_vm0, %v3993_v12, %v3994_v34  ;;  %11612 = vst [vmem:[#allocation79_spill] sm:$0xff] %v9660_v20  ;;  %v11613_v5 = vld [vmem:[#allocation70_spill] sm:$0xff] }
 0x76c   : > { %11609 = vst [vmem:[#allocation122_spill] sm:$0xff] %v9655_v4  ;;  %v3837_v48 = vpop.xlane.xlu0 %3836  ;;  %11610 = vst [vmem:[#allocation121_spill] sm:$0xff] %v9657_v61  ;;  %v4130_v60 = vshra.s32 %v9655_v4, 16 }
 0x76d   : > { %vm3537_vm10 = vcmp.eq.s32.totalorder %v5950_v53, %v3278_v15  ;;  %vm3538_vm9 = vcmp.eq.s32.totalorder %v5953_v26, %v3278_v15  ;;  %vm3927_vm12 = vcmp.eq.f32.partialorder %v9199_v57, %v3837_v48  ;;  %vm3928_vm8 = vcmp.eq.f32.partialorder %v11613_v5, %v3837_v48  ;;  %4149 = vmin.xlane.f32.xlu0 %v9657_v61 }
 0x76e   : > { %v3991_v43 = vsel %vm3927_vm12, %v5950_v53, 256  ;;  %v3992_v12 = vsel %vm3928_vm8, %v5953_v26, 256  ;;  %v9673_v51 = vsel %vm3537_vm10, inf, %v11614_v2  ;;  %v9676_v57 = vsel %vm3538_vm9, inf, %v11615_v24 }
 0x76f   : > { %vm4111_vm13 = vcmp.lt.s32.totalorder %v3991_v43, %v3992_v12  ;;  %v3258_v34 = vpop.xlane.xlu1 %3257  ;;  %v5352_v21 = vsel %vm3538_vm9, 1.0, %v11418_v32  ;;  %v3874_v20 = vmin.f32 %v9673_v51, %v9676_v57  ;;  %v9685_v9 = vcvt.s32.f32 %v4130_v60  ;;  %v11621_v60 = vld [vmem:[#allocation72_spill] sm:$0xff] }
 0x770   : > { %v9679_v48 = vsel %vm4111_vm13, %v3991_v43, %v3992_v12  ;;  %v3834_v10 = vpop.xlane.xlu0 %3833  ;;  %v3259_v5 = vcvt.f32.s32 %v3258_v34  ;;  %v11618_v34 = vld [vmem:[#allocation131_spill] sm:$0xff] }
 0x771   : > { %vm3925_vm14 = vcmp.eq.f32.partialorder %v9220_v19, %v3834_v10  ;;  %vm3926_vm15 = vcmp.eq.f32.partialorder %v9223_v50, %v3834_v10  ;;  %11616 = vst [vmem:[#allocation59_spill] sm:$0xff] %v9685_v9  ;;  %v4114_v2 = vshra.s32 %v9679_v48, 16  ;;  %3875 = vmin.xlane.f32.xlu1 %v3874_v20  ;;  %4133 = vmin.xlane.f32.xlu0 %v9685_v9  ;;  %v11622_v10 = vld [vmem:[#allocation74_spill] sm:$0xff] }
 0x772   : > { %v3989_v24 = vsel %vm3925_vm14, %v5950_v53, 256  ;;  %v3990_v61 = vsel %vm3926_vm15, %v5953_v26, 256  ;;  %v3262_v4 = vadd.s32 %v3261_v31, %v3259_v5  ;;  %v9694_v19 = vadd.f32 %v5352_v21, %v11618_v34 }
 0x773   : > { %vm4095_vm1 = vcmp.lt.s32.totalorder %v3989_v24, %v3990_v61  ;;  %v3831_v43 = vpop.xlane.xlu1 %3830  ;;  %v9691_v12 = vcvt.s32.f32 %v4114_v2  ;;  %v11623_v2 = vld [vmem:[#allocation37_spill] sm:$0xff] }
 0x774   : > { %11619 = vst [vmem:[#allocation60_spill] sm:$0xff] %v9694_v19  ;;  %v9696_v50 = vsel %vm4095_vm1, %v3989_v24, %v3990_v61  ;;  %vm3535_vm3 = vcmp.eq.s32.totalorder %v5950_v53, %v3262_v4  ;;  %vm3536_vm4 = vcmp.eq.s32.totalorder %v5953_v26, %v3262_v4  ;;  %vm3923_vm6 = vcmp.eq.f32.partialorder %v11621_v60, %v3831_v43  ;;  %v11624_v61 = vld [vmem:[#allocation38_spill] sm:$0xff]  ;;  %v11627_v19 = vld [vmem:[#allocation76_spill] sm:$0xff] }
 0x775   : > { %11617 = vst [vmem:[#allocation123_spill] sm:$0xff] %v9691_v12  ;;  %11620 = vst [vmem:[#allocation85_spill] sm:$0xff] %v9696_v50  ;;  %vm3924_vm11 = vcmp.eq.f32.partialorder %v11622_v10, %v3831_v43  ;;  %v3987_v20 = vsel %vm3923_vm6, %v5950_v53, 256  ;;  %v4098_v5 = vshra.s32 %v9696_v50, 16  ;;  %v9708_v21 = vsel %vm3535_vm3, inf, %v11623_v2  ;;  %4117 = vmin.xlane.f32.xlu0 %v9691_v12  ;;  %v11626_v10 = vld [vmem:[#allocation75_spill] sm:$0xff] }
 0x776   : > { %v3988_v31 = vsel %vm3924_vm11, %v5953_v26, 256  ;;  %v9713_v24 = vsel %vm3536_vm4, inf, %v11624_v61  ;;  %v5351_v61 = vsel %vm3537_vm10, 1.0, %v11418_v32 }
 0x777   : > { %11625 = vst [vmem:[#allocation61_spill] sm:$0xff] %v9713_v24  ;;  %vm4079_vm5 = vcmp.lt.s32.totalorder %v3987_v20, %v3988_v31  ;;  %v3828_v43 = vpop.xlane.xlu0 %3827  ;;  %v3871_v34 = vmin.f32 %v9708_v21, %v9713_v24  ;;  %v9722_v2 = vcvt.s32.f32 %v4098_v5 }
 0x778   : > { %v9718_v60 = vsel %vm4079_vm5, %v3987_v20, %v3988_v31  ;;  %vm3921_vm7 = vcmp.eq.f32.partialorder %v11626_v10, %v3828_v43  ;;  %vm3922_vm2 = vcmp.eq.f32.partialorder %v11627_v19, %v3828_v43  ;;  %v5350_v20 = vsel %vm3536_vm4, 1.0, %v11418_v32 }
 0x779   : > { %v3985_v50 = vsel %vm3921_vm7, %v5950_v53, 256  ;;  %v3986_v12 = vsel %vm3922_vm2, %v5953_v26, 256  ;;  %3872 = vmin.xlane.f32.xlu1 %v3871_v34  ;;  %v3825_v9 = vpop.xlane.xlu1 %3824  ;;  %v4082_v24 = vshra.s32 %v9718_v60, 16  ;;  %4101 = vmin.xlane.f32.xlu0 %v9722_v2  ;;  %v5349_v34 = vsel %vm3535_vm3, 1.0, %v11418_v32 }
 0x77a   : > { %vm4063_vm0 = vcmp.lt.s32.totalorder %v3985_v50, %v3986_v12  ;;  %vm3919_vm9 = vcmp.eq.f32.partialorder %v9271_v40, %v3825_v9  ;;  %vm3920_vm12 = vcmp.eq.f32.partialorder %v9274_v38, %v3825_v9  ;;  %v11628_v9 = vld [vmem:[#allocation99_spill] sm:$0xff] }
 0x77b   : > { %v9735_v19 = vsel %vm4063_vm0, %v3985_v50, %v3986_v12  ;;  %v3983_v15 = vsel %vm3919_vm9, %v5950_v53, 256  ;;  %v3984_v31 = vsel %vm3920_vm12, %v5953_v26, 256  ;;  %v9740_v5 = vcvt.s32.f32 %v4082_v24  ;;  %v11630_v50 = vld [vmem:[#allocation132_spill] sm:$0xff] }
 0x77c   : > { %vm4047_vm10 = vcmp.lt.s32.totalorder %v3983_v15, %v3984_v31  ;;  %v4066_v43 = vshra.s32 %v9735_v19, 16  ;;  %v9750_v12 = vadd.f32 %v5351_v61, %v11628_v9  ;;  %v9753_v10 = vadd.f32 %v5350_v20, %v11630_v50  ;;  %v11632_v9 = vld [vmem:[#allocation100_spill] sm:$0xff] }
 0x77d   : > { %v9746_v40 = vsel %vm4047_vm10, %v3983_v15, %v3984_v31  ;;  %4085 = vmin.xlane.f32.xlu1 %v9740_v5  ;;  %v3915_v38 = vpop.xlane.xlu1 %3914  ;;  %v9766_v20 = vadd.f32 %v5349_v34, %v11632_v9 }
 0x77e   : > { %11629 = vst [vmem:[#allocation124_spill] sm:$0xff] %v9750_v12  ;;  %11631 = vst [vmem:[#allocation62_spill] sm:$0xff] %v9753_v10  ;;  %vm3979_vm8 = vcmp.eq.f32.partialorder %v9295_v8, %v3915_v38  ;;  %vm3980_vm13 = vcmp.eq.f32.partialorder %v9298_v30, %v3915_v38  ;;  %v9757_v24 = vcvt.s32.f32 %v4066_v43  ;;  %v4050_v4 = vshra.s32 %v9746_v40, 16 }
 0x77f   : > { %v4043_v15 = vsel %vm3979_vm8, %v5950_v53, 256  ;;  %v4044_v31 = vsel %vm3980_vm13, %v5953_v26, 256  ;;  %11633 = vst [vmem:[#allocation87_spill] sm:$0xff] %v9766_v20 }
 0x780   : > { %vm4527_vm14 = vcmp.lt.s32.totalorder %v4043_v15, %v4044_v31  ;;  %4069 = vmin.xlane.f32.xlu0 %v9757_v24  ;;  %v9763_v61 = vcvt.s32.f32 %v4050_v4 }
 0x781   : > { %v9768_v50 = vsel %vm4527_vm14, %v4043_v15, %v4044_v31  ;;  %v11634_v31 = vld [vmem:[#allocation29_spill] sm:$0xff] }
 0x782   : > { %4053 = vmin.xlane.f32.xlu1 %v9763_v61  ;;  %v4530_v8 = vshra.s32 %v9768_v50, 16 }
 0x784   : > { %v9772_v30 = vcvt.s32.f32 %v4530_v8 }
 0x786   : > { %4533 = vmin.xlane.f32.xlu1 %v9772_v30 }
 0x78f   : > { %v3918_v43 = vpop.xlane.xlu0 %3917 }
 0x790   : > { %vm3981_vm15 = vcmp.eq.f32.partialorder %v9316_v45, %v3918_v43  ;;  %vm3982_vm1 = vcmp.eq.f32.partialorder %v9319_v16, %v3918_v43 }
 0x791   : > { %v4045_v38 = vsel %vm3981_vm15, %v5950_v53, 256  ;;  %v4046_v34 = vsel %vm3982_vm1, %v5953_v26, 256 }
 0x792   : > { %vm4543_vm3 = vcmp.lt.s32.totalorder %v4045_v38, %v4046_v34 }
 0x793   : > { %v9779_v4 = vsel %vm4543_vm3, %v4045_v38, %v4046_v34  ;;  %v11635_v38 = vld [vmem:[#allocation111_spill] sm:$0xff] }
 0x794   : > { %v3912_v15 = vpop.xlane.xlu0 %3911  ;;  %v4546_v9 = vshra.s32 %v9779_v4, 16 }
 0x795   : > { %vm3977_vm4 = vcmp.eq.f32.partialorder %v9335_v52, %v3912_v15  ;;  %vm3978_vm6 = vcmp.eq.f32.partialorder %v11634_v31, %v3912_v15 }
 0x796   : > { %v4041_v8 = vsel %vm3977_vm4, %v5950_v53, 256  ;;  %v4042_v45 = vsel %vm3978_vm6, %v5953_v26, 256  ;;  %v9786_v16 = vcvt.s32.f32 %v4546_v9 }
 0x797   : > { %vm4511_vm11 = vcmp.lt.s32.totalorder %v4041_v8, %v4042_v45 }
 0x798   : > { %v9788_v43 = vsel %vm4511_vm11, %v4041_v8, %v4042_v45  ;;  %v3909_v20 = vpop.xlane.xlu1 %3908  ;;  %4549 = vmin.xlane.f32.xlu0 %v9786_v16  ;;  %v11636_v45 = vld [vmem:[#allocation24_spill] sm:$0xff] }
 0x799   : > { %vm3975_vm5 = vcmp.eq.f32.partialorder %v9354_v42, %v3909_v20  ;;  %vm3976_vm7 = vcmp.eq.f32.partialorder %v11635_v38, %v3909_v20  ;;  %v4514_v52 = vshra.s32 %v9788_v43, 16 }
 0x79a   : > { %v4039_v34 = vsel %vm3975_vm5, %v5950_v53, 256  ;;  %v4040_v15 = vsel %vm3976_vm7, %v5953_v26, 256 }
 0x79b   : > { %vm4495_vm2 = vcmp.lt.s32.totalorder %v4039_v34, %v4040_v15  ;;  %v9796_v31 = vcvt.s32.f32 %v4514_v52 }
 0x79c   : > { %v9798_v9 = vsel %vm4495_vm2, %v4039_v34, %v4040_v15  ;;  %v3906_v8 = vpop.xlane.xlu1 %3905  ;;  %v11637_v15 = vld [vmem:[#allocation14_spill] sm:$0xff] }
 0x79d   : > { %vm3973_vm0 = vcmp.eq.f32.partialorder %v9373_v54, %v3906_v8  ;;  %vm3974_vm9 = vcmp.eq.f32.partialorder %v11636_v45, %v3906_v8  ;;  %4517 = vmin.xlane.f32.xlu1 %v9796_v31  ;;  %v4498_v42 = vshra.s32 %v9798_v9, 16 }
 0x79e   : > { %v4037_v20 = vsel %vm3973_vm0, %v5950_v53, 256  ;;  %v4038_v38 = vsel %vm3974_vm9, %v5953_v26, 256 }
 0x79f   : > { %vm4479_vm12 = vcmp.lt.s32.totalorder %v4037_v20, %v4038_v38  ;;  %v9806_v10 = vcvt.s32.f32 %v4498_v42 }
 0x7a0   : > { %v9808_v52 = vsel %vm4479_vm12, %v4037_v20, %v4038_v38 }
 0x7a1   : > { %v3903_v34 = vpop.xlane.xlu1 %3902  ;;  %4501 = vmin.xlane.f32.xlu1 %v9806_v10  ;;  %v4482_v54 = vshra.s32 %v9808_v52, 16 }
 0x7a2   : > { %vm3971_vm10 = vcmp.eq.f32.partialorder %v9392_v35, %v3903_v34  ;;  %vm3972_vm8 = vcmp.eq.f32.partialorder %v11637_v15, %v3903_v34 }
 0x7a3   : > { %v4035_v8 = vsel %vm3971_vm10, %v5950_v53, 256  ;;  %v4036_v45 = vsel %vm3972_vm8, %v5953_v26, 256  ;;  %v9816_v12 = vcvt.s32.f32 %v4482_v54 }
 0x7a4   : > { %vm4463_vm13 = vcmp.lt.s32.totalorder %v4035_v8, %v4036_v45 }
 0x7a5   : > { %v9818_v42 = vsel %vm4463_vm13, %v4035_v8, %v4036_v45  ;;  %v3900_v20 = vpop.xlane.xlu1 %3899  ;;  %4485 = vmin.xlane.f32.xlu1 %v9816_v12  ;;  %v11638_v45 = vld [vmem:[#allocation18_spill] sm:$0xff] }
 0x7a6   : > { %vm3969_vm14 = vcmp.eq.f32.partialorder %v9411_v7, %v3900_v20  ;;  %vm3970_vm15 = vcmp.eq.f32.partialorder %v9414_v11, %v3900_v20  ;;  %v4466_v35 = vshra.s32 %v9818_v42, 16 }
 0x7a7   : > { %v4033_v38 = vsel %vm3969_vm14, %v5950_v53, 256  ;;  %v4034_v34 = vsel %vm3970_vm15, %v5953_v26, 256 }
 0x7a8   : > { %vm4447_vm1 = vcmp.lt.s32.totalorder %v4033_v38, %v4034_v34  ;;  %v9826_v15 = vcvt.s32.f32 %v4466_v35 }
 0x7a9   : > { %v9828_v54 = vsel %vm4447_vm1, %v4033_v38, %v4034_v34 }
 0x7aa   : > { %v3897_v8 = vpop.xlane.xlu1 %3896  ;;  %4469 = vmin.xlane.f32.xlu1 %v9826_v15  ;;  %v4450_v7 = vshra.s32 %v9828_v54, 16 }
 0x7ab   : > { %vm3967_vm3 = vcmp.eq.f32.partialorder %v9430_v59, %v3897_v8  ;;  %vm3968_vm4 = vcmp.eq.f32.partialorder %v11638_v45, %v3897_v8 }
 0x7ac   : > { %v4031_v11 = vsel %vm3967_vm3, %v5950_v53, 256  ;;  %v4032_v20 = vsel %vm3968_vm4, %v5953_v26, 256  ;;  %v9836_v32 = vcvt.s32.f32 %v4450_v7 }
 0x7ad   : > { %vm4431_vm6 = vcmp.lt.s32.totalorder %v4031_v11, %v4032_v20 }
 0x7ae   : > { %v9838_v35 = vsel %vm4431_vm6, %v4031_v11, %v4032_v20  ;;  %v3894_v38 = vpop.xlane.xlu1 %3893  ;;  %4453 = vmin.xlane.f32.xlu1 %v9836_v32 }
 0x7af   : > { %vm3965_vm11 = vcmp.eq.f32.partialorder %v9448_v63, %v3894_v38  ;;  %vm3966_vm5 = vcmp.eq.f32.partialorder %v9451_v25, %v3894_v38  ;;  %v4434_v59 = vshra.s32 %v9838_v35, 16 }
 0x7b0   : > { %v4029_v34 = vsel %vm3965_vm11, %v5950_v53, 256  ;;  %v4030_v8 = vsel %vm3966_vm5, %v5953_v26, 256 }
 0x7b1   : > { %vm4415_vm7 = vcmp.lt.s32.totalorder %v4029_v34, %v4030_v8  ;;  %v9846_v45 = vcvt.s32.f32 %v4434_v59 }
 0x7b2   : > { %v9848_v7 = vsel %vm4415_vm7, %v4029_v34, %v4030_v8  ;;  %v3891_v11 = vpop.xlane.xlu1 %3890 }
 0x7b3   : > { %11639 = vst [vmem:[#allocation101_spill] sm:$0xff] %v9846_v45  ;;  %vm3963_vm2 = vcmp.eq.f32.partialorder %v9466_v36, %v3891_v11  ;;  %vm3964_vm0 = vcmp.eq.f32.partialorder %v9469_v1, %v3891_v11  ;;  %4437 = vmin.xlane.f32.xlu1 %v9846_v45  ;;  %v4418_v63 = vshra.s32 %v9848_v7, 16  ;;  %v4289_v1 = vand.u32 65535, %v9483_v49 }
 0x7b4   : > { %v4027_v25 = vsel %vm3963_vm2, %v5950_v53, 256  ;;  %v4028_v20 = vsel %vm3964_vm0, %v5953_v26, 256  ;;  %v4273_v45 = vand.u32 65535, %v9492_v55  ;;  %v4257_v49 = vand.u32 65535, %v9504_v22 }
 0x7b5   : > { %vm4399_vm9 = vcmp.lt.s32.totalorder %v4027_v25, %v4028_v20  ;;  %v9856_v38 = vcvt.s32.f32 %v4418_v63  ;;  %v4291_v11 = vcvt.s32.f32 %v4289_v1  ;;  %v4241_v55 = vand.u32 65535, %v9526_v0 }
 0x7b6   : > { %v9858_v59 = vsel %vm4399_vm9, %v4027_v25, %v4028_v20  ;;  %v4275_v20 = vcvt.s32.f32 %v4273_v45  ;;  %v4259_v1 = vcvt.s32.f32 %v4257_v49 }
 0x7b7   : > { %4421 = vmin.xlane.f32.xlu1 %v9856_v38  ;;  %v4402_v34 = vshra.s32 %v9858_v59, 16 }
 0x7b9   : > { %v9862_v36 = vcvt.s32.f32 %v4402_v34 }
 0x7bb   : > { %11640 = vst [vmem:[#allocation58_spill] sm:$0xff] %v9862_v36  ;;  %4405 = vmin.xlane.f32.xlu1 %v9862_v36 }
 0x7c7   : > { %v9866_v8 = vpop.xlane.xlu0 %4293 }
 0x7c8   : > { %vm4295_vm12 = vcmp.eq.f32.partialorder %v9490_v6, %v9866_v8 }
 0x7c9   : > { %v4296_v63 = vsel %vm4295_vm12, %v4291_v11, inf }
 0x7ca   : > { %4297 = vmin.xlane.f32.xlu0 %v4296_v63  ;;  %v4243_v63 = vcvt.s32.f32 %v4241_v55 }
 0x7cc   : > { %v9871_v25 = vpop.xlane.xlu0 %4277 }
 0x7cd   : > { %vm4279_vm10 = vcmp.eq.f32.partialorder %v9497_v56, %v9871_v25 }
 0x7ce   : > { %v4280_v34 = vsel %vm4279_vm10, %v4275_v20, inf }
 0x7cf   : > { %4281 = vmin.xlane.f32.xlu0 %v4280_v34 }
 0x7d8   : > { %v9876_v36 = vpop.xlane.xlu0 %4261 }
 0x7d9   : > { %vm4263_vm8 = vcmp.eq.f32.partialorder %v9516_v29, %v9876_v36  ;;  %v3888_v6 = vpop.xlane.xlu1 %3887 }
 0x7da   : > { %vm3961_vm13 = vcmp.eq.f32.partialorder %v9519_v41, %v3888_v6  ;;  %vm3962_vm14 = vcmp.eq.f32.partialorder %v9522_v37, %v3888_v6  ;;  %v4264_v45 = vsel %vm4263_vm8, %v4259_v1, inf  ;;  %v4225_v37 = vand.u32 65535, %v9543_v3 }
 0x7db   : > { %v4025_v56 = vsel %vm3961_vm13, %v5950_v53, 256  ;;  %v4026_v11 = vsel %vm3962_vm14, %v5953_v26, 256  ;;  %4265 = vmin.xlane.f32.xlu0 %v4264_v45 }
 0x7dc   : > { %vm4383_vm15 = vcmp.lt.s32.totalorder %v4025_v56, %v4026_v11  ;;  %v9885_v22 = vpop.xlane.xlu0 %4245  ;;  %v4227_v1 = vcvt.s32.f32 %v4225_v37 }
 0x7dd   : > { %v9887_v20 = vsel %vm4383_vm15, %v4025_v56, %v4026_v11  ;;  %vm4247_vm1 = vcmp.eq.f32.partialorder %v9541_v39, %v9885_v22  ;;  %v4209_v39 = vand.u32 65535, %v9563_v18  ;;  %v4193_v11 = vand.u32 65535, %v9580_v46 }
 0x7de   : > { %v4248_v29 = vsel %vm4247_vm1, %v4243_v63, inf  ;;  %v4386_v41 = vshra.s32 %v9887_v20, 16 }
 0x7df   : > { %4249 = vmin.xlane.f32.xlu0 %v4248_v29  ;;  %v4195_v37 = vcvt.s32.f32 %v4193_v11 }
 0x7e0   : > { %v9893_v0 = vcvt.s32.f32 %v4386_v41  ;;  %v11641_v41 = vld [vmem:[#allocation7_spill] sm:$0xff] }
 0x7e1   : > { %v3885_v34 = vpop.xlane.xlu1 %3884  ;;  %v9895_v49 = vpop.xlane.xlu0 %4229 }
 0x7e2   : > { %vm3959_vm3 = vcmp.eq.f32.partialorder %v9555_v58, %v3885_v34  ;;  %vm3960_vm4 = vcmp.eq.f32.partialorder %v9558_v33, %v3885_v34  ;;  %4389 = vmin.xlane.f32.xlu1 %v9893_v0  ;;  %vm4231_vm6 = vcmp.eq.f32.partialorder %v9570_v44, %v9895_v49  ;;  %v4211_v33 = vcvt.s32.f32 %v4209_v39 }
 0x7e3   : > { %v4023_v3 = vsel %vm3959_vm3, %v5950_v53, 256  ;;  %v4024_v55 = vsel %vm3960_vm4, %v5953_v26, 256  ;;  %v4232_v6 = vsel %vm4231_vm6, %v4227_v1, inf  ;;  %v4177_v34 = vand.u32 65535, %v9600_v28  ;;  %v11642_v28 = vld [vmem:[#allocation5_spill] sm:$0xff] }
 0x7e4   : > { %vm4367_vm11 = vcmp.lt.s32.totalorder %v4023_v3, %v4024_v55  ;;  %4233 = vmin.xlane.f32.xlu0 %v4232_v6  ;;  %v4161_v6 = vand.u32 65535, %v9616_v27 }
 0x7e5   : > { %v9905_v45 = vsel %vm4367_vm11, %v4023_v3, %v4024_v55  ;;  %v9907_v58 = vpop.xlane.xlu0 %4213  ;;  %v4179_v3 = vcvt.s32.f32 %v4177_v34 }
 0x7e6   : > { %v4370_v56 = vshra.s32 %v9905_v45, 16  ;;  %vm4215_vm5 = vcmp.eq.f32.partialorder %v9582_v62, %v9907_v58 }
 0x7e7   : > { %v4216_v18 = vsel %vm4215_vm5, %v4211_v33, inf }
 0x7e8   : > { %v9913_v44 = vcvt.s32.f32 %v4370_v56  ;;  %4217 = vmin.xlane.f32.xlu0 %v4216_v18  ;;  %v11643_v18 = vld [vmem:[#allocation120_spill] sm:$0xff] }
 0x7e9   : > { %v3882_v63 = vpop.xlane.xlu1 %3881 }
 0x7ea   : > { %v9915_v29 = vpop.xlane.xlu0 %4197  ;;  %vm3957_vm7 = vcmp.eq.f32.partialorder %v9593_v23, %v3882_v63  ;;  %vm3958_vm2 = vcmp.eq.f32.partialorder %v11641_v41, %v3882_v63  ;;  %4373 = vmin.xlane.f32.xlu1 %v9913_v44  ;;  %v4163_v63 = vcvt.s32.f32 %v4161_v6  ;;  %v4145_v41 = vand.u32 65535, %v9639_v13  ;;  %v11645_v13 = vld [vmem:[#allocation121_spill] sm:$0xff] }
 0x7eb   : > { %vm4199_vm0 = vcmp.eq.f32.partialorder %v9606_v17, %v9915_v29  ;;  %v4021_v46 = vsel %vm3957_vm7, %v5950_v53, 256  ;;  %v4022_v62 = vsel %vm3958_vm2, %v5953_v26, 256 }
 0x7ec   : > { %vm4351_vm9 = vcmp.lt.s32.totalorder %v4021_v46, %v4022_v62  ;;  %v4200_v1 = vsel %vm4199_vm0, %v4195_v37, inf }
 0x7ed   : > { %v9925_v39 = vsel %vm4351_vm9, %v4021_v46, %v4022_v62  ;;  %4201 = vmin.xlane.f32.xlu0 %v4200_v1  ;;  %v4147_v62 = vcvt.s32.f32 %v4145_v41 }
 0x7ee   : > { %v9927_v23 = vpop.xlane.xlu0 %4181  ;;  %v4354_v55 = vshra.s32 %v9925_v39, 16 }
 0x7ef   : > { %vm4183_vm12 = vcmp.eq.f32.partialorder %v11642_v28, %v9927_v23 }
 0x7f0   : > { %v4184_v17 = vsel %vm4183_vm12, %v4179_v3, inf  ;;  %v9933_v33 = vcvt.s32.f32 %v4354_v55  ;;  %v11644_v3 = vld [vmem:[#allocation122_spill] sm:$0xff] }
 0x7f1   : > { %4185 = vmin.xlane.f32.xlu0 %v4184_v17  ;;  %v4129_v55 = vand.u32 65535, %v11644_v3 }
 0x7f2   : > { %v3879_v56 = vpop.xlane.xlu1 %3878  ;;  %v9935_v11 = vpop.xlane.xlu0 %4165  ;;  %4357 = vmin.xlane.f32.xlu1 %v9933_v33 }
 0x7f3   : > { %vm3955_vm10 = vcmp.eq.f32.partialorder %v9632_v47, %v3879_v56  ;;  %vm3956_vm8 = vcmp.eq.f32.partialorder %v11643_v18, %v3879_v56  ;;  %vm4167_vm13 = vcmp.eq.f32.partialorder %v9645_v14, %v9935_v11  ;;  %v4131_v56 = vcvt.s32.f32 %v4129_v55 }
 0x7f4   : > { %v4019_v27 = vsel %vm3955_vm10, %v5950_v53, 256  ;;  %v4020_v37 = vsel %vm3956_vm8, %v5953_v26, 256  ;;  %v4168_v34 = vsel %vm4167_vm13, %v4163_v63, inf  ;;  %v4113_v18 = vand.u32 65535, %v9679_v48  ;;  %v11646_v63 = vld [vmem:[#allocation59_spill] sm:$0xff] }
 0x7f5   : > { %vm4335_vm14 = vcmp.lt.s32.totalorder %v4019_v27, %v4020_v37  ;;  %4169 = vmin.xlane.f32.xlu0 %v4168_v34  ;;  %v11648_v48 = vld [vmem:[#allocation123_spill] sm:$0xff] }
 0x7f6   : > { %v9945_v46 = vsel %vm4335_vm14, %v4019_v27, %v4020_v37  ;;  %v9947_v47 = vpop.xlane.xlu0 %4149 }
 0x7f7   : > { %v4338_v1 = vshra.s32 %v9945_v46, 16  ;;  %vm4151_vm15 = vcmp.eq.f32.partialorder %v11645_v13, %v9947_v47 }
 0x7f8   : > { %v4152_v14 = vsel %vm4151_vm15, %v4147_v62, inf }
 0x7f9   : > { %v9953_v6 = vcvt.s32.f32 %v4338_v1  ;;  %4153 = vmin.xlane.f32.xlu0 %v4152_v14  ;;  %v11647_v1 = vld [vmem:[#allocation85_spill] sm:$0xff] }
 0x7fa   : > { %v3876_v28 = vpop.xlane.xlu1 %3875  ;;  %v9955_v17 = vpop.xlane.xlu0 %4133  ;;  %v4097_v3 = vand.u32 65535, %v11647_v1 }
 0x7fb   : > { %vm3953_vm1 = vcmp.eq.f32.partialorder %v9673_v51, %v3876_v28  ;;  %vm3954_vm3 = vcmp.eq.f32.partialorder %v9676_v57, %v3876_v28  ;;  %4341 = vmin.xlane.f32.xlu1 %v9953_v6  ;;  %vm4135_vm4 = vcmp.eq.f32.partialorder %v11646_v63, %v9955_v17  ;;  %v4115_v57 = vcvt.s32.f32 %v4113_v18 }
 0x7fc   : > { %v4017_v41 = vsel %vm3953_vm1, %v5950_v53, 256  ;;  %v4018_v27 = vsel %vm3954_vm3, %v5953_v26, 256  ;;  %v4136_v37 = vsel %vm4135_vm4, %v4131_v56, inf  ;;  %v4081_v28 = vand.u32 65535, %v9718_v60  ;;  %v11649_v56 = vld [vmem:[#allocation61_spill] sm:$0xff] }
 0x7fd   : > { %vm4319_vm6 = vcmp.lt.s32.totalorder %v4017_v41, %v4018_v27  ;;  %4137 = vmin.xlane.f32.xlu0 %v4136_v37 }
 0x7fe   : > { %v9965_v34 = vsel %vm4319_vm6, %v4017_v41, %v4018_v27  ;;  %v9967_v51 = vpop.xlane.xlu0 %4117  ;;  %v4099_v27 = vcvt.s32.f32 %v4097_v3  ;;  %v4049_v3 = vand.u32 65535, %v9746_v40 }
 0x7ff   : > { %v4322_v62 = vshra.s32 %v9965_v34, 16  ;;  %vm4119_vm11 = vcmp.eq.f32.partialorder %v11648_v48, %v9967_v51 }
 0x800   : > { %v4120_v55 = vsel %vm4119_vm11, %v4115_v57, inf }
 0x801   : > { %v9973_v14 = vcvt.s32.f32 %v4322_v62  ;;  %4121 = vmin.xlane.f32.xlu0 %v4120_v55  ;;  %v4065_v62 = vand.u32 65535, %v9735_v19 }
 0x802   : > { %v3873_v13 = vpop.xlane.xlu1 %3872  ;;  %v9978_v63 = vpop.xlane.xlu0 %4101 }
 0x803   : > { %vm3951_vm5 = vcmp.eq.f32.partialorder %v9708_v21, %v3873_v13  ;;  %vm3952_vm7 = vcmp.eq.f32.partialorder %v11649_v56, %v3873_v13  ;;  %4325 = vmin.xlane.f32.xlu1 %v9973_v14  ;;  %vm4103_vm2 = vcmp.eq.f32.partialorder %v9722_v2, %v9978_v63  ;;  %v4083_v21 = vcvt.s32.f32 %v4081_v28 }
 0x804   : > { %v4015_v18 = vsel %vm3951_vm5, %v5950_v53, 256  ;;  %v4016_v41 = vsel %vm3952_vm7, %v5953_v26, 256  ;;  %v4104_v60 = vsel %vm4103_vm2, %v4099_v27, inf  ;;  %v4067_v13 = vcvt.s32.f32 %v4065_v62 }
 0x805   : > { %vm4303_vm0 = vcmp.lt.s32.totalorder %v4015_v18, %v4016_v41  ;;  %4105 = vmin.xlane.f32.xlu0 %v4104_v60  ;;  %v4051_v28 = vcvt.s32.f32 %v4049_v3  ;;  %v4545_v27 = vand.u32 65535, %v9779_v4  ;;  %v4497_v3 = vand.u32 65535, %v9798_v9 }
 0x806   : > { %v9985_v37 = vsel %vm4303_vm0, %v4015_v18, %v4016_v41  ;;  %v9987_v57 = vpop.xlane.xlu1 %4085  ;;  %v4465_v9 = vand.u32 65535, %v9818_v42  ;;  %v4433_v42 = vand.u32 65535, %v9838_v35  ;;  %v4401_v35 = vand.u32 65535, %v9858_v59 }
 0x807   : > { %vm4087_vm9 = vcmp.eq.f32.partialorder %v9740_v5, %v9987_v57  ;;  %v4306_v1 = vshra.s32 %v9985_v37, 16  ;;  %v4529_v5 = vand.u32 65535, %v9768_v50  ;;  %v4547_v50 = vcvt.s32.f32 %v4545_v27 }
 0x808   : > { %v4088_v48 = vsel %vm4087_vm9, %v4083_v21, inf  ;;  %v4513_v21 = vand.u32 65535, %v9788_v43  ;;  %v4481_v43 = vand.u32 65535, %v9808_v52  ;;  %v4449_v52 = vand.u32 65535, %v9828_v54 }
 0x809   : > { %v9994_v55 = vpop.xlane.xlu0 %4069  ;;  %v9996_v2 = vcvt.s32.f32 %v4306_v1  ;;  %4089 = vmin.xlane.f32.xlu0 %v4088_v48  ;;  %v4531_v41 = vcvt.s32.f32 %v4529_v5  ;;  %v4499_v48 = vcvt.s32.f32 %v4497_v3  ;;  %v4435_v27 = vcvt.s32.f32 %v4433_v42 }
 0x80a   : > { %vm4071_vm12 = vcmp.eq.f32.partialorder %v9757_v24, %v9994_v55  ;;  %v4515_v1 = vcvt.s32.f32 %v4513_v21  ;;  %v4417_v54 = vand.u32 65535, %v9848_v7  ;;  %v4403_v3 = vcvt.s32.f32 %v4401_v35  ;;  %v11651_v7 = vld [vmem:[#allocation58_spill] sm:$0xff] }
 0x80b   : > { %4309 = vmin.xlane.f32.xlu1 %v9996_v2  ;;  %v10001_v19 = vpop.xlane.xlu1 %4053  ;;  %v4072_v40 = vsel %vm4071_vm12, %v4067_v13, inf }
 0x80c   : > { %vm4055_vm10 = vcmp.eq.f32.partialorder %v9763_v61, %v10001_v19 }
 0x80d   : > { %v4056_v56 = vsel %vm4055_vm10, %v4051_v28, inf  ;;  %4073 = vmin.xlane.f32.xlu0 %v4072_v40  ;;  %v4483_v28 = vcvt.s32.f32 %v4481_v43  ;;  %v4467_v40 = vcvt.s32.f32 %v4465_v9 }
 0x80f   : > { %4057 = vmin.xlane.f32.xlu1 %v4056_v56  ;;  %v10006_v18 = vpop.xlane.xlu1 %4533 }
 0x810   : > { %vm4535_vm8 = vcmp.eq.f32.partialorder %v9772_v30, %v10006_v18 }
 0x811   : > { %v4536_v24 = vsel %vm4535_vm8, %v4531_v41, inf  ;;  %v4451_v41 = vcvt.s32.f32 %v4449_v52  ;;  %v11652_v52 = vmov 0.0  }
 0x813   : > { %4537 = vmin.xlane.f32.xlu1 %v4536_v24 }
 0x821   : > { %v10011_v60 = vpop.xlane.xlu0 %4549 }
 0x822   : > { %vm4551_vm13 = vcmp.eq.f32.partialorder %v9786_v16, %v10011_v60 }
 0x823   : > { %v4552_v61 = vsel %vm4551_vm13, %v4547_v50, inf  ;;  %v11650_v50 = vld [vmem:[#allocation101_spill] sm:$0xff] }
 0x824   : > { %4553 = vmin.xlane.f32.xlu0 %v4552_v61  ;;  %v4419_v61 = vcvt.s32.f32 %v4417_v54 }
 0x826   : > { %v10016_v62 = vpop.xlane.xlu1 %4517 }
 0x827   : > { %vm4519_vm14 = vcmp.eq.f32.partialorder %v9796_v31, %v10016_v62 }
 0x828   : > { %v4520_v30 = vsel %vm4519_vm14, %v4515_v1, inf }
 0x829   : > { %4521 = vmin.xlane.f32.xlu0 %v4520_v30 }
 0x82a   : > { %v10021_v4 = vpop.xlane.xlu1 %4501 }
 0x82b   : > { %vm4503_vm15 = vcmp.eq.f32.partialorder %v9806_v10, %v10021_v4 }
 0x82c   : > { %v4504_v16 = vsel %vm4503_vm15, %v4499_v48, inf  ;;  %v4300_v48 = vcvt.f32.s32 %v9866_v8 }
 0x82d   : > { %4505 = vmin.xlane.f32.xlu1 %v4504_v16 }
 0x82e   : > { %v10026_v13 = vpop.xlane.xlu1 %4485  ;;  %v4301_v16 = vshll.u32 %v4300_v48, 16  ;;  %v4252_v48 = vcvt.f32.s32 %v9885_v22 }
 0x82f   : > { %vm4487_vm1 = vcmp.eq.f32.partialorder %v9816_v12, %v10026_v13 }
 0x830   : > { %v4488_v31 = vsel %vm4487_vm1, %v4483_v28, inf  ;;  %v4284_v28 = vcvt.f32.s32 %v9871_v25 }
 0x831   : > { %4489 = vmin.xlane.f32.xlu0 %v4488_v31 }
 0x833   : > { %v10031_v5 = vpop.xlane.xlu1 %4469 }
 0x834   : > { %vm4471_vm3 = vcmp.eq.f32.partialorder %v9826_v15, %v10031_v5 }
 0x835   : > { %v4472_v10 = vsel %vm4471_vm3, %v4467_v40, inf }
 0x836   : > { %4473 = vmin.xlane.f32.xlu1 %v4472_v10 }
 0x837   : > { %v10036_v56 = vpop.xlane.xlu1 %4453 }
 0x838   : > { %vm4455_vm4 = vcmp.eq.f32.partialorder %v9836_v32, %v10036_v56 }
 0x839   : > { %v4456_v12 = vsel %vm4455_vm4, %v4451_v41, inf }
 0x83a   : > { %4457 = vmin.xlane.f32.xlu0 %v4456_v12  ;;  %v11653_v12 = vld [vmem:[#allocation128_spill] sm:$0xff] }
 0x83c   : > { %v10041_v24 = vpop.xlane.xlu1 %4437 }
 0x83d   : > { %vm4439_vm6 = vcmp.eq.f32.partialorder %v11650_v50, %v10041_v24 }
 0x83e   : > { %v4440_v15 = vsel %vm4439_vm6, %v4435_v27, inf  ;;  %v11654_v27 = vld [vmem:[#allocation127_spill] sm:$0xff] }
 0x83f   : > { %4441 = vmin.xlane.f32.xlu1 %v4440_v15  ;;  %v4268_v15 = vcvt.f32.s32 %v9876_v36 }
 0x840   : > { %v10046_v21 = vpop.xlane.xlu1 %4421 }
 0x841   : > { %vm4423_vm11 = vcmp.eq.f32.partialorder %v9856_v38, %v10046_v21  ;;  %v4285_v38 = vshll.u32 %v4284_v28, 16 }
 0x842   : > { %v4424_v32 = vsel %vm4423_vm11, %v4419_v61, inf  ;;  %v11655_v61 = vld [vmem:[#allocation129_spill] sm:$0xff] }
 0x843   : > { %4425 = vmin.xlane.f32.xlu0 %v4424_v32  ;;  %v11656_v32 = vld [vmem:[#allocation134_spill] sm:$0xff] }
 0x844   : > { %v10051_v1 = vpop.xlane.xlu1 %4405 }
 0x845   : > { %vm4407_vm5 = vcmp.eq.f32.partialorder %v11651_v7, %v10051_v1 }
 0x846   : > { %v4408_v30 = vsel %vm4407_vm5, %v4403_v3, inf }
 0x847   : > { %4409 = vmin.xlane.f32.xlu1 %v4408_v30  ;;  %v4269_v30 = vshll.u32 %v4268_v15, 16  ;;  %v4369_v15 = vand.u32 65535, %v9905_v45 }
 0x853   : > { %v4298_v43 = vpop.xlane.xlu0 %4297 }
 0x854   : > { %v4299_v59 = vcvt.f32.s32 %v4298_v43 }
 0x856   : > { %v4302_v9 = vadd.s32 %v4301_v16, %v4299_v59  ;;  %v4385_v16 = vand.u32 65535, %v9887_v20 }
 0x858   : > { %v4282_v31 = vpop.xlane.xlu0 %4281  ;;  %vm4590_vm7 = vcmp.eq.s32.totalorder %v5953_v26, %v4302_v9  ;;  %vm4589_vm2 = vcmp.eq.s32.totalorder %v5950_v53, %v4302_v9  ;;  %v4253_v9 = vshll.u32 %v4252_v48, 16 }
 0x859   : > { %v4283_v40 = vcvt.f32.s32 %v4282_v31  ;;  %v5412_v10 = vsel %vm4590_vm7, 1.0, %v11652_v52  ;;  %v5411_v41 = vsel %vm4589_vm2, 1.0, %v11652_v52 }
 0x85a   : > { %v4782_v8 = vadd.f32 %v5412_v10, %v11653_v12  ;;  %v4781_v54 = vadd.f32 %v5411_v41, %v11654_v27  ;;  %v4236_v10 = vcvt.f32.s32 %v9895_v49  ;;  %v11658_v12 = vld [vmem:[#allocation136_spill] sm:$0xff] }
 0x85b   : > { %v4286_v42 = vadd.s32 %v4285_v38, %v4283_v40  ;;  %v4387_v38 = vcvt.s32.f32 %v4385_v16  ;;  %v4204_v16 = vcvt.f32.s32 %v9915_v29 }
 0x85c   : > { %4815 = vmatprep.subr.mxu1 %v4782_v8 }
 0x85d   : > { %vm4587_vm0 = vcmp.eq.s32.totalorder %v5950_v53, %v4286_v42  ;;  %vm4588_vm9 = vcmp.eq.s32.totalorder %v5953_v26, %v4286_v42  ;;  %4816 = vmatpush1.xpose.msra.mxu1 %v4781_v54  ;;  %v11657_v42 = vld [vmem:[#allocation133_spill] sm:$0xff]  ;;  %v4220_v54 = vcvt.f32.s32 %v9907_v58  ;;  %v4371_v58 = vcvt.s32.f32 %v4369_v15 }
 0x85e   : > { %v5410_v25 = vsel %vm4588_vm9, 1.0, %v11652_v52  ;;  %v5409_v50 = vsel %vm4587_vm0, 1.0, %v11652_v52 }
 0x85f   : > { %v4780_v35 = vadd.f32 %v5410_v25, %v11655_v61  ;;  %v4779_v3 = vadd.f32 %v5409_v50, %v11656_v32  ;;  %v4237_v61 = vshll.u32 %v4236_v10, 16  ;;  %v4221_v48 = vshll.u32 %v4220_v54, 16  ;;  %v11662_v10 = vld [vmem:[#allocation140_spill] sm:$0xff] }
 0x861   : > { %4817 = vmatprep.subr.mxu1 %v4780_v35 }
 0x862   : > { %4818 = vmatpush1.xpose.msra.mxu1 %v4779_v3  ;;  %v11660_v3 = vld [vmem:[#allocation138_spill] sm:$0xff] }
 0x864   : > { %v4266_v7 = vpop.xlane.xlu0 %4265 }
 0x865   : > { %v4267_v43 = vcvt.f32.s32 %v4266_v7 }
 0x867   : > { %v4270_v28 = vadd.s32 %v4269_v30, %v4267_v43 }
 0x868   : > { %v4250_v59 = vpop.xlane.xlu0 %4249 }
 0x869   : > { %vm4585_vm12 = vcmp.eq.s32.totalorder %v5950_v53, %v4270_v28  ;;  %vm4586_vm10 = vcmp.eq.s32.totalorder %v5953_v26, %v4270_v28  ;;  %v4251_v36 = vcvt.f32.s32 %v4250_v59 }
 0x86a   : > { %v5408_v31 = vsel %vm4586_vm10, 1.0, %v11652_v52  ;;  %v5407_v40 = vsel %vm4585_vm12, 1.0, %v11652_v52 }
 0x86b   : > { %v4254_v41 = vadd.s32 %v4253_v9, %v4251_v36  ;;  %v10077_v22 = vpop.xlane.xlu1 %4389  ;;  %v4778_v20 = vadd.f32 %v5408_v31, %v11657_v42  ;;  %v4777_v8 = vadd.f32 %v5407_v40, %v11658_v12  ;;  %v11661_v31 = vld [vmem:[#allocation137_spill] sm:$0xff]  ;;  %v4205_v12 = vshll.u32 %v4204_v16, 16 }
 0x86c   : > { %vm4391_vm8 = vcmp.eq.f32.partialorder %v9893_v0, %v10077_v22  ;;  %v11659_v0 = vld [vmem:[#allocation135_spill] sm:$0xff] }
 0x86d   : > { %vm4583_vm13 = vcmp.eq.s32.totalorder %v5950_v53, %v4254_v41  ;;  %vm4584_vm14 = vcmp.eq.s32.totalorder %v5953_v26, %v4254_v41  ;;  %4819 = vmatprep.subr.mxu1 %v4778_v20  ;;  %v4392_v27 = vsel %vm4391_vm8, %v4387_v38, inf  ;;  %v4234_v25 = vpop.xlane.xlu0 %4233  ;;  %v4188_v41 = vcvt.f32.s32 %v9927_v23  ;;  %v11664_v23 = vld [vmem:[#allocation141_spill] sm:$0xff] }
 0x86e   : > { %4393 = vmin.xlane.f32.xlu0 %v4392_v27  ;;  %4820 = vmatpush1.xpose.msra.mxu1 %v4777_v8  ;;  %v5406_v49 = vsel %vm4584_vm14, 1.0, %v11652_v52  ;;  %v5405_v50 = vsel %vm4583_vm13, 1.0, %v11652_v52  ;;  %v4235_v35 = vcvt.f32.s32 %v4234_v25  ;;  %v4353_v20 = vand.u32 65535, %v9925_v39  ;;  %v11663_v25 = vld [vmem:[#allocation139_spill] sm:$0xff] }
 0x86f   : > { %v4776_v32 = vadd.f32 %v5406_v49, %v11659_v0  ;;  %v4775_v7 = vadd.f32 %v5405_v50, %v11660_v3  ;;  %v4189_v15 = vshll.u32 %v4188_v41, 16 }
 0x870   : > { %v4238_v30 = vadd.s32 %v4237_v61, %v4235_v35  ;;  %v4355_v39 = vcvt.s32.f32 %v4353_v20  ;;  %v4172_v35 = vcvt.f32.s32 %v9935_v11 }
 0x871   : > { %4821 = vmatprep.subr.mxu1 %v4776_v32  ;;  %v4218_v43 = vpop.xlane.xlu0 %4217 }
 0x872   : > { %4822 = vmatpush1.xpose.msra.mxu1 %v4775_v7  ;;  %vm4581_vm15 = vcmp.eq.s32.totalorder %v5950_v53, %v4238_v30  ;;  %vm4582_vm1 = vcmp.eq.s32.totalorder %v5953_v26, %v4238_v30  ;;  %v4219_v28 = vcvt.f32.s32 %v4218_v43 }
 0x873   : > { %v10094_v45 = vpop.xlane.xlu1 %4373  ;;  %v5404_v59 = vsel %vm4582_vm1, 1.0, %v11652_v52  ;;  %v5403_v9 = vsel %vm4581_vm15, 1.0, %v11652_v52 }
 0x874   : > { %vm4375_vm3 = vcmp.eq.f32.partialorder %v9913_v44, %v10094_v45  ;;  %v4222_v36 = vadd.s32 %v4221_v48, %v4219_v28  ;;  %v4774_v38 = vadd.f32 %v5404_v59, %v11661_v31  ;;  %v4773_v29 = vadd.f32 %v5403_v9, %v11662_v10  ;;  %v11665_v48 = vld [vmem:[#allocation107_spill] sm:$0xff]  ;;  %v11667_v10 = vld [vmem:[#allocation109_spill] sm:$0xff] }
 0x875   : > { %v4376_v40 = vsel %vm4375_vm3, %v4371_v58, inf  ;;  %v11666_v58 = vld [vmem:[#allocation108_spill] sm:$0xff]  ;;  %v4156_v28 = vcvt.f32.s32 %v9947_v47  ;;  %v4337_v9 = vand.u32 65535, %v9945_v46  ;;  %v11668_v47 = vld [vmem:[#allocation110_spill] sm:$0xff] }
 0x876   : > { %v4202_v42 = vpop.xlane.xlu0 %4201  ;;  %4377 = vmin.xlane.f32.xlu1 %v4376_v40  ;;  %vm4579_vm4 = vcmp.eq.s32.totalorder %v5950_v53, %v4222_v36  ;;  %vm4580_vm6 = vcmp.eq.s32.totalorder %v5953_v26, %v4222_v36  ;;  %4823 = vmatprep.subr.mxu1 %v4774_v38  ;;  %v4173_v36 = vshll.u32 %v4172_v35, 16  ;;  %v4321_v35 = vand.u32 65535, %v9965_v34 }
 0x877   : > { %v4203_v44 = vcvt.f32.s32 %v4202_v42  ;;  %4824 = vmatpush1.xpose.msra.mxu1 %v4773_v29  ;;  %v5402_v8 = vsel %vm4580_vm6, 1.0, %v11652_v52  ;;  %v5401_v27 = vsel %vm4579_vm4, 1.0, %v11652_v52  ;;  %v4157_v42 = vshll.u32 %v4156_v28, 16 }
 0x878   : > { %v4772_v49 = vadd.f32 %v5402_v8, %v11663_v25  ;;  %v4771_v50 = vadd.f32 %v5401_v27, %v11664_v23  ;;  %v4339_v46 = vcvt.s32.f32 %v4337_v9  ;;  %v4323_v34 = vcvt.s32.f32 %v4321_v35 }
 0x879   : > { %v4206_v54 = vadd.s32 %v4205_v12, %v4203_v44  ;;  %v4140_v12 = vcvt.f32.s32 %v9955_v17  ;;  %v4108_v28 = vcvt.f32.s32 %v9978_v63 }
 0x87a   : > { %v4186_v61 = vpop.xlane.xlu0 %4185  ;;  %4825 = vmatprep.subr.mxu1 %v4772_v49  ;;  %v11669_v49 = vld [vmem:[#allocation68_spill] sm:$0xff] }
 0x87b   : > { %vm4577_vm11 = vcmp.eq.s32.totalorder %v5950_v53, %v4206_v54  ;;  %vm4578_vm5 = vcmp.eq.s32.totalorder %v5953_v26, %v4206_v54  ;;  %v4187_v0 = vcvt.f32.s32 %v4186_v61  ;;  %v10113_v32 = vpop.xlane.xlu1 %4357  ;;  %4826 = vmatpush1.xpose.msra.mxu1 %v4771_v50  ;;  %v11670_v50 = vld [vmem:[#allocation73_spill] sm:$0xff]  ;;  %v4124_v61 = vcvt.f32.s32 %v9967_v51  ;;  %v11672_v51 = vld [vmem:[#allocation66_spill] sm:$0xff] }
 0x87c   : > { %vm4359_vm7 = vcmp.eq.f32.partialorder %v9933_v33, %v10113_v32  ;;  %v5400_v3 = vsel %vm4578_vm5, 1.0, %v11652_v52  ;;  %v5399_v7 = vsel %vm4577_vm11, 1.0, %v11652_v52 }
 0x87d   : > { %v4190_v30 = vadd.s32 %v4189_v15, %v4187_v0  ;;  %v4770_v43 = vadd.f32 %v5400_v3, %v11665_v48  ;;  %v4360_v11 = vsel %vm4359_vm7, %v4355_v39, inf  ;;  %v4769_v16 = vadd.f32 %v5399_v7, %v11666_v58  ;;  %v11671_v48 = vld [vmem:[#allocation71_spill] sm:$0xff] }
 0x87e   : > { %v4170_v59 = vpop.xlane.xlu0 %4169  ;;  %4361 = vmin.xlane.f32.xlu0 %v4360_v11  ;;  %v4141_v0 = vshll.u32 %v4140_v12, 16  ;;  %v4125_v58 = vshll.u32 %v4124_v61, 16 }
 0x87f   : > { %vm4575_vm2 = vcmp.eq.s32.totalorder %v5950_v53, %v4190_v30  ;;  %vm4576_vm0 = vcmp.eq.s32.totalorder %v5953_v26, %v4190_v30  ;;  %v4171_v33 = vcvt.f32.s32 %v4170_v59  ;;  %4827 = vmatprep.subr.mxu1 %v4770_v43 }
 0x880   : > { %4828 = vmatpush1.xpose.msra.mxu1 %v4769_v16  ;;  %v5398_v31 = vsel %vm4576_vm0, 1.0, %v11652_v52  ;;  %v5397_v38 = vsel %vm4575_vm2, 1.0, %v11652_v52 }
 0x881   : > { %v4174_v40 = vadd.s32 %v4173_v36, %v4171_v33  ;;  %v4768_v29 = vadd.f32 %v5398_v31, %v11667_v10  ;;  %v4767_v41 = vadd.f32 %v5397_v38, %v11668_v47  ;;  %v11673_v38 = vld [vmem:[#allocation77_spill] sm:$0xff]  ;;  %v11674_v10 = vld [vmem:[#allocation67_spill] sm:$0xff]  ;;  %v4092_v47 = vcvt.f32.s32 %v9987_v57  ;;  %v11676_v57 = vld [vmem:[#allocation32_spill] sm:$0xff] }
 0x882   : > { %v4154_v20 = vpop.xlane.xlu0 %4153 }
 0x883   : > { %vm4573_vm9 = vcmp.eq.s32.totalorder %v5950_v53, %v4174_v40  ;;  %vm4574_vm12 = vcmp.eq.s32.totalorder %v5953_v26, %v4174_v40  ;;  %v4155_v44 = vcvt.f32.s32 %v4154_v20  ;;  %4829 = vmatprep.subr.mxu1 %v4768_v29  ;;  %v4109_v20 = vshll.u32 %v4108_v28, 16 }
 0x884   : > { %v10132_v8 = vpop.xlane.xlu1 %4341  ;;  %4830 = vmatpush1.xpose.msra.mxu1 %v4767_v41  ;;  %v5396_v27 = vsel %vm4574_vm12, 1.0, %v11652_v52  ;;  %v5395_v54 = vsel %vm4573_vm9, 1.0, %v11652_v52 }
 0x885   : > { %vm4343_vm10 = vcmp.eq.f32.partialorder %v9953_v6, %v10132_v8  ;;  %v4158_v25 = vadd.s32 %v4157_v42, %v4155_v44  ;;  %v4766_v23 = vadd.f32 %v5396_v27, %v11669_v49  ;;  %v4765_v15 = vadd.f32 %v5395_v54, %v11670_v50  ;;  %v11675_v27 = vld [vmem:[#allocation78_spill] sm:$0xff] }
 0x886   : > { %v4344_v17 = vsel %vm4343_vm10, %v4339_v46, inf  ;;  %v4138_v39 = vpop.xlane.xlu0 %4137  ;;  %v4305_v42 = vand.u32 65535, %v9985_v37  ;;  %v4093_v49 = vshll.u32 %v4092_v47, 16  ;;  %v4076_v37 = vcvt.f32.s32 %v9994_v55 }
 0x887   : > { %4345 = vmin.xlane.f32.xlu1 %v4344_v17  ;;  %vm4571_vm8 = vcmp.eq.s32.totalorder %v5950_v53, %v4158_v25  ;;  %vm4572_vm13 = vcmp.eq.s32.totalorder %v5953_v26, %v4158_v25  ;;  %v4139_v6 = vcvt.f32.s32 %v4138_v39  ;;  %4831 = vmatprep.subr.mxu1 %v4766_v23  ;;  %v4060_v23 = vcvt.f32.s32 %v10001_v19 }
 0x888   : > { %4832 = vmatpush1.xpose.msra.mxu1 %v4765_v15  ;;  %v5394_v3 = vsel %vm4572_vm13, 1.0, %v11652_v52  ;;  %v5393_v7 = vsel %vm4571_vm8, 1.0, %v11652_v52  ;;  %v4307_v15 = vcvt.s32.f32 %v4305_v42 }
 0x889   : > { %v4142_v30 = vadd.s32 %v4141_v0, %v4139_v6  ;;  %v4764_v43 = vadd.f32 %v5394_v3, %v11671_v48  ;;  %v4763_v11 = vadd.f32 %v5393_v7, %v11672_v51  ;;  %v11677_v0 = vld [vmem:[#allocation33_spill] sm:$0xff]  ;;  %v11678_v3 = vld [vmem:[#allocation27_spill] sm:$0xff]  ;;  %v4061_v48 = vshll.u32 %v4060_v23, 16 }
 0x88a   : > { %v4122_v16 = vpop.xlane.xlu0 %4121 }
 0x88b   : > { %vm4569_vm14 = vcmp.eq.s32.totalorder %v5950_v53, %v4142_v30  ;;  %vm4570_vm15 = vcmp.eq.s32.totalorder %v5953_v26, %v4142_v30  ;;  %v4123_v59 = vcvt.f32.s32 %v4122_v16  ;;  %4833 = vmatprep.subr.mxu1 %v4764_v43  ;;  %v4077_v30 = vshll.u32 %v4076_v37, 16  ;;  %v11685_v37 = vld [vmem:[#allocation35_spill] sm:$0xff] }
 0x88c   : > { %v10151_v9 = vpop.xlane.xlu1 %4325  ;;  %4834 = vmatpush1.xpose.msra.mxu1 %v4763_v11  ;;  %v5392_v36 = vsel %vm4570_vm15, 1.0, %v11652_v52  ;;  %v5391_v33 = vsel %vm4569_vm14, 1.0, %v11652_v52  ;;  %v4540_v43 = vcvt.f32.s32 %v10006_v18 }
 0x88d   : > { %vm4327_vm1 = vcmp.eq.f32.partialorder %v9973_v14, %v10151_v9  ;;  %v4126_v31 = vadd.s32 %v4125_v58, %v4123_v59  ;;  %v4762_v40 = vadd.f32 %v5392_v36, %v11673_v38  ;;  %v4761_v29 = vadd.f32 %v5391_v33, %v11674_v10  ;;  %v11679_v36 = vld [vmem:[#allocation26_spill] sm:$0xff] }
 0x88e   : > { %v4328_v63 = vsel %vm4327_vm1, %v4323_v34, inf  ;;  %v4106_v41 = vpop.xlane.xlu0 %4105  ;;  %v4541_v38 = vshll.u32 %v4540_v43, 16 }
 0x88f   : > { %4329 = vmin.xlane.f32.xlu0 %v4328_v63  ;;  %vm4567_vm3 = vcmp.eq.s32.totalorder %v5950_v53, %v4126_v31  ;;  %vm4568_vm4 = vcmp.eq.s32.totalorder %v5953_v26, %v4126_v31  ;;  %v4107_v14 = vcvt.f32.s32 %v4106_v41  ;;  %4835 = vmatprep.subr.mxu1 %v4762_v40  ;;  %v11680_v31 = vld [vmem:[#allocation63_spill] sm:$0xff]  ;;  %v11681_v41 = vld [vmem:[#allocation21_spill] sm:$0xff] }
 0x890   : > { %4836 = vmatpush1.xpose.msra.mxu1 %v4761_v29  ;;  %v5390_v46 = vsel %vm4568_vm4, 1.0, %v11652_v52  ;;  %v5389_v12 = vsel %vm4567_vm3, 1.0, %v11652_v52 }
 0x891   : > { %v4110_v44 = vadd.s32 %v4109_v20, %v4107_v14  ;;  %v4760_v54 = vadd.f32 %v5390_v46, %v11675_v27  ;;  %v4759_v25 = vadd.f32 %v5389_v12, %v11676_v57  ;;  %v11682_v20 = vld [vmem:[#allocation65_spill] sm:$0xff]  ;;  %v11683_v46 = vld [vmem:[#allocation20_spill] sm:$0xff] }
 0x892   : > { %v4090_v17 = vpop.xlane.xlu0 %4089 }
 0x893   : > { %vm4565_vm6 = vcmp.eq.s32.totalorder %v5950_v53, %v4110_v44  ;;  %vm4566_vm11 = vcmp.eq.s32.totalorder %v5953_v26, %v4110_v44  ;;  %v4091_v61 = vcvt.f32.s32 %v4090_v17  ;;  %4837 = vmatprep.subr.mxu1 %v4760_v54  ;;  %v11684_v54 = vld [vmem:[#allocation36_spill] sm:$0xff]  ;;  %v11686_v17 = vld [vmem:[#allocation34_spill] sm:$0xff] }
 0x894   : > { %v10169_v50 = vpop.xlane.xlu1 %4309  ;;  %4838 = vmatpush1.xpose.msra.mxu1 %v4759_v25  ;;  %v5388_v39 = vsel %vm4566_vm11, 1.0, %v11652_v52  ;;  %v5387_v55 = vsel %vm4565_vm6, 1.0, %v11652_v52 }
 0x895   : > { %vm4311_vm5 = vcmp.eq.f32.partialorder %v9996_v2, %v10169_v50  ;;  %v4094_v19 = vadd.s32 %v4093_v49, %v4091_v61  ;;  %v4758_v6 = vadd.f32 %v5388_v39, %v11677_v0  ;;  %v4757_v7 = vadd.f32 %v5387_v55, %v11678_v3 }
 0x896   : > { %v4312_v35 = vsel %vm4311_vm5, %v4307_v15, inf  ;;  %v4074_v51 = vpop.xlane.xlu0 %4073  ;;  %v4556_v61 = vcvt.f32.s32 %v10011_v60  ;;  %v4524_v39 = vcvt.f32.s32 %v10016_v62 }
 0x897   : > { %4313 = vmin.xlane.f32.xlu1 %v4312_v35  ;;  %vm4563_vm7 = vcmp.eq.s32.totalorder %v5950_v53, %v4094_v19  ;;  %vm4564_vm2 = vcmp.eq.s32.totalorder %v5953_v26, %v4094_v19  ;;  %v4075_v2 = vcvt.f32.s32 %v4074_v51  ;;  %4839 = vmatprep.subr.mxu1 %v4758_v6  ;;  %v11687_v51 = vld [vmem:[#allocation31_spill] sm:$0xff] }
 0x898   : > { %v4058_v11 = vpop.xlane.xlu1 %4057  ;;  %4840 = vmatpush1.xpose.msra.mxu1 %v4757_v7  ;;  %v5386_v16 = vsel %vm4564_vm2, 1.0, %v11652_v52  ;;  %v5385_v34 = vsel %vm4563_vm7, 1.0, %v11652_v52  ;;  %v4557_v55 = vshll.u32 %v4556_v61, 16  ;;  %v4525_v6 = vshll.u32 %v4524_v39, 16 }
 0x899   : > { %v4059_v58 = vcvt.f32.s32 %v4058_v11  ;;  %v4078_v28 = vadd.s32 %v4077_v30, %v4075_v2  ;;  %v4756_v33 = vadd.f32 %v5386_v16, %v11679_v36  ;;  %v4755_v18 = vadd.f32 %v5385_v34, %v11680_v31  ;;  %v11688_v11 = vld [vmem:[#allocation30_spill] sm:$0xff] }
 0x89a   : > { %v4508_v7 = vcvt.f32.s32 %v10021_v4  ;;  %v4444_v61 = vcvt.f32.s32 %v10041_v24 }
 0x89b   : > { %v4062_v59 = vadd.s32 %v4061_v48, %v4059_v58  ;;  %vm4561_vm0 = vcmp.eq.s32.totalorder %v5950_v53, %v4078_v28  ;;  %vm4562_vm9 = vcmp.eq.s32.totalorder %v5953_v26, %v4078_v28  ;;  %4841 = vmatprep.subr.mxu1 %v4756_v33  ;;  %v4492_v58 = vcvt.f32.s32 %v10026_v13  ;;  %v11689_v33 = vld [vmem:[#allocation15_spill] sm:$0xff] }
 0x89c   : > { %v4538_v40 = vpop.xlane.xlu1 %4537  ;;  %4842 = vmatpush1.xpose.msra.mxu1 %v4755_v18  ;;  %v5384_v10 = vsel %vm4562_vm9, 1.0, %v11652_v52  ;;  %v5383_v29 = vsel %vm4561_vm0, 1.0, %v11652_v52  ;;  %v4509_v34 = vshll.u32 %v4508_v7, 16  ;;  %v11690_v18 = vld [vmem:[#allocation25_spill] sm:$0xff]  ;;  %v4445_v24 = vshll.u32 %v4444_v61, 16  ;;  %v11705_v61 = vld [vmem:[#allocation11_spill] sm:$0xff] }
 0x89d   : > { %vm4559_vm12 = vcmp.eq.s32.totalorder %v5950_v53, %v4062_v59  ;;  %vm4560_vm10 = vcmp.eq.s32.totalorder %v5953_v26, %v4062_v59  ;;  %v4539_v63 = vcvt.f32.s32 %v4538_v40  ;;  %v4754_v42 = vadd.f32 %v5384_v10, %v11681_v41 }
 0x89e   : > { %v5382_v47 = vsel %vm4560_vm10, 1.0, %v11652_v52  ;;  %v4753_v14 = vadd.f32 %v5383_v29, %v11682_v20  ;;  %v5381_v44 = vsel %vm4559_vm12, 1.0, %v11652_v52  ;;  %v4493_v13 = vshll.u32 %v4492_v58, 16  ;;  %v11698_v58 = vld [vmem:[#allocation17_spill] sm:$0xff] }
 0x89f   : > { %v4752_v12 = vadd.f32 %v5382_v47, %v11683_v46  ;;  %v4542_v27 = vadd.s32 %v4541_v38, %v4539_v63  ;;  %v4751_v57 = vadd.f32 %v5381_v44, %v11684_v54  ;;  %4843 = vmatprep.subr.mxu1 %v4754_v42  ;;  %v4476_v63 = vcvt.f32.s32 %v10031_v5  ;;  %v11691_v42 = vld [vmem:[#allocation28_spill] sm:$0xff] }
 0x8a0   : > { %4844 = vmatpush1.xpose.msra.mxu1 %v4753_v14  ;;  %v11692_v14 = vld [vmem:[#allocation23_spill] sm:$0xff] }
 0x8a1   : > { %vm4619_vm8 = vcmp.eq.s32.totalorder %v5950_v53, %v4542_v27  ;;  %vm4620_vm13 = vcmp.eq.s32.totalorder %v5953_v26, %v4542_v27  ;;  %4845 = vmatprep.subr.mxu1 %v4752_v12  ;;  %v4460_v12 = vcvt.f32.s32 %v10036_v56  ;;  %v4477_v5 = vshll.u32 %v4476_v63, 16 }
 0x8a2   : > { %v5442_v25 = vsel %vm4620_vm13, 1.0, %v11652_v52  ;;  %v5441_v49 = vsel %vm4619_vm8, 1.0, %v11652_v52 }
 0x8a3   : > { %v4812_v23 = vadd.f32 %v5442_v25, %v11685_v37  ;;  %v4811_v15 = vadd.f32 %v5441_v49, %v11686_v17  ;;  %v11693_v49 = vld [vmem:[#allocation113_spill] sm:$0xff] }
 0x8a4   : > { %4846 = vmatpush1.xpose.msra.mxu1 %v4751_v57 }
 0x8ad   : > { %v4554_v35 = vpop.xlane.xlu0 %4553 }
 0x8ae   : > { %v4555_v19 = vcvt.f32.s32 %v4554_v35 }
 0x8b0   : > { %v4558_v0 = vadd.s32 %v4557_v55, %v4555_v19 }
 0x8b2   : > { %v4522_v3 = vpop.xlane.xlu0 %4521  ;;  %vm4621_vm14 = vcmp.eq.s32.totalorder %v5950_v53, %v4558_v0  ;;  %vm4622_vm15 = vcmp.eq.s32.totalorder %v5953_v26, %v4558_v0  ;;  %v11695_v0 = vld [vmem:[#allocation19_spill] sm:$0xff] }
 0x8b3   : > { %v4523_v30 = vcvt.f32.s32 %v4522_v3  ;;  %v5444_v48 = vsel %vm4622_vm15, 1.0, %v11652_v52  ;;  %v5443_v43 = vsel %vm4621_vm14, 1.0, %v11652_v52  ;;  %v11696_v3 = vld [vmem:[#allocation114_spill] sm:$0xff] }
 0x8b4   : > { %v4814_v62 = vadd.f32 %v5444_v48, %v11687_v51  ;;  %v4813_v2 = vadd.f32 %v5443_v43, %v11688_v11  ;;  %v11697_v11 = vld [vmem:[#allocation22_spill] sm:$0xff] }
 0x8b5   : > { %v4526_v60 = vadd.s32 %v4525_v6, %v4523_v30  ;;  %v4428_v30 = vcvt.f32.s32 %v10046_v21 }
 0x8b6   : > { %v4506_v16 = vpop.xlane.xlu1 %4505  ;;  %4847 = vmatprep.subr.mxu1 %v4814_v62 }
 0x8b7   : > { %vm4617_vm1 = vcmp.eq.s32.totalorder %v5950_v53, %v4526_v60  ;;  %vm4618_vm3 = vcmp.eq.s32.totalorder %v5953_v26, %v4526_v60  ;;  %v4507_v4 = vcvt.f32.s32 %v4506_v16  ;;  %4848 = vmatpush2.xpose.msra.mxu1 %v4813_v2 }
 0x8b8   : > { %v5440_v28 = vsel %vm4618_vm3, 1.0, %v11652_v52  ;;  %v5439_v59 = vsel %vm4617_vm1, 1.0, %v11652_v52  ;;  %4849 = vmatprep.subr.mxu1 %v4812_v23  ;;  %v11694_v23 = vld [vmem:[#allocation112_spill] sm:$0xff] }
 0x8b9   : > { %v4510_v36 = vadd.s32 %v4509_v34, %v4507_v4  ;;  %v4810_v31 = vadd.f32 %v5440_v28, %v11689_v33  ;;  %v4809_v38 = vadd.f32 %v5439_v59, %v11690_v18  ;;  %v4429_v34 = vshll.u32 %v4428_v30, 16  ;;  %v11707_v30 = vld [vmem:[#allocation119_spill] sm:$0xff] }
 0x8ba   : > { %v4490_v40 = vpop.xlane.xlu0 %4489  ;;  %v4412_v4 = vcvt.f32.s32 %v10051_v1 }
 0x8bb   : > { %vm4615_vm4 = vcmp.eq.s32.totalorder %v5950_v53, %v4510_v36  ;;  %vm4616_vm6 = vcmp.eq.s32.totalorder %v5953_v26, %v4510_v36  ;;  %v4491_v10 = vcvt.f32.s32 %v4490_v40  ;;  %4850 = vmatpush2.xpose.msra.mxu1 %v4811_v15  ;;  %v4461_v15 = vshll.u32 %v4460_v12, 16 }
 0x8bc   : > { %v5438_v29 = vsel %vm4616_vm6, 1.0, %v11652_v52  ;;  %v5437_v47 = vsel %vm4615_vm4, 1.0, %v11652_v52  ;;  %4851 = vmatprep.subr.mxu1 %v4810_v31  ;;  %v11699_v31 = vld [vmem:[#allocation116_spill] sm:$0xff]  ;;  %v4413_v63 = vshll.u32 %v4412_v4, 16 }
 0x8bd   : > { %v4494_v41 = vadd.s32 %v4493_v13, %v4491_v10  ;;  %v4808_v20 = vadd.f32 %v5438_v29, %v11691_v42  ;;  %v4807_v46 = vadd.f32 %v5437_v47, %v11692_v14 }
 0x8bf   : > { %v4474_v44 = vpop.xlane.xlu1 %4473  ;;  %vm4613_vm11 = vcmp.eq.s32.totalorder %v5950_v53, %v4494_v41  ;;  %vm4614_vm5 = vcmp.eq.s32.totalorder %v5953_v26, %v4494_v41  ;;  %4852 = vmatpush2.xpose.msra.mxu1 %v4809_v38  ;;  %v11700_v38 = vld [vmem:[#allocation115_spill] sm:$0xff]  ;;  %v11701_v41 = vld [vmem:[#allocation9_spill] sm:$0xff] }
 0x8c0   : > { %v4475_v27 = vcvt.f32.s32 %v4474_v44  ;;  %v5436_v54 = vsel %vm4614_vm5, 1.0, %v11652_v52  ;;  %v5435_v57 = vsel %vm4613_vm11, 1.0, %v11652_v52  ;;  %4853 = vmatprep.subr.mxu1 %v4808_v20  ;;  %v11702_v20 = vld [vmem:[#allocation13_spill] sm:$0xff] }
 0x8c1   : > { %v4806_v37 = vadd.f32 %v5436_v54, %v11693_v49  ;;  %v4805_v17 = vadd.f32 %v5435_v57, %v11694_v23  ;;  %v11703_v44 = vld [vmem:[#allocation117_spill] sm:$0xff]  ;;  %v4396_v57 = vcvt.f32.s32 %v10077_v22 }
 0x8c2   : > { %v4478_v25 = vadd.s32 %v4477_v5, %v4475_v27  ;;  %v11704_v27 = vld [vmem:[#allocation16_spill] sm:$0xff] }
 0x8c3   : > { %v4458_v56 = vpop.xlane.xlu0 %4457  ;;  %4854 = vmatpush2.xpose.msra.mxu1 %v4807_v46  ;;  %v4397_v49 = vshll.u32 %v4396_v57, 16 }
 0x8c4   : > { %vm4611_vm7 = vcmp.eq.s32.totalorder %v5950_v53, %v4478_v25  ;;  %vm4612_vm2 = vcmp.eq.s32.totalorder %v5953_v26, %v4478_v25  ;;  %v4459_v39 = vcvt.f32.s32 %v4458_v56  ;;  %4855 = vmatprep.subr.mxu1 %v4806_v37 }
 0x8c5   : > { %v5434_v35 = vsel %vm4612_vm2, 1.0, %v11652_v52  ;;  %v5433_v55 = vsel %vm4611_vm7, 1.0, %v11652_v52 }
 0x8c6   : > { %v4462_v19 = vadd.s32 %v4461_v15, %v4459_v39  ;;  %v4804_v6 = vadd.f32 %v5434_v35, %v11695_v0  ;;  %v4803_v7 = vadd.f32 %v5433_v55, %v11696_v3  ;;  %v11706_v35 = vld [vmem:[#allocation12_spill] sm:$0xff] }
 0x8c7   : > { %4856 = vmatpush2.xpose.msra.mxu1 %v4805_v17  ;;  %v4380_v17 = vcvt.f32.s32 %v10094_v45  ;;  %v4364_v45 = vcvt.f32.s32 %v10113_v32  ;;  %v4348_v32 = vcvt.f32.s32 %v10132_v8  ;;  %v4332_v8 = vcvt.f32.s32 %v10151_v9 }
 0x8c8   : > { %v4442_v48 = vpop.xlane.xlu1 %4441  ;;  %vm4609_vm0 = vcmp.eq.s32.totalorder %v5950_v53, %v4462_v19  ;;  %vm4610_vm9 = vcmp.eq.s32.totalorder %v5953_v26, %v4462_v19  ;;  %4857 = vmatprep.subr.mxu1 %v4804_v6  ;;  %v4316_v9 = vcvt.f32.s32 %v10169_v50 }
 0x8c9   : > { %v4443_v43 = vcvt.f32.s32 %v4442_v48  ;;  %v5432_v60 = vsel %vm4610_vm9, 1.0, %v11652_v52  ;;  %v5431_v51 = vsel %vm4609_vm0, 1.0, %v11652_v52  ;;  %v4381_v22 = vshll.u32 %v4380_v17, 16  ;;  %v5516_v17 = vld [vmem:[%s5685_s7] sm:$0x1f]  ;;  %s5517_s7 = scalar_lea.vmem %s5076_s26, 256 }
 0x8ca   : > { %v4802_v2 = vadd.f32 %v5432_v60, %v11697_v11  ;;  %v4801_v16 = vadd.f32 %v5431_v51, %v11698_v58  ;;  %v4365_v51 = vshll.u32 %v4364_v45, 16  ;;  %p5518_p12 = scmp.ne.s32.totalorder %s5076_s26, %s5517_s7  ;;  %p5525_p2 = scmp.lt.s32.totalorder %s5523_s9, %s5517_s7 }
 0x8cb   : > { %v4446_v62 = vadd.s32 %v4445_v24, %v4443_v43  ;;  %4858 = vmatpush2.xpose.msra.mxu1 %v4803_v7  ;;  %v11708_v24 = vld [vmem:[#allocation118_spill] sm:$0xff] }
 0x8cc   : > { %v4426_v21 = vpop.xlane.xlu0 %4425  ;;  %4859 = vmatprep.subr.mxu1 %v4802_v2  ;;  %p5519_p13 = pnand %p5518_p12, %p5663_p4  ;;  %p5526_p3 = por %p5525_p2, %p5524_p1 }
 0x8cd   : > { %vm4607_vm12 = vcmp.eq.s32.totalorder %v5950_v53, %v4446_v62  ;;  %vm4608_vm10 = vcmp.eq.s32.totalorder %v5953_v26, %v4446_v62  ;;  %v4427_v28 = vcvt.f32.s32 %v4426_v21  ;;  %v11710_v21 = vld [vmem:[#allocation6_spill] sm:$0xff] }
 0x8ce   : > { %v5430_v59 = vsel %vm4608_vm10, 1.0, %v11652_v52  ;;  %v5429_v36 = vsel %vm4607_vm12, 1.0, %v11652_v52  ;;  %p5520_p0 = pneg %p5519_p13 }
 0x8cf   : > { %v4430_v33 = vadd.s32 %v4429_v34, %v4427_v28  ;;  %v4800_v18 = vadd.f32 %v5430_v59, %v11699_v31  ;;  %v4799_v13 = vadd.f32 %v5429_v36, %v11700_v38  ;;  %4860 = vmatpush2.xpose.msra.mxu1 %v4801_v16  ;;  %v11709_v16 = vld [vmem:[#allocation8_spill] sm:$0xff]  ;;  %v4349_v59 = vshll.u32 %v4348_v32, 16  ;;  %v11711_v38 = vld [vmem:[#allocation10_spill] sm:$0xff] }
 0x8d0   : > { %v4410_v40 = vpop.xlane.xlu1 %4409  ;;  %p5527_p5 = pnand %p5526_p3, %p5520_p0 }
 0x8d1   : > { %vm4605_vm8 = vcmp.eq.s32.totalorder %v5950_v53, %v4430_v33  ;;  %vm4606_vm13 = vcmp.eq.s32.totalorder %v5953_v26, %v4430_v33  ;;  %v4411_v1 = vcvt.f32.s32 %v4410_v40  ;;  %4861 = vmatprep.subr.mxu1 %v4800_v18  ;;  %v11712_v40 = vld [vmem:[#allocation79_spill] sm:$0xff] }
 0x8d2   : > { %v5428_v10 = vsel %vm4606_vm13, 1.0, %v11652_v52  ;;  %v5427_v29 = vsel %vm4605_vm8, 1.0, %v11652_v52  ;;  %vm11717_vm8 = vcmask 39936   ;;  %vm11718_vm13 = vcmask 1044480  }
 0x8d3   : > { %v4414_v47 = vadd.s32 %v4413_v63, %v4411_v1  ;;  %v4798_v42 = vadd.f32 %v5428_v10, %v11701_v41  ;;  %v4797_v14 = vadd.f32 %v5427_v29, %v11702_v20  ;;  %4862 = vmatpush2.xpose.msra.mxu1 %v4799_v13  ;;  %v4333_v10 = vshll.u32 %v4332_v8, 16 }
 0x8d5   : > { %vm4603_vm14 = vcmp.eq.s32.totalorder %v5950_v53, %v4414_v47  ;;  %vm4604_vm15 = vcmp.eq.s32.totalorder %v5953_v26, %v4414_v47  ;;  %4863 = vmatprep.subr.mxu1 %v4798_v42 }
 0x8d6   : > { %v5426_v46 = vsel %vm4604_vm15, 1.0, %v11652_v52  ;;  %v5425_v12 = vsel %vm4603_vm14, 1.0, %v11652_v52  ;;  %vm11719_vm14 = vmmov %vm11718_vm13 }
 0x8d7   : > { %v4796_v5 = vadd.f32 %v5426_v46, %v11703_v44  ;;  %v4795_v54 = vadd.f32 %v5425_v12, %v11704_v27  ;;  %4864 = vmatpush2.xpose.msra.mxu1 %v4797_v14  ;;  %v11713_v14 = vld [vmem:[#allocation60_spill] sm:$0xff]  ;;  %vm11720_vm15 = vmmov %vm11717_vm8 }
 0x8d8   : > { %v11714_v12 = vld [vmem:[#allocation124_spill] sm:$0xff] }
 0x8d9   : > { %4865 = vmatprep.subr.mxu1 %v4796_v5  ;;  %v4317_v5 = vshll.u32 %v4316_v9, 16 }
 0x8db   : > { %4866 = vmatpush2.xpose.msra.mxu1 %v4795_v54 }
 0x8f7   : > { %v4394_v25 = vpop.xlane.xlu0 %4393 }
 0x8f8   : > { %v4395_v37 = vcvt.f32.s32 %v4394_v25  ;;  %v11715_v25 = vld [vmem:[#allocation62_spill] sm:$0xff] }
 0x8fa   : > { %v4398_v23 = vadd.s32 %v4397_v49, %v4395_v37  ;;  %v11716_v37 = vld [vmem:[#allocation87_spill] sm:$0xff] }
 0x8fc   : > { %vm4601_vm1 = vcmp.eq.s32.totalorder %v5950_v53, %v4398_v23  ;;  %vm4602_vm3 = vcmp.eq.s32.totalorder %v5953_v26, %v4398_v23 }
 0x8fd   : > { %v5424_v15 = vsel %vm4602_vm3, 1.0, %v11652_v52  ;;  %v5423_v56 = vsel %vm4601_vm1, 1.0, %v11652_v52 }
 0x8fe   : > { %v4794_v39 = vadd.f32 %v5424_v15, %v11705_v61  ;;  %v4793_v55 = vadd.f32 %v5423_v56, %v11706_v35  ;;  %v5596_v15 = vmov 0  }
 0x8ff   : > { %v4378_v19 = vpop.xlane.xlu1 %4377  ;;  %5515 = vset.pattern.permute.xlu0 %v5596_v15 }
 0x900   : > { %v4379_v0 = vcvt.f32.s32 %v4378_v19  ;;  %4867 = vmatprep.subr.mxu1 %v4794_v39 }
 0x901   : > { %4868 = vmatpush2.xpose.msra.mxu1 %v4793_v55 }
 0x902   : > { %v4382_v6 = vadd.s32 %v4381_v22, %v4379_v0 }
 0x904   : > { %vm4599_vm4 = vcmp.eq.s32.totalorder %v5950_v53, %v4382_v6  ;;  %vm4600_vm6 = vcmp.eq.s32.totalorder %v5953_v26, %v4382_v6 }
 0x905   : > { %v5422_v3 = vsel %vm4600_vm6, 1.0, %v11652_v52  ;;  %v5421_v7 = vsel %vm4599_vm4, 1.0, %v11652_v52 }
 0x906   : > { %v4792_v48 = vadd.f32 %v5422_v3, %v11707_v30  ;;  %v4791_v43 = vadd.f32 %v5421_v7, %v11708_v24 }
 0x907   : > { %v4362_v60 = vpop.xlane.xlu0 %4361 }
 0x908   : > { %v4363_v62 = vcvt.f32.s32 %v4362_v60  ;;  %4869 = vmatprep.subr.mxu1 %v4792_v48 }
 0x909   : > { %4870 = vmatpush2.xpose.msra.mxu1 %v4791_v43 }
 0x90a   : > { %v4366_v11 = vadd.s32 %v4365_v51, %v4363_v62 }
 0x90c   : > { %vm4597_vm11 = vcmp.eq.s32.totalorder %v5950_v53, %v4366_v11  ;;  %vm4598_vm5 = vcmp.eq.s32.totalorder %v5953_v26, %v4366_v11 }
 0x90d   : > { %v5420_v2 = vsel %vm4598_vm5, 1.0, %v11652_v52  ;;  %v5419_v58 = vsel %vm4597_vm11, 1.0, %v11652_v52 }
 0x90e   : > { %v4790_v34 = vadd.f32 %v5420_v2, %v11709_v16  ;;  %v4789_v4 = vadd.f32 %v5419_v58, %v11710_v21 }
 0x910   : > { %v4346_v28 = vpop.xlane.xlu1 %4345  ;;  %4871 = vmatprep.subr.mxu1 %v4790_v34 }
 0x911   : > { %v4347_v36 = vcvt.f32.s32 %v4346_v28  ;;  %4872 = vmatpush2.xpose.msra.mxu1 %v4789_v4 }
 0x913   : > { %v4350_v33 = vadd.s32 %v4349_v59, %v4347_v36 }
 0x915   : > { %vm4595_vm7 = vcmp.eq.s32.totalorder %v5950_v53, %v4350_v33  ;;  %vm4596_vm2 = vcmp.eq.s32.totalorder %v5953_v26, %v4350_v33 }
 0x916   : > { %v5418_v31 = vsel %vm4596_vm2, 1.0, %v11652_v52  ;;  %v5417_v18 = vsel %vm4595_vm7, 1.0, %v11652_v52 }
 0x917   : > { %v4788_v13 = vadd.f32 %v5418_v31, %v11711_v38  ;;  %v4787_v63 = vadd.f32 %v5417_v18, %v11712_v40 }
 0x918   : > { %v4330_v1 = vpop.xlane.xlu0 %4329 }
 0x919   : > { %v4331_v29 = vcvt.f32.s32 %v4330_v1  ;;  %4873 = vmatprep.subr.mxu1 %v4788_v13 }
 0x91a   : > { %4874 = vmatpush2.xpose.msra.mxu1 %v4787_v63 }
 0x91b   : > { %v4334_v47 = vadd.s32 %v4333_v10, %v4331_v29 }
 0x91d   : > { %vm4593_vm0 = vcmp.eq.s32.totalorder %v5950_v53, %v4334_v47  ;;  %vm4594_vm9 = vcmp.eq.s32.totalorder %v5953_v26, %v4334_v47 }
 0x91e   : > { %v5416_v41 = vsel %vm4594_vm9, 1.0, %v11652_v52  ;;  %v5415_v42 = vsel %vm4593_vm0, 1.0, %v11652_v52 }
 0x91f   : > { %v4786_v46 = vadd.f32 %v5416_v41, %v11713_v14  ;;  %v4785_v44 = vadd.f32 %v5415_v42, %v11714_v12 }
 0x920   : > { %v4314_v20 = vpop.xlane.xlu1 %4313 }
 0x921   : > { %v4315_v27 = vcvt.f32.s32 %v4314_v20  ;;  %4875 = vmatprep.subr.mxu1 %v4786_v46 }
 0x922   : > { %4876 = vmatpush2.xpose.msra.mxu1 %v4785_v44 }
 0x923   : > { %v4318_v54 = vadd.s32 %v4317_v5, %v4315_v27 }
 0x925   : > { %vm4591_vm12 = vcmp.eq.s32.totalorder %v5950_v53, %v4318_v54  ;;  %vm4592_vm10 = vcmp.eq.s32.totalorder %v5953_v26, %v4318_v54  ;;  %v4887_v53 = vld [vmem:[%s10365_s2] sm:$0xff] }
 0x926   : > { %v5413_v50 = vsel %vm4591_vm12, 1.0, %v11652_v52  ;;  %v5414_v57 = vsel %vm4592_vm10, 1.0, %v11652_v52  ;;  %5447 = vmatmul.mubr.msk.f32.vlgmr.msra.gmra.mxu0 %vm11717_vm8, %v4887_v53  ;;  %v5048_v26 = vld [vmem:[%s10366_s3] sm:$0xff] }
 0x927   : > { %v4784_v49 = vadd.f32 %v5414_v57, %v11715_v25  ;;  %v4783_v23 = vadd.f32 %v5413_v50, %v11716_v37  ;;  %5051 = vperm.xlu0 %5515, %v5048_v26  }
 0x929   : > { %4877 = vmatprep.subr.mxu1 %v4784_v49 }
 0x92a   : > { %4878 = vmatpush2.xpose.msra.mxu1 %v4783_v23 }
 0x92d   : > { %4880 = vmatmul.mubr.f32.vlgmr.msra.gmra.mxu1 %v5516_v17 }
 0x92e   : > { %5041 = vmatprep.mubr.f32.mxu1 %v11652_v52  ;;  %v4886_v52 = vld [vmem:[%s10364_s1] sm:$0xff] }
 0x9a2   : > { %v5052_v55 = vpop.permute.xlu0 %5051 }
 0x9e6   : > { %v4963_v39 = vpop.f32.mrf.mxu0 }
 0x9e8   : > { %v4965_v22 = vpop.f32.mrf.mxu0 }
 0x9ed   : > { %v4881_v56 = vpop.f32.mrf.mxu1 }
 0x9ef   : > { %v4883_v61 = vpop.f32.mrf.mxu1 }
 0x9f0   : > { %5448 = vmatprep.subr.msk.mxu1 %vm11718_vm13, %v4883_v61 }
 0x9f1   : > { %5449 = vmatpush1.msk.msra.mxu1 %vm11719_vm14, %v4881_v56 }
 0x9f2   : > { %5450 = vmatmul.mubr.msk.f32.vlgmr.msra.gmra.mxu1 %vm11720_vm15, %v4886_v52 }
 0xab2   : > { %v5043_v35 = vpop.f32.mrf.mxu1 }
 0xab3   : > { %v5044_v19 = vadd.f32 %v5043_v35, %v4963_v39 }
 0xab4   : > { %v5045_v0 = vpop.f32.mrf.mxu1 }
 0xab5   : > { %v5046_v6 = vadd.f32 %v5045_v0, %v4965_v22  ;;  %v5054_v45 = vadd.f32 %v5052_v55, %v5044_v19 }
 0xab7   : > { %v5055_v3 = vadd.f32 %v5052_v55, %v5046_v6  ;;  %5056 = vst [vmem:[%s204_s24] sm:$0xff] %v5054_v45 }
 0xab9   : > { %5057 = vst [vmem:[%s204_s24 + $0x8] sm:$0xff] %v5055_v3 }
 0xaba   : > { %5530 = shalt.err (!%p5527_p5)
}
 0xabb   : > { %s5531_s10 = scalar_lea.hbm %s5073_s5, 256  ;;  %s5535_s13 = scalar_lea.hbm %s10367_s4, 512 }
 0xabc   : > { %p5532_p6 = scmp.ne.s32.totalorder %s5073_s5, %s5531_s10  ;;  %p5536_p10 = scmp.lt.s32.totalorder %s5073_s5, %s10367_s4 }
 0xabd   : > { %p5537_p11 = scmp.lt.s32.totalorder %s5535_s13, %s5531_s10 }
 0xabe   : > { %p5533_p7 = pnand %p5532_p6, %p5663_p4 }
 0xabf   : > { %p5538_p12 = por %p5537_p11, %p5536_p10 }
 0xac0   : > { %p5534_p9 = pneg %p5533_p7 }
 0xac2   : > { %p5539_p13 = pnand %p5538_p12, %p5534_p9 }
 0xac4   : > { %5542 = shalt.err (!%p5539_p13)
}
 0xac5   : > { %5458 = dma.vmem_to_hbm [thread:$0]  (%p5663_p4), %s5076_s26, 256, %s5073_s5, %s5059_s6  }
 0xac6 PF: > { %p5464_p0 = scmp.ge.s32.totalorder %s5593_s20, 2  ;;  %s5087_s22 = sand.u32 1, %s5573_s15  }
 0xac7   : > { %s5088_s24 = scalar_lea.sflag [#allocation3], %s5087_s22 }
 0xac8   : > { %p5461_p1 = pnand %p5464_p0, %p5670_p8 }
 0xaca   : > { %p5462_p2 = pneg %p5461_p1 }
 0xacc   : > { %5568 = dma.done.wait (%p5462_p2), %s5088_s24, 256  }
 0xacd   : > { %5570 = vsyncadd (%p5462_p2), %s5088_s24, 4294967040  ;;  %s17_s20 = sadd.s32 1, %s5593_s20   ;;  %s11721_s15 = smov %s5577_s16 }
 0xace   : > { %p14_p3 = scmp.ge.s32.totalorder %s17_s20, 4   ;;  %s11722_s16 = smov %s5581_s17 }
 0xacf   : > { %s11723_s17 = smov %s5676_s28  ;;  %s11724_s18 = smov %s5589_s19 }
 0xad0   : > { %s11725_s19 = smov %s11727_s23  ;;  %16 = sbr.rel (!%p14_p3) target bundleno = 4 (0x4), region = 72 }
 0xad5   :  { %5093 = vsyncpa [#allocation3], 1 }
 0xad6   :  { %5095 = vsyncpa [#allocation3 + $0x1], 1 }

</bundles_post_ra>
